<compile_context>
chip_gen: v6e
topology: v6e:2x2x1
jax: 0.10.0
libtpu: 0.0.40
codegen_flags: <defaults>
</compile_context>

<pallas_src>
import jax
import jax.numpy as jnp
from jax.experimental import pallas as pl
from jax.experimental.pallas import tpu as pltpu

F32 = jnp.float32

# Raise for realistic MelNet shapes (e.g. ~100 MiB on v5e/v6e, <=48 MiB on
# v7x); None keeps the per-generation default scoped VMEM limit.
VMEM_LIMIT_BYTES = None

MAX_TIME_BLOCK = 64    # block over T for the frequency-direction kernels
MAX_FREQ_BLOCK = 128   # block over M for the time-direction GRU


# --------------------------------------------------------------------------
# Small helpers
# --------------------------------------------------------------------------
def _cparams(*dim_sems):
    kwargs = {}
    if dim_sems:
        kwargs["dimension_semantics"] = dim_sems
    if VMEM_LIMIT_BYTES is not None:
        kwargs["vmem_limit_bytes"] = VMEM_LIMIT_BYTES
    return pltpu.CompilerParams(**kwargs)


def _const_spec(shape):
    """Full-array block with a constant index map (weights / biases)."""
    nd = len(shape)
    return pl.BlockSpec(shape, lambda *_, _nd=nd: (0,) * _nd)


def _pick_block(n, max_block):
    """Largest block <= max_block that divides n and is a multiple of 8
    (sublane constraint) or the full dimension."""
    if n <= max_block:
        return n
    best = None
    for b in range(8, max_block + 1, 8):
        if n % b == 0:
            best = b
    return best if best is not None else n


def _loop(n, body, init):
    """Fully unroll short recurrences (LLO scheduler visibility across steps);
    keep long ones rolled to bound code size."""
    if n <= 16:
        carry = init
        for i in range(n):
            carry = body(i, carry)
        return carry
    return jax.lax.fori_loop(0, n, body, init)


def _gru_gates(xg, hg, h, d):
    # PyTorch GRU cell with fused [r|z|n] gates; b_hn stays inside the r* term.
    r = jax.nn.sigmoid(xg[:, :d] + hg[:, :d])
    z = jax.nn.sigmoid(xg[:, d:2 * d] + hg[:, d:2 * d])
    n = jnp.tanh(xg[:, 2 * d:] + r * hg[:, 2 * d:])
    return (1.0 - z) * n + z * h


# --------------------------------------------------------------------------
# Pallas kernels
# --------------------------------------------------------------------------
def input_kernel(xc_ref, xt_ref, xf_ref,
                 wt_ref, bt_ref, wf_ref, bf_ref, wc_ref, bc_ref,
                 time_ref, freq_ref, central_ref):
    # xc: (bt, M) time-shifted frames; xt/xf: (bt, M, 1) same data with a
    # trailing lane-1 axis so the Linear(1, D) embeds are pure lane broadcasts.
    d = wt_ref.shape[1]
    wt = wt_ref[...].reshape(1, 1, d)
    bt = bt_ref[...].reshape(1, 1, d)
    wf = wf_ref[...].reshape(1, 1, d)
    bf = bf_ref[...].reshape(1, 1, d)
    time_ref[...] = xt_ref[...] * wt + bt                 # time_input
    freq_ref[...] = xf_ref[...] * wf + bf                 # freq_input
    central_ref[...] = (                                   # central_input
        jnp.dot(xc_ref[...], wc_ref[...], preferred_element_type=F32)
        + bc_ref[...])


def time_gru_kernel(x_ref, wi_ref, wh_ref, bi_ref, bh_ref, y_ref, xg_ref):
    # x/y: (T, bm, D); xg scratch: (T, bm, 3D).  TimeDelayedStack.time_rnn.
    t_len, bm, d = x_ref.shape
    # Hoisted input projection: one (T*bm, D) @ (D, 3D) GEMM for all steps.
    xg_ref[...] = (
        jnp.dot(x_ref[...].reshape(t_len * bm, d), wi_ref[...],
                preferred_element_type=F32) + bi_ref[...]
    ).reshape(t_len, bm, 3 * d)

    def step(t, h):
        hg = jnp.dot(h, wh_ref[...], preferred_element_type=F32) + bh_ref[...]
        h = _gru_gates(xg_ref[t], hg, h, d)
        y_ref[t] = h
        return h

    _loop(t_len, step, jnp.zeros((bm, d), F32))


def time_stack_kernel(x_ref, x1_ref,
                      wif_ref, whf_ref, bif_ref, bhf_ref,
                      wib_ref, whb_ref, bib_ref, bhb_ref,
                      wo1_ref, wof_ref, wob_ref, bo_ref,
                      out_ref,
                      xgf_ref, xgb_ref, yf_ref, yb_ref):
    # x/x1/out: (bt, M, D).  Bidirectional frequency GRU of TimeDelayedStack
    # (fwd + bwd in one loop, reverse handled in-kernel) fused with the
    # 3D->D time_out linear + residual, without materializing the concat.
    bt, m_len, d = x_ref.shape
    xt = jnp.transpose(x_ref[...], (1, 0, 2)).reshape(m_len * bt, d)
    xgf_ref[...] = (jnp.dot(xt, wif_ref[...], preferred_element_type=F32)
                    + bif_ref[...]).reshape(m_len, bt, 3 * d)
    xgb_ref[...] = (jnp.dot(xt, wib_ref[...], preferred_element_type=F32)
                    + bib_ref[...]).reshape(m_len, bt, 3 * d)

    def step(m, carry):
        hf, hb = carry
        hgf = (jnp.dot(hf, whf_ref[...], preferred_element_type=F32)
               + bhf_ref[...])
        hf = _gru_gates(xgf_ref[m], hgf, hf, d)
        yf_ref[m] = hf
        mb = m_len - 1 - m
        hgb = (jnp.dot(hb, whb_ref[...], preferred_element_type=F32)
               + bhb_ref[...])
        hb = _gru_gates(xgb_ref[mb], hgb, hb, d)
        yb_ref[mb] = hb
        return hf, hb

    h0 = jnp.zeros((bt, d), F32)
    _loop(m_len, step, (h0, h0))

    fb = (jnp.dot(yf_ref[...].reshape(m_len * bt, d), wof_ref[...],
                  preferred_element_type=F32)
          + jnp.dot(yb_ref[...].reshape(m_len * bt, d), wob_ref[...],
                    preferred_element_type=F32)).reshape(m_len, bt, d)
    upd = (jnp.dot(x1_ref[...].reshape(bt * m_len, d), wo1_ref[...],
                   preferred_element_type=F32)
           + bo_ref[...]).reshape(bt, m_len, d)
    out_ref[...] = x_ref[...] + upd + jnp.transpose(fb, (1, 0, 2))


def central_stack_kernel(x_ref, wi_ref, wh_ref, bi_ref, bh_ref,
                         wo_ref, bo_ref, out_ref, xg_ref, ys_ref):
    # x/out: (B, T, D); xg: (T, B, 3D); ys: (T, B, D).  GRU over T, batch B,
    # fused with central_out linear + residual.
    b, t_len, d = x_ref.shape
    xt = jnp.transpose(x_ref[...], (1, 0, 2)).reshape(t_len * b, d)
    xg_ref[...] = (jnp.dot(xt, wi_ref[...], preferred_element_type=F32)
                   + bi_ref[...]).reshape(t_len, b, 3 * d)

    def step(t, h):
        hg = jnp.dot(h, wh_ref[...], preferred_element_type=F32) + bh_ref[...]
        h = _gru_gates(xg_ref[t], hg, h, d)
        ys_ref[t] = h
        return h

    _loop(t_len, step, jnp.zeros((b, d), F32))

    upd = (jnp.dot(ys_ref[...].reshape(t_len * b, d), wo_ref[...],
                   preferred_element_type=F32) + bo_ref[...]).reshape(t_len, b, d)
    out_ref[...] = x_ref[...] + jnp.transpose(upd, (1, 0, 2))


def freq_stack_kernel(xtime_ref, xfreq_ref, xc_ref,
                      wi_ref, wh_ref, bi_ref, bh_ref,
                      wo_ref, bo_ref, out_ref, xg_ref, ys_ref):
    # xtime/xfreq/out: (bt, M, D); xc: (bt, D).  Builds the frequency-delayed
    # stack input, runs the freq GRU over M, fuses freq_out + residual.
    bt, m_len, d = xtime_ref.shape
    xs = xtime_ref[...] + xfreq_ref[...] + xc_ref[...][:, None, :]
    xt = jnp.transpose(xs, (1, 0, 2)).reshape(m_len * bt, d)
    xg_ref[...] = (jnp.dot(xt, wi_ref[...], preferred_element_type=F32)
                   + bi_ref[...]).reshape(m_len, bt, 3 * d)

    def step(m, h):
        hg = jnp.dot(h, wh_ref[...], preferred_element_type=F32) + bh_ref[...]
        h = _gru_gates(xg_ref[m], hg, h, d)
        ys_ref[m] = h
        return h

    _loop(m_len, step, jnp.zeros((bt, d), F32))

    upd = (jnp.dot(ys_ref[...].reshape(m_len * bt, d), wo_ref[...],
                   preferred_element_type=F32) + bo_ref[...]).reshape(m_len, bt, d)
    out_ref[...] = xfreq_ref[...] + jnp.transpose(upd, (1, 0, 2))


def head_kernel(x_ref, w_ref, b_ref, out_ref):
    # x: (bt, M, D); w: (D, 3K) laid out [mu | sigma | pi]; out: (bt, M, 3K).
    bt, m_len, d = x_ref.shape
    k = w_ref.shape[1] // 3
    g = (jnp.dot(x_ref[...].reshape(bt * m_len, d), w_ref[...],
                 preferred_element_type=F32) + b_ref[...])
    mu = g[:, :k]
    s = g[:, k:2 * k]
    p = g[:, 2 * k:]
    # elu(s) + 1 with the exp argument clamped (no overflow on unselected lane)
    sigma = jnp.where(s > 0.0, s, jnp.exp(jnp.minimum(s, 0.0)) - 1.0) + 1.0
    pmax = jnp.max(p, axis=-1, keepdims=True)
    lse = jnp.log(jnp.sum(jnp.exp(p - pmax), axis=-1, keepdims=True)) + pmax
    out_ref[...] = jnp.concatenate([mu, sigma, p - lse], axis=-1).reshape(
        bt, m_len, 3 * k)


# --------------------------------------------------------------------------
# pallas_call wrappers
# --------------------------------------------------------------------------
def input_stage(p, x_time_in, x_freq_in, bt):
    b, t_len, m_len = x_time_in.shape
    d = p["time_input"]["w"].shape[1]
    grid = (b, t_len // bt)
    io4 = pl.BlockSpec((None, bt, m_len, d), lambda i, j: (i, j, 0, 0))
    return pl.pallas_call(
        input_kernel,
        grid=grid,
        in_specs=[
            pl.BlockSpec((None, bt, m_len), lambda i, j: (i, j, 0)),
            pl.BlockSpec((None, bt, m_len, 1), lambda i, j: (i, j, 0, 0)),
            pl.BlockSpec((None, bt, m_len, 1), lambda i, j: (i, j, 0, 0)),
            _const_spec(p["time_input"]["w"].shape),
            _const_spec(p["time_input"]["b"].shape),
            _const_spec(p["freq_input"]["w"].shape),
            _const_spec(p["freq_input"]["b"].shape),
            _const_spec(p["central_input"]["w"].shape),
            _const_spec(p["central_input"]["b"].shape),
        ],
        out_specs=(io4, io4,
                   pl.BlockSpec((None, bt, d), lambda i, j: (i, j, 0))),
        out_shape=(jax.ShapeDtypeStruct((b, t_len, m_len, d), F32),
                   jax.ShapeDtypeStruct((b, t_len, m_len, d), F32),
                   jax.ShapeDtypeStruct((b, t_len, d), F32)),
        compiler_params=_cparams("parallel", "parallel"),
    )(x_time_in, x_time_in[..., None], x_freq_in[..., None],
      p["time_input"]["w"], p["time_input"]["b"],
      p["freq_input"]["w"], p["freq_input"]["b"],
      p["central_input"]["w"], p["central_input"]["b"])


def time_gru(rnn, x_time, bm):
    b, t_len, m_len, d = x_time.shape
    grid = (b, m_len // bm)
    spec = pl.BlockSpec((None, t_len, bm, d), lambda i, j: (i, 0, j, 0))
    return pl.pallas_call(
        time_gru_kernel,
        grid=grid,
        in_specs=[spec,
                  _const_spec(rnn["wi"].shape), _const_spec(rnn["wh"].shape),
                  _const_spec(rnn["bi"].shape), _const_spec(rnn["bh"].shape)],
        out_specs=spec,
        out_shape=jax.ShapeDtypeStruct((b, t_len, m_len, d), F32),
        scratch_shapes=[pltpu.VMEM((t_len, bm, 3 * d), F32)],
        compiler_params=_cparams("parallel", "parallel"),
    )(x_time, rnn["wi"], rnn["wh"], rnn["bi"], rnn["bh"])


def time_stack(lp, x_time, x1, bt):
    b, t_len, m_len, d = x_time.shape
    grid = (b, t_len // bt)
    io = pl.BlockSpec((None, bt, m_len, d), lambda i, j: (i, j, 0, 0))
    fwd, bwd, to = lp["bifreq_fwd"], lp["bifreq_bwd"], lp["time_out"]
    return pl.pallas_call(
        time_stack_kernel,
        grid=grid,
        in_specs=[io, io]
        + [_const_spec(fwd[k].shape) for k in ("wi", "wh", "bi", "bh")]
        + [_const_spec(bwd[k].shape) for k in ("wi", "wh", "bi", "bh")]
        + [_const_spec(to[k].shape) for k in ("w1", "wf", "wb", "b")],
        out_specs=io,
        out_shape=jax.ShapeDtypeStruct((b, t_len, m_len, d), F32),
        scratch_shapes=[pltpu.VMEM((m_len, bt, 3 * d), F32),
                        pltpu.VMEM((m_len, bt, 3 * d), F32),
                        pltpu.VMEM((m_len, bt, d), F32),
                        pltpu.VMEM((m_len, bt, d), F32)],
        compiler_params=_cparams("parallel", "parallel"),
    )(x_time, x1,
      fwd["wi"], fwd["wh"], fwd["bi"], fwd["bh"],
      bwd["wi"], bwd["wh"], bwd["bi"], bwd["bh"],
      to["w1"], to["wf"], to["wb"], to["b"])


def central_stack(lp, x_central):
    b, t_len, d = x_central.shape
    rnn, out = lp["central_rnn"], lp["central_out"]
    vspec = pl.BlockSpec(memory_space=pltpu.MemorySpace.VMEM)
    return pl.pallas_call(
        central_stack_kernel,
        in_specs=[vspec] * 7,
        out_specs=vspec,
        out_shape=jax.ShapeDtypeStruct((b, t_len, d), F32),
        scratch_shapes=[pltpu.VMEM((t_len, b, 3 * d), F32),
                        pltpu.VMEM((t_len, b, d), F32)],
        compiler_params=_cparams(),
    )(x_central, rnn["wi"], rnn["wh"], rnn["bi"], rnn["bh"],
      out["w"], out["b"])


def freq_stack(lp, x_time, x_freq, x_central, bt):
    b, t_len, m_len, d = x_time.shape
    grid = (b, t_len // bt)
    io = pl.BlockSpec((None, bt, m_len, d), lambda i, j: (i, j, 0, 0))
    cspec = pl.BlockSpec((None, bt, d), lambda i, j: (i, j, 0))
    rnn, out = lp["freq_rnn"], lp["freq_out"]
    return pl.pallas_call(
        freq_stack_kernel,
        grid=grid,
        in_specs=[io, io, cspec]
        + [_const_spec(rnn[k].shape) for k in ("wi", "wh", "bi", "bh")]
        + [_const_spec(out["w"].shape), _const_spec(out["b"].shape)],
        out_specs=io,
        out_shape=jax.ShapeDtypeStruct((b, t_len, m_len, d), F32),
        scratch_shapes=[pltpu.VMEM((m_len, bt, 3 * d), F32),
                        pltpu.VMEM((m_len, bt, d), F32)],
        compiler_params=_cparams("parallel", "parallel"),
    )(x_time, x_freq, x_central,
      rnn["wi"], rnn["wh"], rnn["bi"], rnn["bh"], out["w"], out["b"])


def mixture_head(hp, x_freq, bt):
    b, t_len, m_len, d = x_freq.shape
    k3 = hp["w"].shape[1]
    grid = (b, t_len // bt)
    return pl.pallas_call(
        head_kernel,
        grid=grid,
        in_specs=[pl.BlockSpec((None, bt, m_len, d), lambda i, j: (i, j, 0, 0)),
                  _const_spec(hp["w"].shape), _const_spec(hp["b"].shape)],
        out_specs=pl.BlockSpec((None, bt, m_len, k3), lambda i, j: (i, j, 0, 0)),
        out_shape=jax.ShapeDtypeStruct((b, t_len, m_len, k3), F32),
        compiler_params=_cparams("parallel", "parallel"),
    )(x_freq, hp["w"], hp["b"])


# --------------------------------------------------------------------------
# Parameter initialization (deterministic, synthetic)
# --------------------------------------------------------------------------
def _normal(key, shape, scale=0.1):
    return scale * jax.random.normal(key, shape, dtype=F32)


def init_linear(key, d_in, d_out):
    k1, k2 = jax.random.split(key)
    return {"w": _normal(k1, (d_in, d_out)), "b": _normal(k2, (1, d_out))}


def init_gru(key, width):
    ks = jax.random.split(key, 4)
    return {"wi": _normal(ks[0], (width, 3 * width)),   # fused [r|z|n] gates
            "wh": _normal(ks[1], (width, 3 * width)),
            "bi": _normal(ks[2], (1, 3 * width)),
            "bh": _normal(ks[3], (1, 3 * width))}


def init_params(key, width, n_freq, n_layers, n_mixtures):
    ctr = [0]

    def nk():
        ctr[0] += 1
        return jax.random.fold_in(key, ctr[0])

    params = {
        "freq_input": init_linear(nk(), 1, width),
        "time_input": init_linear(nk(), 1, width),
        "central_input": init_linear(nk(), n_freq, width),
        "layers": [],
        # head weight columns laid out [mu | sigma | pi] (equivalent
        # re-parametrization of W_out = Linear(width, 3*n_mixtures)).
        "head": {"w": _normal(nk(), (width, 3 * n_mixtures)),
                 "b": _normal(nk(), (1, 3 * n_mixtures))},
    }
    for _ in range(n_layers):
        kt = jax.random.split(nk(), 4)
        params["layers"].append({
            "time_rnn": init_gru(nk(), width),
            "bifreq_fwd": init_gru(nk(), width),
            "bifreq_bwd": init_gru(nk(), width),
            # time_out = Linear(3*width, width) split into the three DxD
            # blocks acting on [x1 | freq_fwd | freq_bwd] (no concat needed).
            "time_out": {"w1": _normal(kt[0], (width, width)),
                         "wf": _normal(kt[1], (width, width)),
                         "wb": _normal(kt[2], (width, width)),
                         "b": _normal(kt[3], (1, width))},
            "central_rnn": init_gru(nk(), width),
            "central_out": init_linear(nk(), width, width),
            "freq_rnn": init_gru(nk(), width),
            "freq_out": init_linear(nk(), width, width),
        })
    return params


# --------------------------------------------------------------------------
# Forward pass
# --------------------------------------------------------------------------
def initial_tier_forward(params, x):
    # x: (B, T, M) float32 mel frames.
    b, t_len, m_len = x.shape
    k = params["head"]["w"].shape[1] // 3

    # F.pad(x, [0, 0, 1, -1]) / F.pad(x, [1, -1]): shift along time / freq.
    x_time_in = jnp.pad(x, ((0, 0), (1, 0), (0, 0)))[:, :t_len, :]
    x_freq_in = jnp.pad(x, ((0, 0), (0, 0), (1, 0)))[:, :, :m_len]

    bt = _pick_block(t_len, MAX_TIME_BLOCK)
    bm = _pick_block(m_len, MAX_FREQ_BLOCK)

    x_time, x_freq, x_central = input_stage(params, x_time_in, x_freq_in, bt)

    # TODO(synk): entries / flag_lasts drive a cross-call hidden-state cache in
    # PyTorch; a single forward with fresh entries uses zero initial hidden
    # states, which is what the GRU kernels implement.
    for lp in params["layers"]:
        x1 = time_gru(lp["time_rnn"], x_time, bm)
        x_time = time_stack(lp, x_time, x1, bt)
        x_central = central_stack(lp, x_central)
        x_freq = freq_stack(lp, x_time, x_freq, x_central, bt)

    out = mixture_head(params["head"], x_freq, bt)
    mu = out[..., :k]
    sigma = out[..., k:2 * k]
    pi = out[..., 2 * k:]
    return mu, sigma, pi


# --------------------------------------------------------------------------
# Pure-JAX reference (for correctness checking only)
# --------------------------------------------------------------------------
def _gru_ref(x, p):
    # x: (N, L, D) batch-first, zero initial hidden -> (N, L, D)
    d = x.shape[-1]

    def cell(h, x_t):
        xg = x_t @ p["wi"] + p["bi"][0]
        hg = h @ p["wh"] + p["bh"][0]
        r = jax.nn.sigmoid(xg[:, :d] + hg[:, :d])
        z = jax.nn.sigmoid(xg[:, d:2 * d] + hg[:, d:2 * d])
        n = jnp.tanh(xg[:, 2 * d:] + r * hg[:, 2 * d:])
        h = (1.0 - z) * n + z * h
        return h, h

    h0 = jnp.zeros((x.shape[0], d), F32)
    _, ys = jax.lax.scan(cell, h0, jnp.swapaxes(x, 0, 1))
    return jnp.swapaxes(ys, 0, 1)


def initial_tier_reference(params, x):
    b, t_len, m_len = x.shape
    d = params["time_input"]["w"].shape[1]
    k = params["head"]["w"].shape[1] // 3
    x_time_in = jnp.pad(x, ((0, 0), (1, 0), (0, 0)))[:, :t_len, :]
    x_freq_in = jnp.pad(x, ((0, 0), (0, 0), (1, 0)))[:, :, :m_len]
    x_central = x_time_in @ params["central_input"]["w"] + params["central_input"]["b"]
    x_time = x_time_in[..., None] * params["time_input"]["w"] + params["time_input"]["b"]
    x_freq = x_freq_in[..., None] * params["freq_input"]["w"] + params["freq_input"]["b"]
    for lp in params["layers"]:
        tin = jnp.transpose(x_time, (0, 2, 1, 3)).reshape(b * m_len, t_len, d)
        x1 = _gru_ref(tin, lp["time_rnn"]).reshape(b, m_len, t_len, d)
        x1 = jnp.transpose(x1, (0, 2, 1, 3))
        fin = x_time.reshape(b * t_len, m_len, d)
        yf = _gru_ref(fin, lp["bifreq_fwd"]).reshape(b, t_len, m_len, d)
        yb = _gru_ref(fin[:, ::-1, :], lp["bifreq_bwd"])[:, ::-1, :]
        yb = yb.reshape(b, t_len, m_len, d)
        to = lp["time_out"]
        x_time = x_time + x1 @ to["w1"] + yf @ to["wf"] + yb @ to["wb"] + to["b"]
        xc = _gru_ref(x_central, lp["central_rnn"])
        x_central = x_central + xc @ lp["central_out"]["w"] + lp["central_out"]["b"]
        xs = x_time + x_freq + x_central[:, :, None, :]
        ys = _gru_ref(xs.reshape(b * t_len, m_len, d), lp["freq_rnn"])
        x_freq = x_freq + ys.reshape(b, t_len, m_len, d) @ lp["freq_out"]["w"] \
            + lp["freq_out"]["b"]
    g = x_freq @ params["head"]["w"] + params["head"]["b"]
    mu = g[..., :k]
    s = g[..., k:2 * k]
    sigma = jnp.where(s > 0.0, s, jnp.exp(jnp.minimum(s, 0.0)) - 1.0) + 1.0
    pi = jax.nn.log_softmax(g[..., 2 * k:], axis=-1)
    return mu, sigma, pi


# --------------------------------------------------------------------------
if __name__ == "__main__":
    B, T, M, WIDTH, N_LAYERS, N_MIX = 2, 8, 8, 32, 2, 4

    key = jax.random.PRNGKey(0)
    kp, kx = jax.random.split(key)
    params = init_params(kp, width=WIDTH, n_freq=M,
                         n_layers=N_LAYERS, n_mixtures=N_MIX)
    x = jax.random.normal(kx, (B, T, M), dtype=jnp.float32)

    fwd = jax.jit(initial_tier_forward)
    mu, sigma, pi = fwd(params, x)
    jax.block_until_ready((mu, sigma, pi))

    assert mu.shape == (B, T, M, N_MIX)
    assert sigma.shape == (B, T, M, N_MIX)
    assert pi.shape == (B, T, M, N_MIX)
    assert bool(jnp.all(sigma > 0.0))
    assert bool(jnp.allclose(jnp.sum(jnp.exp(pi), axis=-1), 1.0, atol=1e-4))

    # Numerical check against a pure-JAX reference of the same module.
    r_mu, r_sigma, r_pi = initial_tier_reference(params, x)
    assert bool(jnp.allclose(mu, r_mu, atol=2e-3, rtol=2e-3))
    assert bool(jnp.allclose(sigma, r_sigma, atol=2e-3, rtol=2e-3))
    assert bool(jnp.allclose(pi, r_pi, atol=2e-3, rtol=2e-3))

    print("KERNEL_OK")
</pallas_src>

<mosaic_0001>
module attributes {stable_mosaic.version = 11 : i64} {
  func.func @input_kernel(%arg0: i32, %arg1: i32, %arg2: memref<1x8x8xf32, #tpu.memory_space<vmem>>, %arg3: memref<1x8x8x1xf32, #tpu.memory_space<vmem>>, %arg4: memref<1x8x8x1xf32, #tpu.memory_space<vmem>>, %arg5: memref<1x32xf32, #tpu.memory_space<vmem>>, %arg6: memref<1x32xf32, #tpu.memory_space<vmem>>, %arg7: memref<1x32xf32, #tpu.memory_space<vmem>>, %arg8: memref<1x32xf32, #tpu.memory_space<vmem>>, %arg9: memref<8x32xf32, #tpu.memory_space<vmem>>, %arg10: memref<1x32xf32, #tpu.memory_space<vmem>>, %arg11: memref<1x8x8x32xf32, #tpu.memory_space<vmem>>, %arg12: memref<1x8x8x32xf32, #tpu.memory_space<vmem>>, %arg13: memref<1x8x32xf32, #tpu.memory_space<vmem>>) attributes {dimension_semantics = [#tpu.dimension_semantics<parallel>, #tpu.dimension_semantics<parallel>], iteration_bounds = array<i64: 2, 1>, scalar_prefetch = 0 : i64, scratch_operands = 0 : i64, tpu.core_type = #tpu.core_type<tc>, window_params = [{transform_indices = @transform_0, window_bounds = array<i64: 1, 8, 8>}, {transform_indices = @transform_1, window_bounds = array<i64: 1, 8, 8, 1>}, {transform_indices = @transform_2, window_bounds = array<i64: 1, 8, 8, 1>}, {pipeline_mode = #tpu.pipeline_mode<synchronous>, transform_indices = @transform_3, window_bounds = array<i64: 1, 32>}, {pipeline_mode = #tpu.pipeline_mode<synchronous>, transform_indices = @transform_4, window_bounds = array<i64: 1, 32>}, {pipeline_mode = #tpu.pipeline_mode<synchronous>, transform_indices = @transform_5, window_bounds = array<i64: 1, 32>}, {pipeline_mode = #tpu.pipeline_mode<synchronous>, transform_indices = @transform_6, window_bounds = array<i64: 1, 32>}, {pipeline_mode = #tpu.pipeline_mode<synchronous>, transform_indices = @transform_7, window_bounds = array<i64: 8, 32>}, {pipeline_mode = #tpu.pipeline_mode<synchronous>, transform_indices = @transform_8, window_bounds = array<i64: 1, 32>}, {transform_indices = @transform_9, window_bounds = array<i64: 1, 8, 8, 32>}, {transform_indices = @transform_10, window_bounds = array<i64: 1, 8, 8, 32>}, {transform_indices = @transform_11, window_bounds = array<i64: 1, 8, 32>}]} {
    %c0 = arith.constant 0 : index
    %c0_0 = arith.constant 0 : index
    %0 = vector.load %arg5[%c0, %c0_0] : memref<1x32xf32, #tpu.memory_space<vmem>>, vector<1x32xf32>
    %1 = vector.shape_cast %0 : vector<1x32xf32> to vector<1x1x32xf32>
    %c0_1 = arith.constant 0 : index
    %c0_2 = arith.constant 0 : index
    %2 = vector.load %arg6[%c0_1, %c0_2] : memref<1x32xf32, #tpu.memory_space<vmem>>, vector<1x32xf32>
    %3 = vector.shape_cast %2 : vector<1x32xf32> to vector<1x1x32xf32>
    %c0_3 = arith.constant 0 : index
    %c0_4 = arith.constant 0 : index
    %4 = vector.load %arg7[%c0_3, %c0_4] : memref<1x32xf32, #tpu.memory_space<vmem>>, vector<1x32xf32>
    %5 = vector.shape_cast %4 : vector<1x32xf32> to vector<1x1x32xf32>
    %c0_5 = arith.constant 0 : index
    %c0_6 = arith.constant 0 : index
    %6 = vector.load %arg8[%c0_5, %c0_6] : memref<1x32xf32, #tpu.memory_space<vmem>>, vector<1x32xf32>
    %7 = vector.shape_cast %6 : vector<1x32xf32> to vector<1x1x32xf32>
    %c0_7 = arith.constant 0 : index
    %c0_8 = arith.constant 0 : index
    %c0_9 = arith.constant 0 : index
    %c0_10 = arith.constant 0 : index
    %8 = vector.load %arg3[%c0_7, %c0_8, %c0_9, %c0_10] : memref<1x8x8x1xf32, #tpu.memory_space<vmem>>, vector<1x8x8x1xf32>
    %9 = vector.shape_cast %8 : vector<1x8x8x1xf32> to vector<8x8x1xf32>
    %10 = vector.broadcast %9 : vector<8x8x1xf32> to vector<8x8x32xf32>
    %11 = vector.broadcast %1 : vector<1x1x32xf32> to vector<8x8x32xf32>
    %12 = arith.mulf %10, %11 : vector<8x8x32xf32>
    %13 = vector.broadcast %3 : vector<1x1x32xf32> to vector<8x8x32xf32>
    %14 = arith.addf %12, %13 : vector<8x8x32xf32>
    %c0_11 = arith.constant 0 : index
    %c0_12 = arith.constant 0 : index
    %c0_13 = arith.constant 0 : index
    %c0_14 = arith.constant 0 : index
    %15 = vector.load %arg11[%c0_11, %c0_12, %c0_13, %c0_14] : memref<1x8x8x32xf32, #tpu.memory_space<vmem>>, vector<1x8x8x32xf32>
    %16 = vector.shape_cast %15 : vector<1x8x8x32xf32> to vector<8x8x32xf32>
    %17 = vector.shape_cast %14 : vector<8x8x32xf32> to vector<1x8x8x32xf32>
    tpu.vector_store %arg11[%c0_11, %c0_12, %c0_13, %c0_14], %17 {strides = array<i32>} : memref<1x8x8x32xf32, #tpu.memory_space<vmem>>, vector<1x8x8x32xf32>,
    %c0_15 = arith.constant 0 : index
    %c0_16 = arith.constant 0 : index
    %c0_17 = arith.constant 0 : index
    %c0_18 = arith.constant 0 : index
    %18 = vector.load %arg4[%c0_15, %c0_16, %c0_17, %c0_18] : memref<1x8x8x1xf32, #tpu.memory_space<vmem>>, vector<1x8x8x1xf32>
    %19 = vector.shape_cast %18 : vector<1x8x8x1xf32> to vector<8x8x1xf32>
    %20 = vector.broadcast %19 : vector<8x8x1xf32> to vector<8x8x32xf32>
    %21 = vector.broadcast %5 : vector<1x1x32xf32> to vector<8x8x32xf32>
    %22 = arith.mulf %20, %21 : vector<8x8x32xf32>
    %23 = vector.broadcast %7 : vector<1x1x32xf32> to vector<8x8x32xf32>
    %24 = arith.addf %22, %23 : vector<8x8x32xf32>
    %c0_19 = arith.constant 0 : index
    %c0_20 = arith.constant 0 : index
    %c0_21 = arith.constant 0 : index
    %c0_22 = arith.constant 0 : index
    %25 = vector.load %arg12[%c0_19, %c0_20, %c0_21, %c0_22] : memref<1x8x8x32xf32, #tpu.memory_space<vmem>>, vector<1x8x8x32xf32>
    %26 = vector.shape_cast %25 : vector<1x8x8x32xf32> to vector<8x8x32xf32>
    %27 = vector.shape_cast %24 : vector<8x8x32xf32> to vector<1x8x8x32xf32>
    tpu.vector_store %arg12[%c0_19, %c0_20, %c0_21, %c0_22], %27 {strides = array<i32>} : memref<1x8x8x32xf32, #tpu.memory_space<vmem>>, vector<1x8x8x32xf32>,
    %c0_23 = arith.constant 0 : index
    %c0_24 = arith.constant 0 : index
    %c0_25 = arith.constant 0 : index
    %28 = vector.load %arg2[%c0_23, %c0_24, %c0_25] : memref<1x8x8xf32, #tpu.memory_space<vmem>>, vector<1x8x8xf32>
    %29 = vector.shape_cast %28 : vector<1x8x8xf32> to vector<8x8xf32>
    %c0_26 = arith.constant 0 : index
    %c0_27 = arith.constant 0 : index
    %30 = vector.load %arg9[%c0_26, %c0_27] : memref<8x32xf32, #tpu.memory_space<vmem>>, vector<8x32xf32>
    %cst = arith.constant dense<0.000000e+00> : vector<8x32xf32>
    %31 = tpu.matmul %29, %30, %cst {dimension_numbers = #tpu.dot_dimension_numbers<[1], [0], [0], [1], [0, 0, 1, 1], [], []>} : vector<8x8xf32>, vector<8x32xf32>, vector<8x32xf32> -> vector<8x32xf32>
    %c0_28 = arith.constant 0 : index
    %c0_29 = arith.constant 0 : index
    %32 = vector.load %arg10[%c0_28, %c0_29] : memref<1x32xf32, #tpu.memory_space<vmem>>, vector<1x32xf32>
    %33 = vector.broadcast %32 : vector<1x32xf32> to vector<8x32xf32>
    %34 = arith.addf %31, %33 : vector<8x32xf32>
    %c0_30 = arith.constant 0 : index
    %c0_31 = arith.constant 0 : index
    %c0_32 = arith.constant 0 : index
    %35 = vector.load %arg13[%c0_30, %c0_31, %c0_32] : memref<1x8x32xf32, #tpu.memory_space<vmem>>, vector<1x8x32xf32>
    %36 = vector.shape_cast %35 : vector<1x8x32xf32> to vector<8x32xf32>
    %37 = vector.shape_cast %34 : vector<8x32xf32> to vector<1x8x32xf32>
    tpu.vector_store %arg13[%c0_30, %c0_31, %c0_32], %37 {strides = array<i32>} : memref<1x8x32xf32, #tpu.memory_space<vmem>>, vector<1x8x32xf32>,
    return
  }
  func.func @transform_0(%arg0: i32, %arg1: i32) -> (i32, i32, i32) {
    %c0_i32 = arith.constant 0 : i32
    %c0_i32_0 = arith.constant 0 : i32
    return %arg0, %arg1, %c0_i32 : i32, i32, i32
  }
  func.func @transform_1(%arg0: i32, %arg1: i32) -> (i32, i32, i32, i32) {
    %c0_i32 = arith.constant 0 : i32
    %c0_i32_0 = arith.constant 0 : i32
    %c0_i32_1 = arith.constant 0 : i32
    return %arg0, %arg1, %c0_i32, %c0_i32_0 : i32, i32, i32, i32
  }
  func.func @transform_2(%arg0: i32, %arg1: i32) -> (i32, i32, i32, i32) {
    %c0_i32 = arith.constant 0 : i32
    %c0_i32_0 = arith.constant 0 : i32
    %c0_i32_1 = arith.constant 0 : i32
    return %arg0, %arg1, %c0_i32, %c0_i32_0 : i32, i32, i32, i32
  }
  func.func @transform_3(%arg0: i32, %arg1: i32) -> (i32, i32) {
    %c0_i32 = arith.constant 0 : i32
    %c0_i32_0 = arith.constant 0 : i32
    %c0_i32_1 = arith.constant 0 : i32
    return %c0_i32, %c0_i32_0 : i32, i32
  }
  func.func @transform_4(%arg0: i32, %arg1: i32) -> (i32, i32) {
    %c0_i32 = arith.constant 0 : i32
    %c0_i32_0 = arith.constant 0 : i32
    %c0_i32_1 = arith.constant 0 : i32
    return %c0_i32, %c0_i32_0 : i32, i32
  }
  func.func @transform_5(%arg0: i32, %arg1: i32) -> (i32, i32) {
    %c0_i32 = arith.constant 0 : i32
    %c0_i32_0 = arith.constant 0 : i32
    %c0_i32_1 = arith.constant 0 : i32
    return %c0_i32, %c0_i32_0 : i32, i32
  }
  func.func @transform_6(%arg0: i32, %arg1: i32) -> (i32, i32) {
    %c0_i32 = arith.constant 0 : i32
    %c0_i32_0 = arith.constant 0 : i32
    %c0_i32_1 = arith.constant 0 : i32
    return %c0_i32, %c0_i32_0 : i32, i32
  }
  func.func @transform_7(%arg0: i32, %arg1: i32) -> (i32, i32) {
    %c0_i32 = arith.constant 0 : i32
    %c0_i32_0 = arith.constant 0 : i32
    %c0_i32_1 = arith.constant 0 : i32
    return %c0_i32, %c0_i32_0 : i32, i32
  }
  func.func @transform_8(%arg0: i32, %arg1: i32) -> (i32, i32) {
    %c0_i32 = arith.constant 0 : i32
    %c0_i32_0 = arith.constant 0 : i32
    %c0_i32_1 = arith.constant 0 : i32
    return %c0_i32, %c0_i32_0 : i32, i32
  }
  func.func @transform_9(%arg0: i32, %arg1: i32) -> (i32, i32, i32, i32) {
    %c0_i32 = arith.constant 0 : i32
    %c0_i32_0 = arith.constant 0 : i32
    %c0_i32_1 = arith.constant 0 : i32
    return %arg0, %arg1, %c0_i32, %c0_i32_0 : i32, i32, i32, i32
  }
  func.func @transform_10(%arg0: i32, %arg1: i32) -> (i32, i32, i32, i32) {
    %c0_i32 = arith.constant 0 : i32
    %c0_i32_0 = arith.constant 0 : i32
    %c0_i32_1 = arith.constant 0 : i32
    return %arg0, %arg1, %c0_i32, %c0_i32_0 : i32, i32, i32, i32
  }
  func.func @transform_11(%arg0: i32, %arg1: i32) -> (i32, i32, i32) {
    %c0_i32 = arith.constant 0 : i32
    %c0_i32_0 = arith.constant 0 : i32
    return %arg0, %arg1, %c0_i32 : i32, i32, i32
  }
}

module attributes {stable_mosaic.version = 11 : i64} {
  func.func @time_gru_kernel(%arg0: i32, %arg1: i32, %arg2: memref<1x8x8x32xf32, #tpu.memory_space<vmem>>, %arg3: memref<32x96xf32, #tpu.memory_space<vmem>>, %arg4: memref<32x96xf32, #tpu.memory_space<vmem>>, %arg5: memref<1x96xf32, #tpu.memory_space<vmem>>, %arg6: memref<1x96xf32, #tpu.memory_space<vmem>>, %arg7: memref<1x8x8x32xf32, #tpu.memory_space<vmem>>, %arg8: memref<8x8x96xf32, #tpu.memory_space<vmem>>) attributes {dimension_semantics = [#tpu.dimension_semantics<parallel>, #tpu.dimension_semantics<parallel>], iteration_bounds = array<i64: 2, 1>, scalar_prefetch = 0 : i64, scratch_operands = 1 : i64, tpu.core_type = #tpu.core_type<tc>, window_params = [{transform_indices = @transform_0, window_bounds = array<i64: 1, 8, 8, 32>}, {pipeline_mode = #tpu.pipeline_mode<synchronous>, transform_indices = @transform_1, window_bounds = array<i64: 32, 96>}, {pipeline_mode = #tpu.pipeline_mode<synchronous>, transform_indices = @transform_2, window_bounds = array<i64: 32, 96>}, {pipeline_mode = #tpu.pipeline_mode<synchronous>, transform_indices = @transform_3, window_bounds = array<i64: 1, 96>}, {pipeline_mode = #tpu.pipeline_mode<synchronous>, transform_indices = @transform_4, window_bounds = array<i64: 1, 96>}, {transform_indices = @transform_5, window_bounds = array<i64: 1, 8, 8, 32>}]} {
    %c0 = arith.constant 0 : index
    %c0_0 = arith.constant 0 : index
    %c0_1 = arith.constant 0 : index
    %c0_2 = arith.constant 0 : index
    %0 = vector.load %arg2[%c0, %c0_0, %c0_1, %c0_2] : memref<1x8x8x32xf32, #tpu.memory_space<vmem>>, vector<1x8x8x32xf32>
    %1 = vector.shape_cast %0 : vector<1x8x8x32xf32> to vector<8x8x32xf32>
    %2 = vector.shape_cast %1 : vector<8x8x32xf32> to vector<64x32xf32>
    %c0_3 = arith.constant 0 : index
    %c0_4 = arith.constant 0 : index
    %3 = vector.load %arg3[%c0_3, %c0_4] : memref<32x96xf32, #tpu.memory_space<vmem>>, vector<32x96xf32>
    %cst = arith.constant dense<0.000000e+00> : vector<64x96xf32>
    %4 = tpu.matmul %2, %3, %cst {dimension_numbers = #tpu.dot_dimension_numbers<[1], [0], [0], [1], [0, 0, 1, 1], [], []>} : vector<64x32xf32>, vector<32x96xf32>, vector<64x96xf32> -> vector<64x96xf32>
    %c0_5 = arith.constant 0 : index
    %c0_6 = arith.constant 0 : index
    %5 = vector.load %arg5[%c0_5, %c0_6] : memref<1x96xf32, #tpu.memory_space<vmem>>, vector<1x96xf32>
    %6 = vector.broadcast %5 : vector<1x96xf32> to vector<64x96xf32>
    %7 = arith.addf %4, %6 : vector<64x96xf32>
    %8 = vector.shape_cast %7 : vector<64x96xf32> to vector<8x8x96xf32>
    %c0_7 = arith.constant 0 : index
    %c0_8 = arith.constant 0 : index
    %c0_9 = arith.constant 0 : index
    %9 = vector.load %arg8[%c0_7, %c0_8, %c0_9] : memref<8x8x96xf32, #tpu.memory_space<vmem>>, vector<8x8x96xf32>
    tpu.vector_store %arg8[%c0_7, %c0_8, %c0_9], %8 {strides = array<i32>} : memref<8x8x96xf32, #tpu.memory_space<vmem>>, vector<8x8x96xf32>,
    %cst_10 = arith.constant 0.000000e+00 : f32
    %10 = vector.broadcast %cst_10 : f32 to vector<8x32xf32>
    %c0_11 = arith.constant 0 : index
    %c0_12 = arith.constant 0 : index
    %11 = vector.load %arg4[%c0_11, %c0_12] : memref<32x96xf32, #tpu.memory_space<vmem>>, vector<32x96xf32>
    %cst_13 = arith.constant dense<0.000000e+00> : vector<8x96xf32>
    %12 = tpu.matmul %10, %11, %cst_13 {dimension_numbers = #tpu.dot_dimension_numbers<[1], [0], [0], [1], [0, 0, 1, 1], [], []>} : vector<8x32xf32>, vector<32x96xf32>, vector<8x96xf32> -> vector<8x96xf32>
    %c0_14 = arith.constant 0 : index
    %c0_15 = arith.constant 0 : index
    %13 = vector.load %arg6[%c0_14, %c0_15] : memref<1x96xf32, #tpu.memory_space<vmem>>, vector<1x96xf32>
    %14 = vector.broadcast %13 : vector<1x96xf32> to vector<8x96xf32>
    %15 = arith.addf %12, %14 : vector<8x96xf32>
    %c0_16 = arith.constant 0 : index
    %c0_17 = arith.constant 0 : index
    %c0_18 = arith.constant 0 : index
    %16 = vector.load %arg8[%c0_16, %c0_17, %c0_18] : memref<8x8x96xf32, #tpu.memory_space<vmem>>, vector<1x8x96xf32>
    %17 = vector.shape_cast %16 : vector<1x8x96xf32> to vector<8x96xf32>
    %18 = vector.extract_strided_slice %17 {offsets = [0, 0], sizes = [8, 32], strides = [1, 1]} : vector<8x96xf32> to vector<8x32xf32>
    %19 = vector.extract_strided_slice %15 {offsets = [0, 0], sizes = [8, 32], strides = [1, 1]} : vector<8x96xf32> to vector<8x32xf32>
    %20 = arith.addf %18, %19 : vector<8x32xf32>
    %21 = arith.negf %20 : vector<8x32xf32>
    %22 = math.exp %21 : vector<8x32xf32>
    %cst_19 = arith.constant 1.000000e+00 : f32
    %23 = vector.broadcast %cst_19 : f32 to vector<8x32xf32>
    %24 = arith.addf %23, %22 : vector<8x32xf32>
    %25 = arith.divf %23, %24 : vector<8x32xf32>
    %26 = vector.extract_strided_slice %17 {offsets = [0, 32], sizes = [8, 32], strides = [1, 1]} : vector<8x96xf32> to vector<8x32xf32>
    %27 = vector.extract_strided_slice %15 {offsets = [0, 32], sizes = [8, 32], strides = [1, 1]} : vector<8x96xf32> to vector<8x32xf32>
    %28 = arith.addf %26, %27 : vector<8x32xf32>
    %29 = arith.negf %28 : vector<8x32xf32>
    %30 = math.exp %29 : vector<8x32xf32>
    %cst_20 = arith.constant 1.000000e+00 : f32
    %31 = vector.broadcast %cst_20 : f32 to vector<8x32xf32>
    %32 = arith.addf %31, %30 : vector<8x32xf32>
    %33 = arith.divf %31, %32 : vector<8x32xf32>
    %34 = vector.extract_strided_slice %17 {offsets = [0, 64], sizes = [8, 32], strides = [1, 1]} : vector<8x96xf32> to vector<8x32xf32>
    %35 = vector.extract_strided_slice %15 {offsets = [0, 64], sizes = [8, 32], strides = [1, 1]} : vector<8x96xf32> to vector<8x32xf32>
    %36 = arith.mulf %25, %35 : vector<8x32xf32>
    %37 = arith.addf %34, %36 : vector<8x32xf32>
    %38 = math.tanh %37 : vector<8x32xf32>
    %cst_21 = arith.constant 1.000000e+00 : f32
    %39 = vector.broadcast %cst_21 : f32 to vector<8x32xf32>
    %40 = arith.subf %39, %33 : vector<8x32xf32>
    %41 = arith.mulf %40, %38 : vector<8x32xf32>
    %42 = arith.mulf %33, %10 : vector<8x32xf32>
    %43 = arith.addf %41, %42 : vector<8x32xf32>
    %c0_22 = arith.constant 0 : index
    %c0_23 = arith.constant 0 : index
    %c0_24 = arith.constant 0 : index
    %c0_25 = arith.constant 0 : index
    %44 = vector.load %arg7[%c0_22, %c0_23, %c0_24, %c0_25] : memref<1x8x8x32xf32, #tpu.memory_space<vmem>>, vector<1x1x8x32xf32>
    %45 = vector.shape_cast %44 : vector<1x1x8x32xf32> to vector<8x32xf32>
    %46 = vector.shape_cast %43 : vector<8x32xf32> to vector<1x1x8x32xf32>
    tpu.vector_store %arg7[%c0_22, %c0_23, %c0_24, %c0_25], %46 {strides = array<i32>} : memref<1x8x8x32xf32, #tpu.memory_space<vmem>>, vector<1x1x8x32xf32>,
    %c0_26 = arith.constant 0 : index
    %c0_27 = arith.constant 0 : index
    %47 = vector.load %arg4[%c0_26, %c0_27] : memref<32x96xf32, #tpu.memory_space<vmem>>, vector<32x96xf32>
    %cst_28 = arith.constant dense<0.000000e+00> : vector<8x96xf32>
    %48 = tpu.matmul %43, %47, %cst_28 {dimension_numbers = #tpu.dot_dimension_numbers<[1], [0], [0], [1], [0, 0, 1, 1], [], []>} : vector<8x32xf32>, vector<32x96xf32>, vector<8x96xf32> -> vector<8x96xf32>
    %c0_29 = arith.constant 0 : index
    %c0_30 = arith.constant 0 : index
    %49 = vector.load %arg6[%c0_29, %c0_30] : memref<1x96xf32, #tpu.memory_space<vmem>>, vector<1x96xf32>
    %50 = vector.broadcast %49 : vector<1x96xf32> to vector<8x96xf32>
    %51 = arith.addf %48, %50 : vector<8x96xf32>
    %c1 = arith.constant 1 : index
    %c0_31 = arith.constant 0 : index
    %c0_32 = arith.constant 0 : index
    %52 = vector.load %arg8[%c1, %c0_31, %c0_32] : memref<8x8x96xf32, #tpu.memory_space<vmem>>, vector<1x8x96xf32>
    %53 = vector.shape_cast %52 : vector<1x8x96xf32> to vector<8x96xf32>
    %54 = vector.extract_strided_slice %53 {offsets = [0, 0], sizes = [8, 32], strides = [1, 1]} : vector<8x96xf32> to vector<8x32xf32>
    %55 = vector.extract_strided_slice %51 {offsets = [0, 0], sizes = [8, 32], strides = [1, 1]} : vector<8x96xf32> to vector<8x32xf32>
    %56 = arith.addf %54, %55 : vector<8x32xf32>
    %57 = arith.negf %56 : vector<8x32xf32>
    %58 = math.exp %57 : vector<8x32xf32>
    %cst_33 = arith.constant 1.000000e+00 : f32
    %59 = vector.broadcast %cst_33 : f32 to vector<8x32xf32>
    %60 = arith.addf %59, %58 : vector<8x32xf32>
    %61 = arith.divf %59, %60 : vector<8x32xf32>
    %62 = vector.extract_strided_slice %53 {offsets = [0, 32], sizes = [8, 32], strides = [1, 1]} : vector<8x96xf32> to vector<8x32xf32>
    %63 = vector.extract_strided_slice %51 {offsets = [0, 32], sizes = [8, 32], strides = [1, 1]} : vector<8x96xf32> to vector<8x32xf32>
    %64 = arith.addf %62, %63 : vector<8x32xf32>
    %65 = arith.negf %64 : vector<8x32xf32>
    %66 = math.exp %65 : vector<8x32xf32>
    %cst_34 = arith.constant 1.000000e+00 : f32
    %67 = vector.broadcast %cst_34 : f32 to vector<8x32xf32>
    %68 = arith.addf %67, %66 : vector<8x32xf32>
    %69 = arith.divf %67, %68 : vector<8x32xf32>
    %70 = vector.extract_strided_slice %53 {offsets = [0, 64], sizes = [8, 32], strides = [1, 1]} : vector<8x96xf32> to vector<8x32xf32>
    %71 = vector.extract_strided_slice %51 {offsets = [0, 64], sizes = [8, 32], strides = [1, 1]} : vector<8x96xf32> to vector<8x32xf32>
    %72 = arith.mulf %61, %71 : vector<8x32xf32>
    %73 = arith.addf %70, %72 : vector<8x32xf32>
    %74 = math.tanh %73 : vector<8x32xf32>
    %cst_35 = arith.constant 1.000000e+00 : f32
    %75 = vector.broadcast %cst_35 : f32 to vector<8x32xf32>
    %76 = arith.subf %75, %69 : vector<8x32xf32>
    %77 = arith.mulf %76, %74 : vector<8x32xf32>
    %78 = arith.mulf %69, %43 : vector<8x32xf32>
    %79 = arith.addf %77, %78 : vector<8x32xf32>
    %c0_36 = arith.constant 0 : index
    %c1_37 = arith.constant 1 : index
    %c0_38 = arith.constant 0 : index
    %c0_39 = arith.constant 0 : index
    %80 = vector.load %arg7[%c0_36, %c1_37, %c0_38, %c0_39] : memref<1x8x8x32xf32, #tpu.memory_space<vmem>>, vector<1x1x8x32xf32>
    %81 = vector.shape_cast %80 : vector<1x1x8x32xf32> to vector<8x32xf32>
    %82 = vector.shape_cast %79 : vector<8x32xf32> to vector<1x1x8x32xf32>
    tpu.vector_store %arg7[%c0_36, %c1_37, %c0_38, %c0_39], %82 {strides = array<i32>} : memref<1x8x8x32xf32, #tpu.memory_space<vmem>>, vector<1x1x8x32xf32>,
    %c0_40 = arith.constant 0 : index
    %c0_41 = arith.constant 0 : index
    %83 = vector.load %arg4[%c0_40, %c0_41] : memref<32x96xf32, #tpu.memory_space<vmem>>, vector<32x96xf32>
    %cst_42 = arith.constant dense<0.000000e+00> : vector<8x96xf32>
    %84 = tpu.matmul %79, %83, %cst_42 {dimension_numbers = #tpu.dot_dimension_numbers<[1], [0], [0], [1], [0, 0, 1, 1], [], []>} : vector<8x32xf32>, vector<32x96xf32>, vector<8x96xf32> -> vector<8x96xf32>
    %c0_43 = arith.constant 0 : index
    %c0_44 = arith.constant 0 : index
    %85 = vector.load %arg6[%c0_43, %c0_44] : memref<1x96xf32, #tpu.memory_space<vmem>>, vector<1x96xf32>
    %86 = vector.broadcast %85 : vector<1x96xf32> to vector<8x96xf32>
    %87 = arith.addf %84, %86 : vector<8x96xf32>
    %c2 = arith.constant 2 : index
    %c0_45 = arith.constant 0 : index
    %c0_46 = arith.constant 0 : index
    %88 = vector.load %arg8[%c2, %c0_45, %c0_46] : memref<8x8x96xf32, #tpu.memory_space<vmem>>, vector<1x8x96xf32>
    %89 = vector.shape_cast %88 : vector<1x8x96xf32> to vector<8x96xf32>
    %90 = vector.extract_strided_slice %89 {offsets = [0, 0], sizes = [8, 32], strides = [1, 1]} : vector<8x96xf32> to vector<8x32xf32>
    %91 = vector.extract_strided_slice %87 {offsets = [0, 0], sizes = [8, 32], strides = [1, 1]} : vector<8x96xf32> to vector<8x32xf32>
    %92 = arith.addf %90, %91 : vector<8x32xf32>
    %93 = arith.negf %92 : vector<8x32xf32>
    %94 = math.exp %93 : vector<8x32xf32>
    %cst_47 = arith.constant 1.000000e+00 : f32
    %95 = vector.broadcast %cst_47 : f32 to vector<8x32xf32>
    %96 = arith.addf %95, %94 : vector<8x32xf32>
    %97 = arith.divf %95, %96 : vector<8x32xf32>
    %98 = vector.extract_strided_slice %89 {offsets = [0, 32], sizes = [8, 32], strides = [1, 1]} : vector<8x96xf32> to vector<8x32xf32>
    %99 = vector.extract_strided_slice %87 {offsets = [0, 32], sizes = [8, 32], strides = [1, 1]} : vector<8x96xf32> to vector<8x32xf32>
    %100 = arith.addf %98, %99 : vector<8x32xf32>
    %101 = arith.negf %100 : vector<8x32xf32>
    %102 = math.exp %101 : vector<8x32xf32>
    %cst_48 = arith.constant 1.000000e+00 : f32
    %103 = vector.broadcast %cst_48 : f32 to vector<8x32xf32>
    %104 = arith.addf %103, %102 : vector<8x32xf32>
    %105 = arith.divf %103, %104 : vector<8x32xf32>
    %106 = vector.extract_strided_slice %89 {offsets = [0, 64], sizes = [8, 32], strides = [1, 1]} : vector<8x96xf32> to vector<8x32xf32>
    %107 = vector.extract_strided_slice %87 {offsets = [0, 64], sizes = [8, 32], strides = [1, 1]} : vector<8x96xf32> to vector<8x32xf32>
    %108 = arith.mulf %97, %107 : vector<8x32xf32>
    %109 = arith.addf %106, %108 : vector<8x32xf32>
    %110 = math.tanh %109 : vector<8x32xf32>
    %cst_49 = arith.constant 1.000000e+00 : f32
    %111 = vector.broadcast %cst_49 : f32 to vector<8x32xf32>
    %112 = arith.subf %111, %105 : vector<8x32xf32>
    %113 = arith.mulf %112, %110 : vector<8x32xf32>
    %114 = arith.mulf %105, %79 : vector<8x32xf32>
    %115 = arith.addf %113, %114 : vector<8x32xf32>
    %c0_50 = arith.constant 0 : index
    %c2_51 = arith.constant 2 : index
    %c0_52 = arith.constant 0 : index
    %c0_53 = arith.constant 0 : index
    %116 = vector.load %arg7[%c0_50, %c2_51, %c0_52, %c0_53] : memref<1x8x8x32xf32, #tpu.memory_space<vmem>>, vector<1x1x8x32xf32>
    %117 = vector.shape_cast %116 : vector<1x1x8x32xf32> to vector<8x32xf32>
    %118 = vector.shape_cast %115 : vector<8x32xf32> to vector<1x1x8x32xf32>
    tpu.vector_store %arg7[%c0_50, %c2_51, %c0_52, %c0_53], %118 {strides = array<i32>} : memref<1x8x8x32xf32, #tpu.memory_space<vmem>>, vector<1x1x8x32xf32>,
    %c0_54 = arith.constant 0 : index
    %c0_55 = arith.constant 0 : index
    %119 = vector.load %arg4[%c0_54, %c0_55] : memref<32x96xf32, #tpu.memory_space<vmem>>, vector<32x96xf32>
    %cst_56 = arith.constant dense<0.000000e+00> : vector<8x96xf32>
    %120 = tpu.matmul %115, %119, %cst_56 {dimension_numbers = #tpu.dot_dimension_numbers<[1], [0], [0], [1], [0, 0, 1, 1], [], []>} : vector<8x32xf32>, vector<32x96xf32>, vector<8x96xf32> -> vector<8x96xf32>
    %c0_57 = arith.constant 0 : index
    %c0_58 = arith.constant 0 : index
    %121 = vector.load %arg6[%c0_57, %c0_58] : memref<1x96xf32, #tpu.memory_space<vmem>>, vector<1x96xf32>
    %122 = vector.broadcast %121 : vector<1x96xf32> to vector<8x96xf32>
    %123 = arith.addf %120, %122 : vector<8x96xf32>
    %c3 = arith.constant 3 : index
    %c0_59 = arith.constant 0 : index
    %c0_60 = arith.constant 0 : index
    %124 = vector.load %arg8[%c3, %c0_59, %c0_60] : memref<8x8x96xf32, #tpu.memory_space<vmem>>, vector<1x8x96xf32>
    %125 = vector.shape_cast %124 : vector<1x8x96xf32> to vector<8x96xf32>
    %126 = vector.extract_strided_slice %125 {offsets = [0, 0], sizes = [8, 32], strides = [1, 1]} : vector<8x96xf32> to vector<8x32xf32>
    %127 = vector.extract_strided_slice %123 {offsets = [0, 0], sizes = [8, 32], strides = [1, 1]} : vector<8x96xf32> to vector<8x32xf32>
    %128 = arith.addf %126, %127 : vector<8x32xf32>
    %129 = arith.negf %128 : vector<8x32xf32>
    %130 = math.exp %129 : vector<8x32xf32>
    %cst_61 = arith.constant 1.000000e+00 : f32
    %131 = vector.broadcast %cst_61 : f32 to vector<8x32xf32>
    %132 = arith.addf %131, %130 : vector<8x32xf32>
    %133 = arith.divf %131, %132 : vector<8x32xf32>
    %134 = vector.extract_strided_slice %125 {offsets = [0, 32], sizes = [8, 32], strides = [1, 1]} : vector<8x96xf32> to vector<8x32xf32>
    %135 = vector.extract_strided_slice %123 {offsets = [0, 32], sizes = [8, 32], strides = [1, 1]} : vector<8x96xf32> to vector<8x32xf32>
    %136 = arith.addf %134, %135 : vector<8x32xf32>
    %137 = arith.negf %136 : vector<8x32xf32>
    %138 = math.exp %137 : vector<8x32xf32>
    %cst_62 = arith.constant 1.000000e+00 : f32
    %139 = vector.broadcast %cst_62 : f32 to vector<8x32xf32>
    %140 = arith.addf %139, %138 : vector<8x32xf32>
    %141 = arith.divf %139, %140 : vector<8x32xf32>
    %142 = vector.extract_strided_slice %125 {offsets = [0, 64], sizes = [8, 32], strides = [1, 1]} : vector<8x96xf32> to vector<8x32xf32>
    %143 = vector.extract_strided_slice %123 {offsets = [0, 64], sizes = [8, 32], strides = [1, 1]} : vector<8x96xf32> to vector<8x32xf32>
    %144 = arith.mulf %133, %143 : vector<8x32xf32>
    %145 = arith.addf %142, %144 : vector<8x32xf32>
    %146 = math.tanh %145 : vector<8x32xf32>
    %cst_63 = arith.constant 1.000000e+00 : f32
    %147 = vector.broadcast %cst_63 : f32 to vector<8x32xf32>
    %148 = arith.subf %147, %141 : vector<8x32xf32>
    %149 = arith.mulf %148, %146 : vector<8x32xf32>
    %150 = arith.mulf %141, %115 : vector<8x32xf32>
    %151 = arith.addf %149, %150 : vector<8x32xf32>
    %c0_64 = arith.constant 0 : index
    %c3_65 = arith.constant 3 : index
    %c0_66 = arith.constant 0 : index
    %c0_67 = arith.constant 0 : index
    %152 = vector.load %arg7[%c0_64, %c3_65, %c0_66, %c0_67] : memref<1x8x8x32xf32, #tpu.memory_space<vmem>>, vector<1x1x8x32xf32>
    %153 = vector.shape_cast %152 : vector<1x1x8x32xf32> to vector<8x32xf32>
    %154 = vector.shape_cast %151 : vector<8x32xf32> to vector<1x1x8x32xf32>
    tpu.vector_store %arg7[%c0_64, %c3_65, %c0_66, %c0_67], %154 {strides = array<i32>} : memref<1x8x8x32xf32, #tpu.memory_space<vmem>>, vector<1x1x8x32xf32>,
    %c0_68 = arith.constant 0 : index
    %c0_69 = arith.constant 0 : index
    %155 = vector.load %arg4[%c0_68, %c0_69] : memref<32x96xf32, #tpu.memory_space<vmem>>, vector<32x96xf32>
    %cst_70 = arith.constant dense<0.000000e+00> : vector<8x96xf32>
    %156 = tpu.matmul %151, %155, %cst_70 {dimension_numbers = #tpu.dot_dimension_numbers<[1], [0], [0], [1], [0, 0, 1, 1], [], []>} : vector<8x32xf32>, vector<32x96xf32>, vector<8x96xf32> -> vector<8x96xf32>
    %c0_71 = arith.constant 0 : index
    %c0_72 = arith.constant 0 : index
    %157 = vector.load %arg6[%c0_71, %c0_72] : memref<1x96xf32, #tpu.memory_space<vmem>>, vector<1x96xf32>
    %158 = vector.broadcast %157 : vector<1x96xf32> to vector<8x96xf32>
    %159 = arith.addf %156, %158 : vector<8x96xf32>
    %c4 = arith.constant 4 : index
    %c0_73 = arith.constant 0 : index
    %c0_74 = arith.constant 0 : index
    %160 = vector.load %arg8[%c4, %c0_73, %c0_74] : memref<8x8x96xf32, #tpu.memory_space<vmem>>, vector<1x8x96xf32>
    %161 = vector.shape_cast %160 : vector<1x8x96xf32> to vector<8x96xf32>
    %162 = vector.extract_strided_slice %161 {offsets = [0, 0], sizes = [8, 32], strides = [1, 1]} : vector<8x96xf32> to vector<8x32xf32>
    %163 = vector.extract_strided_slice %159 {offsets = [0, 0], sizes = [8, 32], strides = [1, 1]} : vector<8x96xf32> to vector<8x32xf32>
    %164 = arith.addf %162, %163 : vector<8x32xf32>
    %165 = arith.negf %164 : vector<8x32xf32>
    %166 = math.exp %165 : vector<8x32xf32>
    %cst_75 = arith.constant 1.000000e+00 : f32
    %167 = vector.broadcast %cst_75 : f32 to vector<8x32xf32>
    %168 = arith.addf %167, %166 : vector<8x32xf32>
    %169 = arith.divf %167, %168 : vector<8x32xf32>
    %170 = vector.extract_strided_slice %161 {offsets = [0, 32], sizes = [8, 32], strides = [1, 1]} : vector<8x96xf32> to vector<8x32xf32>
    %171 = vector.extract_strided_slice %159 {offsets = [0, 32], sizes = [8, 32], strides = [1, 1]} : vector<8x96xf32> to vector<8x32xf32>
    %172 = arith.addf %170, %171 : vector<8x32xf32>
    %173 = arith.negf %172 : vector<8x32xf32>
    %174 = math.exp %173 : vector<8x32xf32>
    %cst_76 = arith.constant 1.000000e+00 : f32
    %175 = vector.broadcast %cst_76 : f32 to vector<8x32xf32>
    %176 = arith.addf %175, %174 : vector<8x32xf32>
    %177 = arith.divf %175, %176 : vector<8x32xf32>
    %178 = vector.extract_strided_slice %161 {offsets = [0, 64], sizes = [8, 32], strides = [1, 1]} : vector<8x96xf32> to vector<8x32xf32>
    %179 = vector.extract_strided_slice %159 {offsets = [0, 64], sizes = [8, 32], strides = [1, 1]} : vector<8x96xf32> to vector<8x32xf32>
    %180 = arith.mulf %169, %179 : vector<8x32xf32>
    %181 = arith.addf %178, %180 : vector<8x32xf32>
    %182 = math.tanh %181 : vector<8x32xf32>
    %cst_77 = arith.constant 1.000000e+00 : f32
    %183 = vector.broadcast %cst_77 : f32 to vector<8x32xf32>
    %184 = arith.subf %183, %177 : vector<8x32xf32>
    %185 = arith.mulf %184, %182 : vector<8x32xf32>
    %186 = arith.mulf %177, %151 : vector<8x32xf32>
    %187 = arith.addf %185, %186 : vector<8x32xf32>
    %c0_78 = arith.constant 0 : index
    %c4_79 = arith.constant 4 : index
    %c0_80 = arith.constant 0 : index
    %c0_81 = arith.constant 0 : index
    %188 = vector.load %arg7[%c0_78, %c4_79, %c0_80, %c0_81] : memref<1x8x8x32xf32, #tpu.memory_space<vmem>>, vector<1x1x8x32xf32>
    %189 = vector.shape_cast %188 : vector<1x1x8x32xf32> to vector<8x32xf32>
    %190 = vector.shape_cast %187 : vector<8x32xf32> to vector<1x1x8x32xf32>
    tpu.vector_store %arg7[%c0_78, %c4_79, %c0_80, %c0_81], %190 {strides = array<i32>} : memref<1x8x8x32xf32, #tpu.memory_space<vmem>>, vector<1x1x8x32xf32>,
    %c0_82 = arith.constant 0 : index
    %c0_83 = arith.constant 0 : index
    %191 = vector.load %arg4[%c0_82, %c0_83] : memref<32x96xf32, #tpu.memory_space<vmem>>, vector<32x96xf32>
    %cst_84 = arith.constant dense<0.000000e+00> : vector<8x96xf32>
    %192 = tpu.matmul %187, %191, %cst_84 {dimension_numbers = #tpu.dot_dimension_numbers<[1], [0], [0], [1], [0, 0, 1, 1], [], []>} : vector<8x32xf32>, vector<32x96xf32>, vector<8x96xf32> -> vector<8x96xf32>
    %c0_85 = arith.constant 0 : index
    %c0_86 = arith.constant 0 : index
    %193 = vector.load %arg6[%c0_85, %c0_86] : memref<1x96xf32, #tpu.memory_space<vmem>>, vector<1x96xf32>
    %194 = vector.broadcast %193 : vector<1x96xf32> to vector<8x96xf32>
    %195 = arith.addf %192, %194 : vector<8x96xf32>
    %c5 = arith.constant 5 : index
    %c0_87 = arith.constant 0 : index
    %c0_88 = arith.constant 0 : index
    %196 = vector.load %arg8[%c5, %c0_87, %c0_88] : memref<8x8x96xf32, #tpu.memory_space<vmem>>, vector<1x8x96xf32>
    %197 = vector.shape_cast %196 : vector<1x8x96xf32> to vector<8x96xf32>
    %198 = vector.extract_strided_slice %197 {offsets = [0, 0], sizes = [8, 32], strides = [1, 1]} : vector<8x96xf32> to vector<8x32xf32>
    %199 = vector.extract_strided_slice %195 {offsets = [0, 0], sizes = [8, 32], strides = [1, 1]} : vector<8x96xf32> to vector<8x32xf32>
    %200 = arith.addf %198, %199 : vector<8x32xf32>
    %201 = arith.negf %200 : vector<8x32xf32>
    %202 = math.exp %201 : vector<8x32xf32>
    %cst_89 = arith.constant 1.000000e+00 : f32
    %203 = vector.broadcast %cst_89 : f32 to vector<8x32xf32>
    %204 = arith.addf %203, %202 : vector<8x32xf32>
    %205 = arith.divf %203, %204 : vector<8x32xf32>
    %206 = vector.extract_strided_slice %197 {offsets = [0, 32], sizes = [8, 32], strides = [1, 1]} : vector<8x96xf32> to vector<8x32xf32>
    %207 = vector.extract_strided_slice %195 {offsets = [0, 32], sizes = [8, 32], strides = [1, 1]} : vector<8x96xf32> to vector<8x32xf32>
    %208 = arith.addf %206, %207 : vector<8x32xf32>
    %209 = arith.negf %208 : vector<8x32xf32>
    %210 = math.exp %209 : vector<8x32xf32>
    %cst_90 = arith.constant 1.000000e+00 : f32
    %211 = vector.broadcast %cst_90 : f32 to vector<8x32xf32>
    %212 = arith.addf %211, %210 : vector<8x32xf32>
    %213 = arith.divf %211, %212 : vector<8x32xf32>
    %214 = vector.extract_strided_slice %197 {offsets = [0, 64], sizes = [8, 32], strides = [1, 1]} : vector<8x96xf32> to vector<8x32xf32>
    %215 = vector.extract_strided_slice %195 {offsets = [0, 64], sizes = [8, 32], strides = [1, 1]} : vector<8x96xf32> to vector<8x32xf32>
    %216 = arith.mulf %205, %215 : vector<8x32xf32>
    %217 = arith.addf %214, %216 : vector<8x32xf32>
    %218 = math.tanh %217 : vector<8x32xf32>
    %cst_91 = arith.constant 1.000000e+00 : f32
    %219 = vector.broadcast %cst_91 : f32 to vector<8x32xf32>
    %220 = arith.subf %219, %213 : vector<8x32xf32>
    %221 = arith.mulf %220, %218 : vector<8x32xf32>
    %222 = arith.mulf %213, %187 : vector<8x32xf32>
    %223 = arith.addf %221, %222 : vector<8x32xf32>
    %c0_92 = arith.constant 0 : index
    %c5_93 = arith.constant 5 : index
    %c0_94 = arith.constant 0 : index
    %c0_95 = arith.constant 0 : index
    %224 = vector.load %arg7[%c0_92, %c5_93, %c0_94, %c0_95] : memref<1x8x8x32xf32, #tpu.memory_space<vmem>>, vector<1x1x8x32xf32>
    %225 = vector.shape_cast %224 : vector<1x1x8x32xf32> to vector<8x32xf32>
    %226 = vector.shape_cast %223 : vector<8x32xf32> to vector<1x1x8x32xf32>
    tpu.vector_store %arg7[%c0_92, %c5_93, %c0_94, %c0_95], %226 {strides = array<i32>} : memref<1x8x8x32xf32, #tpu.memory_space<vmem>>, vector<1x1x8x32xf32>,
    %c0_96 = arith.constant 0 : index
    %c0_97 = arith.constant 0 : index
    %227 = vector.load %arg4[%c0_96, %c0_97] : memref<32x96xf32, #tpu.memory_space<vmem>>, vector<32x96xf32>
    %cst_98 = arith.constant dense<0.000000e+00> : vector<8x96xf32>
    %228 = tpu.matmul %223, %227, %cst_98 {dimension_numbers = #tpu.dot_dimension_numbers<[1], [0], [0], [1], [0, 0, 1, 1], [], []>} : vector<8x32xf32>, vector<32x96xf32>, vector<8x96xf32> -> vector<8x96xf32>
    %c0_99 = arith.constant 0 : index
    %c0_100 = arith.constant 0 : index
    %229 = vector.load %arg6[%c0_99, %c0_100] : memref<1x96xf32, #tpu.memory_space<vmem>>, vector<1x96xf32>
    %230 = vector.broadcast %229 : vector<1x96xf32> to vector<8x96xf32>
    %231 = arith.addf %228, %230 : vector<8x96xf32>
    %c6 = arith.constant 6 : index
    %c0_101 = arith.constant 0 : index
    %c0_102 = arith.constant 0 : index
    %232 = vector.load %arg8[%c6, %c0_101, %c0_102] : memref<8x8x96xf32, #tpu.memory_space<vmem>>, vector<1x8x96xf32>
    %233 = vector.shape_cast %232 : vector<1x8x96xf32> to vector<8x96xf32>
    %234 = vector.extract_strided_slice %233 {offsets = [0, 0], sizes = [8, 32], strides = [1, 1]} : vector<8x96xf32> to vector<8x32xf32>
    %235 = vector.extract_strided_slice %231 {offsets = [0, 0], sizes = [8, 32], strides = [1, 1]} : vector<8x96xf32> to vector<8x32xf32>
    %236 = arith.addf %234, %235 : vector<8x32xf32>
    %237 = arith.negf %236 : vector<8x32xf32>
    %238 = math.exp %237 : vector<8x32xf32>
    %cst_103 = arith.constant 1.000000e+00 : f32
    %239 = vector.broadcast %cst_103 : f32 to vector<8x32xf32>
    %240 = arith.addf %239, %238 : vector<8x32xf32>
    %241 = arith.divf %239, %240 : vector<8x32xf32>
    %242 = vector.extract_strided_slice %233 {offsets = [0, 32], sizes = [8, 32], strides = [1, 1]} : vector<8x96xf32> to vector<8x32xf32>
    %243 = vector.extract_strided_slice %231 {offsets = [0, 32], sizes = [8, 32], strides = [1, 1]} : vector<8x96xf32> to vector<8x32xf32>
    %244 = arith.addf %242, %243 : vector<8x32xf32>
    %245 = arith.negf %244 : vector<8x32xf32>
    %246 = math.exp %245 : vector<8x32xf32>
    %cst_104 = arith.constant 1.000000e+00 : f32
    %247 = vector.broadcast %cst_104 : f32 to vector<8x32xf32>
    %248 = arith.addf %247, %246 : vector<8x32xf32>
    %249 = arith.divf %247, %248 : vector<8x32xf32>
    %250 = vector.extract_strided_slice %233 {offsets = [0, 64], sizes = [8, 32], strides = [1, 1]} : vector<8x96xf32> to vector<8x32xf32>
    %251 = vector.extract_strided_slice %231 {offsets = [0, 64], sizes = [8, 32], strides = [1, 1]} : vector<8x96xf32> to vector<8x32xf32>
    %252 = arith.mulf %241, %251 : vector<8x32xf32>
    %253 = arith.addf %250, %252 : vector<8x32xf32>
    %254 = math.tanh %253 : vector<8x32xf32>
    %cst_105 = arith.constant 1.000000e+00 : f32
    %255 = vector.broadcast %cst_105 : f32 to vector<8x32xf32>
    %256 = arith.subf %255, %249 : vector<8x32xf32>
    %257 = arith.mulf %256, %254 : vector<8x32xf32>
    %258 = arith.mulf %249, %223 : vector<8x32xf32>
    %259 = arith.addf %257, %258 : vector<8x32xf32>
    %c0_106 = arith.constant 0 : index
    %c6_107 = arith.constant 6 : index
    %c0_108 = arith.constant 0 : index
    %c0_109 = arith.constant 0 : index
    %260 = vector.load %arg7[%c0_106, %c6_107, %c0_108, %c0_109] : memref<1x8x8x32xf32, #tpu.memory_space<vmem>>, vector<1x1x8x32xf32>
    %261 = vector.shape_cast %260 : vector<1x1x8x32xf32> to vector<8x32xf32>
    %262 = vector.shape_cast %259 : vector<8x32xf32> to vector<1x1x8x32xf32>
    tpu.vector_store %arg7[%c0_106, %c6_107, %c0_108, %c0_109], %262 {strides = array<i32>} : memref<1x8x8x32xf32, #tpu.memory_space<vmem>>, vector<1x1x8x32xf32>,
    %c0_110 = arith.constant 0 : index
    %c0_111 = arith.constant 0 : index
    %263 = vector.load %arg4[%c0_110, %c0_111] : memref<32x96xf32, #tpu.memory_space<vmem>>, vector<32x96xf32>
    %cst_112 = arith.constant dense<0.000000e+00> : vector<8x96xf32>
    %264 = tpu.matmul %259, %263, %cst_112 {dimension_numbers = #tpu.dot_dimension_numbers<[1], [0], [0], [1], [0, 0, 1, 1], [], []>} : vector<8x32xf32>, vector<32x96xf32>, vector<8x96xf32> -> vector<8x96xf32>
    %c0_113 = arith.constant 0 : index
    %c0_114 = arith.constant 0 : index
    %265 = vector.load %arg6[%c0_113, %c0_114] : memref<1x96xf32, #tpu.memory_space<vmem>>, vector<1x96xf32>
    %266 = vector.broadcast %265 : vector<1x96xf32> to vector<8x96xf32>
    %267 = arith.addf %264, %266 : vector<8x96xf32>
    %c7 = arith.constant 7 : index
    %c0_115 = arith.constant 0 : index
    %c0_116 = arith.constant 0 : index
    %268 = vector.load %arg8[%c7, %c0_115, %c0_116] : memref<8x8x96xf32, #tpu.memory_space<vmem>>, vector<1x8x96xf32>
    %269 = vector.shape_cast %268 : vector<1x8x96xf32> to vector<8x96xf32>
    %270 = vector.extract_strided_slice %269 {offsets = [0, 0], sizes = [8, 32], strides = [1, 1]} : vector<8x96xf32> to vector<8x32xf32>
    %271 = vector.extract_strided_slice %267 {offsets = [0, 0], sizes = [8, 32], strides = [1, 1]} : vector<8x96xf32> to vector<8x32xf32>
    %272 = arith.addf %270, %271 : vector<8x32xf32>
    %273 = arith.negf %272 : vector<8x32xf32>
    %274 = math.exp %273 : vector<8x32xf32>
    %cst_117 = arith.constant 1.000000e+00 : f32
    %275 = vector.broadcast %cst_117 : f32 to vector<8x32xf32>
    %276 = arith.addf %275, %274 : vector<8x32xf32>
    %277 = arith.divf %275, %276 : vector<8x32xf32>
    %278 = vector.extract_strided_slice %269 {offsets = [0, 32], sizes = [8, 32], strides = [1, 1]} : vector<8x96xf32> to vector<8x32xf32>
    %279 = vector.extract_strided_slice %267 {offsets = [0, 32], sizes = [8, 32], strides = [1, 1]} : vector<8x96xf32> to vector<8x32xf32>
    %280 = arith.addf %278, %279 : vector<8x32xf32>
    %281 = arith.negf %280 : vector<8x32xf32>
    %282 = math.exp %281 : vector<8x32xf32>
    %cst_118 = arith.constant 1.000000e+00 : f32
    %283 = vector.broadcast %cst_118 : f32 to vector<8x32xf32>
    %284 = arith.addf %283, %282 : vector<8x32xf32>
    %285 = arith.divf %283, %284 : vector<8x32xf32>
    %286 = vector.extract_strided_slice %269 {offsets = [0, 64], sizes = [8, 32], strides = [1, 1]} : vector<8x96xf32> to vector<8x32xf32>
    %287 = vector.extract_strided_slice %267 {offsets = [0, 64], sizes = [8, 32], strides = [1, 1]} : vector<8x96xf32> to vector<8x32xf32>
    %288 = arith.mulf %277, %287 : vector<8x32xf32>
    %289 = arith.addf %286, %288 : vector<8x32xf32>
    %290 = math.tanh %289 : vector<8x32xf32>
    %cst_119 = arith.constant 1.000000e+00 : f32
    %291 = vector.broadcast %cst_119 : f32 to vector<8x32xf32>
    %292 = arith.subf %291, %285 : vector<8x32xf32>
    %293 = arith.mulf %292, %290 : vector<8x32xf32>
    %294 = arith.mulf %285, %259 : vector<8x32xf32>
    %295 = arith.addf %293, %294 : vector<8x32xf32>
    %c0_120 = arith.constant 0 : index
    %c7_121 = arith.constant 7 : index
    %c0_122 = arith.constant 0 : index
    %c0_123 = arith.constant 0 : index
    %296 = vector.load %arg7[%c0_120, %c7_121, %c0_122, %c0_123] : memref<1x8x8x32xf32, #tpu.memory_space<vmem>>, vector<1x1x8x32xf32>
    %297 = vector.shape_cast %296 : vector<1x1x8x32xf32> to vector<8x32xf32>
    %298 = vector.shape_cast %295 : vector<8x32xf32> to vector<1x1x8x32xf32>
    tpu.vector_store %arg7[%c0_120, %c7_121, %c0_122, %c0_123], %298 {strides = array<i32>} : memref<1x8x8x32xf32, #tpu.memory_space<vmem>>, vector<1x1x8x32xf32>,
    return
  }
  func.func @transform_0(%arg0: i32, %arg1: i32) -> (i32, i32, i32, i32) {
    %c0_i32 = arith.constant 0 : i32
    %c0_i32_0 = arith.constant 0 : i32
    %c0_i32_1 = arith.constant 0 : i32
    return %arg0, %c0_i32, %arg1, %c0_i32_0 : i32, i32, i32, i32
  }
  func.func @transform_1(%arg0: i32, %arg1: i32) -> (i32, i32) {
    %c0_i32 = arith.constant 0 : i32
    %c0_i32_0 = arith.constant 0 : i32
    %c0_i32_1 = arith.constant 0 : i32
    return %c0_i32, %c0_i32_0 : i32, i32
  }
  func.func @transform_2(%arg0: i32, %arg1: i32) -> (i32, i32) {
    %c0_i32 = arith.constant 0 : i32
    %c0_i32_0 = arith.constant 0 : i32
    %c0_i32_1 = arith.constant 0 : i32
    return %c0_i32, %c0_i32_0 : i32, i32
  }
  func.func @transform_3(%arg0: i32, %arg1: i32) -> (i32, i32) {
    %c0_i32 = arith.constant 0 : i32
    %c0_i32_0 = arith.constant 0 : i32
    %c0_i32_1 = arith.constant 0 : i32
    return %c0_i32, %c0_i32_0 : i32, i32
  }
  func.func @transform_4(%arg0: i32, %arg1: i32) -> (i32, i32) {
    %c0_i32 = arith.constant 0 : i32
    %c0_i32_0 = arith.constant 0 : i32
    %c0_i32_1 = arith.constant 0 : i32
    return %c0_i32, %c0_i32_0 : i32, i32
  }
  func.func @transform_5(%arg0: i32, %arg1: i32) -> (i32, i32, i32, i32) {
    %c0_i32 = arith.constant 0 : i32
    %c0_i32_0 = arith.constant 0 : i32
    %c0_i32_1 = arith.constant 0 : i32
    return %arg0, %c0_i32, %arg1, %c0_i32_0 : i32, i32, i32, i32
  }
}

module attributes {stable_mosaic.version = 11 : i64} {
  func.func @central_stack_kernel(%arg0: memref<2x8x32xf32, #tpu.memory_space<vmem>>, %arg1: memref<32x96xf32, #tpu.memory_space<vmem>>, %arg2: memref<32x96xf32, #tpu.memory_space<vmem>>, %arg3: memref<1x96xf32, #tpu.memory_space<vmem>>, %arg4: memref<1x96xf32, #tpu.memory_space<vmem>>, %arg5: memref<32x32xf32, #tpu.memory_space<vmem>>, %arg6: memref<1x32xf32, #tpu.memory_space<vmem>>, %arg7: memref<2x8x32xf32, #tpu.memory_space<vmem>>, %arg8: memref<8x2x96xf32, #tpu.memory_space<vmem>>, %arg9: memref<8x2x32xf32, #tpu.memory_space<vmem>>) attributes {dimension_semantics = [], scalar_prefetch = 0 : i64, scratch_operands = 2 : i64, tpu.core_type = #tpu.core_type<tc>} {
    %c0 = arith.constant 0 : index
    %c0_0 = arith.constant 0 : index
    %c0_1 = arith.constant 0 : index
    %0 = vector.load %arg0[%c0, %c0_0, %c0_1] : memref<2x8x32xf32, #tpu.memory_space<vmem>>, vector<2x8x32xf32>
    %1 = tpu.transpose %0, [1, 0, 2] : vector<2x8x32xf32> -> vector<8x2x32xf32>
    %2 = vector.shape_cast %1 : vector<8x2x32xf32> to vector<16x32xf32>
    %c0_2 = arith.constant 0 : index
    %c0_3 = arith.constant 0 : index
    %3 = vector.load %arg1[%c0_2, %c0_3] : memref<32x96xf32, #tpu.memory_space<vmem>>, vector<32x96xf32>
    %cst = arith.constant dense<0.000000e+00> : vector<16x96xf32>
    %4 = tpu.matmul %2, %3, %cst {dimension_numbers = #tpu.dot_dimension_numbers<[1], [0], [0], [1], [0, 0, 1, 1], [], []>} : vector<16x32xf32>, vector<32x96xf32>, vector<16x96xf32> -> vector<16x96xf32>
    %c0_4 = arith.constant 0 : index
    %c0_5 = arith.constant 0 : index
    %5 = vector.load %arg3[%c0_4, %c0_5] : memref<1x96xf32, #tpu.memory_space<vmem>>, vector<1x96xf32>
    %6 = vector.broadcast %5 : vector<1x96xf32> to vector<16x96xf32>
    %7 = arith.addf %4, %6 : vector<16x96xf32>
    %8 = vector.shape_cast %7 : vector<16x96xf32> to vector<8x2x96xf32>
    %c0_6 = arith.constant 0 : index
    %c0_7 = arith.constant 0 : index
    %c0_8 = arith.constant 0 : index
    %9 = vector.load %arg8[%c0_6, %c0_7, %c0_8] : memref<8x2x96xf32, #tpu.memory_space<vmem>>, vector<8x2x96xf32>
    tpu.vector_store %arg8[%c0_6, %c0_7, %c0_8], %8 {strides = array<i32>} : memref<8x2x96xf32, #tpu.memory_space<vmem>>, vector<8x2x96xf32>,
    %cst_9 = arith.constant 0.000000e+00 : f32
    %10 = vector.broadcast %cst_9 : f32 to vector<2x32xf32>
    %c0_10 = arith.constant 0 : index
    %c0_11 = arith.constant 0 : index
    %11 = vector.load %arg2[%c0_10, %c0_11] : memref<32x96xf32, #tpu.memory_space<vmem>>, vector<32x96xf32>
    %cst_12 = arith.constant dense<0.000000e+00> : vector<2x96xf32>
    %12 = tpu.matmul %10, %11, %cst_12 {dimension_numbers = #tpu.dot_dimension_numbers<[1], [0], [0], [1], [0, 0, 1, 1], [], []>} : vector<2x32xf32>, vector<32x96xf32>, vector<2x96xf32> -> vector<2x96xf32>
    %c0_13 = arith.constant 0 : index
    %c0_14 = arith.constant 0 : index
    %13 = vector.load %arg4[%c0_13, %c0_14] : memref<1x96xf32, #tpu.memory_space<vmem>>, vector<1x96xf32>
    %14 = vector.broadcast %13 : vector<1x96xf32> to vector<2x96xf32>
    %15 = arith.addf %12, %14 : vector<2x96xf32>
    %c0_15 = arith.constant 0 : index
    %c0_16 = arith.constant 0 : index
    %c0_17 = arith.constant 0 : index
    %16 = vector.load %arg8[%c0_15, %c0_16, %c0_17] : memref<8x2x96xf32, #tpu.memory_space<vmem>>, vector<1x2x96xf32>
    %17 = vector.shape_cast %16 : vector<1x2x96xf32> to vector<2x96xf32>
    %18 = vector.extract_strided_slice %17 {offsets = [0, 0], sizes = [2, 32], strides = [1, 1]} : vector<2x96xf32> to vector<2x32xf32>
    %19 = vector.extract_strided_slice %15 {offsets = [0, 0], sizes = [2, 32], strides = [1, 1]} : vector<2x96xf32> to vector<2x32xf32>
    %20 = arith.addf %18, %19 : vector<2x32xf32>
    %21 = arith.negf %20 : vector<2x32xf32>
    %22 = math.exp %21 : vector<2x32xf32>
    %cst_18 = arith.constant 1.000000e+00 : f32
    %23 = vector.broadcast %cst_18 : f32 to vector<2x32xf32>
    %24 = arith.addf %23, %22 : vector<2x32xf32>
    %25 = arith.divf %23, %24 : vector<2x32xf32>
    %26 = vector.extract_strided_slice %17 {offsets = [0, 32], sizes = [2, 32], strides = [1, 1]} : vector<2x96xf32> to vector<2x32xf32>
    %27 = vector.extract_strided_slice %15 {offsets = [0, 32], sizes = [2, 32], strides = [1, 1]} : vector<2x96xf32> to vector<2x32xf32>
    %28 = arith.addf %26, %27 : vector<2x32xf32>
    %29 = arith.negf %28 : vector<2x32xf32>
    %30 = math.exp %29 : vector<2x32xf32>
    %cst_19 = arith.constant 1.000000e+00 : f32
    %31 = vector.broadcast %cst_19 : f32 to vector<2x32xf32>
    %32 = arith.addf %31, %30 : vector<2x32xf32>
    %33 = arith.divf %31, %32 : vector<2x32xf32>
    %34 = vector.extract_strided_slice %17 {offsets = [0, 64], sizes = [2, 32], strides = [1, 1]} : vector<2x96xf32> to vector<2x32xf32>
    %35 = vector.extract_strided_slice %15 {offsets = [0, 64], sizes = [2, 32], strides = [1, 1]} : vector<2x96xf32> to vector<2x32xf32>
    %36 = arith.mulf %25, %35 : vector<2x32xf32>
    %37 = arith.addf %34, %36 : vector<2x32xf32>
    %38 = math.tanh %37 : vector<2x32xf32>
    %cst_20 = arith.constant 1.000000e+00 : f32
    %39 = vector.broadcast %cst_20 : f32 to vector<2x32xf32>
    %40 = arith.subf %39, %33 : vector<2x32xf32>
    %41 = arith.mulf %40, %38 : vector<2x32xf32>
    %42 = arith.mulf %33, %10 : vector<2x32xf32>
    %43 = arith.addf %41, %42 : vector<2x32xf32>
    %c0_21 = arith.constant 0 : index
    %c0_22 = arith.constant 0 : index
    %c0_23 = arith.constant 0 : index
    %44 = vector.load %arg9[%c0_21, %c0_22, %c0_23] : memref<8x2x32xf32, #tpu.memory_space<vmem>>, vector<1x2x32xf32>
    %45 = vector.shape_cast %44 : vector<1x2x32xf32> to vector<2x32xf32>
    %46 = vector.shape_cast %43 : vector<2x32xf32> to vector<1x2x32xf32>
    tpu.vector_store %arg9[%c0_21, %c0_22, %c0_23], %46 {strides = array<i32>} : memref<8x2x32xf32, #tpu.memory_space<vmem>>, vector<1x2x32xf32>,
    %c0_24 = arith.constant 0 : index
    %c0_25 = arith.constant 0 : index
    %47 = vector.load %arg2[%c0_24, %c0_25] : memref<32x96xf32, #tpu.memory_space<vmem>>, vector<32x96xf32>
    %cst_26 = arith.constant dense<0.000000e+00> : vector<2x96xf32>
    %48 = tpu.matmul %43, %47, %cst_26 {dimension_numbers = #tpu.dot_dimension_numbers<[1], [0], [0], [1], [0, 0, 1, 1], [], []>} : vector<2x32xf32>, vector<32x96xf32>, vector<2x96xf32> -> vector<2x96xf32>
    %c0_27 = arith.constant 0 : index
    %c0_28 = arith.constant 0 : index
    %49 = vector.load %arg4[%c0_27, %c0_28] : memref<1x96xf32, #tpu.memory_space<vmem>>, vector<1x96xf32>
    %50 = vector.broadcast %49 : vector<1x96xf32> to vector<2x96xf32>
    %51 = arith.addf %48, %50 : vector<2x96xf32>
    %c1 = arith.constant 1 : index
    %c0_29 = arith.constant 0 : index
    %c0_30 = arith.constant 0 : index
    %52 = vector.load %arg8[%c1, %c0_29, %c0_30] : memref<8x2x96xf32, #tpu.memory_space<vmem>>, vector<1x2x96xf32>
    %53 = vector.shape_cast %52 : vector<1x2x96xf32> to vector<2x96xf32>
    %54 = vector.extract_strided_slice %53 {offsets = [0, 0], sizes = [2, 32], strides = [1, 1]} : vector<2x96xf32> to vector<2x32xf32>
    %55 = vector.extract_strided_slice %51 {offsets = [0, 0], sizes = [2, 32], strides = [1, 1]} : vector<2x96xf32> to vector<2x32xf32>
    %56 = arith.addf %54, %55 : vector<2x32xf32>
    %57 = arith.negf %56 : vector<2x32xf32>
    %58 = math.exp %57 : vector<2x32xf32>
    %cst_31 = arith.constant 1.000000e+00 : f32
    %59 = vector.broadcast %cst_31 : f32 to vector<2x32xf32>
    %60 = arith.addf %59, %58 : vector<2x32xf32>
    %61 = arith.divf %59, %60 : vector<2x32xf32>
    %62 = vector.extract_strided_slice %53 {offsets = [0, 32], sizes = [2, 32], strides = [1, 1]} : vector<2x96xf32> to vector<2x32xf32>
    %63 = vector.extract_strided_slice %51 {offsets = [0, 32], sizes = [2, 32], strides = [1, 1]} : vector<2x96xf32> to vector<2x32xf32>
    %64 = arith.addf %62, %63 : vector<2x32xf32>
    %65 = arith.negf %64 : vector<2x32xf32>
    %66 = math.exp %65 : vector<2x32xf32>
    %cst_32 = arith.constant 1.000000e+00 : f32
    %67 = vector.broadcast %cst_32 : f32 to vector<2x32xf32>
    %68 = arith.addf %67, %66 : vector<2x32xf32>
    %69 = arith.divf %67, %68 : vector<2x32xf32>
    %70 = vector.extract_strided_slice %53 {offsets = [0, 64], sizes = [2, 32], strides = [1, 1]} : vector<2x96xf32> to vector<2x32xf32>
    %71 = vector.extract_strided_slice %51 {offsets = [0, 64], sizes = [2, 32], strides = [1, 1]} : vector<2x96xf32> to vector<2x32xf32>
    %72 = arith.mulf %61, %71 : vector<2x32xf32>
    %73 = arith.addf %70, %72 : vector<2x32xf32>
    %74 = math.tanh %73 : vector<2x32xf32>
    %cst_33 = arith.constant 1.000000e+00 : f32
    %75 = vector.broadcast %cst_33 : f32 to vector<2x32xf32>
    %76 = arith.subf %75, %69 : vector<2x32xf32>
    %77 = arith.mulf %76, %74 : vector<2x32xf32>
    %78 = arith.mulf %69, %43 : vector<2x32xf32>
    %79 = arith.addf %77, %78 : vector<2x32xf32>
    %c1_34 = arith.constant 1 : index
    %c0_35 = arith.constant 0 : index
    %c0_36 = arith.constant 0 : index
    %80 = vector.load %arg9[%c1_34, %c0_35, %c0_36] : memref<8x2x32xf32, #tpu.memory_space<vmem>>, vector<1x2x32xf32>
    %81 = vector.shape_cast %80 : vector<1x2x32xf32> to vector<2x32xf32>
    %82 = vector.shape_cast %79 : vector<2x32xf32> to vector<1x2x32xf32>
    tpu.vector_store %arg9[%c1_34, %c0_35, %c0_36], %82 {strides = array<i32>} : memref<8x2x32xf32, #tpu.memory_space<vmem>>, vector<1x2x32xf32>,
    %c0_37 = arith.constant 0 : index
    %c0_38 = arith.constant 0 : index
    %83 = vector.load %arg2[%c0_37, %c0_38] : memref<32x96xf32, #tpu.memory_space<vmem>>, vector<32x96xf32>
    %cst_39 = arith.constant dense<0.000000e+00> : vector<2x96xf32>
    %84 = tpu.matmul %79, %83, %cst_39 {dimension_numbers = #tpu.dot_dimension_numbers<[1], [0], [0], [1], [0, 0, 1, 1], [], []>} : vector<2x32xf32>, vector<32x96xf32>, vector<2x96xf32> -> vector<2x96xf32>
    %c0_40 = arith.constant 0 : index
    %c0_41 = arith.constant 0 : index
    %85 = vector.load %arg4[%c0_40, %c0_41] : memref<1x96xf32, #tpu.memory_space<vmem>>, vector<1x96xf32>
    %86 = vector.broadcast %85 : vector<1x96xf32> to vector<2x96xf32>
    %87 = arith.addf %84, %86 : vector<2x96xf32>
    %c2 = arith.constant 2 : index
    %c0_42 = arith.constant 0 : index
    %c0_43 = arith.constant 0 : index
    %88 = vector.load %arg8[%c2, %c0_42, %c0_43] : memref<8x2x96xf32, #tpu.memory_space<vmem>>, vector<1x2x96xf32>
    %89 = vector.shape_cast %88 : vector<1x2x96xf32> to vector<2x96xf32>
    %90 = vector.extract_strided_slice %89 {offsets = [0, 0], sizes = [2, 32], strides = [1, 1]} : vector<2x96xf32> to vector<2x32xf32>
    %91 = vector.extract_strided_slice %87 {offsets = [0, 0], sizes = [2, 32], strides = [1, 1]} : vector<2x96xf32> to vector<2x32xf32>
    %92 = arith.addf %90, %91 : vector<2x32xf32>
    %93 = arith.negf %92 : vector<2x32xf32>
    %94 = math.exp %93 : vector<2x32xf32>
    %cst_44 = arith.constant 1.000000e+00 : f32
    %95 = vector.broadcast %cst_44 : f32 to vector<2x32xf32>
    %96 = arith.addf %95, %94 : vector<2x32xf32>
    %97 = arith.divf %95, %96 : vector<2x32xf32>
    %98 = vector.extract_strided_slice %89 {offsets = [0, 32], sizes = [2, 32], strides = [1, 1]} : vector<2x96xf32> to vector<2x32xf32>
    %99 = vector.extract_strided_slice %87 {offsets = [0, 32], sizes = [2, 32], strides = [1, 1]} : vector<2x96xf32> to vector<2x32xf32>
    %100 = arith.addf %98, %99 : vector<2x32xf32>
    %101 = arith.negf %100 : vector<2x32xf32>
    %102 = math.exp %101 : vector<2x32xf32>
    %cst_45 = arith.constant 1.000000e+00 : f32
    %103 = vector.broadcast %cst_45 : f32 to vector<2x32xf32>
    %104 = arith.addf %103, %102 : vector<2x32xf32>
    %105 = arith.divf %103, %104 : vector<2x32xf32>
    %106 = vector.extract_strided_slice %89 {offsets = [0, 64], sizes = [2, 32], strides = [1, 1]} : vector<2x96xf32> to vector<2x32xf32>
    %107 = vector.extract_strided_slice %87 {offsets = [0, 64], sizes = [2, 32], strides = [1, 1]} : vector<2x96xf32> to vector<2x32xf32>
    %108 = arith.mulf %97, %107 : vector<2x32xf32>
    %109 = arith.addf %106, %108 : vector<2x32xf32>
    %110 = math.tanh %109 : vector<2x32xf32>
    %cst_46 = arith.constant 1.000000e+00 : f32
    %111 = vector.broadcast %cst_46 : f32 to vector<2x32xf32>
    %112 = arith.subf %111, %105 : vector<2x32xf32>
    %113 = arith.mulf %112, %110 : vector<2x32xf32>
    %114 = arith.mulf %105, %79 : vector<2x32xf32>
    %115 = arith.addf %113, %114 : vector<2x32xf32>
    %c2_47 = arith.constant 2 : index
    %c0_48 = arith.constant 0 : index
    %c0_49 = arith.constant 0 : index
    %116 = vector.load %arg9[%c2_47, %c0_48, %c0_49] : memref<8x2x32xf32, #tpu.memory_space<vmem>>, vector<1x2x32xf32>
    %117 = vector.shape_cast %116 : vector<1x2x32xf32> to vector<2x32xf32>
    %118 = vector.shape_cast %115 : vector<2x32xf32> to vector<1x2x32xf32>
    tpu.vector_store %arg9[%c2_47, %c0_48, %c0_49], %118 {strides = array<i32>} : memref<8x2x32xf32, #tpu.memory_space<vmem>>, vector<1x2x32xf32>,
    %c0_50 = arith.constant 0 : index
    %c0_51 = arith.constant 0 : index
    %119 = vector.load %arg2[%c0_50, %c0_51] : memref<32x96xf32, #tpu.memory_space<vmem>>, vector<32x96xf32>
    %cst_52 = arith.constant dense<0.000000e+00> : vector<2x96xf32>
    %120 = tpu.matmul %115, %119, %cst_52 {dimension_numbers = #tpu.dot_dimension_numbers<[1], [0], [0], [1], [0, 0, 1, 1], [], []>} : vector<2x32xf32>, vector<32x96xf32>, vector<2x96xf32> -> vector<2x96xf32>
    %c0_53 = arith.constant 0 : index
    %c0_54 = arith.constant 0 : index
    %121 = vector.load %arg4[%c0_53, %c0_54] : memref<1x96xf32, #tpu.memory_space<vmem>>, vector<1x96xf32>
    %122 = vector.broadcast %121 : vector<1x96xf32> to vector<2x96xf32>
    %123 = arith.addf %120, %122 : vector<2x96xf32>
    %c3 = arith.constant 3 : index
    %c0_55 = arith.constant 0 : index
    %c0_56 = arith.constant 0 : index
    %124 = vector.load %arg8[%c3, %c0_55, %c0_56] : memref<8x2x96xf32, #tpu.memory_space<vmem>>, vector<1x2x96xf32>
    %125 = vector.shape_cast %124 : vector<1x2x96xf32> to vector<2x96xf32>
    %126 = vector.extract_strided_slice %125 {offsets = [0, 0], sizes = [2, 32], strides = [1, 1]} : vector<2x96xf32> to vector<2x32xf32>
    %127 = vector.extract_strided_slice %123 {offsets = [0, 0], sizes = [2, 32], strides = [1, 1]} : vector<2x96xf32> to vector<2x32xf32>
    %128 = arith.addf %126, %127 : vector<2x32xf32>
    %129 = arith.negf %128 : vector<2x32xf32>
    %130 = math.exp %129 : vector<2x32xf32>
    %cst_57 = arith.constant 1.000000e+00 : f32
    %131 = vector.broadcast %cst_57 : f32 to vector<2x32xf32>
    %132 = arith.addf %131, %130 : vector<2x32xf32>
    %133 = arith.divf %131, %132 : vector<2x32xf32>
    %134 = vector.extract_strided_slice %125 {offsets = [0, 32], sizes = [2, 32], strides = [1, 1]} : vector<2x96xf32> to vector<2x32xf32>
    %135 = vector.extract_strided_slice %123 {offsets = [0, 32], sizes = [2, 32], strides = [1, 1]} : vector<2x96xf32> to vector<2x32xf32>
    %136 = arith.addf %134, %135 : vector<2x32xf32>
    %137 = arith.negf %136 : vector<2x32xf32>
    %138 = math.exp %137 : vector<2x32xf32>
    %cst_58 = arith.constant 1.000000e+00 : f32
    %139 = vector.broadcast %cst_58 : f32 to vector<2x32xf32>
    %140 = arith.addf %139, %138 : vector<2x32xf32>
    %141 = arith.divf %139, %140 : vector<2x32xf32>
    %142 = vector.extract_strided_slice %125 {offsets = [0, 64], sizes = [2, 32], strides = [1, 1]} : vector<2x96xf32> to vector<2x32xf32>
    %143 = vector.extract_strided_slice %123 {offsets = [0, 64], sizes = [2, 32], strides = [1, 1]} : vector<2x96xf32> to vector<2x32xf32>
    %144 = arith.mulf %133, %143 : vector<2x32xf32>
    %145 = arith.addf %142, %144 : vector<2x32xf32>
    %146 = math.tanh %145 : vector<2x32xf32>
    %cst_59 = arith.constant 1.000000e+00 : f32
    %147 = vector.broadcast %cst_59 : f32 to vector<2x32xf32>
    %148 = arith.subf %147, %141 : vector<2x32xf32>
    %149 = arith.mulf %148, %146 : vector<2x32xf32>
    %150 = arith.mulf %141, %115 : vector<2x32xf32>
    %151 = arith.addf %149, %150 : vector<2x32xf32>
    %c3_60 = arith.constant 3 : index
    %c0_61 = arith.constant 0 : index
    %c0_62 = arith.constant 0 : index
    %152 = vector.load %arg9[%c3_60, %c0_61, %c0_62] : memref<8x2x32xf32, #tpu.memory_space<vmem>>, vector<1x2x32xf32>
    %153 = vector.shape_cast %152 : vector<1x2x32xf32> to vector<2x32xf32>
    %154 = vector.shape_cast %151 : vector<2x32xf32> to vector<1x2x32xf32>
    tpu.vector_store %arg9[%c3_60, %c0_61, %c0_62], %154 {strides = array<i32>} : memref<8x2x32xf32, #tpu.memory_space<vmem>>, vector<1x2x32xf32>,
    %c0_63 = arith.constant 0 : index
    %c0_64 = arith.constant 0 : index
    %155 = vector.load %arg2[%c0_63, %c0_64] : memref<32x96xf32, #tpu.memory_space<vmem>>, vector<32x96xf32>
    %cst_65 = arith.constant dense<0.000000e+00> : vector<2x96xf32>
    %156 = tpu.matmul %151, %155, %cst_65 {dimension_numbers = #tpu.dot_dimension_numbers<[1], [0], [0], [1], [0, 0, 1, 1], [], []>} : vector<2x32xf32>, vector<32x96xf32>, vector<2x96xf32> -> vector<2x96xf32>
    %c0_66 = arith.constant 0 : index
    %c0_67 = arith.constant 0 : index
    %157 = vector.load %arg4[%c0_66, %c0_67] : memref<1x96xf32, #tpu.memory_space<vmem>>, vector<1x96xf32>
    %158 = vector.broadcast %157 : vector<1x96xf32> to vector<2x96xf32>
    %159 = arith.addf %156, %158 : vector<2x96xf32>
    %c4 = arith.constant 4 : index
    %c0_68 = arith.constant 0 : index
    %c0_69 = arith.constant 0 : index
    %160 = vector.load %arg8[%c4, %c0_68, %c0_69] : memref<8x2x96xf32, #tpu.memory_space<vmem>>, vector<1x2x96xf32>
    %161 = vector.shape_cast %160 : vector<1x2x96xf32> to vector<2x96xf32>
    %162 = vector.extract_strided_slice %161 {offsets = [0, 0], sizes = [2, 32], strides = [1, 1]} : vector<2x96xf32> to vector<2x32xf32>
    %163 = vector.extract_strided_slice %159 {offsets = [0, 0], sizes = [2, 32], strides = [1, 1]} : vector<2x96xf32> to vector<2x32xf32>
    %164 = arith.addf %162, %163 : vector<2x32xf32>
    %165 = arith.negf %164 : vector<2x32xf32>
    %166 = math.exp %165 : vector<2x32xf32>
    %cst_70 = arith.constant 1.000000e+00 : f32
    %167 = vector.broadcast %cst_70 : f32 to vector<2x32xf32>
    %168 = arith.addf %167, %166 : vector<2x32xf32>
    %169 = arith.divf %167, %168 : vector<2x32xf32>
    %170 = vector.extract_strided_slice %161 {offsets = [0, 32], sizes = [2, 32], strides = [1, 1]} : vector<2x96xf32> to vector<2x32xf32>
    %171 = vector.extract_strided_slice %159 {offsets = [0, 32], sizes = [2, 32], strides = [1, 1]} : vector<2x96xf32> to vector<2x32xf32>
    %172 = arith.addf %170, %171 : vector<2x32xf32>
    %173 = arith.negf %172 : vector<2x32xf32>
    %174 = math.exp %173 : vector<2x32xf32>
    %cst_71 = arith.constant 1.000000e+00 : f32
    %175 = vector.broadcast %cst_71 : f32 to vector<2x32xf32>
    %176 = arith.addf %175, %174 : vector<2x32xf32>
    %177 = arith.divf %175, %176 : vector<2x32xf32>
    %178 = vector.extract_strided_slice %161 {offsets = [0, 64], sizes = [2, 32], strides = [1, 1]} : vector<2x96xf32> to vector<2x32xf32>
    %179 = vector.extract_strided_slice %159 {offsets = [0, 64], sizes = [2, 32], strides = [1, 1]} : vector<2x96xf32> to vector<2x32xf32>
    %180 = arith.mulf %169, %179 : vector<2x32xf32>
    %181 = arith.addf %178, %180 : vector<2x32xf32>
    %182 = math.tanh %181 : vector<2x32xf32>
    %cst_72 = arith.constant 1.000000e+00 : f32
    %183 = vector.broadcast %cst_72 : f32 to vector<2x32xf32>
    %184 = arith.subf %183, %177 : vector<2x32xf32>
    %185 = arith.mulf %184, %182 : vector<2x32xf32>
    %186 = arith.mulf %177, %151 : vector<2x32xf32>
    %187 = arith.addf %185, %186 : vector<2x32xf32>
    %c4_73 = arith.constant 4 : index
    %c0_74 = arith.constant 0 : index
    %c0_75 = arith.constant 0 : index
    %188 = vector.load %arg9[%c4_73, %c0_74, %c0_75] : memref<8x2x32xf32, #tpu.memory_space<vmem>>, vector<1x2x32xf32>
    %189 = vector.shape_cast %188 : vector<1x2x32xf32> to vector<2x32xf32>
    %190 = vector.shape_cast %187 : vector<2x32xf32> to vector<1x2x32xf32>
    tpu.vector_store %arg9[%c4_73, %c0_74, %c0_75], %190 {strides = array<i32>} : memref<8x2x32xf32, #tpu.memory_space<vmem>>, vector<1x2x32xf32>,
    %c0_76 = arith.constant 0 : index
    %c0_77 = arith.constant 0 : index
    %191 = vector.load %arg2[%c0_76, %c0_77] : memref<32x96xf32, #tpu.memory_space<vmem>>, vector<32x96xf32>
    %cst_78 = arith.constant dense<0.000000e+00> : vector<2x96xf32>
    %192 = tpu.matmul %187, %191, %cst_78 {dimension_numbers = #tpu.dot_dimension_numbers<[1], [0], [0], [1], [0, 0, 1, 1], [], []>} : vector<2x32xf32>, vector<32x96xf32>, vector<2x96xf32> -> vector<2x96xf32>
    %c0_79 = arith.constant 0 : index
    %c0_80 = arith.constant 0 : index
    %193 = vector.load %arg4[%c0_79, %c0_80] : memref<1x96xf32, #tpu.memory_space<vmem>>, vector<1x96xf32>
    %194 = vector.broadcast %193 : vector<1x96xf32> to vector<2x96xf32>
    %195 = arith.addf %192, %194 : vector<2x96xf32>
    %c5 = arith.constant 5 : index
    %c0_81 = arith.constant 0 : index
    %c0_82 = arith.constant 0 : index
    %196 = vector.load %arg8[%c5, %c0_81, %c0_82] : memref<8x2x96xf32, #tpu.memory_space<vmem>>, vector<1x2x96xf32>
    %197 = vector.shape_cast %196 : vector<1x2x96xf32> to vector<2x96xf32>
    %198 = vector.extract_strided_slice %197 {offsets = [0, 0], sizes = [2, 32], strides = [1, 1]} : vector<2x96xf32> to vector<2x32xf32>
    %199 = vector.extract_strided_slice %195 {offsets = [0, 0], sizes = [2, 32], strides = [1, 1]} : vector<2x96xf32> to vector<2x32xf32>
    %200 = arith.addf %198, %199 : vector<2x32xf32>
    %201 = arith.negf %200 : vector<2x32xf32>
    %202 = math.exp %201 : vector<2x32xf32>
    %cst_83 = arith.constant 1.000000e+00 : f32
    %203 = vector.broadcast %cst_83 : f32 to vector<2x32xf32>
    %204 = arith.addf %203, %202 : vector<2x32xf32>
    %205 = arith.divf %203, %204 : vector<2x32xf32>
    %206 = vector.extract_strided_slice %197 {offsets = [0, 32], sizes = [2, 32], strides = [1, 1]} : vector<2x96xf32> to vector<2x32xf32>
    %207 = vector.extract_strided_slice %195 {offsets = [0, 32], sizes = [2, 32], strides = [1, 1]} : vector<2x96xf32> to vector<2x32xf32>
    %208 = arith.addf %206, %207 : vector<2x32xf32>
    %209 = arith.negf %208 : vector<2x32xf32>
    %210 = math.exp %209 : vector<2x32xf32>
    %cst_84 = arith.constant 1.000000e+00 : f32
    %211 = vector.broadcast %cst_84 : f32 to vector<2x32xf32>
    %212 = arith.addf %211, %210 : vector<2x32xf32>
    %213 = arith.divf %211, %212 : vector<2x32xf32>
    %214 = vector.extract_strided_slice %197 {offsets = [0, 64], sizes = [2, 32], strides = [1, 1]} : vector<2x96xf32> to vector<2x32xf32>
    %215 = vector.extract_strided_slice %195 {offsets = [0, 64], sizes = [2, 32], strides = [1, 1]} : vector<2x96xf32> to vector<2x32xf32>
    %216 = arith.mulf %205, %215 : vector<2x32xf32>
    %217 = arith.addf %214, %216 : vector<2x32xf32>
    %218 = math.tanh %217 : vector<2x32xf32>
    %cst_85 = arith.constant 1.000000e+00 : f32
    %219 = vector.broadcast %cst_85 : f32 to vector<2x32xf32>
    %220 = arith.subf %219, %213 : vector<2x32xf32>
    %221 = arith.mulf %220, %218 : vector<2x32xf32>
    %222 = arith.mulf %213, %187 : vector<2x32xf32>
    %223 = arith.addf %221, %222 : vector<2x32xf32>
    %c5_86 = arith.constant 5 : index
    %c0_87 = arith.constant 0 : index
    %c0_88 = arith.constant 0 : index
    %224 = vector.load %arg9[%c5_86, %c0_87, %c0_88] : memref<8x2x32xf32, #tpu.memory_space<vmem>>, vector<1x2x32xf32>
    %225 = vector.shape_cast %224 : vector<1x2x32xf32> to vector<2x32xf32>
    %226 = vector.shape_cast %223 : vector<2x32xf32> to vector<1x2x32xf32>
    tpu.vector_store %arg9[%c5_86, %c0_87, %c0_88], %226 {strides = array<i32>} : memref<8x2x32xf32, #tpu.memory_space<vmem>>, vector<1x2x32xf32>,
    %c0_89 = arith.constant 0 : index
    %c0_90 = arith.constant 0 : index
    %227 = vector.load %arg2[%c0_89, %c0_90] : memref<32x96xf32, #tpu.memory_space<vmem>>, vector<32x96xf32>
    %cst_91 = arith.constant dense<0.000000e+00> : vector<2x96xf32>
    %228 = tpu.matmul %223, %227, %cst_91 {dimension_numbers = #tpu.dot_dimension_numbers<[1], [0], [0], [1], [0, 0, 1, 1], [], []>} : vector<2x32xf32>, vector<32x96xf32>, vector<2x96xf32> -> vector<2x96xf32>
    %c0_92 = arith.constant 0 : index
    %c0_93 = arith.constant 0 : index
    %229 = vector.load %arg4[%c0_92, %c0_93] : memref<1x96xf32, #tpu.memory_space<vmem>>, vector<1x96xf32>
    %230 = vector.broadcast %229 : vector<1x96xf32> to vector<2x96xf32>
    %231 = arith.addf %228, %230 : vector<2x96xf32>
    %c6 = arith.constant 6 : index
    %c0_94 = arith.constant 0 : index
    %c0_95 = arith.constant 0 : index
    %232 = vector.load %arg8[%c6, %c0_94, %c0_95] : memref<8x2x96xf32, #tpu.memory_space<vmem>>, vector<1x2x96xf32>
    %233 = vector.shape_cast %232 : vector<1x2x96xf32> to vector<2x96xf32>
    %234 = vector.extract_strided_slice %233 {offsets = [0, 0], sizes = [2, 32], strides = [1, 1]} : vector<2x96xf32> to vector<2x32xf32>
    %235 = vector.extract_strided_slice %231 {offsets = [0, 0], sizes = [2, 32], strides = [1, 1]} : vector<2x96xf32> to vector<2x32xf32>
    %236 = arith.addf %234, %235 : vector<2x32xf32>
    %237 = arith.negf %236 : vector<2x32xf32>
    %238 = math.exp %237 : vector<2x32xf32>
    %cst_96 = arith.constant 1.000000e+00 : f32
    %239 = vector.broadcast %cst_96 : f32 to vector<2x32xf32>
    %240 = arith.addf %239, %238 : vector<2x32xf32>
    %241 = arith.divf %239, %240 : vector<2x32xf32>
    %242 = vector.extract_strided_slice %233 {offsets = [0, 32], sizes = [2, 32], strides = [1, 1]} : vector<2x96xf32> to vector<2x32xf32>
    %243 = vector.extract_strided_slice %231 {offsets = [0, 32], sizes = [2, 32], strides = [1, 1]} : vector<2x96xf32> to vector<2x32xf32>
    %244 = arith.addf %242, %243 : vector<2x32xf32>
    %245 = arith.negf %244 : vector<2x32xf32>
    %246 = math.exp %245 : vector<2x32xf32>
    %cst_97 = arith.constant 1.000000e+00 : f32
    %247 = vector.broadcast %cst_97 : f32 to vector<2x32xf32>
    %248 = arith.addf %247, %246 : vector<2x32xf32>
    %249 = arith.divf %247, %248 : vector<2x32xf32>
    %250 = vector.extract_strided_slice %233 {offsets = [0, 64], sizes = [2, 32], strides = [1, 1]} : vector<2x96xf32> to vector<2x32xf32>
    %251 = vector.extract_strided_slice %231 {offsets = [0, 64], sizes = [2, 32], strides = [1, 1]} : vector<2x96xf32> to vector<2x32xf32>
    %252 = arith.mulf %241, %251 : vector<2x32xf32>
    %253 = arith.addf %250, %252 : vector<2x32xf32>
    %254 = math.tanh %253 : vector<2x32xf32>
    %cst_98 = arith.constant 1.000000e+00 : f32
    %255 = vector.broadcast %cst_98 : f32 to vector<2x32xf32>
    %256 = arith.subf %255, %249 : vector<2x32xf32>
    %257 = arith.mulf %256, %254 : vector<2x32xf32>
    %258 = arith.mulf %249, %223 : vector<2x32xf32>
    %259 = arith.addf %257, %258 : vector<2x32xf32>
    %c6_99 = arith.constant 6 : index
    %c0_100 = arith.constant 0 : index
    %c0_101 = arith.constant 0 : index
    %260 = vector.load %arg9[%c6_99, %c0_100, %c0_101] : memref<8x2x32xf32, #tpu.memory_space<vmem>>, vector<1x2x32xf32>
    %261 = vector.shape_cast %260 : vector<1x2x32xf32> to vector<2x32xf32>
    %262 = vector.shape_cast %259 : vector<2x32xf32> to vector<1x2x32xf32>
    tpu.vector_store %arg9[%c6_99, %c0_100, %c0_101], %262 {strides = array<i32>} : memref<8x2x32xf32, #tpu.memory_space<vmem>>, vector<1x2x32xf32>,
    %c0_102 = arith.constant 0 : index
    %c0_103 = arith.constant 0 : index
    %263 = vector.load %arg2[%c0_102, %c0_103] : memref<32x96xf32, #tpu.memory_space<vmem>>, vector<32x96xf32>
    %cst_104 = arith.constant dense<0.000000e+00> : vector<2x96xf32>
    %264 = tpu.matmul %259, %263, %cst_104 {dimension_numbers = #tpu.dot_dimension_numbers<[1], [0], [0], [1], [0, 0, 1, 1], [], []>} : vector<2x32xf32>, vector<32x96xf32>, vector<2x96xf32> -> vector<2x96xf32>
    %c0_105 = arith.constant 0 : index
    %c0_106 = arith.constant 0 : index
    %265 = vector.load %arg4[%c0_105, %c0_106] : memref<1x96xf32, #tpu.memory_space<vmem>>, vector<1x96xf32>
    %266 = vector.broadcast %265 : vector<1x96xf32> to vector<2x96xf32>
    %267 = arith.addf %264, %266 : vector<2x96xf32>
    %c7 = arith.constant 7 : index
    %c0_107 = arith.constant 0 : index
    %c0_108 = arith.constant 0 : index
    %268 = vector.load %arg8[%c7, %c0_107, %c0_108] : memref<8x2x96xf32, #tpu.memory_space<vmem>>, vector<1x2x96xf32>
    %269 = vector.shape_cast %268 : vector<1x2x96xf32> to vector<2x96xf32>
    %270 = vector.extract_strided_slice %269 {offsets = [0, 0], sizes = [2, 32], strides = [1, 1]} : vector<2x96xf32> to vector<2x32xf32>
    %271 = vector.extract_strided_slice %267 {offsets = [0, 0], sizes = [2, 32], strides = [1, 1]} : vector<2x96xf32> to vector<2x32xf32>
    %272 = arith.addf %270, %271 : vector<2x32xf32>
    %273 = arith.negf %272 : vector<2x32xf32>
    %274 = math.exp %273 : vector<2x32xf32>
    %cst_109 = arith.constant 1.000000e+00 : f32
    %275 = vector.broadcast %cst_109 : f32 to vector<2x32xf32>
    %276 = arith.addf %275, %274 : vector<2x32xf32>
    %277 = arith.divf %275, %276 : vector<2x32xf32>
    %278 = vector.extract_strided_slice %269 {offsets = [0, 32], sizes = [2, 32], strides = [1, 1]} : vector<2x96xf32> to vector<2x32xf32>
    %279 = vector.extract_strided_slice %267 {offsets = [0, 32], sizes = [2, 32], strides = [1, 1]} : vector<2x96xf32> to vector<2x32xf32>
    %280 = arith.addf %278, %279 : vector<2x32xf32>
    %281 = arith.negf %280 : vector<2x32xf32>
    %282 = math.exp %281 : vector<2x32xf32>
    %cst_110 = arith.constant 1.000000e+00 : f32
    %283 = vector.broadcast %cst_110 : f32 to vector<2x32xf32>
    %284 = arith.addf %283, %282 : vector<2x32xf32>
    %285 = arith.divf %283, %284 : vector<2x32xf32>
    %286 = vector.extract_strided_slice %269 {offsets = [0, 64], sizes = [2, 32], strides = [1, 1]} : vector<2x96xf32> to vector<2x32xf32>
    %287 = vector.extract_strided_slice %267 {offsets = [0, 64], sizes = [2, 32], strides = [1, 1]} : vector<2x96xf32> to vector<2x32xf32>
    %288 = arith.mulf %277, %287 : vector<2x32xf32>
    %289 = arith.addf %286, %288 : vector<2x32xf32>
    %290 = math.tanh %289 : vector<2x32xf32>
    %cst_111 = arith.constant 1.000000e+00 : f32
    %291 = vector.broadcast %cst_111 : f32 to vector<2x32xf32>
    %292 = arith.subf %291, %285 : vector<2x32xf32>
    %293 = arith.mulf %292, %290 : vector<2x32xf32>
    %294 = arith.mulf %285, %259 : vector<2x32xf32>
    %295 = arith.addf %293, %294 : vector<2x32xf32>
    %c7_112 = arith.constant 7 : index
    %c0_113 = arith.constant 0 : index
    %c0_114 = arith.constant 0 : index
    %296 = vector.load %arg9[%c7_112, %c0_113, %c0_114] : memref<8x2x32xf32, #tpu.memory_space<vmem>>, vector<1x2x32xf32>
    %297 = vector.shape_cast %296 : vector<1x2x32xf32> to vector<2x32xf32>
    %298 = vector.shape_cast %295 : vector<2x32xf32> to vector<1x2x32xf32>
    tpu.vector_store %arg9[%c7_112, %c0_113, %c0_114], %298 {strides = array<i32>} : memref<8x2x32xf32, #tpu.memory_space<vmem>>, vector<1x2x32xf32>,
    %c0_115 = arith.constant 0 : index
    %c0_116 = arith.constant 0 : index
    %c0_117 = arith.constant 0 : index
    %299 = vector.load %arg9[%c0_115, %c0_116, %c0_117] : memref<8x2x32xf32, #tpu.memory_space<vmem>>, vector<8x2x32xf32>
    %300 = vector.shape_cast %299 : vector<8x2x32xf32> to vector<16x32xf32>
    %c0_118 = arith.constant 0 : index
    %c0_119 = arith.constant 0 : index
    %301 = vector.load %arg5[%c0_118, %c0_119] : memref<32x32xf32, #tpu.memory_space<vmem>>, vector<32x32xf32>
    %cst_120 = arith.constant dense<0.000000e+00> : vector<16x32xf32>
    %302 = tpu.matmul %300, %301, %cst_120 {dimension_numbers = #tpu.dot_dimension_numbers<[1], [0], [0], [1], [0, 0, 1, 1], [], []>} : vector<16x32xf32>, vector<32x32xf32>, vector<16x32xf32> -> vector<16x32xf32>
    %c0_121 = arith.constant 0 : index
    %c0_122 = arith.constant 0 : index
    %303 = vector.load %arg6[%c0_121, %c0_122] : memref<1x32xf32, #tpu.memory_space<vmem>>, vector<1x32xf32>
    %304 = vector.broadcast %303 : vector<1x32xf32> to vector<16x32xf32>
    %305 = arith.addf %302, %304 : vector<16x32xf32>
    %306 = vector.shape_cast %305 : vector<16x32xf32> to vector<8x2x32xf32>
    %c0_123 = arith.constant 0 : index
    %c0_124 = arith.constant 0 : index
    %c0_125 = arith.constant 0 : index
    %307 = vector.load %arg0[%c0_123, %c0_124, %c0_125] : memref<2x8x32xf32, #tpu.memory_space<vmem>>, vector<2x8x32xf32>
    %308 = tpu.transpose %306, [1, 0, 2] : vector<8x2x32xf32> -> vector<2x8x32xf32>
    %309 = arith.addf %307, %308 : vector<2x8x32xf32>
    %c0_126 = arith.constant 0 : index
    %c0_127 = arith.constant 0 : index
    %c0_128 = arith.constant 0 : index
    %310 = vector.load %arg7[%c0_126, %c0_127, %c0_128] : memref<2x8x32xf32, #tpu.memory_space<vmem>>, vector<2x8x32xf32>
    tpu.vector_store %arg7[%c0_126, %c0_127, %c0_128], %309 {strides = array<i32>} : memref<2x8x32xf32, #tpu.memory_space<vmem>>, vector<2x8x32xf32>,
    return
  }
}

module attributes {stable_mosaic.version = 11 : i64} {
  func.func @time_stack_kernel(%arg0: i32, %arg1: i32, %arg2: memref<1x8x8x32xf32, #tpu.memory_space<vmem>>, %arg3: memref<1x8x8x32xf32, #tpu.memory_space<vmem>>, %arg4: memref<32x96xf32, #tpu.memory_space<vmem>>, %arg5: memref<32x96xf32, #tpu.memory_space<vmem>>, %arg6: memref<1x96xf32, #tpu.memory_space<vmem>>, %arg7: memref<1x96xf32, #tpu.memory_space<vmem>>, %arg8: memref<32x96xf32, #tpu.memory_space<vmem>>, %arg9: memref<32x96xf32, #tpu.memory_space<vmem>>, %arg10: memref<1x96xf32, #tpu.memory_space<vmem>>, %arg11: memref<1x96xf32, #tpu.memory_space<vmem>>, %arg12: memref<32x32xf32, #tpu.memory_space<vmem>>, %arg13: memref<32x32xf32, #tpu.memory_space<vmem>>, %arg14: memref<32x32xf32, #tpu.memory_space<vmem>>, %arg15: memref<1x32xf32, #tpu.memory_space<vmem>>, %arg16: memref<1x8x8x32xf32, #tpu.memory_space<vmem>>, %arg17: memref<8x8x96xf32, #tpu.memory_space<vmem>>, %arg18: memref<8x8x96xf32, #tpu.memory_space<vmem>>, %arg19: memref<8x8x32xf32, #tpu.memory_space<vmem>>, %arg20: memref<8x8x32xf32, #tpu.memory_space<vmem>>) attributes {dimension_semantics = [#tpu.dimension_semantics<parallel>, #tpu.dimension_semantics<parallel>], iteration_bounds = array<i64: 2, 1>, scalar_prefetch = 0 : i64, scratch_operands = 4 : i64, tpu.core_type = #tpu.core_type<tc>, window_params = [{transform_indices = @transform_0, window_bounds = array<i64: 1, 8, 8, 32>}, {transform_indices = @transform_1, window_bounds = array<i64: 1, 8, 8, 32>}, {pipeline_mode = #tpu.pipeline_mode<synchronous>, transform_indices = @transform_2, window_bounds = array<i64: 32, 96>}, {pipeline_mode = #tpu.pipeline_mode<synchronous>, transform_indices = @transform_3, window_bounds = array<i64: 32, 96>}, {pipeline_mode = #tpu.pipeline_mode<synchronous>, transform_indices = @transform_4, window_bounds = array<i64: 1, 96>}, {pipeline_mode = #tpu.pipeline_mode<synchronous>, transform_indices = @transform_5, window_bounds = array<i64: 1, 96>}, {pipeline_mode = #tpu.pipeline_mode<synchronous>, transform_indices = @transform_6, window_bounds = array<i64: 32, 96>}, {pipeline_mode = #tpu.pipeline_mode<synchronous>, transform_indices = @transform_7, window_bounds = array<i64: 32, 96>}, {pipeline_mode = #tpu.pipeline_mode<synchronous>, transform_indices = @transform_8, window_bounds = array<i64: 1, 96>}, {pipeline_mode = #tpu.pipeline_mode<synchronous>, transform_indices = @transform_9, window_bounds = array<i64: 1, 96>}, {pipeline_mode = #tpu.pipeline_mode<synchronous>, transform_indices = @transform_10, window_bounds = array<i64: 32, 32>}, {pipeline_mode = #tpu.pipeline_mode<synchronous>, transform_indices = @transform_11, window_bounds = array<i64: 32, 32>}, {pipeline_mode = #tpu.pipeline_mode<synchronous>, transform_indices = @transform_12, window_bounds = array<i64: 32, 32>}, {pipeline_mode = #tpu.pipeline_mode<synchronous>, transform_indices = @transform_13, window_bounds = array<i64: 1, 32>}, {transform_indices = @transform_14, window_bounds = array<i64: 1, 8, 8, 32>}]} {
    %c0 = arith.constant 0 : index
    %c0_0 = arith.constant 0 : index
    %c0_1 = arith.constant 0 : index
    %c0_2 = arith.constant 0 : index
    %0 = vector.load %arg2[%c0, %c0_0, %c0_1, %c0_2] : memref<1x8x8x32xf32, #tpu.memory_space<vmem>>, vector<1x8x8x32xf32>
    %1 = vector.shape_cast %0 : vector<1x8x8x32xf32> to vector<8x8x32xf32>
    %2 = tpu.transpose %1, [1, 0, 2] : vector<8x8x32xf32> -> vector<8x8x32xf32>
    %3 = vector.shape_cast %2 : vector<8x8x32xf32> to vector<64x32xf32>
    %c0_3 = arith.constant 0 : index
    %c0_4 = arith.constant 0 : index
    %4 = vector.load %arg4[%c0_3, %c0_4] : memref<32x96xf32, #tpu.memory_space<vmem>>, vector<32x96xf32>
    %cst = arith.constant dense<0.000000e+00> : vector<64x96xf32>
    %5 = tpu.matmul %3, %4, %cst {dimension_numbers = #tpu.dot_dimension_numbers<[1], [0], [0], [1], [0, 0, 1, 1], [], []>} : vector<64x32xf32>, vector<32x96xf32>, vector<64x96xf32> -> vector<64x96xf32>
    %c0_5 = arith.constant 0 : index
    %c0_6 = arith.constant 0 : index
    %6 = vector.load %arg6[%c0_5, %c0_6] : memref<1x96xf32, #tpu.memory_space<vmem>>, vector<1x96xf32>
    %7 = vector.broadcast %6 : vector<1x96xf32> to vector<64x96xf32>
    %8 = arith.addf %5, %7 : vector<64x96xf32>
    %9 = vector.shape_cast %8 : vector<64x96xf32> to vector<8x8x96xf32>
    %c0_7 = arith.constant 0 : index
    %c0_8 = arith.constant 0 : index
    %c0_9 = arith.constant 0 : index
    %10 = vector.load %arg17[%c0_7, %c0_8, %c0_9] : memref<8x8x96xf32, #tpu.memory_space<vmem>>, vector<8x8x96xf32>
    tpu.vector_store %arg17[%c0_7, %c0_8, %c0_9], %9 {strides = array<i32>} : memref<8x8x96xf32, #tpu.memory_space<vmem>>, vector<8x8x96xf32>,
    %c0_10 = arith.constant 0 : index
    %c0_11 = arith.constant 0 : index
    %11 = vector.load %arg8[%c0_10, %c0_11] : memref<32x96xf32, #tpu.memory_space<vmem>>, vector<32x96xf32>
    %cst_12 = arith.constant dense<0.000000e+00> : vector<64x96xf32>
    %12 = tpu.matmul %3, %11, %cst_12 {dimension_numbers = #tpu.dot_dimension_numbers<[1], [0], [0], [1], [0, 0, 1, 1], [], []>} : vector<64x32xf32>, vector<32x96xf32>, vector<64x96xf32> -> vector<64x96xf32>
    %c0_13 = arith.constant 0 : index
    %c0_14 = arith.constant 0 : index
    %13 = vector.load %arg10[%c0_13, %c0_14] : memref<1x96xf32, #tpu.memory_space<vmem>>, vector<1x96xf32>
    %14 = vector.broadcast %13 : vector<1x96xf32> to vector<64x96xf32>
    %15 = arith.addf %12, %14 : vector<64x96xf32>
    %16 = vector.shape_cast %15 : vector<64x96xf32> to vector<8x8x96xf32>
    %c0_15 = arith.constant 0 : index
    %c0_16 = arith.constant 0 : index
    %c0_17 = arith.constant 0 : index
    %17 = vector.load %arg18[%c0_15, %c0_16, %c0_17] : memref<8x8x96xf32, #tpu.memory_space<vmem>>, vector<8x8x96xf32>
    tpu.vector_store %arg18[%c0_15, %c0_16, %c0_17], %16 {strides = array<i32>} : memref<8x8x96xf32, #tpu.memory_space<vmem>>, vector<8x8x96xf32>,
    %cst_18 = arith.constant 0.000000e+00 : f32
    %18 = vector.broadcast %cst_18 : f32 to vector<8x32xf32>
    %c0_19 = arith.constant 0 : index
    %c0_20 = arith.constant 0 : index
    %19 = vector.load %arg5[%c0_19, %c0_20] : memref<32x96xf32, #tpu.memory_space<vmem>>, vector<32x96xf32>
    %cst_21 = arith.constant dense<0.000000e+00> : vector<8x96xf32>
    %20 = tpu.matmul %18, %19, %cst_21 {dimension_numbers = #tpu.dot_dimension_numbers<[1], [0], [0], [1], [0, 0, 1, 1], [], []>} : vector<8x32xf32>, vector<32x96xf32>, vector<8x96xf32> -> vector<8x96xf32>
    %c0_22 = arith.constant 0 : index
    %c0_23 = arith.constant 0 : index
    %21 = vector.load %arg7[%c0_22, %c0_23] : memref<1x96xf32, #tpu.memory_space<vmem>>, vector<1x96xf32>
    %22 = vector.broadcast %21 : vector<1x96xf32> to vector<8x96xf32>
    %23 = arith.addf %20, %22 : vector<8x96xf32>
    %c0_24 = arith.constant 0 : index
    %c0_25 = arith.constant 0 : index
    %c0_26 = arith.constant 0 : index
    %24 = vector.load %arg17[%c0_24, %c0_25, %c0_26] : memref<8x8x96xf32, #tpu.memory_space<vmem>>, vector<1x8x96xf32>
    %25 = vector.shape_cast %24 : vector<1x8x96xf32> to vector<8x96xf32>
    %26 = vector.extract_strided_slice %25 {offsets = [0, 0], sizes = [8, 32], strides = [1, 1]} : vector<8x96xf32> to vector<8x32xf32>
    %27 = vector.extract_strided_slice %23 {offsets = [0, 0], sizes = [8, 32], strides = [1, 1]} : vector<8x96xf32> to vector<8x32xf32>
    %28 = arith.addf %26, %27 : vector<8x32xf32>
    %29 = arith.negf %28 : vector<8x32xf32>
    %30 = math.exp %29 : vector<8x32xf32>
    %cst_27 = arith.constant 1.000000e+00 : f32
    %31 = vector.broadcast %cst_27 : f32 to vector<8x32xf32>
    %32 = arith.addf %31, %30 : vector<8x32xf32>
    %33 = arith.divf %31, %32 : vector<8x32xf32>
    %34 = vector.extract_strided_slice %25 {offsets = [0, 32], sizes = [8, 32], strides = [1, 1]} : vector<8x96xf32> to vector<8x32xf32>
    %35 = vector.extract_strided_slice %23 {offsets = [0, 32], sizes = [8, 32], strides = [1, 1]} : vector<8x96xf32> to vector<8x32xf32>
    %36 = arith.addf %34, %35 : vector<8x32xf32>
    %37 = arith.negf %36 : vector<8x32xf32>
    %38 = math.exp %37 : vector<8x32xf32>
    %cst_28 = arith.constant 1.000000e+00 : f32
    %39 = vector.broadcast %cst_28 : f32 to vector<8x32xf32>
    %40 = arith.addf %39, %38 : vector<8x32xf32>
    %41 = arith.divf %39, %40 : vector<8x32xf32>
    %42 = vector.extract_strided_slice %25 {offsets = [0, 64], sizes = [8, 32], strides = [1, 1]} : vector<8x96xf32> to vector<8x32xf32>
    %43 = vector.extract_strided_slice %23 {offsets = [0, 64], sizes = [8, 32], strides = [1, 1]} : vector<8x96xf32> to vector<8x32xf32>
    %44 = arith.mulf %33, %43 : vector<8x32xf32>
    %45 = arith.addf %42, %44 : vector<8x32xf32>
    %46 = math.tanh %45 : vector<8x32xf32>
    %cst_29 = arith.constant 1.000000e+00 : f32
    %47 = vector.broadcast %cst_29 : f32 to vector<8x32xf32>
    %48 = arith.subf %47, %41 : vector<8x32xf32>
    %49 = arith.mulf %48, %46 : vector<8x32xf32>
    %50 = arith.mulf %41, %18 : vector<8x32xf32>
    %51 = arith.addf %49, %50 : vector<8x32xf32>
    %c0_30 = arith.constant 0 : index
    %c0_31 = arith.constant 0 : index
    %c0_32 = arith.constant 0 : index
    %52 = vector.load %arg19[%c0_30, %c0_31, %c0_32] : memref<8x8x32xf32, #tpu.memory_space<vmem>>, vector<1x8x32xf32>
    %53 = vector.shape_cast %52 : vector<1x8x32xf32> to vector<8x32xf32>
    %54 = vector.shape_cast %51 : vector<8x32xf32> to vector<1x8x32xf32>
    tpu.vector_store %arg19[%c0_30, %c0_31, %c0_32], %54 {strides = array<i32>} : memref<8x8x32xf32, #tpu.memory_space<vmem>>, vector<1x8x32xf32>,
    %c0_33 = arith.constant 0 : index
    %c0_34 = arith.constant 0 : index
    %55 = vector.load %arg9[%c0_33, %c0_34] : memref<32x96xf32, #tpu.memory_space<vmem>>, vector<32x96xf32>
    %cst_35 = arith.constant dense<0.000000e+00> : vector<8x96xf32>
    %56 = tpu.matmul %18, %55, %cst_35 {dimension_numbers = #tpu.dot_dimension_numbers<[1], [0], [0], [1], [0, 0, 1, 1], [], []>} : vector<8x32xf32>, vector<32x96xf32>, vector<8x96xf32> -> vector<8x96xf32>
    %c0_36 = arith.constant 0 : index
    %c0_37 = arith.constant 0 : index
    %57 = vector.load %arg11[%c0_36, %c0_37] : memref<1x96xf32, #tpu.memory_space<vmem>>, vector<1x96xf32>
    %58 = vector.broadcast %57 : vector<1x96xf32> to vector<8x96xf32>
    %59 = arith.addf %56, %58 : vector<8x96xf32>
    %c7 = arith.constant 7 : index
    %c0_38 = arith.constant 0 : index
    %c0_39 = arith.constant 0 : index
    %60 = vector.load %arg18[%c7, %c0_38, %c0_39] : memref<8x8x96xf32, #tpu.memory_space<vmem>>, vector<1x8x96xf32>
    %61 = vector.shape_cast %60 : vector<1x8x96xf32> to vector<8x96xf32>
    %62 = vector.extract_strided_slice %61 {offsets = [0, 0], sizes = [8, 32], strides = [1, 1]} : vector<8x96xf32> to vector<8x32xf32>
    %63 = vector.extract_strided_slice %59 {offsets = [0, 0], sizes = [8, 32], strides = [1, 1]} : vector<8x96xf32> to vector<8x32xf32>
    %64 = arith.addf %62, %63 : vector<8x32xf32>
    %65 = arith.negf %64 : vector<8x32xf32>
    %66 = math.exp %65 : vector<8x32xf32>
    %cst_40 = arith.constant 1.000000e+00 : f32
    %67 = vector.broadcast %cst_40 : f32 to vector<8x32xf32>
    %68 = arith.addf %67, %66 : vector<8x32xf32>
    %69 = arith.divf %67, %68 : vector<8x32xf32>
    %70 = vector.extract_strided_slice %61 {offsets = [0, 32], sizes = [8, 32], strides = [1, 1]} : vector<8x96xf32> to vector<8x32xf32>
    %71 = vector.extract_strided_slice %59 {offsets = [0, 32], sizes = [8, 32], strides = [1, 1]} : vector<8x96xf32> to vector<8x32xf32>
    %72 = arith.addf %70, %71 : vector<8x32xf32>
    %73 = arith.negf %72 : vector<8x32xf32>
    %74 = math.exp %73 : vector<8x32xf32>
    %cst_41 = arith.constant 1.000000e+00 : f32
    %75 = vector.broadcast %cst_41 : f32 to vector<8x32xf32>
    %76 = arith.addf %75, %74 : vector<8x32xf32>
    %77 = arith.divf %75, %76 : vector<8x32xf32>
    %78 = vector.extract_strided_slice %61 {offsets = [0, 64], sizes = [8, 32], strides = [1, 1]} : vector<8x96xf32> to vector<8x32xf32>
    %79 = vector.extract_strided_slice %59 {offsets = [0, 64], sizes = [8, 32], strides = [1, 1]} : vector<8x96xf32> to vector<8x32xf32>
    %80 = arith.mulf %69, %79 : vector<8x32xf32>
    %81 = arith.addf %78, %80 : vector<8x32xf32>
    %82 = math.tanh %81 : vector<8x32xf32>
    %cst_42 = arith.constant 1.000000e+00 : f32
    %83 = vector.broadcast %cst_42 : f32 to vector<8x32xf32>
    %84 = arith.subf %83, %77 : vector<8x32xf32>
    %85 = arith.mulf %84, %82 : vector<8x32xf32>
    %86 = arith.mulf %77, %18 : vector<8x32xf32>
    %87 = arith.addf %85, %86 : vector<8x32xf32>
    %c7_43 = arith.constant 7 : index
    %c0_44 = arith.constant 0 : index
    %c0_45 = arith.constant 0 : index
    %88 = vector.load %arg20[%c7_43, %c0_44, %c0_45] : memref<8x8x32xf32, #tpu.memory_space<vmem>>, vector<1x8x32xf32>
    %89 = vector.shape_cast %88 : vector<1x8x32xf32> to vector<8x32xf32>
    %90 = vector.shape_cast %87 : vector<8x32xf32> to vector<1x8x32xf32>
    tpu.vector_store %arg20[%c7_43, %c0_44, %c0_45], %90 {strides = array<i32>} : memref<8x8x32xf32, #tpu.memory_space<vmem>>, vector<1x8x32xf32>,
    %c0_46 = arith.constant 0 : index
    %c0_47 = arith.constant 0 : index
    %91 = vector.load %arg5[%c0_46, %c0_47] : memref<32x96xf32, #tpu.memory_space<vmem>>, vector<32x96xf32>
    %cst_48 = arith.constant dense<0.000000e+00> : vector<8x96xf32>
    %92 = tpu.matmul %51, %91, %cst_48 {dimension_numbers = #tpu.dot_dimension_numbers<[1], [0], [0], [1], [0, 0, 1, 1], [], []>} : vector<8x32xf32>, vector<32x96xf32>, vector<8x96xf32> -> vector<8x96xf32>
    %c0_49 = arith.constant 0 : index
    %c0_50 = arith.constant 0 : index
    %93 = vector.load %arg7[%c0_49, %c0_50] : memref<1x96xf32, #tpu.memory_space<vmem>>, vector<1x96xf32>
    %94 = vector.broadcast %93 : vector<1x96xf32> to vector<8x96xf32>
    %95 = arith.addf %92, %94 : vector<8x96xf32>
    %c1 = arith.constant 1 : index
    %c0_51 = arith.constant 0 : index
    %c0_52 = arith.constant 0 : index
    %96 = vector.load %arg17[%c1, %c0_51, %c0_52] : memref<8x8x96xf32, #tpu.memory_space<vmem>>, vector<1x8x96xf32>
    %97 = vector.shape_cast %96 : vector<1x8x96xf32> to vector<8x96xf32>
    %98 = vector.extract_strided_slice %97 {offsets = [0, 0], sizes = [8, 32], strides = [1, 1]} : vector<8x96xf32> to vector<8x32xf32>
    %99 = vector.extract_strided_slice %95 {offsets = [0, 0], sizes = [8, 32], strides = [1, 1]} : vector<8x96xf32> to vector<8x32xf32>
    %100 = arith.addf %98, %99 : vector<8x32xf32>
    %101 = arith.negf %100 : vector<8x32xf32>
    %102 = math.exp %101 : vector<8x32xf32>
    %cst_53 = arith.constant 1.000000e+00 : f32
    %103 = vector.broadcast %cst_53 : f32 to vector<8x32xf32>
    %104 = arith.addf %103, %102 : vector<8x32xf32>
    %105 = arith.divf %103, %104 : vector<8x32xf32>
    %106 = vector.extract_strided_slice %97 {offsets = [0, 32], sizes = [8, 32], strides = [1, 1]} : vector<8x96xf32> to vector<8x32xf32>
    %107 = vector.extract_strided_slice %95 {offsets = [0, 32], sizes = [8, 32], strides = [1, 1]} : vector<8x96xf32> to vector<8x32xf32>
    %108 = arith.addf %106, %107 : vector<8x32xf32>
    %109 = arith.negf %108 : vector<8x32xf32>
    %110 = math.exp %109 : vector<8x32xf32>
    %cst_54 = arith.constant 1.000000e+00 : f32
    %111 = vector.broadcast %cst_54 : f32 to vector<8x32xf32>
    %112 = arith.addf %111, %110 : vector<8x32xf32>
    %113 = arith.divf %111, %112 : vector<8x32xf32>
    %114 = vector.extract_strided_slice %97 {offsets = [0, 64], sizes = [8, 32], strides = [1, 1]} : vector<8x96xf32> to vector<8x32xf32>
    %115 = vector.extract_strided_slice %95 {offsets = [0, 64], sizes = [8, 32], strides = [1, 1]} : vector<8x96xf32> to vector<8x32xf32>
    %116 = arith.mulf %105, %115 : vector<8x32xf32>
    %117 = arith.addf %114, %116 : vector<8x32xf32>
    %118 = math.tanh %117 : vector<8x32xf32>
    %cst_55 = arith.constant 1.000000e+00 : f32
    %119 = vector.broadcast %cst_55 : f32 to vector<8x32xf32>
    %120 = arith.subf %119, %113 : vector<8x32xf32>
    %121 = arith.mulf %120, %118 : vector<8x32xf32>
    %122 = arith.mulf %113, %51 : vector<8x32xf32>
    %123 = arith.addf %121, %122 : vector<8x32xf32>
    %c1_56 = arith.constant 1 : index
    %c0_57 = arith.constant 0 : index
    %c0_58 = arith.constant 0 : index
    %124 = vector.load %arg19[%c1_56, %c0_57, %c0_58] : memref<8x8x32xf32, #tpu.memory_space<vmem>>, vector<1x8x32xf32>
    %125 = vector.shape_cast %124 : vector<1x8x32xf32> to vector<8x32xf32>
    %126 = vector.shape_cast %123 : vector<8x32xf32> to vector<1x8x32xf32>
    tpu.vector_store %arg19[%c1_56, %c0_57, %c0_58], %126 {strides = array<i32>} : memref<8x8x32xf32, #tpu.memory_space<vmem>>, vector<1x8x32xf32>,
    %c0_59 = arith.constant 0 : index
    %c0_60 = arith.constant 0 : index
    %127 = vector.load %arg9[%c0_59, %c0_60] : memref<32x96xf32, #tpu.memory_space<vmem>>, vector<32x96xf32>
    %cst_61 = arith.constant dense<0.000000e+00> : vector<8x96xf32>
    %128 = tpu.matmul %87, %127, %cst_61 {dimension_numbers = #tpu.dot_dimension_numbers<[1], [0], [0], [1], [0, 0, 1, 1], [], []>} : vector<8x32xf32>, vector<32x96xf32>, vector<8x96xf32> -> vector<8x96xf32>
    %c0_62 = arith.constant 0 : index
    %c0_63 = arith.constant 0 : index
    %129 = vector.load %arg11[%c0_62, %c0_63] : memref<1x96xf32, #tpu.memory_space<vmem>>, vector<1x96xf32>
    %130 = vector.broadcast %129 : vector<1x96xf32> to vector<8x96xf32>
    %131 = arith.addf %128, %130 : vector<8x96xf32>
    %c6 = arith.constant 6 : index
    %c0_64 = arith.constant 0 : index
    %c0_65 = arith.constant 0 : index
    %132 = vector.load %arg18[%c6, %c0_64, %c0_65] : memref<8x8x96xf32, #tpu.memory_space<vmem>>, vector<1x8x96xf32>
    %133 = vector.shape_cast %132 : vector<1x8x96xf32> to vector<8x96xf32>
    %134 = vector.extract_strided_slice %133 {offsets = [0, 0], sizes = [8, 32], strides = [1, 1]} : vector<8x96xf32> to vector<8x32xf32>
    %135 = vector.extract_strided_slice %131 {offsets = [0, 0], sizes = [8, 32], strides = [1, 1]} : vector<8x96xf32> to vector<8x32xf32>
    %136 = arith.addf %134, %135 : vector<8x32xf32>
    %137 = arith.negf %136 : vector<8x32xf32>
    %138 = math.exp %137 : vector<8x32xf32>
    %cst_66 = arith.constant 1.000000e+00 : f32
    %139 = vector.broadcast %cst_66 : f32 to vector<8x32xf32>
    %140 = arith.addf %139, %138 : vector<8x32xf32>
    %141 = arith.divf %139, %140 : vector<8x32xf32>
    %142 = vector.extract_strided_slice %133 {offsets = [0, 32], sizes = [8, 32], strides = [1, 1]} : vector<8x96xf32> to vector<8x32xf32>
    %143 = vector.extract_strided_slice %131 {offsets = [0, 32], sizes = [8, 32], strides = [1, 1]} : vector<8x96xf32> to vector<8x32xf32>
    %144 = arith.addf %142, %143 : vector<8x32xf32>
    %145 = arith.negf %144 : vector<8x32xf32>
    %146 = math.exp %145 : vector<8x32xf32>
    %cst_67 = arith.constant 1.000000e+00 : f32
    %147 = vector.broadcast %cst_67 : f32 to vector<8x32xf32>
    %148 = arith.addf %147, %146 : vector<8x32xf32>
    %149 = arith.divf %147, %148 : vector<8x32xf32>
    %150 = vector.extract_strided_slice %133 {offsets = [0, 64], sizes = [8, 32], strides = [1, 1]} : vector<8x96xf32> to vector<8x32xf32>
    %151 = vector.extract_strided_slice %131 {offsets = [0, 64], sizes = [8, 32], strides = [1, 1]} : vector<8x96xf32> to vector<8x32xf32>
    %152 = arith.mulf %141, %151 : vector<8x32xf32>
    %153 = arith.addf %150, %152 : vector<8x32xf32>
    %154 = math.tanh %153 : vector<8x32xf32>
    %cst_68 = arith.constant 1.000000e+00 : f32
    %155 = vector.broadcast %cst_68 : f32 to vector<8x32xf32>
    %156 = arith.subf %155, %149 : vector<8x32xf32>
    %157 = arith.mulf %156, %154 : vector<8x32xf32>
    %158 = arith.mulf %149, %87 : vector<8x32xf32>
    %159 = arith.addf %157, %158 : vector<8x32xf32>
    %c6_69 = arith.constant 6 : index
    %c0_70 = arith.constant 0 : index
    %c0_71 = arith.constant 0 : index
    %160 = vector.load %arg20[%c6_69, %c0_70, %c0_71] : memref<8x8x32xf32, #tpu.memory_space<vmem>>, vector<1x8x32xf32>
    %161 = vector.shape_cast %160 : vector<1x8x32xf32> to vector<8x32xf32>
    %162 = vector.shape_cast %159 : vector<8x32xf32> to vector<1x8x32xf32>
    tpu.vector_store %arg20[%c6_69, %c0_70, %c0_71], %162 {strides = array<i32>} : memref<8x8x32xf32, #tpu.memory_space<vmem>>, vector<1x8x32xf32>,
    %c0_72 = arith.constant 0 : index
    %c0_73 = arith.constant 0 : index
    %163 = vector.load %arg5[%c0_72, %c0_73] : memref<32x96xf32, #tpu.memory_space<vmem>>, vector<32x96xf32>
    %cst_74 = arith.constant dense<0.000000e+00> : vector<8x96xf32>
    %164 = tpu.matmul %123, %163, %cst_74 {dimension_numbers = #tpu.dot_dimension_numbers<[1], [0], [0], [1], [0, 0, 1, 1], [], []>} : vector<8x32xf32>, vector<32x96xf32>, vector<8x96xf32> -> vector<8x96xf32>
    %c0_75 = arith.constant 0 : index
    %c0_76 = arith.constant 0 : index
    %165 = vector.load %arg7[%c0_75, %c0_76] : memref<1x96xf32, #tpu.memory_space<vmem>>, vector<1x96xf32>
    %166 = vector.broadcast %165 : vector<1x96xf32> to vector<8x96xf32>
    %167 = arith.addf %164, %166 : vector<8x96xf32>
    %c2 = arith.constant 2 : index
    %c0_77 = arith.constant 0 : index
    %c0_78 = arith.constant 0 : index
    %168 = vector.load %arg17[%c2, %c0_77, %c0_78] : memref<8x8x96xf32, #tpu.memory_space<vmem>>, vector<1x8x96xf32>
    %169 = vector.shape_cast %168 : vector<1x8x96xf32> to vector<8x96xf32>
    %170 = vector.extract_strided_slice %169 {offsets = [0, 0], sizes = [8, 32], strides = [1, 1]} : vector<8x96xf32> to vector<8x32xf32>
    %171 = vector.extract_strided_slice %167 {offsets = [0, 0], sizes = [8, 32], strides = [1, 1]} : vector<8x96xf32> to vector<8x32xf32>
    %172 = arith.addf %170, %171 : vector<8x32xf32>
    %173 = arith.negf %172 : vector<8x32xf32>
    %174 = math.exp %173 : vector<8x32xf32>
    %cst_79 = arith.constant 1.000000e+00 : f32
    %175 = vector.broadcast %cst_79 : f32 to vector<8x32xf32>
    %176 = arith.addf %175, %174 : vector<8x32xf32>
    %177 = arith.divf %175, %176 : vector<8x32xf32>
    %178 = vector.extract_strided_slice %169 {offsets = [0, 32], sizes = [8, 32], strides = [1, 1]} : vector<8x96xf32> to vector<8x32xf32>
    %179 = vector.extract_strided_slice %167 {offsets = [0, 32], sizes = [8, 32], strides = [1, 1]} : vector<8x96xf32> to vector<8x32xf32>
    %180 = arith.addf %178, %179 : vector<8x32xf32>
    %181 = arith.negf %180 : vector<8x32xf32>
    %182 = math.exp %181 : vector<8x32xf32>
    %cst_80 = arith.constant 1.000000e+00 : f32
    %183 = vector.broadcast %cst_80 : f32 to vector<8x32xf32>
    %184 = arith.addf %183, %182 : vector<8x32xf32>
    %185 = arith.divf %183, %184 : vector<8x32xf32>
    %186 = vector.extract_strided_slice %169 {offsets = [0, 64], sizes = [8, 32], strides = [1, 1]} : vector<8x96xf32> to vector<8x32xf32>
    %187 = vector.extract_strided_slice %167 {offsets = [0, 64], sizes = [8, 32], strides = [1, 1]} : vector<8x96xf32> to vector<8x32xf32>
    %188 = arith.mulf %177, %187 : vector<8x32xf32>
    %189 = arith.addf %186, %188 : vector<8x32xf32>
    %190 = math.tanh %189 : vector<8x32xf32>
    %cst_81 = arith.constant 1.000000e+00 : f32
    %191 = vector.broadcast %cst_81 : f32 to vector<8x32xf32>
    %192 = arith.subf %191, %185 : vector<8x32xf32>
    %193 = arith.mulf %192, %190 : vector<8x32xf32>
    %194 = arith.mulf %185, %123 : vector<8x32xf32>
    %195 = arith.addf %193, %194 : vector<8x32xf32>
    %c2_82 = arith.constant 2 : index
    %c0_83 = arith.constant 0 : index
    %c0_84 = arith.constant 0 : index
    %196 = vector.load %arg19[%c2_82, %c0_83, %c0_84] : memref<8x8x32xf32, #tpu.memory_space<vmem>>, vector<1x8x32xf32>
    %197 = vector.shape_cast %196 : vector<1x8x32xf32> to vector<8x32xf32>
    %198 = vector.shape_cast %195 : vector<8x32xf32> to vector<1x8x32xf32>
    tpu.vector_store %arg19[%c2_82, %c0_83, %c0_84], %198 {strides = array<i32>} : memref<8x8x32xf32, #tpu.memory_space<vmem>>, vector<1x8x32xf32>,
    %c0_85 = arith.constant 0 : index
    %c0_86 = arith.constant 0 : index
    %199 = vector.load %arg9[%c0_85, %c0_86] : memref<32x96xf32, #tpu.memory_space<vmem>>, vector<32x96xf32>
    %cst_87 = arith.constant dense<0.000000e+00> : vector<8x96xf32>
    %200 = tpu.matmul %159, %199, %cst_87 {dimension_numbers = #tpu.dot_dimension_numbers<[1], [0], [0], [1], [0, 0, 1, 1], [], []>} : vector<8x32xf32>, vector<32x96xf32>, vector<8x96xf32> -> vector<8x96xf32>
    %c0_88 = arith.constant 0 : index
    %c0_89 = arith.constant 0 : index
    %201 = vector.load %arg11[%c0_88, %c0_89] : memref<1x96xf32, #tpu.memory_space<vmem>>, vector<1x96xf32>
    %202 = vector.broadcast %201 : vector<1x96xf32> to vector<8x96xf32>
    %203 = arith.addf %200, %202 : vector<8x96xf32>
    %c5 = arith.constant 5 : index
    %c0_90 = arith.constant 0 : index
    %c0_91 = arith.constant 0 : index
    %204 = vector.load %arg18[%c5, %c0_90, %c0_91] : memref<8x8x96xf32, #tpu.memory_space<vmem>>, vector<1x8x96xf32>
    %205 = vector.shape_cast %204 : vector<1x8x96xf32> to vector<8x96xf32>
    %206 = vector.extract_strided_slice %205 {offsets = [0, 0], sizes = [8, 32], strides = [1, 1]} : vector<8x96xf32> to vector<8x32xf32>
    %207 = vector.extract_strided_slice %203 {offsets = [0, 0], sizes = [8, 32], strides = [1, 1]} : vector<8x96xf32> to vector<8x32xf32>
    %208 = arith.addf %206, %207 : vector<8x32xf32>
    %209 = arith.negf %208 : vector<8x32xf32>
    %210 = math.exp %209 : vector<8x32xf32>
    %cst_92 = arith.constant 1.000000e+00 : f32
    %211 = vector.broadcast %cst_92 : f32 to vector<8x32xf32>
    %212 = arith.addf %211, %210 : vector<8x32xf32>
    %213 = arith.divf %211, %212 : vector<8x32xf32>
    %214 = vector.extract_strided_slice %205 {offsets = [0, 32], sizes = [8, 32], strides = [1, 1]} : vector<8x96xf32> to vector<8x32xf32>
    %215 = vector.extract_strided_slice %203 {offsets = [0, 32], sizes = [8, 32], strides = [1, 1]} : vector<8x96xf32> to vector<8x32xf32>
    %216 = arith.addf %214, %215 : vector<8x32xf32>
    %217 = arith.negf %216 : vector<8x32xf32>
    %218 = math.exp %217 : vector<8x32xf32>
    %cst_93 = arith.constant 1.000000e+00 : f32
    %219 = vector.broadcast %cst_93 : f32 to vector<8x32xf32>
    %220 = arith.addf %219, %218 : vector<8x32xf32>
    %221 = arith.divf %219, %220 : vector<8x32xf32>
    %222 = vector.extract_strided_slice %205 {offsets = [0, 64], sizes = [8, 32], strides = [1, 1]} : vector<8x96xf32> to vector<8x32xf32>
    %223 = vector.extract_strided_slice %203 {offsets = [0, 64], sizes = [8, 32], strides = [1, 1]} : vector<8x96xf32> to vector<8x32xf32>
    %224 = arith.mulf %213, %223 : vector<8x32xf32>
    %225 = arith.addf %222, %224 : vector<8x32xf32>
    %226 = math.tanh %225 : vector<8x32xf32>
    %cst_94 = arith.constant 1.000000e+00 : f32
    %227 = vector.broadcast %cst_94 : f32 to vector<8x32xf32>
    %228 = arith.subf %227, %221 : vector<8x32xf32>
    %229 = arith.mulf %228, %226 : vector<8x32xf32>
    %230 = arith.mulf %221, %159 : vector<8x32xf32>
    %231 = arith.addf %229, %230 : vector<8x32xf32>
    %c5_95 = arith.constant 5 : index
    %c0_96 = arith.constant 0 : index
    %c0_97 = arith.constant 0 : index
    %232 = vector.load %arg20[%c5_95, %c0_96, %c0_97] : memref<8x8x32xf32, #tpu.memory_space<vmem>>, vector<1x8x32xf32>
    %233 = vector.shape_cast %232 : vector<1x8x32xf32> to vector<8x32xf32>
    %234 = vector.shape_cast %231 : vector<8x32xf32> to vector<1x8x32xf32>
    tpu.vector_store %arg20[%c5_95, %c0_96, %c0_97], %234 {strides = array<i32>} : memref<8x8x32xf32, #tpu.memory_space<vmem>>, vector<1x8x32xf32>,
    %c0_98 = arith.constant 0 : index
    %c0_99 = arith.constant 0 : index
    %235 = vector.load %arg5[%c0_98, %c0_99] : memref<32x96xf32, #tpu.memory_space<vmem>>, vector<32x96xf32>
    %cst_100 = arith.constant dense<0.000000e+00> : vector<8x96xf32>
    %236 = tpu.matmul %195, %235, %cst_100 {dimension_numbers = #tpu.dot_dimension_numbers<[1], [0], [0], [1], [0, 0, 1, 1], [], []>} : vector<8x32xf32>, vector<32x96xf32>, vector<8x96xf32> -> vector<8x96xf32>
    %c0_101 = arith.constant 0 : index
    %c0_102 = arith.constant 0 : index
    %237 = vector.load %arg7[%c0_101, %c0_102] : memref<1x96xf32, #tpu.memory_space<vmem>>, vector<1x96xf32>
    %238 = vector.broadcast %237 : vector<1x96xf32> to vector<8x96xf32>
    %239 = arith.addf %236, %238 : vector<8x96xf32>
    %c3 = arith.constant 3 : index
    %c0_103 = arith.constant 0 : index
    %c0_104 = arith.constant 0 : index
    %240 = vector.load %arg17[%c3, %c0_103, %c0_104] : memref<8x8x96xf32, #tpu.memory_space<vmem>>, vector<1x8x96xf32>
    %241 = vector.shape_cast %240 : vector<1x8x96xf32> to vector<8x96xf32>
    %242 = vector.extract_strided_slice %241 {offsets = [0, 0], sizes = [8, 32], strides = [1, 1]} : vector<8x96xf32> to vector<8x32xf32>
    %243 = vector.extract_strided_slice %239 {offsets = [0, 0], sizes = [8, 32], strides = [1, 1]} : vector<8x96xf32> to vector<8x32xf32>
    %244 = arith.addf %242, %243 : vector<8x32xf32>
    %245 = arith.negf %244 : vector<8x32xf32>
    %246 = math.exp %245 : vector<8x32xf32>
    %cst_105 = arith.constant 1.000000e+00 : f32
    %247 = vector.broadcast %cst_105 : f32 to vector<8x32xf32>
    %248 = arith.addf %247, %246 : vector<8x32xf32>
    %249 = arith.divf %247, %248 : vector<8x32xf32>
    %250 = vector.extract_strided_slice %241 {offsets = [0, 32], sizes = [8, 32], strides = [1, 1]} : vector<8x96xf32> to vector<8x32xf32>
    %251 = vector.extract_strided_slice %239 {offsets = [0, 32], sizes = [8, 32], strides = [1, 1]} : vector<8x96xf32> to vector<8x32xf32>
    %252 = arith.addf %250, %251 : vector<8x32xf32>
    %253 = arith.negf %252 : vector<8x32xf32>
    %254 = math.exp %253 : vector<8x32xf32>
    %cst_106 = arith.constant 1.000000e+00 : f32
    %255 = vector.broadcast %cst_106 : f32 to vector<8x32xf32>
    %256 = arith.addf %255, %254 : vector<8x32xf32>
    %257 = arith.divf %255, %256 : vector<8x32xf32>
    %258 = vector.extract_strided_slice %241 {offsets = [0, 64], sizes = [8, 32], strides = [1, 1]} : vector<8x96xf32> to vector<8x32xf32>
    %259 = vector.extract_strided_slice %239 {offsets = [0, 64], sizes = [8, 32], strides = [1, 1]} : vector<8x96xf32> to vector<8x32xf32>
    %260 = arith.mulf %249, %259 : vector<8x32xf32>
    %261 = arith.addf %258, %260 : vector<8x32xf32>
    %262 = math.tanh %261 : vector<8x32xf32>
    %cst_107 = arith.constant 1.000000e+00 : f32
    %263 = vector.broadcast %cst_107 : f32 to vector<8x32xf32>
    %264 = arith.subf %263, %257 : vector<8x32xf32>
    %265 = arith.mulf %264, %262 : vector<8x32xf32>
    %266 = arith.mulf %257, %195 : vector<8x32xf32>
    %267 = arith.addf %265, %266 : vector<8x32xf32>
    %c3_108 = arith.constant 3 : index
    %c0_109 = arith.constant 0 : index
    %c0_110 = arith.constant 0 : index
    %268 = vector.load %arg19[%c3_108, %c0_109, %c0_110] : memref<8x8x32xf32, #tpu.memory_space<vmem>>, vector<1x8x32xf32>
    %269 = vector.shape_cast %268 : vector<1x8x32xf32> to vector<8x32xf32>
    %270 = vector.shape_cast %267 : vector<8x32xf32> to vector<1x8x32xf32>
    tpu.vector_store %arg19[%c3_108, %c0_109, %c0_110], %270 {strides = array<i32>} : memref<8x8x32xf32, #tpu.memory_space<vmem>>, vector<1x8x32xf32>,
    %c0_111 = arith.constant 0 : index
    %c0_112 = arith.constant 0 : index
    %271 = vector.load %arg9[%c0_111, %c0_112] : memref<32x96xf32, #tpu.memory_space<vmem>>, vector<32x96xf32>
    %cst_113 = arith.constant dense<0.000000e+00> : vector<8x96xf32>
    %272 = tpu.matmul %231, %271, %cst_113 {dimension_numbers = #tpu.dot_dimension_numbers<[1], [0], [0], [1], [0, 0, 1, 1], [], []>} : vector<8x32xf32>, vector<32x96xf32>, vector<8x96xf32> -> vector<8x96xf32>
    %c0_114 = arith.constant 0 : index
    %c0_115 = arith.constant 0 : index
    %273 = vector.load %arg11[%c0_114, %c0_115] : memref<1x96xf32, #tpu.memory_space<vmem>>, vector<1x96xf32>
    %274 = vector.broadcast %273 : vector<1x96xf32> to vector<8x96xf32>
    %275 = arith.addf %272, %274 : vector<8x96xf32>
    %c4 = arith.constant 4 : index
    %c0_116 = arith.constant 0 : index
    %c0_117 = arith.constant 0 : index
    %276 = vector.load %arg18[%c4, %c0_116, %c0_117] : memref<8x8x96xf32, #tpu.memory_space<vmem>>, vector<1x8x96xf32>
    %277 = vector.shape_cast %276 : vector<1x8x96xf32> to vector<8x96xf32>
    %278 = vector.extract_strided_slice %277 {offsets = [0, 0], sizes = [8, 32], strides = [1, 1]} : vector<8x96xf32> to vector<8x32xf32>
    %279 = vector.extract_strided_slice %275 {offsets = [0, 0], sizes = [8, 32], strides = [1, 1]} : vector<8x96xf32> to vector<8x32xf32>
    %280 = arith.addf %278, %279 : vector<8x32xf32>
    %281 = arith.negf %280 : vector<8x32xf32>
    %282 = math.exp %281 : vector<8x32xf32>
    %cst_118 = arith.constant 1.000000e+00 : f32
    %283 = vector.broadcast %cst_118 : f32 to vector<8x32xf32>
    %284 = arith.addf %283, %282 : vector<8x32xf32>
    %285 = arith.divf %283, %284 : vector<8x32xf32>
    %286 = vector.extract_strided_slice %277 {offsets = [0, 32], sizes = [8, 32], strides = [1, 1]} : vector<8x96xf32> to vector<8x32xf32>
    %287 = vector.extract_strided_slice %275 {offsets = [0, 32], sizes = [8, 32], strides = [1, 1]} : vector<8x96xf32> to vector<8x32xf32>
    %288 = arith.addf %286, %287 : vector<8x32xf32>
    %289 = arith.negf %288 : vector<8x32xf32>
    %290 = math.exp %289 : vector<8x32xf32>
    %cst_119 = arith.constant 1.000000e+00 : f32
    %291 = vector.broadcast %cst_119 : f32 to vector<8x32xf32>
    %292 = arith.addf %291, %290 : vector<8x32xf32>
    %293 = arith.divf %291, %292 : vector<8x32xf32>
    %294 = vector.extract_strided_slice %277 {offsets = [0, 64], sizes = [8, 32], strides = [1, 1]} : vector<8x96xf32> to vector<8x32xf32>
    %295 = vector.extract_strided_slice %275 {offsets = [0, 64], sizes = [8, 32], strides = [1, 1]} : vector<8x96xf32> to vector<8x32xf32>
    %296 = arith.mulf %285, %295 : vector<8x32xf32>
    %297 = arith.addf %294, %296 : vector<8x32xf32>
    %298 = math.tanh %297 : vector<8x32xf32>
    %cst_120 = arith.constant 1.000000e+00 : f32
    %299 = vector.broadcast %cst_120 : f32 to vector<8x32xf32>
    %300 = arith.subf %299, %293 : vector<8x32xf32>
    %301 = arith.mulf %300, %298 : vector<8x32xf32>
    %302 = arith.mulf %293, %231 : vector<8x32xf32>
    %303 = arith.addf %301, %302 : vector<8x32xf32>
    %c4_121 = arith.constant 4 : index
    %c0_122 = arith.constant 0 : index
    %c0_123 = arith.constant 0 : index
    %304 = vector.load %arg20[%c4_121, %c0_122, %c0_123] : memref<8x8x32xf32, #tpu.memory_space<vmem>>, vector<1x8x32xf32>
    %305 = vector.shape_cast %304 : vector<1x8x32xf32> to vector<8x32xf32>
    %306 = vector.shape_cast %303 : vector<8x32xf32> to vector<1x8x32xf32>
    tpu.vector_store %arg20[%c4_121, %c0_122, %c0_123], %306 {strides = array<i32>} : memref<8x8x32xf32, #tpu.memory_space<vmem>>, vector<1x8x32xf32>,
    %c0_124 = arith.constant 0 : index
    %c0_125 = arith.constant 0 : index
    %307 = vector.load %arg5[%c0_124, %c0_125] : memref<32x96xf32, #tpu.memory_space<vmem>>, vector<32x96xf32>
    %cst_126 = arith.constant dense<0.000000e+00> : vector<8x96xf32>
    %308 = tpu.matmul %267, %307, %cst_126 {dimension_numbers = #tpu.dot_dimension_numbers<[1], [0], [0], [1], [0, 0, 1, 1], [], []>} : vector<8x32xf32>, vector<32x96xf32>, vector<8x96xf32> -> vector<8x96xf32>
    %c0_127 = arith.constant 0 : index
    %c0_128 = arith.constant 0 : index
    %309 = vector.load %arg7[%c0_127, %c0_128] : memref<1x96xf32, #tpu.memory_space<vmem>>, vector<1x96xf32>
    %310 = vector.broadcast %309 : vector<1x96xf32> to vector<8x96xf32>
    %311 = arith.addf %308, %310 : vector<8x96xf32>
    %c4_129 = arith.constant 4 : index
    %c0_130 = arith.constant 0 : index
    %c0_131 = arith.constant 0 : index
    %312 = vector.load %arg17[%c4_129, %c0_130, %c0_131] : memref<8x8x96xf32, #tpu.memory_space<vmem>>, vector<1x8x96xf32>
    %313 = vector.shape_cast %312 : vector<1x8x96xf32> to vector<8x96xf32>
    %314 = vector.extract_strided_slice %313 {offsets = [0, 0], sizes = [8, 32], strides = [1, 1]} : vector<8x96xf32> to vector<8x32xf32>
    %315 = vector.extract_strided_slice %311 {offsets = [0, 0], sizes = [8, 32], strides = [1, 1]} : vector<8x96xf32> to vector<8x32xf32>
    %316 = arith.addf %314, %315 : vector<8x32xf32>
    %317 = arith.negf %316 : vector<8x32xf32>
    %318 = math.exp %317 : vector<8x32xf32>
    %cst_132 = arith.constant 1.000000e+00 : f32
    %319 = vector.broadcast %cst_132 : f32 to vector<8x32xf32>
    %320 = arith.addf %319, %318 : vector<8x32xf32>
    %321 = arith.divf %319, %320 : vector<8x32xf32>
    %322 = vector.extract_strided_slice %313 {offsets = [0, 32], sizes = [8, 32], strides = [1, 1]} : vector<8x96xf32> to vector<8x32xf32>
    %323 = vector.extract_strided_slice %311 {offsets = [0, 32], sizes = [8, 32], strides = [1, 1]} : vector<8x96xf32> to vector<8x32xf32>
    %324 = arith.addf %322, %323 : vector<8x32xf32>
    %325 = arith.negf %324 : vector<8x32xf32>
    %326 = math.exp %325 : vector<8x32xf32>
    %cst_133 = arith.constant 1.000000e+00 : f32
    %327 = vector.broadcast %cst_133 : f32 to vector<8x32xf32>
    %328 = arith.addf %327, %326 : vector<8x32xf32>
    %329 = arith.divf %327, %328 : vector<8x32xf32>
    %330 = vector.extract_strided_slice %313 {offsets = [0, 64], sizes = [8, 32], strides = [1, 1]} : vector<8x96xf32> to vector<8x32xf32>
    %331 = vector.extract_strided_slice %311 {offsets = [0, 64], sizes = [8, 32], strides = [1, 1]} : vector<8x96xf32> to vector<8x32xf32>
    %332 = arith.mulf %321, %331 : vector<8x32xf32>
    %333 = arith.addf %330, %332 : vector<8x32xf32>
    %334 = math.tanh %333 : vector<8x32xf32>
    %cst_134 = arith.constant 1.000000e+00 : f32
    %335 = vector.broadcast %cst_134 : f32 to vector<8x32xf32>
    %336 = arith.subf %335, %329 : vector<8x32xf32>
    %337 = arith.mulf %336, %334 : vector<8x32xf32>
    %338 = arith.mulf %329, %267 : vector<8x32xf32>
    %339 = arith.addf %337, %338 : vector<8x32xf32>
    %c4_135 = arith.constant 4 : index
    %c0_136 = arith.constant 0 : index
    %c0_137 = arith.constant 0 : index
    %340 = vector.load %arg19[%c4_135, %c0_136, %c0_137] : memref<8x8x32xf32, #tpu.memory_space<vmem>>, vector<1x8x32xf32>
    %341 = vector.shape_cast %340 : vector<1x8x32xf32> to vector<8x32xf32>
    %342 = vector.shape_cast %339 : vector<8x32xf32> to vector<1x8x32xf32>
    tpu.vector_store %arg19[%c4_135, %c0_136, %c0_137], %342 {strides = array<i32>} : memref<8x8x32xf32, #tpu.memory_space<vmem>>, vector<1x8x32xf32>,
    %c0_138 = arith.constant 0 : index
    %c0_139 = arith.constant 0 : index
    %343 = vector.load %arg9[%c0_138, %c0_139] : memref<32x96xf32, #tpu.memory_space<vmem>>, vector<32x96xf32>
    %cst_140 = arith.constant dense<0.000000e+00> : vector<8x96xf32>
    %344 = tpu.matmul %303, %343, %cst_140 {dimension_numbers = #tpu.dot_dimension_numbers<[1], [0], [0], [1], [0, 0, 1, 1], [], []>} : vector<8x32xf32>, vector<32x96xf32>, vector<8x96xf32> -> vector<8x96xf32>
    %c0_141 = arith.constant 0 : index
    %c0_142 = arith.constant 0 : index
    %345 = vector.load %arg11[%c0_141, %c0_142] : memref<1x96xf32, #tpu.memory_space<vmem>>, vector<1x96xf32>
    %346 = vector.broadcast %345 : vector<1x96xf32> to vector<8x96xf32>
    %347 = arith.addf %344, %346 : vector<8x96xf32>
    %c3_143 = arith.constant 3 : index
    %c0_144 = arith.constant 0 : index
    %c0_145 = arith.constant 0 : index
    %348 = vector.load %arg18[%c3_143, %c0_144, %c0_145] : memref<8x8x96xf32, #tpu.memory_space<vmem>>, vector<1x8x96xf32>
    %349 = vector.shape_cast %348 : vector<1x8x96xf32> to vector<8x96xf32>
    %350 = vector.extract_strided_slice %349 {offsets = [0, 0], sizes = [8, 32], strides = [1, 1]} : vector<8x96xf32> to vector<8x32xf32>
    %351 = vector.extract_strided_slice %347 {offsets = [0, 0], sizes = [8, 32], strides = [1, 1]} : vector<8x96xf32> to vector<8x32xf32>
    %352 = arith.addf %350, %351 : vector<8x32xf32>
    %353 = arith.negf %352 : vector<8x32xf32>
    %354 = math.exp %353 : vector<8x32xf32>
    %cst_146 = arith.constant 1.000000e+00 : f32
    %355 = vector.broadcast %cst_146 : f32 to vector<8x32xf32>
    %356 = arith.addf %355, %354 : vector<8x32xf32>
    %357 = arith.divf %355, %356 : vector<8x32xf32>
    %358 = vector.extract_strided_slice %349 {offsets = [0, 32], sizes = [8, 32], strides = [1, 1]} : vector<8x96xf32> to vector<8x32xf32>
    %359 = vector.extract_strided_slice %347 {offsets = [0, 32], sizes = [8, 32], strides = [1, 1]} : vector<8x96xf32> to vector<8x32xf32>
    %360 = arith.addf %358, %359 : vector<8x32xf32>
    %361 = arith.negf %360 : vector<8x32xf32>
    %362 = math.exp %361 : vector<8x32xf32>
    %cst_147 = arith.constant 1.000000e+00 : f32
    %363 = vector.broadcast %cst_147 : f32 to vector<8x32xf32>
    %364 = arith.addf %363, %362 : vector<8x32xf32>
    %365 = arith.divf %363, %364 : vector<8x32xf32>
    %366 = vector.extract_strided_slice %349 {offsets = [0, 64], sizes = [8, 32], strides = [1, 1]} : vector<8x96xf32> to vector<8x32xf32>
    %367 = vector.extract_strided_slice %347 {offsets = [0, 64], sizes = [8, 32], strides = [1, 1]} : vector<8x96xf32> to vector<8x32xf32>
    %368 = arith.mulf %357, %367 : vector<8x32xf32>
    %369 = arith.addf %366, %368 : vector<8x32xf32>
    %370 = math.tanh %369 : vector<8x32xf32>
    %cst_148 = arith.constant 1.000000e+00 : f32
    %371 = vector.broadcast %cst_148 : f32 to vector<8x32xf32>
    %372 = arith.subf %371, %365 : vector<8x32xf32>
    %373 = arith.mulf %372, %370 : vector<8x32xf32>
    %374 = arith.mulf %365, %303 : vector<8x32xf32>
    %375 = arith.addf %373, %374 : vector<8x32xf32>
    %c3_149 = arith.constant 3 : index
    %c0_150 = arith.constant 0 : index
    %c0_151 = arith.constant 0 : index
    %376 = vector.load %arg20[%c3_149, %c0_150, %c0_151] : memref<8x8x32xf32, #tpu.memory_space<vmem>>, vector<1x8x32xf32>
    %377 = vector.shape_cast %376 : vector<1x8x32xf32> to vector<8x32xf32>
    %378 = vector.shape_cast %375 : vector<8x32xf32> to vector<1x8x32xf32>
    tpu.vector_store %arg20[%c3_149, %c0_150, %c0_151], %378 {strides = array<i32>} : memref<8x8x32xf32, #tpu.memory_space<vmem>>, vector<1x8x32xf32>,
    %c0_152 = arith.constant 0 : index
    %c0_153 = arith.constant 0 : index
    %379 = vector.load %arg5[%c0_152, %c0_153] : memref<32x96xf32, #tpu.memory_space<vmem>>, vector<32x96xf32>
    %cst_154 = arith.constant dense<0.000000e+00> : vector<8x96xf32>
    %380 = tpu.matmul %339, %379, %cst_154 {dimension_numbers = #tpu.dot_dimension_numbers<[1], [0], [0], [1], [0, 0, 1, 1], [], []>} : vector<8x32xf32>, vector<32x96xf32>, vector<8x96xf32> -> vector<8x96xf32>
    %c0_155 = arith.constant 0 : index
    %c0_156 = arith.constant 0 : index
    %381 = vector.load %arg7[%c0_155, %c0_156] : memref<1x96xf32, #tpu.memory_space<vmem>>, vector<1x96xf32>
    %382 = vector.broadcast %381 : vector<1x96xf32> to vector<8x96xf32>
    %383 = arith.addf %380, %382 : vector<8x96xf32>
    %c5_157 = arith.constant 5 : index
    %c0_158 = arith.constant 0 : index
    %c0_159 = arith.constant 0 : index
    %384 = vector.load %arg17[%c5_157, %c0_158, %c0_159] : memref<8x8x96xf32, #tpu.memory_space<vmem>>, vector<1x8x96xf32>
    %385 = vector.shape_cast %384 : vector<1x8x96xf32> to vector<8x96xf32>
    %386 = vector.extract_strided_slice %385 {offsets = [0, 0], sizes = [8, 32], strides = [1, 1]} : vector<8x96xf32> to vector<8x32xf32>
    %387 = vector.extract_strided_slice %383 {offsets = [0, 0], sizes = [8, 32], strides = [1, 1]} : vector<8x96xf32> to vector<8x32xf32>
    %388 = arith.addf %386, %387 : vector<8x32xf32>
    %389 = arith.negf %388 : vector<8x32xf32>
    %390 = math.exp %389 : vector<8x32xf32>
    %cst_160 = arith.constant 1.000000e+00 : f32
    %391 = vector.broadcast %cst_160 : f32 to vector<8x32xf32>
    %392 = arith.addf %391, %390 : vector<8x32xf32>
    %393 = arith.divf %391, %392 : vector<8x32xf32>
    %394 = vector.extract_strided_slice %385 {offsets = [0, 32], sizes = [8, 32], strides = [1, 1]} : vector<8x96xf32> to vector<8x32xf32>
    %395 = vector.extract_strided_slice %383 {offsets = [0, 32], sizes = [8, 32], strides = [1, 1]} : vector<8x96xf32> to vector<8x32xf32>
    %396 = arith.addf %394, %395 : vector<8x32xf32>
    %397 = arith.negf %396 : vector<8x32xf32>
    %398 = math.exp %397 : vector<8x32xf32>
    %cst_161 = arith.constant 1.000000e+00 : f32
    %399 = vector.broadcast %cst_161 : f32 to vector<8x32xf32>
    %400 = arith.addf %399, %398 : vector<8x32xf32>
    %401 = arith.divf %399, %400 : vector<8x32xf32>
    %402 = vector.extract_strided_slice %385 {offsets = [0, 64], sizes = [8, 32], strides = [1, 1]} : vector<8x96xf32> to vector<8x32xf32>
    %403 = vector.extract_strided_slice %383 {offsets = [0, 64], sizes = [8, 32], strides = [1, 1]} : vector<8x96xf32> to vector<8x32xf32>
    %404 = arith.mulf %393, %403 : vector<8x32xf32>
    %405 = arith.addf %402, %404 : vector<8x32xf32>
    %406 = math.tanh %405 : vector<8x32xf32>
    %cst_162 = arith.constant 1.000000e+00 : f32
    %407 = vector.broadcast %cst_162 : f32 to vector<8x32xf32>
    %408 = arith.subf %407, %401 : vector<8x32xf32>
    %409 = arith.mulf %408, %406 : vector<8x32xf32>
    %410 = arith.mulf %401, %339 : vector<8x32xf32>
    %411 = arith.addf %409, %410 : vector<8x32xf32>
    %c5_163 = arith.constant 5 : index
    %c0_164 = arith.constant 0 : index
    %c0_165 = arith.constant 0 : index
    %412 = vector.load %arg19[%c5_163, %c0_164, %c0_165] : memref<8x8x32xf32, #tpu.memory_space<vmem>>, vector<1x8x32xf32>
    %413 = vector.shape_cast %412 : vector<1x8x32xf32> to vector<8x32xf32>
    %414 = vector.shape_cast %411 : vector<8x32xf32> to vector<1x8x32xf32>
    tpu.vector_store %arg19[%c5_163, %c0_164, %c0_165], %414 {strides = array<i32>} : memref<8x8x32xf32, #tpu.memory_space<vmem>>, vector<1x8x32xf32>,
    %c0_166 = arith.constant 0 : index
    %c0_167 = arith.constant 0 : index
    %415 = vector.load %arg9[%c0_166, %c0_167] : memref<32x96xf32, #tpu.memory_space<vmem>>, vector<32x96xf32>
    %cst_168 = arith.constant dense<0.000000e+00> : vector<8x96xf32>
    %416 = tpu.matmul %375, %415, %cst_168 {dimension_numbers = #tpu.dot_dimension_numbers<[1], [0], [0], [1], [0, 0, 1, 1], [], []>} : vector<8x32xf32>, vector<32x96xf32>, vector<8x96xf32> -> vector<8x96xf32>
    %c0_169 = arith.constant 0 : index
    %c0_170 = arith.constant 0 : index
    %417 = vector.load %arg11[%c0_169, %c0_170] : memref<1x96xf32, #tpu.memory_space<vmem>>, vector<1x96xf32>
    %418 = vector.broadcast %417 : vector<1x96xf32> to vector<8x96xf32>
    %419 = arith.addf %416, %418 : vector<8x96xf32>
    %c2_171 = arith.constant 2 : index
    %c0_172 = arith.constant 0 : index
    %c0_173 = arith.constant 0 : index
    %420 = vector.load %arg18[%c2_171, %c0_172, %c0_173] : memref<8x8x96xf32, #tpu.memory_space<vmem>>, vector<1x8x96xf32>
    %421 = vector.shape_cast %420 : vector<1x8x96xf32> to vector<8x96xf32>
    %422 = vector.extract_strided_slice %421 {offsets = [0, 0], sizes = [8, 32], strides = [1, 1]} : vector<8x96xf32> to vector<8x32xf32>
    %423 = vector.extract_strided_slice %419 {offsets = [0, 0], sizes = [8, 32], strides = [1, 1]} : vector<8x96xf32> to vector<8x32xf32>
    %424 = arith.addf %422, %423 : vector<8x32xf32>
    %425 = arith.negf %424 : vector<8x32xf32>
    %426 = math.exp %425 : vector<8x32xf32>
    %cst_174 = arith.constant 1.000000e+00 : f32
    %427 = vector.broadcast %cst_174 : f32 to vector<8x32xf32>
    %428 = arith.addf %427, %426 : vector<8x32xf32>
    %429 = arith.divf %427, %428 : vector<8x32xf32>
    %430 = vector.extract_strided_slice %421 {offsets = [0, 32], sizes = [8, 32], strides = [1, 1]} : vector<8x96xf32> to vector<8x32xf32>
    %431 = vector.extract_strided_slice %419 {offsets = [0, 32], sizes = [8, 32], strides = [1, 1]} : vector<8x96xf32> to vector<8x32xf32>
    %432 = arith.addf %430, %431 : vector<8x32xf32>
    %433 = arith.negf %432 : vector<8x32xf32>
    %434 = math.exp %433 : vector<8x32xf32>
    %cst_175 = arith.constant 1.000000e+00 : f32
    %435 = vector.broadcast %cst_175 : f32 to vector<8x32xf32>
    %436 = arith.addf %435, %434 : vector<8x32xf32>
    %437 = arith.divf %435, %436 : vector<8x32xf32>
    %438 = vector.extract_strided_slice %421 {offsets = [0, 64], sizes = [8, 32], strides = [1, 1]} : vector<8x96xf32> to vector<8x32xf32>
    %439 = vector.extract_strided_slice %419 {offsets = [0, 64], sizes = [8, 32], strides = [1, 1]} : vector<8x96xf32> to vector<8x32xf32>
    %440 = arith.mulf %429, %439 : vector<8x32xf32>
    %441 = arith.addf %438, %440 : vector<8x32xf32>
    %442 = math.tanh %441 : vector<8x32xf32>
    %cst_176 = arith.constant 1.000000e+00 : f32
    %443 = vector.broadcast %cst_176 : f32 to vector<8x32xf32>
    %444 = arith.subf %443, %437 : vector<8x32xf32>
    %445 = arith.mulf %444, %442 : vector<8x32xf32>
    %446 = arith.mulf %437, %375 : vector<8x32xf32>
    %447 = arith.addf %445, %446 : vector<8x32xf32>
    %c2_177 = arith.constant 2 : index
    %c0_178 = arith.constant 0 : index
    %c0_179 = arith.constant 0 : index
    %448 = vector.load %arg20[%c2_177, %c0_178, %c0_179] : memref<8x8x32xf32, #tpu.memory_space<vmem>>, vector<1x8x32xf32>
    %449 = vector.shape_cast %448 : vector<1x8x32xf32> to vector<8x32xf32>
    %450 = vector.shape_cast %447 : vector<8x32xf32> to vector<1x8x32xf32>
    tpu.vector_store %arg20[%c2_177, %c0_178, %c0_179], %450 {strides = array<i32>} : memref<8x8x32xf32, #tpu.memory_space<vmem>>, vector<1x8x32xf32>,
    %c0_180 = arith.constant 0 : index
    %c0_181 = arith.constant 0 : index
    %451 = vector.load %arg5[%c0_180, %c0_181] : memref<32x96xf32, #tpu.memory_space<vmem>>, vector<32x96xf32>
    %cst_182 = arith.constant dense<0.000000e+00> : vector<8x96xf32>
    %452 = tpu.matmul %411, %451, %cst_182 {dimension_numbers = #tpu.dot_dimension_numbers<[1], [0], [0], [1], [0, 0, 1, 1], [], []>} : vector<8x32xf32>, vector<32x96xf32>, vector<8x96xf32> -> vector<8x96xf32>
    %c0_183 = arith.constant 0 : index
    %c0_184 = arith.constant 0 : index
    %453 = vector.load %arg7[%c0_183, %c0_184] : memref<1x96xf32, #tpu.memory_space<vmem>>, vector<1x96xf32>
    %454 = vector.broadcast %453 : vector<1x96xf32> to vector<8x96xf32>
    %455 = arith.addf %452, %454 : vector<8x96xf32>
    %c6_185 = arith.constant 6 : index
    %c0_186 = arith.constant 0 : index
    %c0_187 = arith.constant 0 : index
    %456 = vector.load %arg17[%c6_185, %c0_186, %c0_187] : memref<8x8x96xf32, #tpu.memory_space<vmem>>, vector<1x8x96xf32>
    %457 = vector.shape_cast %456 : vector<1x8x96xf32> to vector<8x96xf32>
    %458 = vector.extract_strided_slice %457 {offsets = [0, 0], sizes = [8, 32], strides = [1, 1]} : vector<8x96xf32> to vector<8x32xf32>
    %459 = vector.extract_strided_slice %455 {offsets = [0, 0], sizes = [8, 32], strides = [1, 1]} : vector<8x96xf32> to vector<8x32xf32>
    %460 = arith.addf %458, %459 : vector<8x32xf32>
    %461 = arith.negf %460 : vector<8x32xf32>
    %462 = math.exp %461 : vector<8x32xf32>
    %cst_188 = arith.constant 1.000000e+00 : f32
    %463 = vector.broadcast %cst_188 : f32 to vector<8x32xf32>
    %464 = arith.addf %463, %462 : vector<8x32xf32>
    %465 = arith.divf %463, %464 : vector<8x32xf32>
    %466 = vector.extract_strided_slice %457 {offsets = [0, 32], sizes = [8, 32], strides = [1, 1]} : vector<8x96xf32> to vector<8x32xf32>
    %467 = vector.extract_strided_slice %455 {offsets = [0, 32], sizes = [8, 32], strides = [1, 1]} : vector<8x96xf32> to vector<8x32xf32>
    %468 = arith.addf %466, %467 : vector<8x32xf32>
    %469 = arith.negf %468 : vector<8x32xf32>
    %470 = math.exp %469 : vector<8x32xf32>
    %cst_189 = arith.constant 1.000000e+00 : f32
    %471 = vector.broadcast %cst_189 : f32 to vector<8x32xf32>
    %472 = arith.addf %471, %470 : vector<8x32xf32>
    %473 = arith.divf %471, %472 : vector<8x32xf32>
    %474 = vector.extract_strided_slice %457 {offsets = [0, 64], sizes = [8, 32], strides = [1, 1]} : vector<8x96xf32> to vector<8x32xf32>
    %475 = vector.extract_strided_slice %455 {offsets = [0, 64], sizes = [8, 32], strides = [1, 1]} : vector<8x96xf32> to vector<8x32xf32>
    %476 = arith.mulf %465, %475 : vector<8x32xf32>
    %477 = arith.addf %474, %476 : vector<8x32xf32>
    %478 = math.tanh %477 : vector<8x32xf32>
    %cst_190 = arith.constant 1.000000e+00 : f32
    %479 = vector.broadcast %cst_190 : f32 to vector<8x32xf32>
    %480 = arith.subf %479, %473 : vector<8x32xf32>
    %481 = arith.mulf %480, %478 : vector<8x32xf32>
    %482 = arith.mulf %473, %411 : vector<8x32xf32>
    %483 = arith.addf %481, %482 : vector<8x32xf32>
    %c6_191 = arith.constant 6 : index
    %c0_192 = arith.constant 0 : index
    %c0_193 = arith.constant 0 : index
    %484 = vector.load %arg19[%c6_191, %c0_192, %c0_193] : memref<8x8x32xf32, #tpu.memory_space<vmem>>, vector<1x8x32xf32>
    %485 = vector.shape_cast %484 : vector<1x8x32xf32> to vector<8x32xf32>
    %486 = vector.shape_cast %483 : vector<8x32xf32> to vector<1x8x32xf32>
    tpu.vector_store %arg19[%c6_191, %c0_192, %c0_193], %486 {strides = array<i32>} : memref<8x8x32xf32, #tpu.memory_space<vmem>>, vector<1x8x32xf32>,
    %c0_194 = arith.constant 0 : index
    %c0_195 = arith.constant 0 : index
    %487 = vector.load %arg9[%c0_194, %c0_195] : memref<32x96xf32, #tpu.memory_space<vmem>>, vector<32x96xf32>
    %cst_196 = arith.constant dense<0.000000e+00> : vector<8x96xf32>
    %488 = tpu.matmul %447, %487, %cst_196 {dimension_numbers = #tpu.dot_dimension_numbers<[1], [0], [0], [1], [0, 0, 1, 1], [], []>} : vector<8x32xf32>, vector<32x96xf32>, vector<8x96xf32> -> vector<8x96xf32>
    %c0_197 = arith.constant 0 : index
    %c0_198 = arith.constant 0 : index
    %489 = vector.load %arg11[%c0_197, %c0_198] : memref<1x96xf32, #tpu.memory_space<vmem>>, vector<1x96xf32>
    %490 = vector.broadcast %489 : vector<1x96xf32> to vector<8x96xf32>
    %491 = arith.addf %488, %490 : vector<8x96xf32>
    %c1_199 = arith.constant 1 : index
    %c0_200 = arith.constant 0 : index
    %c0_201 = arith.constant 0 : index
    %492 = vector.load %arg18[%c1_199, %c0_200, %c0_201] : memref<8x8x96xf32, #tpu.memory_space<vmem>>, vector<1x8x96xf32>
    %493 = vector.shape_cast %492 : vector<1x8x96xf32> to vector<8x96xf32>
    %494 = vector.extract_strided_slice %493 {offsets = [0, 0], sizes = [8, 32], strides = [1, 1]} : vector<8x96xf32> to vector<8x32xf32>
    %495 = vector.extract_strided_slice %491 {offsets = [0, 0], sizes = [8, 32], strides = [1, 1]} : vector<8x96xf32> to vector<8x32xf32>
    %496 = arith.addf %494, %495 : vector<8x32xf32>
    %497 = arith.negf %496 : vector<8x32xf32>
    %498 = math.exp %497 : vector<8x32xf32>
    %cst_202 = arith.constant 1.000000e+00 : f32
    %499 = vector.broadcast %cst_202 : f32 to vector<8x32xf32>
    %500 = arith.addf %499, %498 : vector<8x32xf32>
    %501 = arith.divf %499, %500 : vector<8x32xf32>
    %502 = vector.extract_strided_slice %493 {offsets = [0, 32], sizes = [8, 32], strides = [1, 1]} : vector<8x96xf32> to vector<8x32xf32>
    %503 = vector.extract_strided_slice %491 {offsets = [0, 32], sizes = [8, 32], strides = [1, 1]} : vector<8x96xf32> to vector<8x32xf32>
    %504 = arith.addf %502, %503 : vector<8x32xf32>
    %505 = arith.negf %504 : vector<8x32xf32>
    %506 = math.exp %505 : vector<8x32xf32>
    %cst_203 = arith.constant 1.000000e+00 : f32
    %507 = vector.broadcast %cst_203 : f32 to vector<8x32xf32>
    %508 = arith.addf %507, %506 : vector<8x32xf32>
    %509 = arith.divf %507, %508 : vector<8x32xf32>
    %510 = vector.extract_strided_slice %493 {offsets = [0, 64], sizes = [8, 32], strides = [1, 1]} : vector<8x96xf32> to vector<8x32xf32>
    %511 = vector.extract_strided_slice %491 {offsets = [0, 64], sizes = [8, 32], strides = [1, 1]} : vector<8x96xf32> to vector<8x32xf32>
    %512 = arith.mulf %501, %511 : vector<8x32xf32>
    %513 = arith.addf %510, %512 : vector<8x32xf32>
    %514 = math.tanh %513 : vector<8x32xf32>
    %cst_204 = arith.constant 1.000000e+00 : f32
    %515 = vector.broadcast %cst_204 : f32 to vector<8x32xf32>
    %516 = arith.subf %515, %509 : vector<8x32xf32>
    %517 = arith.mulf %516, %514 : vector<8x32xf32>
    %518 = arith.mulf %509, %447 : vector<8x32xf32>
    %519 = arith.addf %517, %518 : vector<8x32xf32>
    %c1_205 = arith.constant 1 : index
    %c0_206 = arith.constant 0 : index
    %c0_207 = arith.constant 0 : index
    %520 = vector.load %arg20[%c1_205, %c0_206, %c0_207] : memref<8x8x32xf32, #tpu.memory_space<vmem>>, vector<1x8x32xf32>
    %521 = vector.shape_cast %520 : vector<1x8x32xf32> to vector<8x32xf32>
    %522 = vector.shape_cast %519 : vector<8x32xf32> to vector<1x8x32xf32>
    tpu.vector_store %arg20[%c1_205, %c0_206, %c0_207], %522 {strides = array<i32>} : memref<8x8x32xf32, #tpu.memory_space<vmem>>, vector<1x8x32xf32>,
    %c0_208 = arith.constant 0 : index
    %c0_209 = arith.constant 0 : index
    %523 = vector.load %arg5[%c0_208, %c0_209] : memref<32x96xf32, #tpu.memory_space<vmem>>, vector<32x96xf32>
    %cst_210 = arith.constant dense<0.000000e+00> : vector<8x96xf32>
    %524 = tpu.matmul %483, %523, %cst_210 {dimension_numbers = #tpu.dot_dimension_numbers<[1], [0], [0], [1], [0, 0, 1, 1], [], []>} : vector<8x32xf32>, vector<32x96xf32>, vector<8x96xf32> -> vector<8x96xf32>
    %c0_211 = arith.constant 0 : index
    %c0_212 = arith.constant 0 : index
    %525 = vector.load %arg7[%c0_211, %c0_212] : memref<1x96xf32, #tpu.memory_space<vmem>>, vector<1x96xf32>
    %526 = vector.broadcast %525 : vector<1x96xf32> to vector<8x96xf32>
    %527 = arith.addf %524, %526 : vector<8x96xf32>
    %c7_213 = arith.constant 7 : index
    %c0_214 = arith.constant 0 : index
    %c0_215 = arith.constant 0 : index
    %528 = vector.load %arg17[%c7_213, %c0_214, %c0_215] : memref<8x8x96xf32, #tpu.memory_space<vmem>>, vector<1x8x96xf32>
    %529 = vector.shape_cast %528 : vector<1x8x96xf32> to vector<8x96xf32>
    %530 = vector.extract_strided_slice %529 {offsets = [0, 0], sizes = [8, 32], strides = [1, 1]} : vector<8x96xf32> to vector<8x32xf32>
    %531 = vector.extract_strided_slice %527 {offsets = [0, 0], sizes = [8, 32], strides = [1, 1]} : vector<8x96xf32> to vector<8x32xf32>
    %532 = arith.addf %530, %531 : vector<8x32xf32>
    %533 = arith.negf %532 : vector<8x32xf32>
    %534 = math.exp %533 : vector<8x32xf32>
    %cst_216 = arith.constant 1.000000e+00 : f32
    %535 = vector.broadcast %cst_216 : f32 to vector<8x32xf32>
    %536 = arith.addf %535, %534 : vector<8x32xf32>
    %537 = arith.divf %535, %536 : vector<8x32xf32>
    %538 = vector.extract_strided_slice %529 {offsets = [0, 32], sizes = [8, 32], strides = [1, 1]} : vector<8x96xf32> to vector<8x32xf32>
    %539 = vector.extract_strided_slice %527 {offsets = [0, 32], sizes = [8, 32], strides = [1, 1]} : vector<8x96xf32> to vector<8x32xf32>
    %540 = arith.addf %538, %539 : vector<8x32xf32>
    %541 = arith.negf %540 : vector<8x32xf32>
    %542 = math.exp %541 : vector<8x32xf32>
    %cst_217 = arith.constant 1.000000e+00 : f32
    %543 = vector.broadcast %cst_217 : f32 to vector<8x32xf32>
    %544 = arith.addf %543, %542 : vector<8x32xf32>
    %545 = arith.divf %543, %544 : vector<8x32xf32>
    %546 = vector.extract_strided_slice %529 {offsets = [0, 64], sizes = [8, 32], strides = [1, 1]} : vector<8x96xf32> to vector<8x32xf32>
    %547 = vector.extract_strided_slice %527 {offsets = [0, 64], sizes = [8, 32], strides = [1, 1]} : vector<8x96xf32> to vector<8x32xf32>
    %548 = arith.mulf %537, %547 : vector<8x32xf32>
    %549 = arith.addf %546, %548 : vector<8x32xf32>
    %550 = math.tanh %549 : vector<8x32xf32>
    %cst_218 = arith.constant 1.000000e+00 : f32
    %551 = vector.broadcast %cst_218 : f32 to vector<8x32xf32>
    %552 = arith.subf %551, %545 : vector<8x32xf32>
    %553 = arith.mulf %552, %550 : vector<8x32xf32>
    %554 = arith.mulf %545, %483 : vector<8x32xf32>
    %555 = arith.addf %553, %554 : vector<8x32xf32>
    %c7_219 = arith.constant 7 : index
    %c0_220 = arith.constant 0 : index
    %c0_221 = arith.constant 0 : index
    %556 = vector.load %arg19[%c7_219, %c0_220, %c0_221] : memref<8x8x32xf32, #tpu.memory_space<vmem>>, vector<1x8x32xf32>
    %557 = vector.shape_cast %556 : vector<1x8x32xf32> to vector<8x32xf32>
    %558 = vector.shape_cast %555 : vector<8x32xf32> to vector<1x8x32xf32>
    tpu.vector_store %arg19[%c7_219, %c0_220, %c0_221], %558 {strides = array<i32>} : memref<8x8x32xf32, #tpu.memory_space<vmem>>, vector<1x8x32xf32>,
    %c0_222 = arith.constant 0 : index
    %c0_223 = arith.constant 0 : index
    %559 = vector.load %arg9[%c0_222, %c0_223] : memref<32x96xf32, #tpu.memory_space<vmem>>, vector<32x96xf32>
    %cst_224 = arith.constant dense<0.000000e+00> : vector<8x96xf32>
    %560 = tpu.matmul %519, %559, %cst_224 {dimension_numbers = #tpu.dot_dimension_numbers<[1], [0], [0], [1], [0, 0, 1, 1], [], []>} : vector<8x32xf32>, vector<32x96xf32>, vector<8x96xf32> -> vector<8x96xf32>
    %c0_225 = arith.constant 0 : index
    %c0_226 = arith.constant 0 : index
    %561 = vector.load %arg11[%c0_225, %c0_226] : memref<1x96xf32, #tpu.memory_space<vmem>>, vector<1x96xf32>
    %562 = vector.broadcast %561 : vector<1x96xf32> to vector<8x96xf32>
    %563 = arith.addf %560, %562 : vector<8x96xf32>
    %c0_227 = arith.constant 0 : index
    %c0_228 = arith.constant 0 : index
    %c0_229 = arith.constant 0 : index
    %564 = vector.load %arg18[%c0_227, %c0_228, %c0_229] : memref<8x8x96xf32, #tpu.memory_space<vmem>>, vector<1x8x96xf32>
    %565 = vector.shape_cast %564 : vector<1x8x96xf32> to vector<8x96xf32>
    %566 = vector.extract_strided_slice %565 {offsets = [0, 0], sizes = [8, 32], strides = [1, 1]} : vector<8x96xf32> to vector<8x32xf32>
    %567 = vector.extract_strided_slice %563 {offsets = [0, 0], sizes = [8, 32], strides = [1, 1]} : vector<8x96xf32> to vector<8x32xf32>
    %568 = arith.addf %566, %567 : vector<8x32xf32>
    %569 = arith.negf %568 : vector<8x32xf32>
    %570 = math.exp %569 : vector<8x32xf32>
    %cst_230 = arith.constant 1.000000e+00 : f32
    %571 = vector.broadcast %cst_230 : f32 to vector<8x32xf32>
    %572 = arith.addf %571, %570 : vector<8x32xf32>
    %573 = arith.divf %571, %572 : vector<8x32xf32>
    %574 = vector.extract_strided_slice %565 {offsets = [0, 32], sizes = [8, 32], strides = [1, 1]} : vector<8x96xf32> to vector<8x32xf32>
    %575 = vector.extract_strided_slice %563 {offsets = [0, 32], sizes = [8, 32], strides = [1, 1]} : vector<8x96xf32> to vector<8x32xf32>
    %576 = arith.addf %574, %575 : vector<8x32xf32>
    %577 = arith.negf %576 : vector<8x32xf32>
    %578 = math.exp %577 : vector<8x32xf32>
    %cst_231 = arith.constant 1.000000e+00 : f32
    %579 = vector.broadcast %cst_231 : f32 to vector<8x32xf32>
    %580 = arith.addf %579, %578 : vector<8x32xf32>
    %581 = arith.divf %579, %580 : vector<8x32xf32>
    %582 = vector.extract_strided_slice %565 {offsets = [0, 64], sizes = [8, 32], strides = [1, 1]} : vector<8x96xf32> to vector<8x32xf32>
    %583 = vector.extract_strided_slice %563 {offsets = [0, 64], sizes = [8, 32], strides = [1, 1]} : vector<8x96xf32> to vector<8x32xf32>
    %584 = arith.mulf %573, %583 : vector<8x32xf32>
    %585 = arith.addf %582, %584 : vector<8x32xf32>
    %586 = math.tanh %585 : vector<8x32xf32>
    %cst_232 = arith.constant 1.000000e+00 : f32
    %587 = vector.broadcast %cst_232 : f32 to vector<8x32xf32>
    %588 = arith.subf %587, %581 : vector<8x32xf32>
    %589 = arith.mulf %588, %586 : vector<8x32xf32>
    %590 = arith.mulf %581, %519 : vector<8x32xf32>
    %591 = arith.addf %589, %590 : vector<8x32xf32>
    %c0_233 = arith.constant 0 : index
    %c0_234 = arith.constant 0 : index
    %c0_235 = arith.constant 0 : index
    %592 = vector.load %arg20[%c0_233, %c0_234, %c0_235] : memref<8x8x32xf32, #tpu.memory_space<vmem>>, vector<1x8x32xf32>
    %593 = vector.shape_cast %592 : vector<1x8x32xf32> to vector<8x32xf32>
    %594 = vector.shape_cast %591 : vector<8x32xf32> to vector<1x8x32xf32>
    tpu.vector_store %arg20[%c0_233, %c0_234, %c0_235], %594 {strides = array<i32>} : memref<8x8x32xf32, #tpu.memory_space<vmem>>, vector<1x8x32xf32>,
    %c0_236 = arith.constant 0 : index
    %c0_237 = arith.constant 0 : index
    %c0_238 = arith.constant 0 : index
    %595 = vector.load %arg19[%c0_236, %c0_237, %c0_238] : memref<8x8x32xf32, #tpu.memory_space<vmem>>, vector<8x8x32xf32>
    %596 = vector.shape_cast %595 : vector<8x8x32xf32> to vector<64x32xf32>
    %c0_239 = arith.constant 0 : index
    %c0_240 = arith.constant 0 : index
    %597 = vector.load %arg13[%c0_239, %c0_240] : memref<32x32xf32, #tpu.memory_space<vmem>>, vector<32x32xf32>
    %cst_241 = arith.constant dense<0.000000e+00> : vector<64x32xf32>
    %598 = tpu.matmul %596, %597, %cst_241 {dimension_numbers = #tpu.dot_dimension_numbers<[1], [0], [0], [1], [0, 0, 1, 1], [], []>} : vector<64x32xf32>, vector<32x32xf32>, vector<64x32xf32> -> vector<64x32xf32>
    %c0_242 = arith.constant 0 : index
    %c0_243 = arith.constant 0 : index
    %c0_244 = arith.constant 0 : index
    %599 = vector.load %arg20[%c0_242, %c0_243, %c0_244] : memref<8x8x32xf32, #tpu.memory_space<vmem>>, vector<8x8x32xf32>
    %600 = vector.shape_cast %599 : vector<8x8x32xf32> to vector<64x32xf32>
    %c0_245 = arith.constant 0 : index
    %c0_246 = arith.constant 0 : index
    %601 = vector.load %arg14[%c0_245, %c0_246] : memref<32x32xf32, #tpu.memory_space<vmem>>, vector<32x32xf32>
    %cst_247 = arith.constant dense<0.000000e+00> : vector<64x32xf32>
    %602 = tpu.matmul %600, %601, %cst_247 {dimension_numbers = #tpu.dot_dimension_numbers<[1], [0], [0], [1], [0, 0, 1, 1], [], []>} : vector<64x32xf32>, vector<32x32xf32>, vector<64x32xf32> -> vector<64x32xf32>
    %603 = arith.addf %598, %602 : vector<64x32xf32>
    %604 = vector.shape_cast %603 : vector<64x32xf32> to vector<8x8x32xf32>
    %c0_248 = arith.constant 0 : index
    %c0_249 = arith.constant 0 : index
    %c0_250 = arith.constant 0 : index
    %c0_251 = arith.constant 0 : index
    %605 = vector.load %arg3[%c0_248, %c0_249, %c0_250, %c0_251] : memref<1x8x8x32xf32, #tpu.memory_space<vmem>>, vector<1x8x8x32xf32>
    %606 = vector.shape_cast %605 : vector<1x8x8x32xf32> to vector<8x8x32xf32>
    %607 = vector.shape_cast %606 : vector<8x8x32xf32> to vector<64x32xf32>
    %c0_252 = arith.constant 0 : index
    %c0_253 = arith.constant 0 : index
    %608 = vector.load %arg12[%c0_252, %c0_253] : memref<32x32xf32, #tpu.memory_space<vmem>>, vector<32x32xf32>
    %cst_254 = arith.constant dense<0.000000e+00> : vector<64x32xf32>
    %609 = tpu.matmul %607, %608, %cst_254 {dimension_numbers = #tpu.dot_dimension_numbers<[1], [0], [0], [1], [0, 0, 1, 1], [], []>} : vector<64x32xf32>, vector<32x32xf32>, vector<64x32xf32> -> vector<64x32xf32>
    %c0_255 = arith.constant 0 : index
    %c0_256 = arith.constant 0 : index
    %610 = vector.load %arg15[%c0_255, %c0_256] : memref<1x32xf32, #tpu.memory_space<vmem>>, vector<1x32xf32>
    %611 = vector.broadcast %610 : vector<1x32xf32> to vector<64x32xf32>
    %612 = arith.addf %609, %611 : vector<64x32xf32>
    %613 = vector.shape_cast %612 : vector<64x32xf32> to vector<8x8x32xf32>
    %c0_257 = arith.constant 0 : index
    %c0_258 = arith.constant 0 : index
    %c0_259 = arith.constant 0 : index
    %c0_260 = arith.constant 0 : index
    %614 = vector.load %arg2[%c0_257, %c0_258, %c0_259, %c0_260] : memref<1x8x8x32xf32, #tpu.memory_space<vmem>>, vector<1x8x8x32xf32>
    %615 = vector.shape_cast %614 : vector<1x8x8x32xf32> to vector<8x8x32xf32>
    %616 = arith.addf %615, %613 : vector<8x8x32xf32>
    %617 = tpu.transpose %604, [1, 0, 2] : vector<8x8x32xf32> -> vector<8x8x32xf32>
    %618 = arith.addf %616, %617 : vector<8x8x32xf32>
    %c0_261 = arith.constant 0 : index
    %c0_262 = arith.constant 0 : index
    %c0_263 = arith.constant 0 : index
    %c0_264 = arith.constant 0 : index
    %619 = vector.load %arg16[%c0_261, %c0_262, %c0_263, %c0_264] : memref<1x8x8x32xf32, #tpu.memory_space<vmem>>, vector<1x8x8x32xf32>
    %620 = vector.shape_cast %619 : vector<1x8x8x32xf32> to vector<8x8x32xf32>
    %621 = vector.shape_cast %618 : vector<8x8x32xf32> to vector<1x8x8x32xf32>
    tpu.vector_store %arg16[%c0_261, %c0_262, %c0_263, %c0_264], %621 {strides = array<i32>} : memref<1x8x8x32xf32, #tpu.memory_space<vmem>>, vector<1x8x8x32xf32>,
    return
  }
  func.func @transform_0(%arg0: i32, %arg1: i32) -> (i32, i32, i32, i32) {
    %c0_i32 = arith.constant 0 : i32
    %c0_i32_0 = arith.constant 0 : i32
    %c0_i32_1 = arith.constant 0 : i32
    return %arg0, %arg1, %c0_i32, %c0_i32_0 : i32, i32, i32, i32
  }
  func.func @transform_1(%arg0: i32, %arg1: i32) -> (i32, i32, i32, i32) {
    %c0_i32 = arith.constant 0 : i32
    %c0_i32_0 = arith.constant 0 : i32
    %c0_i32_1 = arith.constant 0 : i32
    return %arg0, %arg1, %c0_i32, %c0_i32_0 : i32, i32, i32, i32
  }
  func.func @transform_2(%arg0: i32, %arg1: i32) -> (i32, i32) {
    %c0_i32 = arith.constant 0 : i32
    %c0_i32_0 = arith.constant 0 : i32
    %c0_i32_1 = arith.constant 0 : i32
    return %c0_i32, %c0_i32_0 : i32, i32
  }
  func.func @transform_3(%arg0: i32, %arg1: i32) -> (i32, i32) {
    %c0_i32 = arith.constant 0 : i32
    %c0_i32_0 = arith.constant 0 : i32
    %c0_i32_1 = arith.constant 0 : i32
    return %c0_i32, %c0_i32_0 : i32, i32
  }
  func.func @transform_4(%arg0: i32, %arg1: i32) -> (i32, i32) {
    %c0_i32 = arith.constant 0 : i32
    %c0_i32_0 = arith.constant 0 : i32
    %c0_i32_1 = arith.constant 0 : i32
    return %c0_i32, %c0_i32_0 : i32, i32
  }
  func.func @transform_5(%arg0: i32, %arg1: i32) -> (i32, i32) {
    %c0_i32 = arith.constant 0 : i32
    %c0_i32_0 = arith.constant 0 : i32
    %c0_i32_1 = arith.constant 0 : i32
    return %c0_i32, %c0_i32_0 : i32, i32
  }
  func.func @transform_6(%arg0: i32, %arg1: i32) -> (i32, i32) {
    %c0_i32 = arith.constant 0 : i32
    %c0_i32_0 = arith.constant 0 : i32
    %c0_i32_1 = arith.constant 0 : i32
    return %c0_i32, %c0_i32_0 : i32, i32
  }
  func.func @transform_7(%arg0: i32, %arg1: i32) -> (i32, i32) {
    %c0_i32 = arith.constant 0 : i32
    %c0_i32_0 = arith.constant 0 : i32
    %c0_i32_1 = arith.constant 0 : i32
    return %c0_i32, %c0_i32_0 : i32, i32
  }
  func.func @transform_8(%arg0: i32, %arg1: i32) -> (i32, i32) {
    %c0_i32 = arith.constant 0 : i32
    %c0_i32_0 = arith.constant 0 : i32
    %c0_i32_1 = arith.constant 0 : i32
    return %c0_i32, %c0_i32_0 : i32, i32
  }
  func.func @transform_9(%arg0: i32, %arg1: i32) -> (i32, i32) {
    %c0_i32 = arith.constant 0 : i32
    %c0_i32_0 = arith.constant 0 : i32
    %c0_i32_1 = arith.constant 0 : i32
    return %c0_i32, %c0_i32_0 : i32, i32
  }
  func.func @transform_10(%arg0: i32, %arg1: i32) -> (i32, i32) {
    %c0_i32 = arith.constant 0 : i32
    %c0_i32_0 = arith.constant 0 : i32
    %c0_i32_1 = arith.constant 0 : i32
    return %c0_i32, %c0_i32_0 : i32, i32
  }
  func.func @transform_11(%arg0: i32, %arg1: i32) -> (i32, i32) {
    %c0_i32 = arith.constant 0 : i32
    %c0_i32_0 = arith.constant 0 : i32
    %c0_i32_1 = arith.constant 0 : i32
    return %c0_i32, %c0_i32_0 : i32, i32
  }
  func.func @transform_12(%arg0: i32, %arg1: i32) -> (i32, i32) {
    %c0_i32 = arith.constant 0 : i32
    %c0_i32_0 = arith.constant 0 : i32
    %c0_i32_1 = arith.constant 0 : i32
    return %c0_i32, %c0_i32_0 : i32, i32
  }
  func.func @transform_13(%arg0: i32, %arg1: i32) -> (i32, i32) {
    %c0_i32 = arith.constant 0 : i32
    %c0_i32_0 = arith.constant 0 : i32
    %c0_i32_1 = arith.constant 0 : i32
    return %c0_i32, %c0_i32_0 : i32, i32
  }
  func.func @transform_14(%arg0: i32, %arg1: i32) -> (i32, i32, i32, i32) {
    %c0_i32 = arith.constant 0 : i32
    %c0_i32_0 = arith.constant 0 : i32
    %c0_i32_1 = arith.constant 0 : i32
    return %arg0, %arg1, %c0_i32, %c0_i32_0 : i32, i32, i32, i32
  }
}

module attributes {stable_mosaic.version = 11 : i64} {
  func.func @freq_stack_kernel(%arg0: i32, %arg1: i32, %arg2: memref<1x8x8x32xf32, #tpu.memory_space<vmem>>, %arg3: memref<1x8x8x32xf32, #tpu.memory_space<vmem>>, %arg4: memref<1x8x32xf32, #tpu.memory_space<vmem>>, %arg5: memref<32x96xf32, #tpu.memory_space<vmem>>, %arg6: memref<32x96xf32, #tpu.memory_space<vmem>>, %arg7: memref<1x96xf32, #tpu.memory_space<vmem>>, %arg8: memref<1x96xf32, #tpu.memory_space<vmem>>, %arg9: memref<32x32xf32, #tpu.memory_space<vmem>>, %arg10: memref<1x32xf32, #tpu.memory_space<vmem>>, %arg11: memref<1x8x8x32xf32, #tpu.memory_space<vmem>>, %arg12: memref<8x8x96xf32, #tpu.memory_space<vmem>>, %arg13: memref<8x8x32xf32, #tpu.memory_space<vmem>>) attributes {dimension_semantics = [#tpu.dimension_semantics<parallel>, #tpu.dimension_semantics<parallel>], iteration_bounds = array<i64: 2, 1>, scalar_prefetch = 0 : i64, scratch_operands = 2 : i64, tpu.core_type = #tpu.core_type<tc>, window_params = [{transform_indices = @transform_0, window_bounds = array<i64: 1, 8, 8, 32>}, {transform_indices = @transform_1, window_bounds = array<i64: 1, 8, 8, 32>}, {transform_indices = @transform_2, window_bounds = array<i64: 1, 8, 32>}, {pipeline_mode = #tpu.pipeline_mode<synchronous>, transform_indices = @transform_3, window_bounds = array<i64: 32, 96>}, {pipeline_mode = #tpu.pipeline_mode<synchronous>, transform_indices = @transform_4, window_bounds = array<i64: 32, 96>}, {pipeline_mode = #tpu.pipeline_mode<synchronous>, transform_indices = @transform_5, window_bounds = array<i64: 1, 96>}, {pipeline_mode = #tpu.pipeline_mode<synchronous>, transform_indices = @transform_6, window_bounds = array<i64: 1, 96>}, {pipeline_mode = #tpu.pipeline_mode<synchronous>, transform_indices = @transform_7, window_bounds = array<i64: 32, 32>}, {pipeline_mode = #tpu.pipeline_mode<synchronous>, transform_indices = @transform_8, window_bounds = array<i64: 1, 32>}, {transform_indices = @transform_9, window_bounds = array<i64: 1, 8, 8, 32>}]} {
    %c0 = arith.constant 0 : index
    %c0_0 = arith.constant 0 : index
    %c0_1 = arith.constant 0 : index
    %c0_2 = arith.constant 0 : index
    %0 = vector.load %arg2[%c0, %c0_0, %c0_1, %c0_2] : memref<1x8x8x32xf32, #tpu.memory_space<vmem>>, vector<1x8x8x32xf32>
    %1 = vector.shape_cast %0 : vector<1x8x8x32xf32> to vector<8x8x32xf32>
    %c0_3 = arith.constant 0 : index
    %c0_4 = arith.constant 0 : index
    %c0_5 = arith.constant 0 : index
    %c0_6 = arith.constant 0 : index
    %2 = vector.load %arg3[%c0_3, %c0_4, %c0_5, %c0_6] : memref<1x8x8x32xf32, #tpu.memory_space<vmem>>, vector<1x8x8x32xf32>
    %3 = vector.shape_cast %2 : vector<1x8x8x32xf32> to vector<8x8x32xf32>
    %4 = arith.addf %1, %3 : vector<8x8x32xf32>
    %c0_7 = arith.constant 0 : index
    %c0_8 = arith.constant 0 : index
    %c0_9 = arith.constant 0 : index
    %5 = vector.load %arg4[%c0_7, %c0_8, %c0_9] : memref<1x8x32xf32, #tpu.memory_space<vmem>>, vector<1x8x32xf32>
    %6 = vector.shape_cast %5 : vector<1x8x32xf32> to vector<8x32xf32>
    %7 = vector.shape_cast %6 : vector<8x32xf32> to vector<8x1x32xf32>
    %8 = vector.broadcast %7 : vector<8x1x32xf32> to vector<8x8x32xf32>
    %9 = arith.addf %4, %8 : vector<8x8x32xf32>
    %10 = tpu.transpose %9, [1, 0, 2] : vector<8x8x32xf32> -> vector<8x8x32xf32>
    %11 = vector.shape_cast %10 : vector<8x8x32xf32> to vector<64x32xf32>
    %c0_10 = arith.constant 0 : index
    %c0_11 = arith.constant 0 : index
    %12 = vector.load %arg5[%c0_10, %c0_11] : memref<32x96xf32, #tpu.memory_space<vmem>>, vector<32x96xf32>
    %cst = arith.constant dense<0.000000e+00> : vector<64x96xf32>
    %13 = tpu.matmul %11, %12, %cst {dimension_numbers = #tpu.dot_dimension_numbers<[1], [0], [0], [1], [0, 0, 1, 1], [], []>} : vector<64x32xf32>, vector<32x96xf32>, vector<64x96xf32> -> vector<64x96xf32>
    %c0_12 = arith.constant 0 : index
    %c0_13 = arith.constant 0 : index
    %14 = vector.load %arg7[%c0_12, %c0_13] : memref<1x96xf32, #tpu.memory_space<vmem>>, vector<1x96xf32>
    %15 = vector.broadcast %14 : vector<1x96xf32> to vector<64x96xf32>
    %16 = arith.addf %13, %15 : vector<64x96xf32>
    %17 = vector.shape_cast %16 : vector<64x96xf32> to vector<8x8x96xf32>
    %c0_14 = arith.constant 0 : index
    %c0_15 = arith.constant 0 : index
    %c0_16 = arith.constant 0 : index
    %18 = vector.load %arg12[%c0_14, %c0_15, %c0_16] : memref<8x8x96xf32, #tpu.memory_space<vmem>>, vector<8x8x96xf32>
    tpu.vector_store %arg12[%c0_14, %c0_15, %c0_16], %17 {strides = array<i32>} : memref<8x8x96xf32, #tpu.memory_space<vmem>>, vector<8x8x96xf32>,
    %cst_17 = arith.constant 0.000000e+00 : f32
    %19 = vector.broadcast %cst_17 : f32 to vector<8x32xf32>
    %c0_18 = arith.constant 0 : index
    %c0_19 = arith.constant 0 : index
    %20 = vector.load %arg6[%c0_18, %c0_19] : memref<32x96xf32, #tpu.memory_space<vmem>>, vector<32x96xf32>
    %cst_20 = arith.constant dense<0.000000e+00> : vector<8x96xf32>
    %21 = tpu.matmul %19, %20, %cst_20 {dimension_numbers = #tpu.dot_dimension_numbers<[1], [0], [0], [1], [0, 0, 1, 1], [], []>} : vector<8x32xf32>, vector<32x96xf32>, vector<8x96xf32> -> vector<8x96xf32>
    %c0_21 = arith.constant 0 : index
    %c0_22 = arith.constant 0 : index
    %22 = vector.load %arg8[%c0_21, %c0_22] : memref<1x96xf32, #tpu.memory_space<vmem>>, vector<1x96xf32>
    %23 = vector.broadcast %22 : vector<1x96xf32> to vector<8x96xf32>
    %24 = arith.addf %21, %23 : vector<8x96xf32>
    %c0_23 = arith.constant 0 : index
    %c0_24 = arith.constant 0 : index
    %c0_25 = arith.constant 0 : index
    %25 = vector.load %arg12[%c0_23, %c0_24, %c0_25] : memref<8x8x96xf32, #tpu.memory_space<vmem>>, vector<1x8x96xf32>
    %26 = vector.shape_cast %25 : vector<1x8x96xf32> to vector<8x96xf32>
    %27 = vector.extract_strided_slice %26 {offsets = [0, 0], sizes = [8, 32], strides = [1, 1]} : vector<8x96xf32> to vector<8x32xf32>
    %28 = vector.extract_strided_slice %24 {offsets = [0, 0], sizes = [8, 32], strides = [1, 1]} : vector<8x96xf32> to vector<8x32xf32>
    %29 = arith.addf %27, %28 : vector<8x32xf32>
    %30 = arith.negf %29 : vector<8x32xf32>
    %31 = math.exp %30 : vector<8x32xf32>
    %cst_26 = arith.constant 1.000000e+00 : f32
    %32 = vector.broadcast %cst_26 : f32 to vector<8x32xf32>
    %33 = arith.addf %32, %31 : vector<8x32xf32>
    %34 = arith.divf %32, %33 : vector<8x32xf32>
    %35 = vector.extract_strided_slice %26 {offsets = [0, 32], sizes = [8, 32], strides = [1, 1]} : vector<8x96xf32> to vector<8x32xf32>
    %36 = vector.extract_strided_slice %24 {offsets = [0, 32], sizes = [8, 32], strides = [1, 1]} : vector<8x96xf32> to vector<8x32xf32>
    %37 = arith.addf %35, %36 : vector<8x32xf32>
    %38 = arith.negf %37 : vector<8x32xf32>
    %39 = math.exp %38 : vector<8x32xf32>
    %cst_27 = arith.constant 1.000000e+00 : f32
    %40 = vector.broadcast %cst_27 : f32 to vector<8x32xf32>
    %41 = arith.addf %40, %39 : vector<8x32xf32>
    %42 = arith.divf %40, %41 : vector<8x32xf32>
    %43 = vector.extract_strided_slice %26 {offsets = [0, 64], sizes = [8, 32], strides = [1, 1]} : vector<8x96xf32> to vector<8x32xf32>
    %44 = vector.extract_strided_slice %24 {offsets = [0, 64], sizes = [8, 32], strides = [1, 1]} : vector<8x96xf32> to vector<8x32xf32>
    %45 = arith.mulf %34, %44 : vector<8x32xf32>
    %46 = arith.addf %43, %45 : vector<8x32xf32>
    %47 = math.tanh %46 : vector<8x32xf32>
    %cst_28 = arith.constant 1.000000e+00 : f32
    %48 = vector.broadcast %cst_28 : f32 to vector<8x32xf32>
    %49 = arith.subf %48, %42 : vector<8x32xf32>
    %50 = arith.mulf %49, %47 : vector<8x32xf32>
    %51 = arith.mulf %42, %19 : vector<8x32xf32>
    %52 = arith.addf %50, %51 : vector<8x32xf32>
    %c0_29 = arith.constant 0 : index
    %c0_30 = arith.constant 0 : index
    %c0_31 = arith.constant 0 : index
    %53 = vector.load %arg13[%c0_29, %c0_30, %c0_31] : memref<8x8x32xf32, #tpu.memory_space<vmem>>, vector<1x8x32xf32>
    %54 = vector.shape_cast %53 : vector<1x8x32xf32> to vector<8x32xf32>
    %55 = vector.shape_cast %52 : vector<8x32xf32> to vector<1x8x32xf32>
    tpu.vector_store %arg13[%c0_29, %c0_30, %c0_31], %55 {strides = array<i32>} : memref<8x8x32xf32, #tpu.memory_space<vmem>>, vector<1x8x32xf32>,
    %c0_32 = arith.constant 0 : index
    %c0_33 = arith.constant 0 : index
    %56 = vector.load %arg6[%c0_32, %c0_33] : memref<32x96xf32, #tpu.memory_space<vmem>>, vector<32x96xf32>
    %cst_34 = arith.constant dense<0.000000e+00> : vector<8x96xf32>
    %57 = tpu.matmul %52, %56, %cst_34 {dimension_numbers = #tpu.dot_dimension_numbers<[1], [0], [0], [1], [0, 0, 1, 1], [], []>} : vector<8x32xf32>, vector<32x96xf32>, vector<8x96xf32> -> vector<8x96xf32>
    %c0_35 = arith.constant 0 : index
    %c0_36 = arith.constant 0 : index
    %58 = vector.load %arg8[%c0_35, %c0_36] : memref<1x96xf32, #tpu.memory_space<vmem>>, vector<1x96xf32>
    %59 = vector.broadcast %58 : vector<1x96xf32> to vector<8x96xf32>
    %60 = arith.addf %57, %59 : vector<8x96xf32>
    %c1 = arith.constant 1 : index
    %c0_37 = arith.constant 0 : index
    %c0_38 = arith.constant 0 : index
    %61 = vector.load %arg12[%c1, %c0_37, %c0_38] : memref<8x8x96xf32, #tpu.memory_space<vmem>>, vector<1x8x96xf32>
    %62 = vector.shape_cast %61 : vector<1x8x96xf32> to vector<8x96xf32>
    %63 = vector.extract_strided_slice %62 {offsets = [0, 0], sizes = [8, 32], strides = [1, 1]} : vector<8x96xf32> to vector<8x32xf32>
    %64 = vector.extract_strided_slice %60 {offsets = [0, 0], sizes = [8, 32], strides = [1, 1]} : vector<8x96xf32> to vector<8x32xf32>
    %65 = arith.addf %63, %64 : vector<8x32xf32>
    %66 = arith.negf %65 : vector<8x32xf32>
    %67 = math.exp %66 : vector<8x32xf32>
    %cst_39 = arith.constant 1.000000e+00 : f32
    %68 = vector.broadcast %cst_39 : f32 to vector<8x32xf32>
    %69 = arith.addf %68, %67 : vector<8x32xf32>
    %70 = arith.divf %68, %69 : vector<8x32xf32>
    %71 = vector.extract_strided_slice %62 {offsets = [0, 32], sizes = [8, 32], strides = [1, 1]} : vector<8x96xf32> to vector<8x32xf32>
    %72 = vector.extract_strided_slice %60 {offsets = [0, 32], sizes = [8, 32], strides = [1, 1]} : vector<8x96xf32> to vector<8x32xf32>
    %73 = arith.addf %71, %72 : vector<8x32xf32>
    %74 = arith.negf %73 : vector<8x32xf32>
    %75 = math.exp %74 : vector<8x32xf32>
    %cst_40 = arith.constant 1.000000e+00 : f32
    %76 = vector.broadcast %cst_40 : f32 to vector<8x32xf32>
    %77 = arith.addf %76, %75 : vector<8x32xf32>
    %78 = arith.divf %76, %77 : vector<8x32xf32>
    %79 = vector.extract_strided_slice %62 {offsets = [0, 64], sizes = [8, 32], strides = [1, 1]} : vector<8x96xf32> to vector<8x32xf32>
    %80 = vector.extract_strided_slice %60 {offsets = [0, 64], sizes = [8, 32], strides = [1, 1]} : vector<8x96xf32> to vector<8x32xf32>
    %81 = arith.mulf %70, %80 : vector<8x32xf32>
    %82 = arith.addf %79, %81 : vector<8x32xf32>
    %83 = math.tanh %82 : vector<8x32xf32>
    %cst_41 = arith.constant 1.000000e+00 : f32
    %84 = vector.broadcast %cst_41 : f32 to vector<8x32xf32>
    %85 = arith.subf %84, %78 : vector<8x32xf32>
    %86 = arith.mulf %85, %83 : vector<8x32xf32>
    %87 = arith.mulf %78, %52 : vector<8x32xf32>
    %88 = arith.addf %86, %87 : vector<8x32xf32>
    %c1_42 = arith.constant 1 : index
    %c0_43 = arith.constant 0 : index
    %c0_44 = arith.constant 0 : index
    %89 = vector.load %arg13[%c1_42, %c0_43, %c0_44] : memref<8x8x32xf32, #tpu.memory_space<vmem>>, vector<1x8x32xf32>
    %90 = vector.shape_cast %89 : vector<1x8x32xf32> to vector<8x32xf32>
    %91 = vector.shape_cast %88 : vector<8x32xf32> to vector<1x8x32xf32>
    tpu.vector_store %arg13[%c1_42, %c0_43, %c0_44], %91 {strides = array<i32>} : memref<8x8x32xf32, #tpu.memory_space<vmem>>, vector<1x8x32xf32>,
    %c0_45 = arith.constant 0 : index
    %c0_46 = arith.constant 0 : index
    %92 = vector.load %arg6[%c0_45, %c0_46] : memref<32x96xf32, #tpu.memory_space<vmem>>, vector<32x96xf32>
    %cst_47 = arith.constant dense<0.000000e+00> : vector<8x96xf32>
    %93 = tpu.matmul %88, %92, %cst_47 {dimension_numbers = #tpu.dot_dimension_numbers<[1], [0], [0], [1], [0, 0, 1, 1], [], []>} : vector<8x32xf32>, vector<32x96xf32>, vector<8x96xf32> -> vector<8x96xf32>
    %c0_48 = arith.constant 0 : index
    %c0_49 = arith.constant 0 : index
    %94 = vector.load %arg8[%c0_48, %c0_49] : memref<1x96xf32, #tpu.memory_space<vmem>>, vector<1x96xf32>
    %95 = vector.broadcast %94 : vector<1x96xf32> to vector<8x96xf32>
    %96 = arith.addf %93, %95 : vector<8x96xf32>
    %c2 = arith.constant 2 : index
    %c0_50 = arith.constant 0 : index
    %c0_51 = arith.constant 0 : index
    %97 = vector.load %arg12[%c2, %c0_50, %c0_51] : memref<8x8x96xf32, #tpu.memory_space<vmem>>, vector<1x8x96xf32>
    %98 = vector.shape_cast %97 : vector<1x8x96xf32> to vector<8x96xf32>
    %99 = vector.extract_strided_slice %98 {offsets = [0, 0], sizes = [8, 32], strides = [1, 1]} : vector<8x96xf32> to vector<8x32xf32>
    %100 = vector.extract_strided_slice %96 {offsets = [0, 0], sizes = [8, 32], strides = [1, 1]} : vector<8x96xf32> to vector<8x32xf32>
    %101 = arith.addf %99, %100 : vector<8x32xf32>
    %102 = arith.negf %101 : vector<8x32xf32>
    %103 = math.exp %102 : vector<8x32xf32>
    %cst_52 = arith.constant 1.000000e+00 : f32
    %104 = vector.broadcast %cst_52 : f32 to vector<8x32xf32>
    %105 = arith.addf %104, %103 : vector<8x32xf32>
    %106 = arith.divf %104, %105 : vector<8x32xf32>
    %107 = vector.extract_strided_slice %98 {offsets = [0, 32], sizes = [8, 32], strides = [1, 1]} : vector<8x96xf32> to vector<8x32xf32>
    %108 = vector.extract_strided_slice %96 {offsets = [0, 32], sizes = [8, 32], strides = [1, 1]} : vector<8x96xf32> to vector<8x32xf32>
    %109 = arith.addf %107, %108 : vector<8x32xf32>
    %110 = arith.negf %109 : vector<8x32xf32>
    %111 = math.exp %110 : vector<8x32xf32>
    %cst_53 = arith.constant 1.000000e+00 : f32
    %112 = vector.broadcast %cst_53 : f32 to vector<8x32xf32>
    %113 = arith.addf %112, %111 : vector<8x32xf32>
    %114 = arith.divf %112, %113 : vector<8x32xf32>
    %115 = vector.extract_strided_slice %98 {offsets = [0, 64], sizes = [8, 32], strides = [1, 1]} : vector<8x96xf32> to vector<8x32xf32>
    %116 = vector.extract_strided_slice %96 {offsets = [0, 64], sizes = [8, 32], strides = [1, 1]} : vector<8x96xf32> to vector<8x32xf32>
    %117 = arith.mulf %106, %116 : vector<8x32xf32>
    %118 = arith.addf %115, %117 : vector<8x32xf32>
    %119 = math.tanh %118 : vector<8x32xf32>
    %cst_54 = arith.constant 1.000000e+00 : f32
    %120 = vector.broadcast %cst_54 : f32 to vector<8x32xf32>
    %121 = arith.subf %120, %114 : vector<8x32xf32>
    %122 = arith.mulf %121, %119 : vector<8x32xf32>
    %123 = arith.mulf %114, %88 : vector<8x32xf32>
    %124 = arith.addf %122, %123 : vector<8x32xf32>
    %c2_55 = arith.constant 2 : index
    %c0_56 = arith.constant 0 : index
    %c0_57 = arith.constant 0 : index
    %125 = vector.load %arg13[%c2_55, %c0_56, %c0_57] : memref<8x8x32xf32, #tpu.memory_space<vmem>>, vector<1x8x32xf32>
    %126 = vector.shape_cast %125 : vector<1x8x32xf32> to vector<8x32xf32>
    %127 = vector.shape_cast %124 : vector<8x32xf32> to vector<1x8x32xf32>
    tpu.vector_store %arg13[%c2_55, %c0_56, %c0_57], %127 {strides = array<i32>} : memref<8x8x32xf32, #tpu.memory_space<vmem>>, vector<1x8x32xf32>,
    %c0_58 = arith.constant 0 : index
    %c0_59 = arith.constant 0 : index
    %128 = vector.load %arg6[%c0_58, %c0_59] : memref<32x96xf32, #tpu.memory_space<vmem>>, vector<32x96xf32>
    %cst_60 = arith.constant dense<0.000000e+00> : vector<8x96xf32>
    %129 = tpu.matmul %124, %128, %cst_60 {dimension_numbers = #tpu.dot_dimension_numbers<[1], [0], [0], [1], [0, 0, 1, 1], [], []>} : vector<8x32xf32>, vector<32x96xf32>, vector<8x96xf32> -> vector<8x96xf32>
    %c0_61 = arith.constant 0 : index
    %c0_62 = arith.constant 0 : index
    %130 = vector.load %arg8[%c0_61, %c0_62] : memref<1x96xf32, #tpu.memory_space<vmem>>, vector<1x96xf32>
    %131 = vector.broadcast %130 : vector<1x96xf32> to vector<8x96xf32>
    %132 = arith.addf %129, %131 : vector<8x96xf32>
    %c3 = arith.constant 3 : index
    %c0_63 = arith.constant 0 : index
    %c0_64 = arith.constant 0 : index
    %133 = vector.load %arg12[%c3, %c0_63, %c0_64] : memref<8x8x96xf32, #tpu.memory_space<vmem>>, vector<1x8x96xf32>
    %134 = vector.shape_cast %133 : vector<1x8x96xf32> to vector<8x96xf32>
    %135 = vector.extract_strided_slice %134 {offsets = [0, 0], sizes = [8, 32], strides = [1, 1]} : vector<8x96xf32> to vector<8x32xf32>
    %136 = vector.extract_strided_slice %132 {offsets = [0, 0], sizes = [8, 32], strides = [1, 1]} : vector<8x96xf32> to vector<8x32xf32>
    %137 = arith.addf %135, %136 : vector<8x32xf32>
    %138 = arith.negf %137 : vector<8x32xf32>
    %139 = math.exp %138 : vector<8x32xf32>
    %cst_65 = arith.constant 1.000000e+00 : f32
    %140 = vector.broadcast %cst_65 : f32 to vector<8x32xf32>
    %141 = arith.addf %140, %139 : vector<8x32xf32>
    %142 = arith.divf %140, %141 : vector<8x32xf32>
    %143 = vector.extract_strided_slice %134 {offsets = [0, 32], sizes = [8, 32], strides = [1, 1]} : vector<8x96xf32> to vector<8x32xf32>
    %144 = vector.extract_strided_slice %132 {offsets = [0, 32], sizes = [8, 32], strides = [1, 1]} : vector<8x96xf32> to vector<8x32xf32>
    %145 = arith.addf %143, %144 : vector<8x32xf32>
    %146 = arith.negf %145 : vector<8x32xf32>
    %147 = math.exp %146 : vector<8x32xf32>
    %cst_66 = arith.constant 1.000000e+00 : f32
    %148 = vector.broadcast %cst_66 : f32 to vector<8x32xf32>
    %149 = arith.addf %148, %147 : vector<8x32xf32>
    %150 = arith.divf %148, %149 : vector<8x32xf32>
    %151 = vector.extract_strided_slice %134 {offsets = [0, 64], sizes = [8, 32], strides = [1, 1]} : vector<8x96xf32> to vector<8x32xf32>
    %152 = vector.extract_strided_slice %132 {offsets = [0, 64], sizes = [8, 32], strides = [1, 1]} : vector<8x96xf32> to vector<8x32xf32>
    %153 = arith.mulf %142, %152 : vector<8x32xf32>
    %154 = arith.addf %151, %153 : vector<8x32xf32>
    %155 = math.tanh %154 : vector<8x32xf32>
    %cst_67 = arith.constant 1.000000e+00 : f32
    %156 = vector.broadcast %cst_67 : f32 to vector<8x32xf32>
    %157 = arith.subf %156, %150 : vector<8x32xf32>
    %158 = arith.mulf %157, %155 : vector<8x32xf32>
    %159 = arith.mulf %150, %124 : vector<8x32xf32>
    %160 = arith.addf %158, %159 : vector<8x32xf32>
    %c3_68 = arith.constant 3 : index
    %c0_69 = arith.constant 0 : index
    %c0_70 = arith.constant 0 : index
    %161 = vector.load %arg13[%c3_68, %c0_69, %c0_70] : memref<8x8x32xf32, #tpu.memory_space<vmem>>, vector<1x8x32xf32>
    %162 = vector.shape_cast %161 : vector<1x8x32xf32> to vector<8x32xf32>
    %163 = vector.shape_cast %160 : vector<8x32xf32> to vector<1x8x32xf32>
    tpu.vector_store %arg13[%c3_68, %c0_69, %c0_70], %163 {strides = array<i32>} : memref<8x8x32xf32, #tpu.memory_space<vmem>>, vector<1x8x32xf32>,
    %c0_71 = arith.constant 0 : index
    %c0_72 = arith.constant 0 : index
    %164 = vector.load %arg6[%c0_71, %c0_72] : memref<32x96xf32, #tpu.memory_space<vmem>>, vector<32x96xf32>
    %cst_73 = arith.constant dense<0.000000e+00> : vector<8x96xf32>
    %165 = tpu.matmul %160, %164, %cst_73 {dimension_numbers = #tpu.dot_dimension_numbers<[1], [0], [0], [1], [0, 0, 1, 1], [], []>} : vector<8x32xf32>, vector<32x96xf32>, vector<8x96xf32> -> vector<8x96xf32>
    %c0_74 = arith.constant 0 : index
    %c0_75 = arith.constant 0 : index
    %166 = vector.load %arg8[%c0_74, %c0_75] : memref<1x96xf32, #tpu.memory_space<vmem>>, vector<1x96xf32>
    %167 = vector.broadcast %166 : vector<1x96xf32> to vector<8x96xf32>
    %168 = arith.addf %165, %167 : vector<8x96xf32>
    %c4 = arith.constant 4 : index
    %c0_76 = arith.constant 0 : index
    %c0_77 = arith.constant 0 : index
    %169 = vector.load %arg12[%c4, %c0_76, %c0_77] : memref<8x8x96xf32, #tpu.memory_space<vmem>>, vector<1x8x96xf32>
    %170 = vector.shape_cast %169 : vector<1x8x96xf32> to vector<8x96xf32>
    %171 = vector.extract_strided_slice %170 {offsets = [0, 0], sizes = [8, 32], strides = [1, 1]} : vector<8x96xf32> to vector<8x32xf32>
    %172 = vector.extract_strided_slice %168 {offsets = [0, 0], sizes = [8, 32], strides = [1, 1]} : vector<8x96xf32> to vector<8x32xf32>
    %173 = arith.addf %171, %172 : vector<8x32xf32>
    %174 = arith.negf %173 : vector<8x32xf32>
    %175 = math.exp %174 : vector<8x32xf32>
    %cst_78 = arith.constant 1.000000e+00 : f32
    %176 = vector.broadcast %cst_78 : f32 to vector<8x32xf32>
    %177 = arith.addf %176, %175 : vector<8x32xf32>
    %178 = arith.divf %176, %177 : vector<8x32xf32>
    %179 = vector.extract_strided_slice %170 {offsets = [0, 32], sizes = [8, 32], strides = [1, 1]} : vector<8x96xf32> to vector<8x32xf32>
    %180 = vector.extract_strided_slice %168 {offsets = [0, 32], sizes = [8, 32], strides = [1, 1]} : vector<8x96xf32> to vector<8x32xf32>
    %181 = arith.addf %179, %180 : vector<8x32xf32>
    %182 = arith.negf %181 : vector<8x32xf32>
    %183 = math.exp %182 : vector<8x32xf32>
    %cst_79 = arith.constant 1.000000e+00 : f32
    %184 = vector.broadcast %cst_79 : f32 to vector<8x32xf32>
    %185 = arith.addf %184, %183 : vector<8x32xf32>
    %186 = arith.divf %184, %185 : vector<8x32xf32>
    %187 = vector.extract_strided_slice %170 {offsets = [0, 64], sizes = [8, 32], strides = [1, 1]} : vector<8x96xf32> to vector<8x32xf32>
    %188 = vector.extract_strided_slice %168 {offsets = [0, 64], sizes = [8, 32], strides = [1, 1]} : vector<8x96xf32> to vector<8x32xf32>
    %189 = arith.mulf %178, %188 : vector<8x32xf32>
    %190 = arith.addf %187, %189 : vector<8x32xf32>
    %191 = math.tanh %190 : vector<8x32xf32>
    %cst_80 = arith.constant 1.000000e+00 : f32
    %192 = vector.broadcast %cst_80 : f32 to vector<8x32xf32>
    %193 = arith.subf %192, %186 : vector<8x32xf32>
    %194 = arith.mulf %193, %191 : vector<8x32xf32>
    %195 = arith.mulf %186, %160 : vector<8x32xf32>
    %196 = arith.addf %194, %195 : vector<8x32xf32>
    %c4_81 = arith.constant 4 : index
    %c0_82 = arith.constant 0 : index
    %c0_83 = arith.constant 0 : index
    %197 = vector.load %arg13[%c4_81, %c0_82, %c0_83] : memref<8x8x32xf32, #tpu.memory_space<vmem>>, vector<1x8x32xf32>
    %198 = vector.shape_cast %197 : vector<1x8x32xf32> to vector<8x32xf32>
    %199 = vector.shape_cast %196 : vector<8x32xf32> to vector<1x8x32xf32>
    tpu.vector_store %arg13[%c4_81, %c0_82, %c0_83], %199 {strides = array<i32>} : memref<8x8x32xf32, #tpu.memory_space<vmem>>, vector<1x8x32xf32>,
    %c0_84 = arith.constant 0 : index
    %c0_85 = arith.constant 0 : index
    %200 = vector.load %arg6[%c0_84, %c0_85] : memref<32x96xf32, #tpu.memory_space<vmem>>, vector<32x96xf32>
    %cst_86 = arith.constant dense<0.000000e+00> : vector<8x96xf32>
    %201 = tpu.matmul %196, %200, %cst_86 {dimension_numbers = #tpu.dot_dimension_numbers<[1], [0], [0], [1], [0, 0, 1, 1], [], []>} : vector<8x32xf32>, vector<32x96xf32>, vector<8x96xf32> -> vector<8x96xf32>
    %c0_87 = arith.constant 0 : index
    %c0_88 = arith.constant 0 : index
    %202 = vector.load %arg8[%c0_87, %c0_88] : memref<1x96xf32, #tpu.memory_space<vmem>>, vector<1x96xf32>
    %203 = vector.broadcast %202 : vector<1x96xf32> to vector<8x96xf32>
    %204 = arith.addf %201, %203 : vector<8x96xf32>
    %c5 = arith.constant 5 : index
    %c0_89 = arith.constant 0 : index
    %c0_90 = arith.constant 0 : index
    %205 = vector.load %arg12[%c5, %c0_89, %c0_90] : memref<8x8x96xf32, #tpu.memory_space<vmem>>, vector<1x8x96xf32>
    %206 = vector.shape_cast %205 : vector<1x8x96xf32> to vector<8x96xf32>
    %207 = vector.extract_strided_slice %206 {offsets = [0, 0], sizes = [8, 32], strides = [1, 1]} : vector<8x96xf32> to vector<8x32xf32>
    %208 = vector.extract_strided_slice %204 {offsets = [0, 0], sizes = [8, 32], strides = [1, 1]} : vector<8x96xf32> to vector<8x32xf32>
    %209 = arith.addf %207, %208 : vector<8x32xf32>
    %210 = arith.negf %209 : vector<8x32xf32>
    %211 = math.exp %210 : vector<8x32xf32>
    %cst_91 = arith.constant 1.000000e+00 : f32
    %212 = vector.broadcast %cst_91 : f32 to vector<8x32xf32>
    %213 = arith.addf %212, %211 : vector<8x32xf32>
    %214 = arith.divf %212, %213 : vector<8x32xf32>
    %215 = vector.extract_strided_slice %206 {offsets = [0, 32], sizes = [8, 32], strides = [1, 1]} : vector<8x96xf32> to vector<8x32xf32>
    %216 = vector.extract_strided_slice %204 {offsets = [0, 32], sizes = [8, 32], strides = [1, 1]} : vector<8x96xf32> to vector<8x32xf32>
    %217 = arith.addf %215, %216 : vector<8x32xf32>
    %218 = arith.negf %217 : vector<8x32xf32>
    %219 = math.exp %218 : vector<8x32xf32>
    %cst_92 = arith.constant 1.000000e+00 : f32
    %220 = vector.broadcast %cst_92 : f32 to vector<8x32xf32>
    %221 = arith.addf %220, %219 : vector<8x32xf32>
    %222 = arith.divf %220, %221 : vector<8x32xf32>
    %223 = vector.extract_strided_slice %206 {offsets = [0, 64], sizes = [8, 32], strides = [1, 1]} : vector<8x96xf32> to vector<8x32xf32>
    %224 = vector.extract_strided_slice %204 {offsets = [0, 64], sizes = [8, 32], strides = [1, 1]} : vector<8x96xf32> to vector<8x32xf32>
    %225 = arith.mulf %214, %224 : vector<8x32xf32>
    %226 = arith.addf %223, %225 : vector<8x32xf32>
    %227 = math.tanh %226 : vector<8x32xf32>
    %cst_93 = arith.constant 1.000000e+00 : f32
    %228 = vector.broadcast %cst_93 : f32 to vector<8x32xf32>
    %229 = arith.subf %228, %222 : vector<8x32xf32>
    %230 = arith.mulf %229, %227 : vector<8x32xf32>
    %231 = arith.mulf %222, %196 : vector<8x32xf32>
    %232 = arith.addf %230, %231 : vector<8x32xf32>
    %c5_94 = arith.constant 5 : index
    %c0_95 = arith.constant 0 : index
    %c0_96 = arith.constant 0 : index
    %233 = vector.load %arg13[%c5_94, %c0_95, %c0_96] : memref<8x8x32xf32, #tpu.memory_space<vmem>>, vector<1x8x32xf32>
    %234 = vector.shape_cast %233 : vector<1x8x32xf32> to vector<8x32xf32>
    %235 = vector.shape_cast %232 : vector<8x32xf32> to vector<1x8x32xf32>
    tpu.vector_store %arg13[%c5_94, %c0_95, %c0_96], %235 {strides = array<i32>} : memref<8x8x32xf32, #tpu.memory_space<vmem>>, vector<1x8x32xf32>,
    %c0_97 = arith.constant 0 : index
    %c0_98 = arith.constant 0 : index
    %236 = vector.load %arg6[%c0_97, %c0_98] : memref<32x96xf32, #tpu.memory_space<vmem>>, vector<32x96xf32>
    %cst_99 = arith.constant dense<0.000000e+00> : vector<8x96xf32>
    %237 = tpu.matmul %232, %236, %cst_99 {dimension_numbers = #tpu.dot_dimension_numbers<[1], [0], [0], [1], [0, 0, 1, 1], [], []>} : vector<8x32xf32>, vector<32x96xf32>, vector<8x96xf32> -> vector<8x96xf32>
    %c0_100 = arith.constant 0 : index
    %c0_101 = arith.constant 0 : index
    %238 = vector.load %arg8[%c0_100, %c0_101] : memref<1x96xf32, #tpu.memory_space<vmem>>, vector<1x96xf32>
    %239 = vector.broadcast %238 : vector<1x96xf32> to vector<8x96xf32>
    %240 = arith.addf %237, %239 : vector<8x96xf32>
    %c6 = arith.constant 6 : index
    %c0_102 = arith.constant 0 : index
    %c0_103 = arith.constant 0 : index
    %241 = vector.load %arg12[%c6, %c0_102, %c0_103] : memref<8x8x96xf32, #tpu.memory_space<vmem>>, vector<1x8x96xf32>
    %242 = vector.shape_cast %241 : vector<1x8x96xf32> to vector<8x96xf32>
    %243 = vector.extract_strided_slice %242 {offsets = [0, 0], sizes = [8, 32], strides = [1, 1]} : vector<8x96xf32> to vector<8x32xf32>
    %244 = vector.extract_strided_slice %240 {offsets = [0, 0], sizes = [8, 32], strides = [1, 1]} : vector<8x96xf32> to vector<8x32xf32>
    %245 = arith.addf %243, %244 : vector<8x32xf32>
    %246 = arith.negf %245 : vector<8x32xf32>
    %247 = math.exp %246 : vector<8x32xf32>
    %cst_104 = arith.constant 1.000000e+00 : f32
    %248 = vector.broadcast %cst_104 : f32 to vector<8x32xf32>
    %249 = arith.addf %248, %247 : vector<8x32xf32>
    %250 = arith.divf %248, %249 : vector<8x32xf32>
    %251 = vector.extract_strided_slice %242 {offsets = [0, 32], sizes = [8, 32], strides = [1, 1]} : vector<8x96xf32> to vector<8x32xf32>
    %252 = vector.extract_strided_slice %240 {offsets = [0, 32], sizes = [8, 32], strides = [1, 1]} : vector<8x96xf32> to vector<8x32xf32>
    %253 = arith.addf %251, %252 : vector<8x32xf32>
    %254 = arith.negf %253 : vector<8x32xf32>
    %255 = math.exp %254 : vector<8x32xf32>
    %cst_105 = arith.constant 1.000000e+00 : f32
    %256 = vector.broadcast %cst_105 : f32 to vector<8x32xf32>
    %257 = arith.addf %256, %255 : vector<8x32xf32>
    %258 = arith.divf %256, %257 : vector<8x32xf32>
    %259 = vector.extract_strided_slice %242 {offsets = [0, 64], sizes = [8, 32], strides = [1, 1]} : vector<8x96xf32> to vector<8x32xf32>
    %260 = vector.extract_strided_slice %240 {offsets = [0, 64], sizes = [8, 32], strides = [1, 1]} : vector<8x96xf32> to vector<8x32xf32>
    %261 = arith.mulf %250, %260 : vector<8x32xf32>
    %262 = arith.addf %259, %261 : vector<8x32xf32>
    %263 = math.tanh %262 : vector<8x32xf32>
    %cst_106 = arith.constant 1.000000e+00 : f32
    %264 = vector.broadcast %cst_106 : f32 to vector<8x32xf32>
    %265 = arith.subf %264, %258 : vector<8x32xf32>
    %266 = arith.mulf %265, %263 : vector<8x32xf32>
    %267 = arith.mulf %258, %232 : vector<8x32xf32>
    %268 = arith.addf %266, %267 : vector<8x32xf32>
    %c6_107 = arith.constant 6 : index
    %c0_108 = arith.constant 0 : index
    %c0_109 = arith.constant 0 : index
    %269 = vector.load %arg13[%c6_107, %c0_108, %c0_109] : memref<8x8x32xf32, #tpu.memory_space<vmem>>, vector<1x8x32xf32>
    %270 = vector.shape_cast %269 : vector<1x8x32xf32> to vector<8x32xf32>
    %271 = vector.shape_cast %268 : vector<8x32xf32> to vector<1x8x32xf32>
    tpu.vector_store %arg13[%c6_107, %c0_108, %c0_109], %271 {strides = array<i32>} : memref<8x8x32xf32, #tpu.memory_space<vmem>>, vector<1x8x32xf32>,
    %c0_110 = arith.constant 0 : index
    %c0_111 = arith.constant 0 : index
    %272 = vector.load %arg6[%c0_110, %c0_111] : memref<32x96xf32, #tpu.memory_space<vmem>>, vector<32x96xf32>
    %cst_112 = arith.constant dense<0.000000e+00> : vector<8x96xf32>
    %273 = tpu.matmul %268, %272, %cst_112 {dimension_numbers = #tpu.dot_dimension_numbers<[1], [0], [0], [1], [0, 0, 1, 1], [], []>} : vector<8x32xf32>, vector<32x96xf32>, vector<8x96xf32> -> vector<8x96xf32>
    %c0_113 = arith.constant 0 : index
    %c0_114 = arith.constant 0 : index
    %274 = vector.load %arg8[%c0_113, %c0_114] : memref<1x96xf32, #tpu.memory_space<vmem>>, vector<1x96xf32>
    %275 = vector.broadcast %274 : vector<1x96xf32> to vector<8x96xf32>
    %276 = arith.addf %273, %275 : vector<8x96xf32>
    %c7 = arith.constant 7 : index
    %c0_115 = arith.constant 0 : index
    %c0_116 = arith.constant 0 : index
    %277 = vector.load %arg12[%c7, %c0_115, %c0_116] : memref<8x8x96xf32, #tpu.memory_space<vmem>>, vector<1x8x96xf32>
    %278 = vector.shape_cast %277 : vector<1x8x96xf32> to vector<8x96xf32>
    %279 = vector.extract_strided_slice %278 {offsets = [0, 0], sizes = [8, 32], strides = [1, 1]} : vector<8x96xf32> to vector<8x32xf32>
    %280 = vector.extract_strided_slice %276 {offsets = [0, 0], sizes = [8, 32], strides = [1, 1]} : vector<8x96xf32> to vector<8x32xf32>
    %281 = arith.addf %279, %280 : vector<8x32xf32>
    %282 = arith.negf %281 : vector<8x32xf32>
    %283 = math.exp %282 : vector<8x32xf32>
    %cst_117 = arith.constant 1.000000e+00 : f32
    %284 = vector.broadcast %cst_117 : f32 to vector<8x32xf32>
    %285 = arith.addf %284, %283 : vector<8x32xf32>
    %286 = arith.divf %284, %285 : vector<8x32xf32>
    %287 = vector.extract_strided_slice %278 {offsets = [0, 32], sizes = [8, 32], strides = [1, 1]} : vector<8x96xf32> to vector<8x32xf32>
    %288 = vector.extract_strided_slice %276 {offsets = [0, 32], sizes = [8, 32], strides = [1, 1]} : vector<8x96xf32> to vector<8x32xf32>
    %289 = arith.addf %287, %288 : vector<8x32xf32>
    %290 = arith.negf %289 : vector<8x32xf32>
    %291 = math.exp %290 : vector<8x32xf32>
    %cst_118 = arith.constant 1.000000e+00 : f32
    %292 = vector.broadcast %cst_118 : f32 to vector<8x32xf32>
    %293 = arith.addf %292, %291 : vector<8x32xf32>
    %294 = arith.divf %292, %293 : vector<8x32xf32>
    %295 = vector.extract_strided_slice %278 {offsets = [0, 64], sizes = [8, 32], strides = [1, 1]} : vector<8x96xf32> to vector<8x32xf32>
    %296 = vector.extract_strided_slice %276 {offsets = [0, 64], sizes = [8, 32], strides = [1, 1]} : vector<8x96xf32> to vector<8x32xf32>
    %297 = arith.mulf %286, %296 : vector<8x32xf32>
    %298 = arith.addf %295, %297 : vector<8x32xf32>
    %299 = math.tanh %298 : vector<8x32xf32>
    %cst_119 = arith.constant 1.000000e+00 : f32
    %300 = vector.broadcast %cst_119 : f32 to vector<8x32xf32>
    %301 = arith.subf %300, %294 : vector<8x32xf32>
    %302 = arith.mulf %301, %299 : vector<8x32xf32>
    %303 = arith.mulf %294, %268 : vector<8x32xf32>
    %304 = arith.addf %302, %303 : vector<8x32xf32>
    %c7_120 = arith.constant 7 : index
    %c0_121 = arith.constant 0 : index
    %c0_122 = arith.constant 0 : index
    %305 = vector.load %arg13[%c7_120, %c0_121, %c0_122] : memref<8x8x32xf32, #tpu.memory_space<vmem>>, vector<1x8x32xf32>
    %306 = vector.shape_cast %305 : vector<1x8x32xf32> to vector<8x32xf32>
    %307 = vector.shape_cast %304 : vector<8x32xf32> to vector<1x8x32xf32>
    tpu.vector_store %arg13[%c7_120, %c0_121, %c0_122], %307 {strides = array<i32>} : memref<8x8x32xf32, #tpu.memory_space<vmem>>, vector<1x8x32xf32>,
    %c0_123 = arith.constant 0 : index
    %c0_124 = arith.constant 0 : index
    %c0_125 = arith.constant 0 : index
    %308 = vector.load %arg13[%c0_123, %c0_124, %c0_125] : memref<8x8x32xf32, #tpu.memory_space<vmem>>, vector<8x8x32xf32>
    %309 = vector.shape_cast %308 : vector<8x8x32xf32> to vector<64x32xf32>
    %c0_126 = arith.constant 0 : index
    %c0_127 = arith.constant 0 : index
    %310 = vector.load %arg9[%c0_126, %c0_127] : memref<32x32xf32, #tpu.memory_space<vmem>>, vector<32x32xf32>
    %cst_128 = arith.constant dense<0.000000e+00> : vector<64x32xf32>
    %311 = tpu.matmul %309, %310, %cst_128 {dimension_numbers = #tpu.dot_dimension_numbers<[1], [0], [0], [1], [0, 0, 1, 1], [], []>} : vector<64x32xf32>, vector<32x32xf32>, vector<64x32xf32> -> vector<64x32xf32>
    %c0_129 = arith.constant 0 : index
    %c0_130 = arith.constant 0 : index
    %312 = vector.load %arg10[%c0_129, %c0_130] : memref<1x32xf32, #tpu.memory_space<vmem>>, vector<1x32xf32>
    %313 = vector.broadcast %312 : vector<1x32xf32> to vector<64x32xf32>
    %314 = arith.addf %311, %313 : vector<64x32xf32>
    %315 = vector.shape_cast %314 : vector<64x32xf32> to vector<8x8x32xf32>
    %c0_131 = arith.constant 0 : index
    %c0_132 = arith.constant 0 : index
    %c0_133 = arith.constant 0 : index
    %c0_134 = arith.constant 0 : index
    %316 = vector.load %arg3[%c0_131, %c0_132, %c0_133, %c0_134] : memref<1x8x8x32xf32, #tpu.memory_space<vmem>>, vector<1x8x8x32xf32>
    %317 = vector.shape_cast %316 : vector<1x8x8x32xf32> to vector<8x8x32xf32>
    %318 = tpu.transpose %315, [1, 0, 2] : vector<8x8x32xf32> -> vector<8x8x32xf32>
    %319 = arith.addf %317, %318 : vector<8x8x32xf32>
    %c0_135 = arith.constant 0 : index
    %c0_136 = arith.constant 0 : index
    %c0_137 = arith.constant 0 : index
    %c0_138 = arith.constant 0 : index
    %320 = vector.load %arg11[%c0_135, %c0_136, %c0_137, %c0_138] : memref<1x8x8x32xf32, #tpu.memory_space<vmem>>, vector<1x8x8x32xf32>
    %321 = vector.shape_cast %320 : vector<1x8x8x32xf32> to vector<8x8x32xf32>
    %322 = vector.shape_cast %319 : vector<8x8x32xf32> to vector<1x8x8x32xf32>
    tpu.vector_store %arg11[%c0_135, %c0_136, %c0_137, %c0_138], %322 {strides = array<i32>} : memref<1x8x8x32xf32, #tpu.memory_space<vmem>>, vector<1x8x8x32xf32>,
    return
  }
  func.func @transform_0(%arg0: i32, %arg1: i32) -> (i32, i32, i32, i32) {
    %c0_i32 = arith.constant 0 : i32
    %c0_i32_0 = arith.constant 0 : i32
    %c0_i32_1 = arith.constant 0 : i32
    return %arg0, %arg1, %c0_i32, %c0_i32_0 : i32, i32, i32, i32
  }
  func.func @transform_1(%arg0: i32, %arg1: i32) -> (i32, i32, i32, i32) {
    %c0_i32 = arith.constant 0 : i32
    %c0_i32_0 = arith.constant 0 : i32
    %c0_i32_1 = arith.constant 0 : i32
    return %arg0, %arg1, %c0_i32, %c0_i32_0 : i32, i32, i32, i32
  }
  func.func @transform_2(%arg0: i32, %arg1: i32) -> (i32, i32, i32) {
    %c0_i32 = arith.constant 0 : i32
    %c0_i32_0 = arith.constant 0 : i32
    return %arg0, %arg1, %c0_i32 : i32, i32, i32
  }
  func.func @transform_3(%arg0: i32, %arg1: i32) -> (i32, i32) {
    %c0_i32 = arith.constant 0 : i32
    %c0_i32_0 = arith.constant 0 : i32
    %c0_i32_1 = arith.constant 0 : i32
    return %c0_i32, %c0_i32_0 : i32, i32
  }
  func.func @transform_4(%arg0: i32, %arg1: i32) -> (i32, i32) {
    %c0_i32 = arith.constant 0 : i32
    %c0_i32_0 = arith.constant 0 : i32
    %c0_i32_1 = arith.constant 0 : i32
    return %c0_i32, %c0_i32_0 : i32, i32
  }
  func.func @transform_5(%arg0: i32, %arg1: i32) -> (i32, i32) {
    %c0_i32 = arith.constant 0 : i32
    %c0_i32_0 = arith.constant 0 : i32
    %c0_i32_1 = arith.constant 0 : i32
    return %c0_i32, %c0_i32_0 : i32, i32
  }
  func.func @transform_6(%arg0: i32, %arg1: i32) -> (i32, i32) {
    %c0_i32 = arith.constant 0 : i32
    %c0_i32_0 = arith.constant 0 : i32
    %c0_i32_1 = arith.constant 0 : i32
    return %c0_i32, %c0_i32_0 : i32, i32
  }
  func.func @transform_7(%arg0: i32, %arg1: i32) -> (i32, i32) {
    %c0_i32 = arith.constant 0 : i32
    %c0_i32_0 = arith.constant 0 : i32
    %c0_i32_1 = arith.constant 0 : i32
    return %c0_i32, %c0_i32_0 : i32, i32
  }
  func.func @transform_8(%arg0: i32, %arg1: i32) -> (i32, i32) {
    %c0_i32 = arith.constant 0 : i32
    %c0_i32_0 = arith.constant 0 : i32
    %c0_i32_1 = arith.constant 0 : i32
    return %c0_i32, %c0_i32_0 : i32, i32
  }
  func.func @transform_9(%arg0: i32, %arg1: i32) -> (i32, i32, i32, i32) {
    %c0_i32 = arith.constant 0 : i32
    %c0_i32_0 = arith.constant 0 : i32
    %c0_i32_1 = arith.constant 0 : i32
    return %arg0, %arg1, %c0_i32, %c0_i32_0 : i32, i32, i32, i32
  }
}

module attributes {stable_mosaic.version = 11 : i64} {
  func.func @head_kernel(%arg0: i32, %arg1: i32, %arg2: memref<1x8x8x32xf32, #tpu.memory_space<vmem>>, %arg3: memref<32x12xf32, #tpu.memory_space<vmem>>, %arg4: memref<1x12xf32, #tpu.memory_space<vmem>>, %arg5: memref<1x8x8x12xf32, #tpu.memory_space<vmem>>) attributes {dimension_semantics = [#tpu.dimension_semantics<parallel>, #tpu.dimension_semantics<parallel>], iteration_bounds = array<i64: 2, 1>, scalar_prefetch = 0 : i64, scratch_operands = 0 : i64, tpu.core_type = #tpu.core_type<tc>, window_params = [{transform_indices = @transform_0, window_bounds = array<i64: 1, 8, 8, 32>}, {pipeline_mode = #tpu.pipeline_mode<synchronous>, transform_indices = @transform_1, window_bounds = array<i64: 32, 12>}, {pipeline_mode = #tpu.pipeline_mode<synchronous>, transform_indices = @transform_2, window_bounds = array<i64: 1, 12>}, {transform_indices = @transform_3, window_bounds = array<i64: 1, 8, 8, 12>}]} {
    %c0 = arith.constant 0 : index
    %c0_0 = arith.constant 0 : index
    %c0_1 = arith.constant 0 : index
    %c0_2 = arith.constant 0 : index
    %0 = vector.load %arg2[%c0, %c0_0, %c0_1, %c0_2] : memref<1x8x8x32xf32, #tpu.memory_space<vmem>>, vector<1x8x8x32xf32>
    %1 = vector.shape_cast %0 : vector<1x8x8x32xf32> to vector<8x8x32xf32>
    %2 = vector.shape_cast %1 : vector<8x8x32xf32> to vector<64x32xf32>
    %c0_3 = arith.constant 0 : index
    %c0_4 = arith.constant 0 : index
    %3 = vector.load %arg3[%c0_3, %c0_4] : memref<32x12xf32, #tpu.memory_space<vmem>>, vector<32x12xf32>
    %cst = arith.constant dense<0.000000e+00> : vector<64x12xf32>
    %4 = tpu.matmul %2, %3, %cst {dimension_numbers = #tpu.dot_dimension_numbers<[1], [0], [0], [1], [0, 0, 1, 1], [], []>} : vector<64x32xf32>, vector<32x12xf32>, vector<64x12xf32> -> vector<64x12xf32>
    %c0_5 = arith.constant 0 : index
    %c0_6 = arith.constant 0 : index
    %5 = vector.load %arg4[%c0_5, %c0_6] : memref<1x12xf32, #tpu.memory_space<vmem>>, vector<1x12xf32>
    %6 = vector.broadcast %5 : vector<1x12xf32> to vector<64x12xf32>
    %7 = arith.addf %4, %6 : vector<64x12xf32>
    %8 = vector.extract_strided_slice %7 {offsets = [0, 0], sizes = [64, 4], strides = [1, 1]} : vector<64x12xf32> to vector<64x4xf32>
    %9 = vector.extract_strided_slice %7 {offsets = [0, 4], sizes = [64, 4], strides = [1, 1]} : vector<64x12xf32> to vector<64x4xf32>
    %10 = vector.extract_strided_slice %7 {offsets = [0, 8], sizes = [64, 4], strides = [1, 1]} : vector<64x12xf32> to vector<64x4xf32>
    %cst_7 = arith.constant 0.000000e+00 : f32
    %11 = vector.broadcast %cst_7 : f32 to vector<64x4xf32>
    %12 = arith.cmpf ogt, %9, %11 : vector<64x4xf32>
    %cst_8 = arith.constant 0.000000e+00 : f32
    %13 = vector.broadcast %cst_8 : f32 to vector<64x4xf32>
    %14 = arith.minimumf %9, %13 : vector<64x4xf32>
    %15 = math.exp %14 : vector<64x4xf32>
    %cst_9 = arith.constant 1.000000e+00 : f32
    %16 = vector.broadcast %cst_9 : f32 to vector<64x4xf32>
    %17 = arith.subf %15, %16 : vector<64x4xf32>
    %18 = arith.select %12, %9, %17 : vector<64x4xi1>, vector<64x4xf32>
    %cst_10 = arith.constant 1.000000e+00 : f32
    %19 = vector.broadcast %cst_10 : f32 to vector<64x4xf32>
    %20 = arith.addf %18, %19 : vector<64x4xf32>
    %cst_11 = arith.constant dense<0xFF800000> : vector<64xf32>
    %21 = vector.multi_reduction <maximumf>, %10, %cst_11 [1] : vector<64x4xf32> to vector<64xf32>
    %22 = vector.shape_cast %21 : vector<64xf32> to vector<64x1xf32>
    %23 = vector.broadcast %22 : vector<64x1xf32> to vector<64x4xf32>
    %24 = arith.subf %10, %23 : vector<64x4xf32>
    %25 = math.exp %24 : vector<64x4xf32>
    %cst_12 = arith.constant dense<0.000000e+00> : vector<64xf32>
    %26 = vector.multi_reduction <add>, %25, %cst_12 [1] : vector<64x4xf32> to vector<64xf32>
    %27 = vector.shape_cast %26 : vector<64xf32> to vector<64x1xf32>
    %28 = math.log %27 : vector<64x1xf32>
    %29 = arith.addf %28, %22 : vector<64x1xf32>
    %30 = vector.broadcast %29 : vector<64x1xf32> to vector<64x4xf32>
    %31 = arith.subf %10, %30 : vector<64x4xf32>
    %32 = tpu.concatenate %8, %20, %31 in 1 : vector<64x4xf32>, vector<64x4xf32>, vector<64x4xf32> -> vector<64x12xf32>
    %33 = vector.shape_cast %32 : vector<64x12xf32> to vector<8x8x12xf32>
    %c0_13 = arith.constant 0 : index
    %c0_14 = arith.constant 0 : index
    %c0_15 = arith.constant 0 : index
    %c0_16 = arith.constant 0 : index
    %34 = vector.load %arg5[%c0_13, %c0_14, %c0_15, %c0_16] : memref<1x8x8x12xf32, #tpu.memory_space<vmem>>, vector<1x8x8x12xf32>
    %35 = vector.shape_cast %34 : vector<1x8x8x12xf32> to vector<8x8x12xf32>
    %36 = vector.shape_cast %33 : vector<8x8x12xf32> to vector<1x8x8x12xf32>
    tpu.vector_store %arg5[%c0_13, %c0_14, %c0_15, %c0_16], %36 {strides = array<i32>} : memref<1x8x8x12xf32, #tpu.memory_space<vmem>>, vector<1x8x8x12xf32>,
    return
  }
  func.func @transform_0(%arg0: i32, %arg1: i32) -> (i32, i32, i32, i32) {
    %c0_i32 = arith.constant 0 : i32
    %c0_i32_0 = arith.constant 0 : i32
    %c0_i32_1 = arith.constant 0 : i32
    return %arg0, %arg1, %c0_i32, %c0_i32_0 : i32, i32, i32, i32
  }
  func.func @transform_1(%arg0: i32, %arg1: i32) -> (i32, i32) {
    %c0_i32 = arith.constant 0 : i32
    %c0_i32_0 = arith.constant 0 : i32
    %c0_i32_1 = arith.constant 0 : i32
    return %c0_i32, %c0_i32_0 : i32, i32
  }
  func.func @transform_2(%arg0: i32, %arg1: i32) -> (i32, i32) {
    %c0_i32 = arith.constant 0 : i32
    %c0_i32_0 = arith.constant 0 : i32
    %c0_i32_1 = arith.constant 0 : i32
    return %c0_i32, %c0_i32_0 : i32, i32
  }
  func.func @transform_3(%arg0: i32, %arg1: i32) -> (i32, i32, i32, i32) {
    %c0_i32 = arith.constant 0 : i32
    %c0_i32_0 = arith.constant 0 : i32
    %c0_i32_1 = arith.constant 0 : i32
    return %arg0, %arg1, %c0_i32, %c0_i32_0 : i32, i32, i32, i32
  }
}

</mosaic_0001>

<bundles_post_ra>
// kernel: initial_tier_forward.10
= control target key start
LH: loop header
LB: loop body
LE: loop exit
PB: predicated region body
PF: predicated region fallthrough
CT: control target
= control target key end

     0   :  { %s1150_s17 = smov 0   ;;  %s1152_s18 = smov 0   ;;  %s1254_s0 = inlined_call_operand.vmem [shape: f32[2,8,8], index: 0, kind: input, shape index: {}]   ;;  %s1255_s1 = inlined_call_operand.vmem [shape: f32[2,8,8,1], index: 1, kind: input, shape index: {}]   ;;  %s1256_s2 = inlined_call_operand.vmem [shape: f32[2,8,8,1], index: 2, kind: input, shape index: {}]   ;;  %s1257_s3 = inlined_call_operand.vmem [shape: f32[1,32], index: 3, kind: input, shape index: {}]   ;;  %s1258_s4 = inlined_call_operand.vmem [shape: f32[1,32], index: 4, kind: input, shape index: {}]   ;;  %s1259_s5 = inlined_call_operand.vmem [shape: f32[1,32], index: 5, kind: input, shape index: {}]   ;;  %s1260_s6 = inlined_call_operand.vmem [shape: f32[1,32], index: 6, kind: input, shape index: {}]   ;;  %s1261_s7 = inlined_call_operand.vmem [shape: f32[8,32], index: 7, kind: input, shape index: {}]   ;;  %s1262_s8 = inlined_call_operand.vmem [shape: f32[1,32], index: 8, kind: input, shape index: {}]   ;;  %s1263_s9 = inlined_call_operand.vmem [shape: f32[2,8,8,32], index: 9, kind: output, shape index: {0}]   ;;  %s1264_s10 = inlined_call_operand.vmem [shape: f32[2,8,8,32], index: 10, kind: output, shape index: {1}]   ;;  %s1265_s11 = inlined_call_operand.vmem [shape: f32[2,8,32], index: 11, kind: output, shape index: {2}]  }
   0x1   :  { %s1154_s19 = smov 0  }
   0x2 LB: > { %s34_s20 = sadd.s32 1, %s1081_s18  ;;  %p1004_p0 = scmp.ge.s32.totalorder %s1085_s19, 1  ;;  %s1085_s19 = sphi %s1154_s19, %s22_s19   ;;  %s1081_s18 = sphi %s1152_s18, %s1267_s18   ;;  %s1077_s17 = sphi %s1150_s17, %s1266_s17  }
   0x3   : > { %p36_p1 = scmp.ge.s32.totalorder %s34_s20, 2  ;;  %p398_p2 = scmp.lt.s32.totalorder %s1085_s19, 3 }
   0x5   : > { %s1269_s20 = smov (%p36_p1, %s34_s20), 0  ;;  %p399_p3 = pnand %p1004_p0, %p398_p2 }
   0x6   : > { %p478_p4 = scmp.lt.s32.totalorder (!%p399_p3), %s1077_s17, 1 }
   0x7   : > { %402 = sbr.rel (%p399_p3) target bundleno = 212 (0xd4), region = 56 }
   0xc   : > { %v706_v0 = vld [vmem:[%s1261_s7] sm:$0xff]  ;;  %v1087_v1 = vmov 0.0   ;;  %vm1088_vm0 = vmmov 0   ;;  %s1271_s17 = smov (!%p478_p4, %s1077_s17), 1  ;;  %v1089_v2 = vmov 0   ;;  %vm714_vm1 = vcmask 64512  }
   0xd   : > { %1029 = vmatprep.subr.mxu0 %v1087_v1  ;;  %1031 = vmatprep.mubr.msk.f32.mxu0 %vm1088_vm0, %v1087_v1  ;;  %s1005_s23 = sshll.u32 %s1271_s17, 3  ;;  %s1175_s24 = sshll.u32 %s1271_s17, 6  ;;  %v1015_v20 = vld [vmem:[%s1257_s3] ss:$0 sm:$0xff]  ;;  %vm612_vm2 = vcmask 261120  }
   0xe   : > { %1030 = vmatpush3.msra.mxu0 %v706_v0  ;;  %1062 = vset.pattern.permute.xlu1 %v1089_v2  ;;  %s484_s27 = scalar_lea.vmem %s1254_s0, %s1005_s23  ;;  %s493_s30 = scalar_lea.vmem %s1255_s1, %s1175_s24  ;;  %v1016_v21 = vld [vmem:[%s1258_s4] ss:$0 sm:$0xff] }
   0xf   : > { %1061 = vset.pattern.permute.xlu0 %v1089_v2  ;;  %v705_v3 = vld [vmem:[%s484_s27] sm:$0xff]  ;;  %v538_v4 = vld [vmem:[%s493_s30 + $0x10] sm:$0xff]  ;;  %v539_v6 = vld [vmem:[%s493_s30 + $0x18] sm:$0xff]  ;;  %s503_s14 = scalar_lea.vmem %s1256_s2, %s1175_s24  ;;  %s1200_s27 = scalar_lea.vmem %s1263_s9, %s1175_s24 }
  0x10   : > { %v536_v5 = vld [vmem:[%s493_s30] sm:$0xff]  ;;  %1032 = vmatmul.mubr.msk.f32.vlgmr.msra.gmra.mxu0 %vm714_vm1, %v705_v3  ;;  %556 = vperm.xlu1 %1062, %v538_v4   ;;  %v537_v7 = vld [vmem:[%s493_s30 + $0x8] sm:$0xff]  ;;  %v543_v10 = vld [vmem:[%s493_s30 + $0x38] sm:$0xff]  ;;  %s523_s15 = scalar_lea.vmem %s1264_s10, %s1175_s24  ;;  %s531_s25 = scalar_lea.vmem %s1265_s11, %s1005_s23 }
  0x11   : > { %546 = vperm.xlu0 %1061, %v536_v5   ;;  %v541_v8 = vld [vmem:[%s493_s30 + $0x28] sm:$0xff]  ;;  %v540_v9 = vld [vmem:[%s493_s30 + $0x20] sm:$0xff]  ;;  %v542_v11 = vld [vmem:[%s493_s30 + $0x30] sm:$0xff] }
  0x12   : > { %v622_v12 = vld [vmem:[%s503_s14 + $0x8] sm:$0xff]  ;;  %v621_v13 = vld [vmem:[%s503_s14] sm:$0xff]  ;;  %v624_v14 = vld [vmem:[%s503_s14 + $0x18] sm:$0xff] }
  0x13   : > { %v623_v15 = vld [vmem:[%s503_s14 + $0x10] sm:$0xff]  ;;  %v626_v16 = vld [vmem:[%s503_s14 + $0x28] sm:$0xff]  ;;  %v625_v17 = vld [vmem:[%s503_s14 + $0x20] sm:$0xff] }
  0x14   : > { %561 = vperm.xlu1 %1062, %v539_v6   ;;  %v628_v18 = vld [vmem:[%s503_s14 + $0x38] sm:$0xff]  ;;  %v627_v19 = vld [vmem:[%s503_s14 + $0x30] sm:$0xff]  ;;  %v1017_v44 = vld [vmem:[%s1259_s5] ss:$0 sm:$0xff] }
  0x15   : > { %551 = vperm.xlu0 %1061, %v537_v7   ;;  %v1018_v47 = vld [vmem:[%s1260_s6] ss:$0 sm:$0xff] }
  0x18   : > { %571 = vperm.xlu1 %1062, %v541_v8   ;;  %v1019_v8 = vld [vmem:[%s1262_s8] ss:$0 sm:$0xff] }
  0x19   : > { %566 = vperm.xlu0 %1061, %v540_v9  }
  0x1c   : > { %581 = vperm.xlu1 %1062, %v543_v10  }
  0x1d   : > { %576 = vperm.xlu0 %1061, %v542_v11  }
  0x20   : > { %636 = vperm.xlu1 %1062, %v622_v12  }
  0x21   : > { %631 = vperm.xlu0 %1061, %v621_v13  }
  0x24   : > { %646 = vperm.xlu1 %1062, %v624_v14  }
  0x25   : > { %641 = vperm.xlu0 %1061, %v623_v15  }
  0x28   : > { %656 = vperm.xlu1 %1062, %v626_v16  }
  0x29   : > { %651 = vperm.xlu0 %1061, %v625_v17  }
  0x2c   : > { %666 = vperm.xlu1 %1062, %v628_v18  }
  0x2d   : > { %661 = vperm.xlu0 %1061, %v627_v19  }
  0x8b   : > { %v557_v22 = vpop.permute.xlu1 %556 }
  0x8c   : > { %v592_v23 = vmul.f32 %v1015_v20, %v557_v22  ;;  %v547_v24 = vpop.permute.xlu0 %546 }
  0x8d   : > { %v590_v25 = vmul.f32 %v1015_v20, %v547_v24 }
  0x8e   : > { %v606_v26 = vadd.f32 %v1016_v21, %v592_v23 }
  0x8f   : > { %v604_v27 = vadd.f32 %v1016_v21, %v590_v25  ;;  %v562_v28 = vpop.permute.xlu1 %561 }
  0x90   : > { %615 = vst.msk [vmem:[%s1200_s27 + $0x10] sm:$0xff] %vm612_vm2, %v606_v26  ;;  %v593_v29 = vmul.f32 %v1015_v20, %v562_v28  ;;  %v552_v30 = vpop.permute.xlu0 %551 }
  0x91   : > { %613 = vst.msk [vmem:[%s1200_s27] sm:$0xff] %vm612_vm2, %v604_v27  ;;  %v591_v31 = vmul.f32 %v1015_v20, %v552_v30 }
  0x92   : > { %v607_v32 = vadd.f32 %v1016_v21, %v593_v29 }
  0x93   : > { %v605_v33 = vadd.f32 %v1016_v21, %v591_v31  ;;  %v572_v34 = vpop.permute.xlu1 %571 }
  0x94   : > { %616 = vst.msk [vmem:[%s1200_s27 + $0x18] sm:$0xff] %vm612_vm2, %v607_v32  ;;  %v595_v35 = vmul.f32 %v1015_v20, %v572_v34  ;;  %v567_v36 = vpop.permute.xlu0 %566 }
  0x95   : > { %614 = vst.msk [vmem:[%s1200_s27 + $0x8] sm:$0xff] %vm612_vm2, %v605_v33  ;;  %v594_v37 = vmul.f32 %v1015_v20, %v567_v36 }
  0x96   : > { %v609_v38 = vadd.f32 %v1016_v21, %v595_v35 }
  0x97   : > { %v608_v39 = vadd.f32 %v1016_v21, %v594_v37  ;;  %v582_v40 = vpop.permute.xlu1 %581 }
  0x98   : > { %618 = vst.msk [vmem:[%s1200_s27 + $0x28] sm:$0xff] %vm612_vm2, %v609_v38  ;;  %v597_v41 = vmul.f32 %v1015_v20, %v582_v40  ;;  %v577_v42 = vpop.permute.xlu0 %576 }
  0x99   : > { %617 = vst.msk [vmem:[%s1200_s27 + $0x20] sm:$0xff] %vm612_vm2, %v608_v39  ;;  %v596_v43 = vmul.f32 %v1015_v20, %v577_v42 }
  0x9a   : > { %v611_v45 = vadd.f32 %v1016_v21, %v597_v41 }
  0x9b   : > { %v610_v46 = vadd.f32 %v1016_v21, %v596_v43  ;;  %v637_v48 = vpop.permute.xlu1 %636 }
  0x9c   : > { %620 = vst.msk [vmem:[%s1200_s27 + $0x38] sm:$0xff] %vm612_vm2, %v611_v45  ;;  %v676_v49 = vmul.f32 %v1017_v44, %v637_v48  ;;  %v632_v50 = vpop.permute.xlu0 %631 }
  0x9d   : > { %619 = vst.msk [vmem:[%s1200_s27 + $0x30] sm:$0xff] %vm612_vm2, %v610_v46  ;;  %v675_v51 = vmul.f32 %v1017_v44, %v632_v50 }
  0x9e   : > { %v690_v52 = vadd.f32 %v1018_v47, %v676_v49 }
  0x9f   : > { %v689_v53 = vadd.f32 %v1018_v47, %v675_v51  ;;  %v647_v54 = vpop.permute.xlu1 %646 }
  0xa0   : > { %698 = vst.msk [vmem:[%s523_s15 + $0x8] sm:$0xff] %vm612_vm2, %v690_v52  ;;  %v678_v55 = vmul.f32 %v1017_v44, %v647_v54  ;;  %v642_v56 = vpop.permute.xlu0 %641 }
  0xa1   : > { %697 = vst.msk [vmem:[%s523_s15] sm:$0xff] %vm612_vm2, %v689_v53  ;;  %v677_v57 = vmul.f32 %v1017_v44, %v642_v56 }
  0xa2   : > { %v692_v58 = vadd.f32 %v1018_v47, %v678_v55 }
  0xa3   : > { %v691_v59 = vadd.f32 %v1018_v47, %v677_v57  ;;  %v657_v60 = vpop.permute.xlu1 %656 }
  0xa4   : > { %700 = vst.msk [vmem:[%s523_s15 + $0x18] sm:$0xff] %vm612_vm2, %v692_v58  ;;  %v680_v61 = vmul.f32 %v1017_v44, %v657_v60  ;;  %v652_v62 = vpop.permute.xlu0 %651 }
  0xa5   : > { %699 = vst.msk [vmem:[%s523_s15 + $0x10] sm:$0xff] %vm612_vm2, %v691_v59  ;;  %v679_v63 = vmul.f32 %v1017_v44, %v652_v62 }
  0xa6   : > { %v694_v0 = vadd.f32 %v1018_v47, %v680_v61 }
  0xa7   : > { %v693_v1 = vadd.f32 %v1018_v47, %v679_v63  ;;  %v667_v2 = vpop.permute.xlu1 %666 }
  0xa8   : > { %702 = vst.msk [vmem:[%s523_s15 + $0x28] sm:$0xff] %vm612_vm2, %v694_v0  ;;  %v682_v3 = vmul.f32 %v1017_v44, %v667_v2  ;;  %v662_v4 = vpop.permute.xlu0 %661 }
  0xa9   : > { %701 = vst.msk [vmem:[%s523_s15 + $0x20] sm:$0xff] %vm612_vm2, %v693_v1  ;;  %v681_v5 = vmul.f32 %v1017_v44, %v662_v4 }
  0xaa   : > { %v696_v6 = vadd.f32 %v1018_v47, %v682_v3 }
  0xab   : > { %v695_v7 = vadd.f32 %v1018_v47, %v681_v5 }
  0xac   : > { %704 = vst.msk [vmem:[%s523_s15 + $0x38] sm:$0xff] %vm612_vm2, %v696_v6 }
  0xad   : > { %703 = vst.msk [vmem:[%s523_s15 + $0x30] sm:$0xff] %vm612_vm2, %v695_v7 }
  0xd0   : > { %v784_v9 = vpop.f32.mrf.mxu0 }
  0xd1   : > { %v785_v10 = vadd.f32 %v1019_v8, %v784_v9 }
  0xd2   : > { %v1033_v11 = vpop.f32.mrf.mxu0 }
  0xd3   : > { %788 = vst.msk [vmem:[%s531_s25] sm:$0xff] %vm612_vm2, %v785_v10 }
  0xd4 PF: > { %s22_s19 = sadd.s32 1, %s1085_s19   ;;  %s1266_s17 = smov %s1081_s18 }
  0xd5   : > { %p19_p5 = scmp.ge.s32.totalorder %s22_s19, 4   ;;  %s1267_s18 = smov %s1269_s20 }
  0xd7   :  { %21 = sbr.rel (!%p19_p5) target bundleno = 2 (0x2), region = 116 }

// kernel: initial_tier_forward.13
= control target key start
LH: loop header
LB: loop body
LE: loop exit
PB: predicated region body
PF: predicated region fallthrough
CT: control target
= control target key end

     0   :  { %v32_v0 = vlaneseq  ;;  %v1737_v1 = vmov 0.0   ;;  %vm1738_vm0 = vmmov 0   ;;  %v1739_v4 = vmov 1983009808   ;;  %s1741_s20 = smov 64   ;;  %s2052_s2 = inlined_call_operand.vmem [shape: f32[32,96], index: 2, kind: input, shape index: {}]   ;;  %s2053_s1 = inlined_call_operand.vmem [shape: f32[32,96], index: 1, kind: input, shape index: {}]   ;;  %s2054_s0 = inlined_call_operand.vmem [shape: f32[2,8,32], index: 0, kind: input, shape index: {}]   ;;  %s2055_s4 = inlined_call_operand.vmem [shape: f32[1,96], index: 4, kind: input, shape index: {}]   ;;  %s2056_s3 = inlined_call_operand.vmem [shape: f32[1,96], index: 3, kind: input, shape index: {}]   ;;  %s2057_s5 = inlined_call_operand.vmem [shape: f32[32,32], index: 5, kind: input, shape index: {}]   ;;  %s2058_s6 = inlined_call_operand.vmem [shape: f32[1,32], index: 6, kind: input, shape index: {}]   ;;  %s2059_s7 = inlined_call_operand.vmem [shape: f32[2,8,32], index: 7, kind: output, shape index: {}]  }
   0x1   :  { %1584 = vmatprep.subr.mxu1 %v1737_v1  ;;  %v1787_v2 = vld [vmem:[%s2052_s2 + $0x18] sm:$0xff]  ;;  %v1792_v3 = vld [vmem:[%s2052_s2 + $0x10] sm:$0xff]  ;;  %1592 = vmatprep.mubr.msk.f32.mxu1 %vm1738_vm0, %v1737_v1  ;;  %v30_v5 = vunpack.c.l.s4 %v1739_v4  ;;  %v1740_v9 = vmov 1934713408   ;;  %v1807_v11 = vld [vmem:[%s2052_s2 + $0x8] sm:$0xff]  ;;  %vm147_vm1 = vcmask 261120  }
   0x2   :  { %1585 = vmatpush3.msra.mxu1 %v1787_v2  ;;  %v97_v6 = vld [vmem:[%s2053_s1 + $0x18] sm:$0xff]  ;;  %v96_v7 = vld [vmem:[%s2053_s1 + $0x10] sm:$0xff]  ;;  %v33_v8 = vshrl.u32 %v32_v0, 7  ;;  %v61_v10 = vunpack.c.l.s4 %v1740_v9  ;;  %v1812_v12 = vld [vmem:[%s2054_s0] sm:$0xff]  ;;  %vm271_vm2 = vcmask 779264   ;;  %vm395_vm3 = vcmask 254976  }
   0x3   :  { %1586 = vmatprep.subr.mxu1 %v1737_v1  ;;  %1573 = vmatprep.subr.mxu0 %v97_v6  ;;  %v31_v13 = vunpack.c.0.s8 %v30_v5  ;;  %v95_v14 = vld [vmem:[%s2053_s1 + $0x8] sm:$0xff]  ;;  %v28_v16 = vcombine.high %v1812_v12, %v1737_v1  ;;  %v1829_v18 = vld [vmem:[%s2052_s2] sm:$0xff] }
   0x4   :  { %1587 = vmatpush3.msra.mxu1 %v1792_v3  ;;  %1574 = vmatpush3.msra.mxu0 %v97_v6  ;;  %v1821_v15 = vld [vmem:[%s2054_s0 + $0x8] sm:$0xff]  ;;  %v62_v17 = vunpack.c.0.s8 %v61_v10  ;;  %v94_v21 = vld [vmem:[%s2053_s1] sm:$0xff] }
   0x5   :  { %1588 = vmatprep.subr.mxu1 %v1737_v1  ;;  %1575 = vmatprep.subr.mxu0 %v96_v7  ;;  %v1831_v19 = vsub.s32 %v31_v13, %v33_v8  ;;  %v43_v20 = vcombine.high %v1821_v15, %v1737_v1  ;;  %v1889_v49 = vld [vmem:[%s2055_s4] ss:$0 sm:$0xff] }
   0x6   :  { %1589 = vmatpush3.msra.mxu1 %v1807_v11  ;;  %1576 = vmatpush3.msra.mxu0 %v96_v7  ;;  %v1839_v22 = vsub.s32 %v62_v17, %v33_v8  ;;  %v1490_v54 = vld [vmem:[%s2056_s3] ss:$0 sm:$0xff]  ;;  %s1742_s3 = smov 96  }
   0x7   :  { %1590 = vmatprep.subr.mxu1 %v1737_v1  ;;  %1577 = vmatprep.subr.mxu0 %v95_v14  ;;  %v35_v23 = vrot.slane %v1812_v12, %v1831_v19  ;;  %v42_v24 = vrot.slane %v28_v16, %v1831_v19  ;;  %v50_v25 = vrot.slane %v1821_v15, %v1831_v19 }
   0x8   :  { %1591 = vmatpush3.msra.mxu1 %v1829_v18  ;;  %1578 = vmatpush3.msra.mxu0 %v95_v14  ;;  %v57_v26 = vrot.slane %v43_v20, %v1831_v19 }
   0x9   :  { %1593 = vmatmul.mubr.f32.vlgmr.msra.gmra.mxu1 %v1737_v1  ;;  %1579 = vmatprep.subr.mxu0 %v94_v21  ;;  %v58_v27 = vcombine.low %v35_v23, %v50_v25  ;;  %v59_v28 = vcombine.high %v35_v23, %v50_v25 }
   0xa   :  { %1580 = vmatpush3.msra.mxu0 %v94_v21  ;;  %v74_v29 = vcombine.low %v42_v24, %v57_v26  ;;  %v75_v30 = vcombine.high %v42_v24, %v57_v26  ;;  %1606 = vmatprep.subr.mxu1 %v1737_v1 }
   0xb   :  { %v66_v31 = vrot.slane %v58_v27, %v1839_v22  ;;  %v73_v32 = vrot.slane %v59_v28, %v1839_v22  ;;  %1595 = vmatprep.subr.mxu0 %v1737_v1  ;;  %1607 = vmatpush3.msra.mxu1 %v1787_v2 }
   0xc   :  { %v82_v33 = vrot.slane %v74_v29, %v1839_v22  ;;  %v89_v34 = vrot.slane %v75_v30, %v1839_v22  ;;  %1608 = vmatprep.subr.mxu1 %v1737_v1  ;;  %1614 = vmatprep.mubr.msk.f32.mxu1 %vm1738_vm0, %v1737_v1 }
   0xd   :  { %v90_v35 = vcombine.high %v66_v31, %v1737_v1  ;;  %v91_v36 = vcombine.high %v73_v32, %v1737_v1  ;;  %1609 = vmatpush3.msra.mxu1 %v1792_v3 }
   0xe   :  { %v92_v37 = vcombine.high %v82_v33, %v1737_v1  ;;  %v93_v38 = vcombine.high %v89_v34, %v1737_v1  ;;  %1610 = vmatprep.subr.mxu1 %v1737_v1 }
   0xf   :  { %v113_v39 = vcombine.low %v66_v31, %v90_v35  ;;  %v114_v40 = vcombine.low %v73_v32, %v91_v36  ;;  %1611 = vmatpush3.msra.mxu1 %v1807_v11 }
  0x10   :  { %v130_v41 = vcombine.low %v82_v33, %v92_v37  ;;  %v131_v42 = vcombine.low %v89_v34, %v93_v38  ;;  %1612 = vmatprep.subr.mxu1 %v1737_v1 }
  0x11   :  { %v121_v43 = vrot.slane %v113_v39, %v1831_v19  ;;  %v128_v44 = vrot.slane %v114_v40, %v1831_v19  ;;  %1613 = vmatpush3.msra.mxu1 %v1829_v18 }
  0x12   :  { %v138_v45 = vrot.slane %v130_v41, %v1831_v19  ;;  %v145_v46 = vrot.slane %v131_v42, %v1831_v19  ;;  %1628 = vmatprep.subr.mxu1 %v1737_v1 }
  0x13   :  { %v129_v47 = vcombine.low %v121_v43, %v128_v44 }
  0x14   :  { %v146_v48 = vcombine.low %v138_v45, %v145_v46 }
  0x15   :  { %1581 = vmatprep.mubr.msk.f32.mxu0 %vm147_vm1, %v129_v47 }
  0x16   :  { %1582 = vmatmul.mubr.msk.f32.vlgmr.msra.gmra.mxu0 %vm147_vm1, %v146_v48 }
  0x17   :  { %1596 = vmatpush3.msra.mxu0 %v1787_v2  ;;  %1603 = vmatprep.mubr.msk.f32.mxu0 %vm1738_vm0, %v1737_v1 }
  0x18   :  { %1597 = vmatprep.subr.mxu0 %v1737_v1 }
  0x19   :  { %1598 = vmatpush3.msra.mxu0 %v1792_v3 }
  0x1a   :  { %1599 = vmatprep.subr.mxu0 %v1737_v1 }
  0x1b   :  { %1600 = vmatpush3.msra.mxu0 %v1807_v11 }
  0x1c   :  { %1601 = vmatprep.subr.mxu0 %v1737_v1 }
  0x1d   :  { %1602 = vmatpush3.msra.mxu0 %v1829_v18 }
  0x1e   :  { %1617 = vmatprep.subr.mxu0 %v1737_v1 }
  0xc9   :  { %v360_v50 = vpop.f32.mrf.mxu1 }
  0xca   :  { %v361_v51 = vadd.f32 %v1889_v49, %v360_v50 }
  0xcb   :  { %v1594_v52 = vpop.f32.mrf.mxu1 }
  0xcc   :  { %373 = vrot.lane.b32.xlu0 %v361_v51, %s1741_s20 }
  0xd6   :  { %v1583_v53 = vpop.f32.mrf.mxu0 }
  0xd7   :  { %v224_v55 = vadd.f32 %v1583_v53, %v1490_v54 }
  0xd8   :  { %v218_v56 = vpop.f32.mrf.mxu0 }
  0xd9   :  { %v246_v57 = vcombine.high %v224_v55, %v224_v55  ;;  %v253_v58 = vrot.slane %v224_v55, %v1831_v19  ;;  %v219_v59 = vadd.f32 %v1490_v54, %v218_v56 }
  0xdb   :  { %v260_v60 = vrot.slane %v246_v57, %v1831_v19  ;;  %v261_v61 = vcombine.high %v253_v58, %v253_v58  ;;  %276 = vst.msk [vmem:[#allocation2 + $0x8] sm:$0x3] %vm271_vm2, %v253_v58  ;;  %v229_v62 = vcombine.high %v219_v59, %v219_v59  ;;  %v236_v63 = vrot.slane %v219_v59, %v1831_v19 }
  0xdd   :  { %v262_v0 = vcombine.high %v260_v60, %v260_v60  ;;  %277 = vst.msk [vmem:[#allocation2 + $0xa] sm:$0x3] %vm271_vm2, %v261_v61  ;;  %278 = vst.msk [vmem:[#allocation2 + $0xc] sm:$0x3] %vm271_vm2, %v260_v60  ;;  %v243_v4 = vrot.slane %v229_v62, %v1831_v19  ;;  %v244_v5 = vcombine.high %v236_v63, %v236_v63 }
  0xde   :  { %272 = vst.msk [vmem:[#allocation2] sm:$0x3] %vm271_vm2, %v236_v63 }
  0xdf   :  { %279 = vst.msk [vmem:[#allocation2 + $0xe] sm:$0x3] %vm271_vm2, %v262_v0  ;;  %v245_v6 = vcombine.high %v243_v4, %v243_v4  ;;  %273 = vst.msk [vmem:[#allocation2 + $0x2] sm:$0x3] %vm271_vm2, %v244_v5 }
  0xe0   :  { %274 = vst.msk [vmem:[#allocation2 + $0x4] sm:$0x3] %vm271_vm2, %v243_v4 }
  0xe1   :  { %275 = vst.msk [vmem:[#allocation2 + $0x6] sm:$0x3] %vm271_vm2, %v245_v6 }
  0xe5   :  { %v364_v7 = vld [vmem:[#allocation2] sm:$0x3] }
  0xe6   :  { %v365_v8 = vadd.f32 %v364_v7, %v361_v51  ;;  %v481_v33 = vld [vmem:[#allocation2 + $0x2] sm:$0x3] }
  0xe7   :  { %v598_v54 = vld [vmem:[#allocation2 + $0x4] sm:$0x3] }
  0xe8   :  { %v1494_v9 = vmul.f32 -1.442695, %v365_v8 }
  0xea   :  { %1689 = vpow2.f32 %v1494_v9 }
  0xf7   :  { %v1690_v10 = vpop.eup %1689 }
  0xf8   :  { %v369_v13 = vadd.f32 1.0, %v1690_v10 }
  0xfa   :  { %1691 = vrcp.f32 %v369_v13 }
 0x107   :  { %v1692_v14 = vpop.eup %1691 }
 0x108   :  { %v383_v24 = vsub.f32 1.0, %v1692_v14  ;;  %v389_v26 = vmul.f32 0.0, %v1692_v14 }
 0x13e   :  { %v374_v16 = vpop.permute.xlu0 %373 }
 0x13f   :  { %v376_v17 = vmul.f32 %v1692_v14, %v374_v16  ;;  %v715_v16 = vld [vmem:[#allocation2 + $0x6] sm:$0x3] }
 0x141   :  { %378 = vrot.lane.b32.xlu0 %v376_v17, %s1741_s20 }
 0x1b3   :  { %v379_v20 = vpop.permute.xlu0 %378 }
 0x1b4   :  { %v381_v21 = vadd.f32 %v379_v20, %v364_v7 }
 0x1b6   :  { %1693 = vtanh.f32 %v381_v21 }
 0x1c3   :  { %v1694_v23 = vpop.eup %1693 }
 0x1c4   :  { %385 = vrot.lane.b32.xlu1 %v1694_v23, %s1742_s3 }
 0x236   :  { %v386_v25 = vpop.permute.xlu1 %385 }
 0x237   :  { %v388_v27 = vmul.f32 %v386_v25, %v383_v24 }
 0x239   :  { %v390_v28 = vadd.f32 %v389_v26, %v388_v27 }
 0x23b   :  { %392 = vrot.lane.b32.xlu1 %v390_v28, %s1742_s3 }
 0x2ad   :  { %v393_v29 = vpop.permute.xlu1 %392 }
 0x2ae   :  { %396 = vst.msk [vmem:[#allocation3] sm:$0x3] %vm395_vm3, %v393_v29  ;;  %1604 = vmatmul.mubr.msk.f32.vlgmr.msra.gmra.mxu0 %vm147_vm1, %v393_v29 }
 0x2af   :  { %1618 = vmatpush3.msra.mxu0 %v1787_v2  ;;  %1625 = vmatprep.mubr.msk.f32.mxu0 %vm1738_vm0, %v1737_v1 }
 0x2b0   :  { %1619 = vmatprep.subr.mxu0 %v1737_v1 }
 0x2b1   :  { %1620 = vmatpush3.msra.mxu0 %v1792_v3 }
 0x2b2   :  { %1621 = vmatprep.subr.mxu0 %v1737_v1 }
 0x2b3   :  { %1622 = vmatpush3.msra.mxu0 %v1807_v11 }
 0x2b4   :  { %1623 = vmatprep.subr.mxu0 %v1737_v1 }
 0x2b5   :  { %1624 = vmatpush3.msra.mxu0 %v1829_v18 }
 0x2b6   :  { %1639 = vmatprep.subr.mxu0 %v1737_v1 }
 0x36e   :  { %v476_v30 = vpop.f32.mrf.mxu0 }
 0x36f   :  { %v477_v31 = vadd.f32 %v1889_v49, %v476_v30 }
 0x370   :  { %v1605_v32 = vpop.f32.mrf.mxu0 }
 0x371   :  { %490 = vrot.lane.b32.xlu0 %v477_v31, %s1741_s20  ;;  %v482_v34 = vadd.f32 %v481_v33, %v477_v31 }
 0x373   :  { %v1497_v35 = vmul.f32 -1.442695, %v482_v34 }
 0x375   :  { %1695 = vpow2.f32 %v1497_v35 }
 0x382   :  { %v1696_v36 = vpop.eup %1695 }
 0x383   :  { %v486_v37 = vadd.f32 1.0, %v1696_v36 }
 0x385   :  { %1697 = vrcp.f32 %v486_v37 }
 0x392   :  { %v1698_v38 = vpop.eup %1697 }
 0x393   :  { %v500_v44 = vsub.f32 1.0, %v1698_v38  ;;  %v506_v46 = vmul.f32 %v1698_v38, %v390_v28 }
 0x3e3   :  { %v491_v39 = vpop.permute.xlu0 %490 }
 0x3e4   :  { %v493_v40 = vmul.f32 %v1698_v38, %v491_v39  ;;  %v832_v39 = vld [vmem:[#allocation2 + $0x8] sm:$0x3] }
 0x3e6   :  { %495 = vrot.lane.b32.xlu1 %v493_v40, %s1741_s20 }
 0x458   :  { %v496_v41 = vpop.permute.xlu1 %495 }
 0x459   :  { %v498_v42 = vadd.f32 %v496_v41, %v481_v33 }
 0x45b   :  { %1699 = vtanh.f32 %v498_v42 }
 0x468   :  { %v1700_v43 = vpop.eup %1699 }
 0x469   :  { %502 = vrot.lane.b32.xlu0 %v1700_v43, %s1742_s3 }
 0x4db   :  { %v503_v45 = vpop.permute.xlu0 %502 }
 0x4dc   :  { %v505_v47 = vmul.f32 %v503_v45, %v500_v44 }
 0x4de   :  { %v507_v48 = vadd.f32 %v506_v46, %v505_v47 }
 0x4e0   :  { %509 = vrot.lane.b32.xlu1 %v507_v48, %s1742_s3 }
 0x552   :  { %v510_v50 = vpop.permute.xlu1 %509 }
 0x553   :  { %513 = vst.msk [vmem:[#allocation3 + $0x2] sm:$0x3] %vm395_vm3, %v510_v50  ;;  %1615 = vmatmul.mubr.msk.f32.vlgmr.msra.gmra.mxu1 %vm147_vm1, %v510_v50 }
 0x554   :  { %1629 = vmatpush3.msra.mxu1 %v1787_v2  ;;  %1636 = vmatprep.mubr.msk.f32.mxu1 %vm1738_vm0, %v1737_v1 }
 0x555   :  { %1630 = vmatprep.subr.mxu1 %v1737_v1 }
 0x556   :  { %1631 = vmatpush3.msra.mxu1 %v1792_v3 }
 0x557   :  { %1632 = vmatprep.subr.mxu1 %v1737_v1 }
 0x558   :  { %1633 = vmatpush3.msra.mxu1 %v1807_v11 }
 0x559   :  { %1634 = vmatprep.subr.mxu1 %v1737_v1 }
 0x55a   :  { %1635 = vmatpush3.msra.mxu1 %v1829_v18 }
 0x55b   :  { %1650 = vmatprep.subr.mxu1 %v1737_v1 }
 0x613   :  { %v593_v51 = vpop.f32.mrf.mxu1 }
 0x614   :  { %v594_v52 = vadd.f32 %v1889_v49, %v593_v51 }
 0x615   :  { %v1616_v53 = vpop.f32.mrf.mxu1 }
 0x616   :  { %607 = vrot.lane.b32.xlu0 %v594_v52, %s1741_s20  ;;  %v599_v55 = vadd.f32 %v598_v54, %v594_v52 }
 0x618   :  { %v1500_v56 = vmul.f32 -1.442695, %v599_v55 }
 0x61a   :  { %1701 = vpow2.f32 %v1500_v56 }
 0x627   :  { %v1702_v57 = vpop.eup %1701 }
 0x628   :  { %v603_v58 = vadd.f32 1.0, %v1702_v57 }
 0x62a   :  { %1703 = vrcp.f32 %v603_v58 }
 0x637   :  { %v1704_v59 = vpop.eup %1703 }
 0x638   :  { %v617_v4 = vsub.f32 1.0, %v1704_v59  ;;  %v623_v6 = vmul.f32 %v1704_v59, %v507_v48 }
 0x688   :  { %v608_v60 = vpop.permute.xlu0 %607 }
 0x689   :  { %v610_v61 = vmul.f32 %v1704_v59, %v608_v60 }
 0x68b   :  { %612 = vrot.lane.b32.xlu1 %v610_v61, %s1741_s20 }
 0x6fd   :  { %v613_v62 = vpop.permute.xlu1 %612 }
 0x6fe   :  { %v615_v63 = vadd.f32 %v613_v62, %v598_v54 }
 0x700   :  { %1705 = vtanh.f32 %v615_v63 }
 0x70d   :  { %v1706_v0 = vpop.eup %1705 }
 0x70e   :  { %619 = vrot.lane.b32.xlu0 %v1706_v0, %s1742_s3 }
 0x780   :  { %v620_v5 = vpop.permute.xlu0 %619 }
 0x781   :  { %v622_v7 = vmul.f32 %v620_v5, %v617_v4 }
 0x783   :  { %v624_v8 = vadd.f32 %v623_v6, %v622_v7 }
 0x785   :  { %626 = vrot.lane.b32.xlu1 %v624_v8, %s1742_s3 }
 0x7f7   :  { %v627_v9 = vpop.permute.xlu1 %626 }
 0x7f8   :  { %630 = vst.msk [vmem:[#allocation3 + $0x4] sm:$0x3] %vm395_vm3, %v627_v9  ;;  %1626 = vmatmul.mubr.msk.f32.vlgmr.msra.gmra.mxu0 %vm147_vm1, %v627_v9 }
 0x7f9   :  { %1640 = vmatpush3.msra.mxu0 %v1787_v2  ;;  %1647 = vmatprep.mubr.msk.f32.mxu0 %vm1738_vm0, %v1737_v1 }
 0x7fa   :  { %1641 = vmatprep.subr.mxu0 %v1737_v1 }
 0x7fb   :  { %1642 = vmatpush3.msra.mxu0 %v1792_v3 }
 0x7fc   :  { %1643 = vmatprep.subr.mxu0 %v1737_v1 }
 0x7fd   :  { %1644 = vmatpush3.msra.mxu0 %v1807_v11 }
 0x7fe   :  { %1645 = vmatprep.subr.mxu0 %v1737_v1 }
 0x7ff   :  { %1646 = vmatpush3.msra.mxu0 %v1829_v18 }
 0x800   :  { %1661 = vmatprep.subr.mxu0 %v1737_v1 }
 0x8b8   :  { %v710_v10 = vpop.f32.mrf.mxu0 }
 0x8b9   :  { %v711_v13 = vadd.f32 %v1889_v49, %v710_v10 }
 0x8ba   :  { %v1627_v14 = vpop.f32.mrf.mxu0 }
 0x8bb   :  { %724 = vrot.lane.b32.xlu0 %v711_v13, %s1741_s20  ;;  %v716_v17 = vadd.f32 %v715_v16, %v711_v13  ;;  %v1217_v13 = vld [vmem:[#allocation3 + $0x2] sm:$0x3]  ;;  %v1218_v14 = vld [vmem:[#allocation3 + $0x4] sm:$0x3] }
 0x8bd   :  { %v1503_v20 = vmul.f32 -1.442695, %v716_v17  ;;  %v1216_v17 = vld [vmem:[#allocation3] sm:$0x3] }
 0x8bf   :  { %1707 = vpow2.f32 %v1503_v20  ;;  %v1243_v20 = vcombine.low %v1216_v17, %v1217_v13 }
 0x8cc   :  { %v1708_v21 = vpop.eup %1707 }
 0x8cd   :  { %v720_v23 = vadd.f32 1.0, %v1708_v21 }
 0x8cf   :  { %1709 = vrcp.f32 %v720_v23  ;;  %v1251_v23 = vrot.slane %v1243_v20, %v1831_v19 }
 0x8dc   :  { %v1710_v24 = vpop.eup %1709 }
 0x8dd   :  { %v734_v30 = vsub.f32 1.0, %v1710_v24  ;;  %v740_v32 = vmul.f32 %v1710_v24, %v624_v8 }
 0x92d   :  { %v725_v25 = vpop.permute.xlu0 %724 }
 0x92e   :  { %v727_v26 = vmul.f32 %v1710_v24, %v725_v25 }
 0x930   :  { %729 = vrot.lane.b32.xlu1 %v727_v26, %s1741_s20 }
 0x9a2   :  { %v730_v27 = vpop.permute.xlu1 %729 }
 0x9a3   :  { %v732_v28 = vadd.f32 %v730_v27, %v715_v16 }
 0x9a5   :  { %1711 = vtanh.f32 %v732_v28 }
 0x9b2   :  { %v1712_v29 = vpop.eup %1711 }
 0x9b3   :  { %736 = vrot.lane.b32.xlu0 %v1712_v29, %s1742_s3  ;;  %v1066_v29 = vld [vmem:[#allocation2 + $0xc] sm:$0x3] }
 0xa25   :  { %v737_v31 = vpop.permute.xlu0 %736 }
 0xa26   :  { %v739_v33 = vmul.f32 %v737_v31, %v734_v30 }
 0xa28   :  { %v741_v34 = vadd.f32 %v740_v32, %v739_v33 }
 0xa2a   :  { %743 = vrot.lane.b32.xlu1 %v741_v34, %s1742_s3 }
 0xa9c   :  { %v744_v35 = vpop.permute.xlu1 %743 }
 0xa9d   :  { %747 = vst.msk [vmem:[#allocation3 + $0x6] sm:$0x3] %vm395_vm3, %v744_v35  ;;  %1637 = vmatmul.mubr.msk.f32.vlgmr.msra.gmra.mxu1 %vm147_vm1, %v744_v35 }
 0xa9e   :  { %1651 = vmatpush3.msra.mxu1 %v1787_v2  ;;  %1658 = vmatprep.mubr.msk.f32.mxu1 %vm1738_vm0, %v1737_v1 }
 0xa9f   :  { %1652 = vmatprep.subr.mxu1 %v1737_v1 }
 0xaa0   :  { %1653 = vmatpush3.msra.mxu1 %v1792_v3 }
 0xaa1   :  { %1654 = vmatprep.subr.mxu1 %v1737_v1 }
 0xaa2   :  { %1655 = vmatpush3.msra.mxu1 %v1807_v11 }
 0xaa3   :  { %1656 = vmatprep.subr.mxu1 %v1737_v1 }
 0xaa4   :  { %1657 = vmatpush3.msra.mxu1 %v1829_v18  ;;  %v1219_v10 = vld [vmem:[#allocation3 + $0x6] sm:$0x3] }
 0xaa5   :  { %v1244_v16 = vcombine.low %v1218_v14, %v1219_v10 }
 0xaa7   :  { %v1258_v21 = vrot.slane %v1244_v16, %v1831_v19  ;;  %v1516_v16 = vld [vmem:[%s2058_s6] ss:$0 sm:$0xff] }
 0xaa9   :  { %v1259_v25 = vcombine.low %v1251_v23, %v1258_v21 }
 0xb5d   :  { %v827_v36 = vpop.f32.mrf.mxu1 }
 0xb5e   :  { %v828_v37 = vadd.f32 %v1889_v49, %v827_v36 }
 0xb5f   :  { %v1638_v38 = vpop.f32.mrf.mxu1 }
 0xb60   :  { %841 = vrot.lane.b32.xlu0 %v828_v37, %s1741_s20  ;;  %v833_v40 = vadd.f32 %v832_v39, %v828_v37 }
 0xb62   :  { %v1506_v41 = vmul.f32 -1.442695, %v833_v40 }
 0xb64   :  { %1713 = vpow2.f32 %v1506_v41 }
 0xb71   :  { %v1714_v42 = vpop.eup %1713 }
 0xb72   :  { %v837_v43 = vadd.f32 1.0, %v1714_v42 }
 0xb74   :  { %1715 = vrcp.f32 %v837_v43 }
 0xb81   :  { %v1716_v44 = vpop.eup %1715 }
 0xb82   :  { %v851_v51 = vsub.f32 1.0, %v1716_v44  ;;  %v857_v53 = vmul.f32 %v1716_v44, %v741_v34 }
 0xbd2   :  { %v842_v45 = vpop.permute.xlu0 %841 }
 0xbd3   :  { %v844_v46 = vmul.f32 %v1716_v44, %v842_v45 }
 0xbd5   :  { %846 = vrot.lane.b32.xlu1 %v844_v46, %s1741_s20 }
 0xc47   :  { %v847_v47 = vpop.permute.xlu1 %846 }
 0xc48   :  { %v849_v48 = vadd.f32 %v847_v47, %v832_v39 }
 0xc4a   :  { %1717 = vtanh.f32 %v849_v48 }
 0xc57   :  { %v1718_v50 = vpop.eup %1717 }
 0xc58   :  { %853 = vrot.lane.b32.xlu0 %v1718_v50, %s1742_s3  ;;  %v1183_v50 = vld [vmem:[#allocation2 + $0xe] sm:$0x3] }
 0xcca   :  { %v854_v52 = vpop.permute.xlu0 %853 }
 0xccb   :  { %v856_v54 = vmul.f32 %v854_v52, %v851_v51 }
 0xccd   :  { %v858_v55 = vadd.f32 %v857_v53, %v856_v54 }
 0xccf   :  { %860 = vrot.lane.b32.xlu1 %v858_v55, %s1742_s3 }
 0xd41   :  { %v861_v56 = vpop.permute.xlu1 %860 }
 0xd42   :  { %864 = vst.msk [vmem:[#allocation3 + $0x8] sm:$0x3] %vm395_vm3, %v861_v56  ;;  %1648 = vmatmul.mubr.msk.f32.vlgmr.msra.gmra.mxu0 %vm147_vm1, %v861_v56 }
 0xd43   :  { %1662 = vmatpush3.msra.mxu0 %v1787_v2  ;;  %1669 = vmatprep.mubr.msk.f32.mxu0 %vm1738_vm0, %v1737_v1  ;;  %v949_v2 = vld [vmem:[#allocation2 + $0xa] sm:$0x3] }
 0xd44   :  { %1663 = vmatprep.subr.mxu0 %v1737_v1 }
 0xd45   :  { %1664 = vmatpush3.msra.mxu0 %v1792_v3 }
 0xd46   :  { %1665 = vmatprep.subr.mxu0 %v1737_v1 }
 0xd47   :  { %1666 = vmatpush3.msra.mxu0 %v1807_v11 }
 0xd48   :  { %1667 = vmatprep.subr.mxu0 %v1737_v1 }
 0xd49   :  { %1668 = vmatpush3.msra.mxu0 %v1829_v18 }
 0xe02   :  { %v944_v57 = vpop.f32.mrf.mxu0 }
 0xe03   :  { %v945_v58 = vadd.f32 %v1889_v49, %v944_v57 }
 0xe04   :  { %v1649_v59 = vpop.f32.mrf.mxu0 }
 0xe05   :  { %958 = vrot.lane.b32.xlu0 %v945_v58, %s1741_s20  ;;  %v950_v60 = vadd.f32 %v949_v2, %v945_v58 }
 0xe07   :  { %v1509_v61 = vmul.f32 -1.442695, %v950_v60  ;;  %v1226_v60 = vld [vmem:[%s2057_s5 + $0x10] sm:$0xff] }
 0xe09   :  { %1719 = vpow2.f32 %v1509_v61  ;;  %v1225_v61 = vld [vmem:[%s2057_s5 + $0x8] sm:$0xff] }
 0xe16   :  { %v1720_v62 = vpop.eup %1719 }
 0xe17   :  { %v954_v3 = vadd.f32 1.0, %v1720_v62  ;;  %v1224_v62 = vld [vmem:[%s2057_s5] sm:$0xff] }
 0xe19   :  { %1721 = vrcp.f32 %v954_v3 }
 0xe26   :  { %v1722_v63 = vpop.eup %1721 }
 0xe27   :  { %v968_v5 = vsub.f32 1.0, %v1722_v63  ;;  %v974_v7 = vmul.f32 %v1722_v63, %v858_v55 }
 0xe77   :  { %v959_v0 = vpop.permute.xlu0 %958 }
 0xe78   :  { %v961_v11 = vmul.f32 %v1722_v63, %v959_v0 }
 0xe7a   :  { %963 = vrot.lane.b32.xlu1 %v961_v11, %s1741_s20 }
 0xeec   :  { %v964_v1 = vpop.permute.xlu1 %963 }
 0xeed   :  { %v966_v18 = vadd.f32 %v964_v1, %v949_v2 }
 0xeef   :  { %1723 = vtanh.f32 %v966_v18 }
 0xefc   :  { %v1724_v4 = vpop.eup %1723 }
 0xefd   :  { %970 = vrot.lane.b32.xlu0 %v1724_v4, %s1742_s3 }
 0xf6f   :  { %v971_v6 = vpop.permute.xlu0 %970 }
 0xf70   :  { %v973_v8 = vmul.f32 %v971_v6, %v968_v5  ;;  %v1220_v5 = vld [vmem:[#allocation3 + $0x8] sm:$0x3] }
 0xf72   :  { %v975_v9 = vadd.f32 %v974_v7, %v973_v8 }
 0xf74   :  { %977 = vrot.lane.b32.xlu1 %v975_v9, %s1742_s3 }
 0xfe6   :  { %v978_v24 = vpop.permute.xlu1 %977 }
 0xfe7   :  { %981 = vst.msk [vmem:[#allocation3 + $0xa] sm:$0x3] %vm395_vm3, %v978_v24  ;;  %1659 = vmatmul.mubr.msk.f32.vlgmr.msra.gmra.mxu1 %vm147_vm1, %v978_v24 }
 0xfe8   :  { %1680 = vmatprep.mubr.msk.f32.mxu1 %vm147_vm1, %v1259_v25 }
 0xfee   :  { %v1221_v4 = vld [vmem:[#allocation3 + $0xa] sm:$0x3] }
 0xfef   :  { %v1260_v6 = vcombine.low %v1220_v5, %v1221_v4 }
 0xff1   :  { %v1268_v10 = vrot.slane %v1260_v6, %v1831_v19 }
0x10a7   :  { %v1061_v26 = vpop.f32.mrf.mxu1 }
0x10a8   :  { %v1062_v27 = vadd.f32 %v1889_v49, %v1061_v26 }
0x10a9   :  { %v1660_v28 = vpop.f32.mrf.mxu1 }
0x10aa   :  { %1075 = vrot.lane.b32.xlu0 %v1062_v27, %s1741_s20  ;;  %v1067_v30 = vadd.f32 %v1066_v29, %v1062_v27 }
0x10ac   :  { %v1512_v31 = vmul.f32 -1.442695, %v1067_v30 }
0x10ae   :  { %1725 = vpow2.f32 %v1512_v31 }
0x10bb   :  { %v1726_v32 = vpop.eup %1725 }
0x10bc   :  { %v1071_v33 = vadd.f32 1.0, %v1726_v32 }
0x10be   :  { %1727 = vrcp.f32 %v1071_v33 }
0x10cb   :  { %v1728_v34 = vpop.eup %1727 }
0x10cc   :  { %v1085_v40 = vsub.f32 1.0, %v1728_v34  ;;  %v1091_v42 = vmul.f32 %v1728_v34, %v975_v9 }
0x111c   :  { %v1076_v35 = vpop.permute.xlu0 %1075 }
0x111d   :  { %v1078_v36 = vmul.f32 %v1728_v34, %v1076_v35 }
0x111f   :  { %1080 = vrot.lane.b32.xlu1 %v1078_v36, %s1741_s20 }
0x1191   :  { %v1081_v37 = vpop.permute.xlu1 %1080 }
0x1192   :  { %v1083_v38 = vadd.f32 %v1081_v37, %v1066_v29 }
0x1194   :  { %1729 = vtanh.f32 %v1083_v38 }
0x11a1   :  { %v1730_v39 = vpop.eup %1729 }
0x11a2   :  { %1087 = vrot.lane.b32.xlu0 %v1730_v39, %s1742_s3 }
0x1214   :  { %v1088_v41 = vpop.permute.xlu0 %1087 }
0x1215   :  { %v1090_v43 = vmul.f32 %v1088_v41, %v1085_v40 }
0x1217   :  { %v1092_v44 = vadd.f32 %v1091_v42, %v1090_v43 }
0x1219   :  { %1094 = vrot.lane.b32.xlu1 %v1092_v44, %s1742_s3 }
0x128b   :  { %v1095_v45 = vpop.permute.xlu1 %1094 }
0x128c   :  { %1098 = vst.msk [vmem:[#allocation3 + $0xc] sm:$0x3] %vm395_vm3, %v1095_v45  ;;  %1670 = vmatmul.mubr.msk.f32.vlgmr.msra.gmra.mxu0 %vm147_vm1, %v1095_v45 }
0x1293   :  { %v1222_v7 = vld [vmem:[#allocation3 + $0xc] sm:$0x3] }
0x134c   :  { %v1178_v46 = vpop.f32.mrf.mxu0 }
0x134d   :  { %v1179_v47 = vadd.f32 %v1889_v49, %v1178_v46  ;;  %v1227_v49 = vld [vmem:[%s2057_s5 + $0x18] sm:$0xff] }
0x134e   :  { %v1671_v48 = vpop.f32.mrf.mxu0  ;;  %1672 = vmatprep.subr.mxu1 %v1227_v49 }
0x134f   :  { %1192 = vrot.lane.b32.xlu0 %v1179_v47, %s1741_s20  ;;  %v1184_v51 = vadd.f32 %v1183_v50, %v1179_v47  ;;  %1673 = vmatpush3.msra.mxu1 %v1227_v49 }
0x1350   :  { %1674 = vmatprep.subr.mxu1 %v1226_v60 }
0x1351   :  { %v1515_v52 = vmul.f32 -1.442695, %v1184_v51  ;;  %1675 = vmatpush3.msra.mxu1 %v1226_v60 }
0x1352   :  { %1676 = vmatprep.subr.mxu1 %v1225_v61 }
0x1353   :  { %1731 = vpow2.f32 %v1515_v52  ;;  %1677 = vmatpush3.msra.mxu1 %v1225_v61 }
0x1354   :  { %1678 = vmatprep.subr.mxu1 %v1224_v62 }
0x1355   :  { %1679 = vmatpush3.msra.mxu1 %v1224_v62 }
0x1360   :  { %v1732_v53 = vpop.eup %1731 }
0x1361   :  { %v1188_v54 = vadd.f32 1.0, %v1732_v53 }
0x1363   :  { %1733 = vrcp.f32 %v1188_v54 }
0x1370   :  { %v1734_v55 = vpop.eup %1733 }
0x1371   :  { %v1202_v3 = vsub.f32 1.0, %v1734_v55  ;;  %v1208_v0 = vmul.f32 %v1734_v55, %v1092_v44 }
0x13c1   :  { %v1193_v56 = vpop.permute.xlu0 %1192 }
0x13c2   :  { %v1195_v57 = vmul.f32 %v1734_v55, %v1193_v56 }
0x13c4   :  { %1197 = vrot.lane.b32.xlu1 %v1195_v57, %s1741_s20 }
0x1436   :  { %v1198_v58 = vpop.permute.xlu1 %1197 }
0x1437   :  { %v1200_v59 = vadd.f32 %v1198_v58, %v1183_v50 }
0x1439   :  { %1735 = vtanh.f32 %v1200_v59 }
0x1446   :  { %v1736_v2 = vpop.eup %1735 }
0x1447   :  { %1204 = vrot.lane.b32.xlu0 %v1736_v2, %s1742_s3 }
0x14b9   :  { %v1205_v63 = vpop.permute.xlu0 %1204 }
0x14ba   :  { %v1207_v11 = vmul.f32 %v1205_v63, %v1202_v3 }
0x14bc   :  { %v1209_v1 = vadd.f32 %v1208_v0, %v1207_v11 }
0x14be   :  { %1211 = vrot.lane.b32.xlu1 %v1209_v1, %s1742_s3 }
0x1530   :  { %v1212_v18 = vpop.permute.xlu1 %1211 }
0x1531   :  { %1215 = vst.msk [vmem:[#allocation3 + $0xe] sm:$0x3] %vm395_vm3, %v1212_v18 }
0x1538   :  { %v1223_v8 = vld [vmem:[#allocation3 + $0xe] sm:$0x3] }
0x1539   :  { %v1261_v9 = vcombine.low %v1222_v7, %v1223_v8 }
0x153b   :  { %v1275_v13 = vrot.slane %v1261_v9, %v1831_v19 }
0x153d   :  { %v1276_v14 = vcombine.low %v1268_v10, %v1275_v13 }
0x153f   :  { %1681 = vmatmul.mubr.msk.f32.vlgmr.msra.gmra.mxu1 %vm147_vm1, %v1276_v14 }
0x15ff   :  { %v1682_v17 = vpop.f32.mrf.mxu1 }
0x1600   :  { %v1353_v20 = vadd.f32 %v1682_v17, %v1516_v16 }
0x1601   :  { %v1347_v21 = vpop.f32.mrf.mxu1 }
0x1602   :  { %v1375_v23 = vcombine.high %v1353_v20, %v1353_v20  ;;  %v1382_v24 = vrot.slane %v1353_v20, %v1831_v19  ;;  %v1348_v25 = vadd.f32 %v1516_v16, %v1347_v21 }
0x1604   :  { %v1389_v26 = vrot.slane %v1375_v23, %v1831_v19  ;;  %v1390_v27 = vcombine.high %v1382_v24, %v1382_v24  ;;  %v1358_v28 = vcombine.high %v1348_v25, %v1348_v25  ;;  %v1365_v29 = vrot.slane %v1348_v25, %v1831_v19 }
0x1606   :  { %v1391_v30 = vcombine.high %v1389_v26, %v1389_v26  ;;  %v1420_v31 = vcombine.low %v1382_v24, %v1390_v27  ;;  %v1372_v32 = vrot.slane %v1358_v28, %v1831_v19  ;;  %v1373_v33 = vcombine.high %v1365_v29, %v1365_v29 }
0x1608   :  { %v1429_v34 = vcombine.low %v1389_v26, %v1391_v30  ;;  %v1374_v35 = vcombine.high %v1372_v32, %v1372_v32  ;;  %v1402_v36 = vcombine.low %v1365_v29, %v1373_v33  ;;  %v1427_v37 = vrot.slane %v1420_v31, %v1839_v22 }
0x160a   :  { %v1436_v38 = vrot.slane %v1429_v34, %v1839_v22  ;;  %v1411_v39 = vcombine.low %v1372_v32, %v1374_v35  ;;  %v1409_v42 = vrot.slane %v1402_v36, %v1839_v22 }
0x160c   :  { %v1447_v40 = vcombine.low %v1427_v37, %v1436_v38  ;;  %v1520_v41 = vcombine.high %v1427_v37, %v1436_v38  ;;  %v1418_v43 = vrot.slane %v1411_v39, %v1839_v22 }
0x160e   :  { %v1446_v44 = vcombine.low %v1409_v42, %v1418_v43  ;;  %v1519_v45 = vcombine.high %v1409_v42, %v1418_v43  ;;  %v1461_v46 = vrot.slane %v1447_v40, %v1831_v19  ;;  %v1478_v47 = vrot.slane %v1520_v41, %v1831_v19 }
0x1610   :  { %v1454_v48 = vrot.slane %v1446_v44, %v1831_v19  ;;  %v1471_v50 = vrot.slane %v1519_v45, %v1831_v19 }
0x1612   :  { %v1462_v51 = vcombine.low %v1454_v48, %v1461_v46  ;;  %v1479_v52 = vcombine.low %v1471_v50, %v1478_v47 }
0x1614   :  { %v1482_v53 = vadd.f32 %v1462_v51, %v1812_v12  ;;  %v1483_v54 = vadd.f32 %v1479_v52, %v1821_v15 }
0x1616   :  { %1484 = vst.msk [vmem:[%s2059_s7] sm:$0xff] %vm147_vm1, %v1482_v53  ;;  %1485 = vst.msk [vmem:[%s2059_s7 + $0x8] sm:$0xff] %vm147_vm1, %v1483_v54 }

// kernel: initial_tier_forward.11
= control target key start
LH: loop header
LB: loop body
LE: loop exit
PB: predicated region body
PF: predicated region fallthrough
CT: control target
= control target key end

     0   :  { %s1778_s18 = smov 0   ;;  %s1780_s19 = smov 0   ;;  %s2040_s0 = inlined_call_operand.vmem [shape: f32[2,8,8,32], index: 0, kind: input, shape index: {}]   ;;  %s2041_s1 = inlined_call_operand.vmem [shape: f32[32,96], index: 1, kind: input, shape index: {}]   ;;  %s2042_s2 = inlined_call_operand.vmem [shape: f32[32,96], index: 2, kind: input, shape index: {}]   ;;  %s2043_s3 = inlined_call_operand.vmem [shape: f32[1,96], index: 3, kind: input, shape index: {}]   ;;  %s2044_s4 = inlined_call_operand.vmem [shape: f32[1,96], index: 4, kind: input, shape index: {}]   ;;  %s2045_s5 = inlined_call_operand.vmem [shape: f32[2,8,8,32], index: 5, kind: output, shape index: {}]  }
   0x1   :  { %s1782_s20 = smov 0  }
   0x2 LB: > { %s27_s21 = sadd.s32 1, %s1738_s19  ;;  %p1436_p0 = scmp.ge.s32.totalorder %s1742_s20, 1  ;;  %s1742_s20 = sphi %s1782_s20, %s15_s20   ;;  %s1738_s19 = sphi %s1780_s19, %s2047_s19   ;;  %s1734_s18 = sphi %s1778_s18, %s2046_s18  }
   0x3   : > { %p29_p1 = scmp.ge.s32.totalorder %s27_s21, 2  ;;  %p206_p2 = scmp.lt.s32.totalorder %s1742_s20, 3 }
   0x5   : > { %s2049_s21 = smov (%p29_p1, %s27_s21), 0  ;;  %p207_p3 = pnand %p1436_p0, %p206_p2 }
   0x6   : > { %p240_p4 = scmp.lt.s32.totalorder (!%p207_p3), %s1734_s18, 1  ;;  %s1746_s25 = smov (!%p207_p3), 64  }
   0x7   : > { %210 = sbr.rel (%p207_p3) target bundleno = 5439 (0x153f), region = 40  ;;  %s1747_s26 = smov (!%p207_p3), 96  }
   0xc   : > { %v267_v0 = vld [vmem:[%s2041_s1 + $0x18] sm:$0xff]  ;;  %v266_v2 = vld [vmem:[%s2041_s1 + $0x10] sm:$0xff]  ;;  %v1744_v3 = vmov 0.0   ;;  %v265_v5 = vld [vmem:[%s2041_s1 + $0x8] sm:$0xff]  ;;  %s2051_s18 = smov (!%p240_p4, %s1734_s18), 1  ;;  %vm275_vm0 = vcmask 261120  }
   0xd   : > { %v1802_v1 = vld [vmem:[%s2042_s2 + $0x18] sm:$0xff]  ;;  %1536 = vmatprep.subr.mxu0 %v267_v0  ;;  %1556 = vmatprep.subr.mxu1 %v1744_v3  ;;  %v1811_v4 = vld [vmem:[%s2042_s2 + $0x10] sm:$0xff]  ;;  %v1823_v6 = vld [vmem:[%s2042_s2 + $0x8] sm:$0xff]  ;;  %s1482_s11 = sshll.u32 %s2051_s18, 6  ;;  %vm1745_vm1 = vmmov 0   ;;  %vm405_vm2 = vcmask 785408  }
   0xe   : > { %1537 = vmatpush3.msra.mxu0 %v267_v0  ;;  %1557 = vmatpush3.msra.mxu1 %v1802_v1  ;;  %v264_v7 = vld [vmem:[%s2041_s1] sm:$0xff]  ;;  %s1836_s14 = scalar_lea.vmem %s2040_s0, %s1482_s11  ;;  %s1897_s29 = scalar_lea.vmem %s2045_s5, %s1482_s11 }
   0xf   : > { %1538 = vmatprep.subr.mxu0 %v266_v2  ;;  %1558 = vmatprep.subr.mxu1 %v1744_v3  ;;  %v256_v8 = vld [vmem:[%s1836_s14] sm:$0xff]  ;;  %v257_v10 = vld [vmem:[%s1836_s14 + $0x8] sm:$0xff]  ;;  %v258_v50 = vld [vmem:[%s1836_s14 + $0x10] sm:$0xff] }
  0x10   : > { %1539 = vmatpush3.msra.mxu0 %v266_v2  ;;  %1559 = vmatpush3.msra.mxu1 %v1811_v4  ;;  %v1843_v9 = vld [vmem:[%s2042_s2] sm:$0xff]  ;;  %v259_v51 = vld [vmem:[%s1836_s14 + $0x18] sm:$0xff]  ;;  %v261_v53 = vld [vmem:[%s1836_s14 + $0x28] sm:$0xff] }
  0x11   : > { %1540 = vmatprep.subr.mxu0 %v265_v5  ;;  %1560 = vmatprep.subr.mxu1 %v1744_v3  ;;  %v1876_v11 = vld [vmem:[%s2044_s4] ss:$0 sm:$0xff]  ;;  %v262_v54 = vld [vmem:[%s1836_s14 + $0x30] sm:$0xff]  ;;  %v263_v55 = vld [vmem:[%s1836_s14 + $0x38] sm:$0xff] }
  0x12   : > { %1541 = vmatpush3.msra.mxu0 %v265_v5  ;;  %1561 = vmatpush3.msra.mxu1 %v1823_v6  ;;  %v1881_v13 = vld [vmem:[%s2043_s3] ss:$0 sm:$0xff] }
  0x13   : > { %1542 = vmatprep.subr.mxu0 %v264_v7  ;;  %1562 = vmatprep.subr.mxu1 %v1744_v3  ;;  %v260_v52 = vld [vmem:[%s1836_s14 + $0x20] sm:$0xff] }
  0x14   : > { %1543 = vmatpush3.msra.mxu0 %v264_v7  ;;  %1544 = vmatprep.mubr.msk.f32.mxu0 %vm275_vm0, %v256_v8 }
  0x15   : > { %1563 = vmatpush3.msra.mxu1 %v1843_v9  ;;  %1564 = vmatprep.mubr.msk.f32.mxu1 %vm1745_vm1, %v1744_v3 }
  0x16   : > { %1545 = vmatmul.mubr.msk.f32.vlgmr.msra.gmra.mxu0 %vm275_vm0, %v257_v10  ;;  %1565 = vmatmul.mubr.f32.vlgmr.msra.gmra.mxu1 %v1744_v3 }
  0x17   : > { %1567 = vmatprep.subr.mxu1 %v1744_v3  ;;  %1575 = vmatprep.mubr.msk.f32.mxu1 %vm1745_vm1, %v1744_v3 }
  0x18   : > { %1568 = vmatpush3.msra.mxu1 %v1802_v1  ;;  %1578 = vmatprep.subr.mxu0 %v1744_v3 }
  0x19   : > { %1569 = vmatprep.subr.mxu1 %v1744_v3  ;;  %1579 = vmatpush3.msra.mxu0 %v1802_v1 }
  0x1a   : > { %1570 = vmatpush3.msra.mxu1 %v1811_v4  ;;  %1580 = vmatprep.subr.mxu0 %v1744_v3 }
  0x1b   : > { %1571 = vmatprep.subr.mxu1 %v1744_v3  ;;  %1581 = vmatpush3.msra.mxu0 %v1811_v4 }
  0x1c   : > { %1572 = vmatpush3.msra.mxu1 %v1823_v6  ;;  %1582 = vmatprep.subr.mxu0 %v1744_v3 }
  0x1d   : > { %1573 = vmatprep.subr.mxu1 %v1744_v3  ;;  %1583 = vmatpush3.msra.mxu0 %v1823_v6 }
  0x1e   : > { %1574 = vmatpush3.msra.mxu1 %v1843_v9  ;;  %1584 = vmatprep.subr.mxu0 %v1744_v3 }
  0x1f   : > { %1585 = vmatpush3.msra.mxu0 %v1843_v9  ;;  %1589 = vmatprep.subr.mxu1 %v1744_v3 }
  0x20   : > { %1600 = vmatprep.subr.mxu0 %v1744_v3  ;;  %1547 = vmatprep.mubr.msk.f32.mxu0 %vm275_vm0, %v258_v50 }
  0x21   : > { %1548 = vmatmul.mubr.msk.f32.gmra.mxu0 %vm275_vm0, %v259_v51 }
  0x22   : > { %1550 = vmatprep.mubr.msk.f32.mxu0 %vm275_vm0, %v260_v52 }
  0x25   : > { %1551 = vmatmul.mubr.msk.f32.gmra.mxu0 %vm275_vm0, %v261_v53 }
  0x26   : > { %1553 = vmatprep.mubr.msk.f32.mxu0 %vm275_vm0, %v262_v54 }
  0x29   : > { %1554 = vmatmul.mubr.msk.f32.gmra.mxu0 %vm275_vm0, %v263_v55 }
  0x2a   : > { %1586 = vmatprep.mubr.msk.f32.mxu0 %vm1745_vm1, %v1744_v3 }
  0xd6   : > { %v1546_v12 = vpop.f32.mrf.mxu0  ;;  %v494_v14 = vpop.f32.mrf.mxu1 }
  0xd7   : > { %v372_v15 = vadd.f32 %v1546_v12, %v1881_v13  ;;  %v495_v16 = vadd.f32 %v1876_v11, %v494_v14 }
  0xd8   : > { %v366_v17 = vpop.f32.mrf.mxu0  ;;  %v1566_v18 = vpop.f32.mrf.mxu1 }
  0xd9   : > { %407 = vst.msk [vmem:[#allocation2 + $0x8] sm:$0xff] %vm405_vm2, %v372_v15  ;;  %v367_v19 = vadd.f32 %v1881_v13, %v366_v17  ;;  %507 = vrot.lane.b32.xlu0 %v495_v16, %s1746_s25 }
  0xdb   : > { %406 = vst.msk [vmem:[#allocation2] sm:$0xff] %vm405_vm2, %v367_v19 }
  0xe0   : > { %v614_v40 = vld [vmem:[#allocation2 + $0x8] sm:$0xff] }
  0xe1   : > { %v1549_v62 = vpop.f32.mrf.mxu0 }
  0xe2   : > { %v498_v20 = vld [vmem:[#allocation2] sm:$0xff]  ;;  %v382_v63 = vadd.f32 %v1549_v62, %v1881_v13 }
  0xe3   : > { %v499_v21 = vadd.f32 %v498_v20, %v495_v16  ;;  %v376_v0 = vpop.f32.mrf.mxu0 }
  0xe4   : > { %409 = vst.msk [vmem:[#allocation2 + $0x18] sm:$0xff] %vm405_vm2, %v382_v63  ;;  %v377_v2 = vadd.f32 %v1881_v13, %v376_v0 }
  0xe5   : > { %v1451_v22 = vmul.f32 -1.442695, %v499_v21  ;;  %v1552_v5 = vpop.f32.mrf.mxu0 }
  0xe6   : > { %408 = vst.msk [vmem:[#allocation2 + $0x10] sm:$0xff] %vm405_vm2, %v377_v2  ;;  %v392_v7 = vadd.f32 %v1552_v5, %v1881_v13 }
  0xe7   : > { %1672 = vpow2.f32 %v1451_v22  ;;  %v386_v8 = vpop.f32.mrf.mxu0 }
  0xe8   : > { %411 = vst.msk [vmem:[#allocation2 + $0x28] sm:$0xff] %vm405_vm2, %v392_v7  ;;  %v387_v10 = vadd.f32 %v1881_v13, %v386_v8 }
  0xe9   : > { %v1555_v12 = vpop.f32.mrf.mxu0 }
  0xea   : > { %410 = vst.msk [vmem:[#allocation2 + $0x20] sm:$0xff] %vm405_vm2, %v387_v10  ;;  %v402_v14 = vadd.f32 %v1555_v12, %v1881_v13 }
  0xeb   : > { %v396_v15 = vpop.f32.mrf.mxu0 }
  0xec   : > { %413 = vst.msk [vmem:[#allocation2 + $0x38] sm:$0xff] %vm405_vm2, %v402_v14  ;;  %v397_v16 = vadd.f32 %v1881_v13, %v396_v15 }
  0xee   : > { %412 = vst.msk [vmem:[#allocation2 + $0x30] sm:$0xff] %vm405_vm2, %v397_v16 }
  0xf4   : > { %v1673_v23 = vpop.eup %1672 }
  0xf5   : > { %v503_v24 = vadd.f32 1.0, %v1673_v23 }
  0xf7   : > { %1674 = vrcp.f32 %v503_v24 }
 0x104   : > { %v1675_v25 = vpop.eup %1674 }
 0x105   : > { %v517_v31 = vsub.f32 1.0, %v1675_v25  ;;  %v523_v33 = vmul.f32 0.0, %v1675_v25 }
 0x14b   : > { %v508_v26 = vpop.permute.xlu0 %507 }
 0x14c   : > { %v510_v27 = vmul.f32 %v1675_v25, %v508_v26 }
 0x14e   : > { %512 = vrot.lane.b32.xlu0 %v510_v27, %s1746_s25 }
 0x1c0   : > { %v513_v28 = vpop.permute.xlu0 %512 }
 0x1c1   : > { %v515_v29 = vadd.f32 %v513_v28, %v498_v20  ;;  %v731_v20 = vld [vmem:[#allocation2 + $0x10] sm:$0xff] }
 0x1c3   : > { %1676 = vtanh.f32 %v515_v29 }
 0x1d0   : > { %v1677_v30 = vpop.eup %1676 }
 0x1d1   : > { %519 = vrot.lane.b32.xlu1 %v1677_v30, %s1747_s26 }
 0x243   : > { %v520_v32 = vpop.permute.xlu1 %519 }
 0x244   : > { %v522_v34 = vmul.f32 %v520_v32, %v517_v31 }
 0x246   : > { %v524_v35 = vadd.f32 %v523_v33, %v522_v34 }
 0x248   : > { %526 = vrot.lane.b32.xlu1 %v524_v35, %s1747_s26 }
 0x2ba   : > { %v527_v36 = vpop.permute.xlu1 %526 }
 0x2bb   : > { %529 = vst.msk [vmem:[%s1897_s29] sm:$0xff] %vm275_vm0, %v527_v36  ;;  %1576 = vmatmul.mubr.msk.f32.vlgmr.msra.gmra.mxu1 %vm275_vm0, %v527_v36 }
 0x2bc   : > { %1590 = vmatpush3.msra.mxu1 %v1802_v1  ;;  %1597 = vmatprep.mubr.msk.f32.mxu1 %vm1745_vm1, %v1744_v3 }
 0x2bd   : > { %1591 = vmatprep.subr.mxu1 %v1744_v3 }
 0x2be   : > { %1592 = vmatpush3.msra.mxu1 %v1811_v4 }
 0x2bf   : > { %1593 = vmatprep.subr.mxu1 %v1744_v3 }
 0x2c0   : > { %1594 = vmatpush3.msra.mxu1 %v1823_v6 }
 0x2c1   : > { %1595 = vmatprep.subr.mxu1 %v1744_v3 }
 0x2c2   : > { %1596 = vmatpush3.msra.mxu1 %v1843_v9 }
 0x2c3   : > { %1611 = vmatprep.subr.mxu1 %v1744_v3 }
 0x37b   : > { %v609_v37 = vpop.f32.mrf.mxu1 }
 0x37c   : > { %v610_v38 = vadd.f32 %v1876_v11, %v609_v37 }
 0x37d   : > { %v1577_v39 = vpop.f32.mrf.mxu1 }
 0x37e   : > { %623 = vrot.lane.b32.xlu0 %v610_v38, %s1746_s25  ;;  %v615_v41 = vadd.f32 %v614_v40, %v610_v38 }
 0x380   : > { %v1454_v42 = vmul.f32 -1.442695, %v615_v41 }
 0x382   : > { %1678 = vpow2.f32 %v1454_v42 }
 0x38f   : > { %v1679_v43 = vpop.eup %1678 }
 0x390   : > { %v619_v44 = vadd.f32 1.0, %v1679_v43 }
 0x392   : > { %1680 = vrcp.f32 %v619_v44 }
 0x39f   : > { %v1681_v45 = vpop.eup %1680 }
 0x3a0   : > { %v633_v57 = vsub.f32 1.0, %v1681_v45  ;;  %v639_v59 = vmul.f32 %v1681_v45, %v524_v35 }
 0x3f0   : > { %v624_v46 = vpop.permute.xlu0 %623 }
 0x3f1   : > { %v626_v47 = vmul.f32 %v1681_v45, %v624_v46 }
 0x3f3   : > { %628 = vrot.lane.b32.xlu1 %v626_v47, %s1746_s25 }
 0x465   : > { %v629_v48 = vpop.permute.xlu1 %628 }
 0x466   : > { %v631_v49 = vadd.f32 %v629_v48, %v614_v40  ;;  %v848_v40 = vld [vmem:[#allocation2 + $0x18] sm:$0xff] }
 0x468   : > { %1682 = vtanh.f32 %v631_v49 }
 0x475   : > { %v1683_v56 = vpop.eup %1682 }
 0x476   : > { %635 = vrot.lane.b32.xlu0 %v1683_v56, %s1747_s26 }
 0x4e8   : > { %v636_v58 = vpop.permute.xlu0 %635 }
 0x4e9   : > { %v638_v60 = vmul.f32 %v636_v58, %v633_v57 }
 0x4eb   : > { %v640_v61 = vadd.f32 %v639_v59, %v638_v60  ;;  %v965_v60 = vld [vmem:[#allocation2 + $0x20] sm:$0xff] }
 0x4ed   : > { %642 = vrot.lane.b32.xlu1 %v640_v61, %s1747_s26 }
 0x55f   : > { %v643_v17 = vpop.permute.xlu1 %642 }
 0x560   : > { %1455 = vst.msk [vmem:[%s1897_s29 + $0x8] sm:$0xff] %vm275_vm0, %v643_v17  ;;  %1587 = vmatmul.mubr.msk.f32.vlgmr.msra.gmra.mxu0 %vm275_vm0, %v643_v17 }
 0x561   : > { %1601 = vmatpush3.msra.mxu0 %v1802_v1  ;;  %1608 = vmatprep.mubr.msk.f32.mxu0 %vm1745_vm1, %v1744_v3 }
 0x562   : > { %1602 = vmatprep.subr.mxu0 %v1744_v3 }
 0x563   : > { %1603 = vmatpush3.msra.mxu0 %v1811_v4 }
 0x564   : > { %1604 = vmatprep.subr.mxu0 %v1744_v3 }
 0x565   : > { %1605 = vmatpush3.msra.mxu0 %v1823_v6 }
 0x566   : > { %1606 = vmatprep.subr.mxu0 %v1744_v3 }
 0x567   : > { %1607 = vmatpush3.msra.mxu0 %v1843_v9 }
 0x568   : > { %1622 = vmatprep.subr.mxu0 %v1744_v3 }
 0x620   : > { %v726_v13 = vpop.f32.mrf.mxu0 }
 0x621   : > { %v727_v18 = vadd.f32 %v1876_v11, %v726_v13 }
 0x622   : > { %v1588_v19 = vpop.f32.mrf.mxu0 }
 0x623   : > { %740 = vrot.lane.b32.xlu0 %v727_v18, %s1746_s25  ;;  %v732_v21 = vadd.f32 %v731_v20, %v727_v18 }
 0x625   : > { %v1458_v22 = vmul.f32 -1.442695, %v732_v21 }
 0x627   : > { %1684 = vpow2.f32 %v1458_v22 }
 0x634   : > { %v1685_v23 = vpop.eup %1684 }
 0x635   : > { %v736_v24 = vadd.f32 1.0, %v1685_v23 }
 0x637   : > { %1686 = vrcp.f32 %v736_v24 }
 0x644   : > { %v1687_v25 = vpop.eup %1686 }
 0x645   : > { %v750_v31 = vsub.f32 1.0, %v1687_v25  ;;  %v756_v33 = vmul.f32 %v1687_v25, %v640_v61 }
 0x695   : > { %v741_v26 = vpop.permute.xlu0 %740 }
 0x696   : > { %v743_v27 = vmul.f32 %v1687_v25, %v741_v26 }
 0x698   : > { %745 = vrot.lane.b32.xlu1 %v743_v27, %s1746_s25 }
 0x70a   : > { %v746_v28 = vpop.permute.xlu1 %745 }
 0x70b   : > { %v748_v29 = vadd.f32 %v746_v28, %v731_v20 }
 0x70d   : > { %1688 = vtanh.f32 %v748_v29 }
 0x71a   : > { %v1689_v30 = vpop.eup %1688 }
 0x71b   : > { %752 = vrot.lane.b32.xlu0 %v1689_v30, %s1747_s26 }
 0x78d   : > { %v753_v32 = vpop.permute.xlu0 %752 }
 0x78e   : > { %v755_v34 = vmul.f32 %v753_v32, %v750_v31 }
 0x790   : > { %v757_v35 = vadd.f32 %v756_v33, %v755_v34 }
 0x792   : > { %759 = vrot.lane.b32.xlu1 %v757_v35, %s1747_s26 }
 0x804   : > { %v760_v36 = vpop.permute.xlu1 %759 }
 0x805   : > { %1459 = vst.msk [vmem:[%s1897_s29 + $0x10] sm:$0xff] %vm275_vm0, %v760_v36  ;;  %1598 = vmatmul.mubr.msk.f32.vlgmr.msra.gmra.mxu1 %vm275_vm0, %v760_v36 }
 0x806   : > { %1612 = vmatpush3.msra.mxu1 %v1802_v1  ;;  %1619 = vmatprep.mubr.msk.f32.mxu1 %vm1745_vm1, %v1744_v3 }
 0x807   : > { %1613 = vmatprep.subr.mxu1 %v1744_v3 }
 0x808   : > { %1614 = vmatpush3.msra.mxu1 %v1811_v4 }
 0x809   : > { %1615 = vmatprep.subr.mxu1 %v1744_v3 }
 0x80a   : > { %1616 = vmatpush3.msra.mxu1 %v1823_v6 }
 0x80b   : > { %1617 = vmatprep.subr.mxu1 %v1744_v3 }
 0x80c   : > { %1618 = vmatpush3.msra.mxu1 %v1843_v9 }
 0x80d   : > { %1633 = vmatprep.subr.mxu1 %v1744_v3 }
 0x8c5   : > { %v843_v37 = vpop.f32.mrf.mxu1 }
 0x8c6   : > { %v844_v38 = vadd.f32 %v1876_v11, %v843_v37  ;;  %v1199_v37 = vld [vmem:[#allocation2 + $0x30] sm:$0xff] }
 0x8c7   : > { %v1599_v39 = vpop.f32.mrf.mxu1 }
 0x8c8   : > { %857 = vrot.lane.b32.xlu0 %v844_v38, %s1746_s25  ;;  %v849_v41 = vadd.f32 %v848_v40, %v844_v38 }
 0x8ca   : > { %v1462_v42 = vmul.f32 -1.442695, %v849_v41 }
 0x8cc   : > { %1690 = vpow2.f32 %v1462_v42 }
 0x8d9   : > { %v1691_v43 = vpop.eup %1690 }
 0x8da   : > { %v853_v44 = vadd.f32 1.0, %v1691_v43 }
 0x8dc   : > { %1692 = vrcp.f32 %v853_v44 }
 0x8e9   : > { %v1693_v45 = vpop.eup %1692 }
 0x8ea   : > { %v867_v51 = vsub.f32 1.0, %v1693_v45  ;;  %v873_v53 = vmul.f32 %v1693_v45, %v757_v35 }
 0x93a   : > { %v858_v46 = vpop.permute.xlu0 %857 }
 0x93b   : > { %v860_v47 = vmul.f32 %v1693_v45, %v858_v46 }
 0x93d   : > { %862 = vrot.lane.b32.xlu1 %v860_v47, %s1746_s25 }
 0x9af   : > { %v863_v48 = vpop.permute.xlu1 %862 }
 0x9b0   : > { %v865_v49 = vadd.f32 %v863_v48, %v848_v40 }
 0x9b2   : > { %1694 = vtanh.f32 %v865_v49 }
 0x9bf   : > { %v1695_v50 = vpop.eup %1694 }
 0x9c0   : > { %869 = vrot.lane.b32.xlu0 %v1695_v50, %s1747_s26 }
 0xa32   : > { %v870_v52 = vpop.permute.xlu0 %869 }
 0xa33   : > { %v872_v54 = vmul.f32 %v870_v52, %v867_v51 }
 0xa35   : > { %v874_v55 = vadd.f32 %v873_v53, %v872_v54 }
 0xa37   : > { %876 = vrot.lane.b32.xlu1 %v874_v55, %s1747_s26 }
 0xaa9   : > { %v877_v56 = vpop.permute.xlu1 %876 }
 0xaaa   : > { %1463 = vst.msk [vmem:[%s1897_s29 + $0x18] sm:$0xff] %vm275_vm0, %v877_v56  ;;  %1609 = vmatmul.mubr.msk.f32.vlgmr.msra.gmra.mxu0 %vm275_vm0, %v877_v56 }
 0xaab   : > { %1623 = vmatpush3.msra.mxu0 %v1802_v1  ;;  %1630 = vmatprep.mubr.msk.f32.mxu0 %vm1745_vm1, %v1744_v3 }
 0xaac   : > { %1624 = vmatprep.subr.mxu0 %v1744_v3 }
 0xaad   : > { %1625 = vmatpush3.msra.mxu0 %v1811_v4 }
 0xaae   : > { %1626 = vmatprep.subr.mxu0 %v1744_v3 }
 0xaaf   : > { %1627 = vmatpush3.msra.mxu0 %v1823_v6 }
 0xab0   : > { %1628 = vmatprep.subr.mxu0 %v1744_v3 }
 0xab1   : > { %1629 = vmatpush3.msra.mxu0 %v1843_v9 }
 0xb6a   : > { %v960_v57 = vpop.f32.mrf.mxu0 }
 0xb6b   : > { %v961_v58 = vadd.f32 %v1876_v11, %v960_v57  ;;  %v1316_v57 = vld [vmem:[#allocation2 + $0x38] sm:$0xff] }
 0xb6c   : > { %v1610_v59 = vpop.f32.mrf.mxu0 }
 0xb6d   : > { %974 = vrot.lane.b32.xlu0 %v961_v58, %s1746_s25  ;;  %v966_v61 = vadd.f32 %v965_v60, %v961_v58 }
 0xb6f   : > { %v1466_v62 = vmul.f32 -1.442695, %v966_v61 }
 0xb71   : > { %1696 = vpow2.f32 %v1466_v62 }
 0xb7e   : > { %v1697_v63 = vpop.eup %1696 }
 0xb7f   : > { %v970_v0 = vadd.f32 1.0, %v1697_v63 }
 0xb81   : > { %1698 = vrcp.f32 %v970_v0 }
 0xb8e   : > { %v1699_v2 = vpop.eup %1698 }
 0xb8f   : > { %v984_v14 = vsub.f32 1.0, %v1699_v2  ;;  %v990_v16 = vmul.f32 %v1699_v2, %v874_v55 }
 0xbdf   : > { %v975_v5 = vpop.permute.xlu0 %974 }
 0xbe0   : > { %v977_v7 = vmul.f32 %v1699_v2, %v975_v5 }
 0xbe2   : > { %979 = vrot.lane.b32.xlu1 %v977_v7, %s1746_s25 }
 0xc54   : > { %v980_v8 = vpop.permute.xlu1 %979 }
 0xc55   : > { %v982_v10 = vadd.f32 %v980_v8, %v965_v60 }
 0xc57   : > { %1700 = vtanh.f32 %v982_v10 }
 0xc64   : > { %v1701_v12 = vpop.eup %1700 }
 0xc65   : > { %986 = vrot.lane.b32.xlu0 %v1701_v12, %s1747_s26 }
 0xcd7   : > { %v987_v15 = vpop.permute.xlu0 %986 }
 0xcd8   : > { %v989_v17 = vmul.f32 %v987_v15, %v984_v14 }
 0xcda   : > { %v991_v13 = vadd.f32 %v990_v16, %v989_v17 }
 0xcdc   : > { %993 = vrot.lane.b32.xlu1 %v991_v13, %s1747_s26 }
 0xd4e   : > { %v994_v18 = vpop.permute.xlu1 %993 }
 0xd4f   : > { %1467 = vst.msk [vmem:[%s1897_s29 + $0x20] sm:$0xff] %vm275_vm0, %v994_v18  ;;  %1620 = vmatmul.mubr.msk.f32.vlgmr.msra.gmra.mxu1 %vm275_vm0, %v994_v18 }
 0xd50   : > { %1634 = vmatpush3.msra.mxu1 %v1802_v1  ;;  %1641 = vmatprep.mubr.msk.f32.mxu1 %vm1745_vm1, %v1744_v3  ;;  %v1082_v1 = vld [vmem:[#allocation2 + $0x28] sm:$0xff] }
 0xd51   : > { %1635 = vmatprep.subr.mxu1 %v1744_v3 }
 0xd52   : > { %1636 = vmatpush3.msra.mxu1 %v1811_v4 }
 0xd53   : > { %1637 = vmatprep.subr.mxu1 %v1744_v3 }
 0xd54   : > { %1638 = vmatpush3.msra.mxu1 %v1823_v6 }
 0xd55   : > { %1639 = vmatprep.subr.mxu1 %v1744_v3 }
 0xd56   : > { %1640 = vmatpush3.msra.mxu1 %v1843_v9 }
 0xe0f   : > { %v1077_v19 = vpop.f32.mrf.mxu1 }
 0xe10   : > { %v1078_v20 = vadd.f32 %v1876_v11, %v1077_v19 }
 0xe11   : > { %v1621_v21 = vpop.f32.mrf.mxu1 }
 0xe12   : > { %1091 = vrot.lane.b32.xlu0 %v1078_v20, %s1746_s25  ;;  %v1083_v22 = vadd.f32 %v1082_v1, %v1078_v20 }
 0xe14   : > { %v1470_v23 = vmul.f32 -1.442695, %v1083_v22 }
 0xe16   : > { %1702 = vpow2.f32 %v1470_v23 }
 0xe23   : > { %v1703_v24 = vpop.eup %1702 }
 0xe24   : > { %v1087_v4 = vadd.f32 1.0, %v1703_v24 }
 0xe26   : > { %1704 = vrcp.f32 %v1087_v4 }
 0xe33   : > { %v1705_v25 = vpop.eup %1704 }
 0xe34   : > { %v1101_v28 = vsub.f32 1.0, %v1705_v25  ;;  %v1107_v30 = vmul.f32 %v1705_v25, %v991_v13 }
 0xe84   : > { %v1092_v6 = vpop.permute.xlu0 %1091 }
 0xe85   : > { %v1094_v26 = vmul.f32 %v1705_v25, %v1092_v6 }
 0xe87   : > { %1096 = vrot.lane.b32.xlu1 %v1094_v26, %s1746_s25 }
 0xef9   : > { %v1097_v3 = vpop.permute.xlu1 %1096 }
 0xefa   : > { %v1099_v9 = vadd.f32 %v1097_v3, %v1082_v1 }
 0xefc   : > { %1706 = vtanh.f32 %v1099_v9 }
 0xf09   : > { %v1707_v27 = vpop.eup %1706 }
 0xf0a   : > { %1103 = vrot.lane.b32.xlu0 %v1707_v27, %s1747_s26 }
 0xf7c   : > { %v1104_v29 = vpop.permute.xlu0 %1103 }
 0xf7d   : > { %v1106_v31 = vmul.f32 %v1104_v29, %v1101_v28 }
 0xf7f   : > { %v1108_v32 = vadd.f32 %v1107_v30, %v1106_v31 }
 0xf81   : > { %1110 = vrot.lane.b32.xlu1 %v1108_v32, %s1747_s26 }
 0xff3   : > { %v1111_v33 = vpop.permute.xlu1 %1110 }
 0xff4   : > { %1471 = vst.msk [vmem:[%s1897_s29 + $0x28] sm:$0xff] %vm275_vm0, %v1111_v33  ;;  %1631 = vmatmul.mubr.msk.f32.vlgmr.msra.gmra.mxu0 %vm275_vm0, %v1111_v33 }
0x10b4   : > { %v1194_v34 = vpop.f32.mrf.mxu0 }
0x10b5   : > { %v1195_v35 = vadd.f32 %v1876_v11, %v1194_v34 }
0x10b6   : > { %v1632_v36 = vpop.f32.mrf.mxu0 }
0x10b7   : > { %1208 = vrot.lane.b32.xlu0 %v1195_v35, %s1746_s25  ;;  %v1200_v38 = vadd.f32 %v1199_v37, %v1195_v35 }
0x10b9   : > { %v1474_v39 = vmul.f32 -1.442695, %v1200_v38 }
0x10bb   : > { %1708 = vpow2.f32 %v1474_v39 }
0x10c8   : > { %v1709_v40 = vpop.eup %1708 }
0x10c9   : > { %v1204_v41 = vadd.f32 1.0, %v1709_v40 }
0x10cb   : > { %1710 = vrcp.f32 %v1204_v41 }
0x10d8   : > { %v1711_v42 = vpop.eup %1710 }
0x10d9   : > { %v1218_v48 = vsub.f32 1.0, %v1711_v42  ;;  %v1224_v50 = vmul.f32 %v1711_v42, %v1108_v32 }
0x1129   : > { %v1209_v43 = vpop.permute.xlu0 %1208 }
0x112a   : > { %v1211_v44 = vmul.f32 %v1711_v42, %v1209_v43 }
0x112c   : > { %1213 = vrot.lane.b32.xlu1 %v1211_v44, %s1746_s25 }
0x119e   : > { %v1214_v45 = vpop.permute.xlu1 %1213 }
0x119f   : > { %v1216_v46 = vadd.f32 %v1214_v45, %v1199_v37 }
0x11a1   : > { %1712 = vtanh.f32 %v1216_v46 }
0x11ae   : > { %v1713_v47 = vpop.eup %1712 }
0x11af   : > { %1220 = vrot.lane.b32.xlu0 %v1713_v47, %s1747_s26 }
0x1221   : > { %v1221_v49 = vpop.permute.xlu0 %1220 }
0x1222   : > { %v1223_v51 = vmul.f32 %v1221_v49, %v1218_v48 }
0x1224   : > { %v1225_v52 = vadd.f32 %v1224_v50, %v1223_v51 }
0x1226   : > { %1227 = vrot.lane.b32.xlu1 %v1225_v52, %s1747_s26 }
0x1298   : > { %v1228_v53 = vpop.permute.xlu1 %1227 }
0x1299   : > { %1475 = vst.msk [vmem:[%s1897_s29 + $0x30] sm:$0xff] %vm275_vm0, %v1228_v53  ;;  %1642 = vmatmul.mubr.msk.f32.vlgmr.msra.gmra.mxu1 %vm275_vm0, %v1228_v53 }
0x1359   : > { %v1311_v54 = vpop.f32.mrf.mxu1 }
0x135a   : > { %v1312_v55 = vadd.f32 %v1876_v11, %v1311_v54 }
0x135b   : > { %v1643_v56 = vpop.f32.mrf.mxu1 }
0x135c   : > { %1325 = vrot.lane.b32.xlu0 %v1312_v55, %s1746_s25  ;;  %v1317_v58 = vadd.f32 %v1316_v57, %v1312_v55 }
0x135e   : > { %v1478_v59 = vmul.f32 -1.442695, %v1317_v58 }
0x1360   : > { %1714 = vpow2.f32 %v1478_v59 }
0x136d   : > { %v1715_v60 = vpop.eup %1714 }
0x136e   : > { %v1321_v61 = vadd.f32 1.0, %v1715_v60 }
0x1370   : > { %1716 = vrcp.f32 %v1321_v61 }
0x137d   : > { %v1717_v62 = vpop.eup %1716 }
0x137e   : > { %v1335_v7 = vsub.f32 1.0, %v1717_v62  ;;  %v1341_v10 = vmul.f32 %v1717_v62, %v1225_v52 }
0x13ce   : > { %v1326_v63 = vpop.permute.xlu0 %1325 }
0x13cf   : > { %v1328_v0 = vmul.f32 %v1717_v62, %v1326_v63 }
0x13d1   : > { %1330 = vrot.lane.b32.xlu1 %v1328_v0, %s1746_s25 }
0x1443   : > { %v1331_v2 = vpop.permute.xlu1 %1330 }
0x1444   : > { %v1333_v5 = vadd.f32 %v1331_v2, %v1316_v57 }
0x1446   : > { %1718 = vtanh.f32 %v1333_v5 }
0x1453   : > { %v1719_v11 = vpop.eup %1718 }
0x1454   : > { %1337 = vrot.lane.b32.xlu0 %v1719_v11, %s1747_s26 }
0x14c6   : > { %v1338_v8 = vpop.permute.xlu0 %1337 }
0x14c7   : > { %v1340_v12 = vmul.f32 %v1338_v8, %v1335_v7 }
0x14c9   : > { %v1342_v14 = vadd.f32 %v1341_v10, %v1340_v12 }
0x14cb   : > { %1344 = vrot.lane.b32.xlu1 %v1342_v14, %s1747_s26 }
0x153d   : > { %v1345_v15 = vpop.permute.xlu1 %1344 }
0x153e   : > { %1479 = vst.msk [vmem:[%s1897_s29 + $0x38] sm:$0xff] %vm275_vm0, %v1345_v15 }
0x153f PF: > { %s15_s20 = sadd.s32 1, %s1742_s20   ;;  %s2046_s18 = smov %s1738_s19 }
0x1540   : > { %p12_p5 = scmp.ge.s32.totalorder %s15_s20, 4   ;;  %s2047_s19 = smov %s2049_s21 }
0x1542   :  { %14 = sbr.rel (!%p12_p5) target bundleno = 2 (0x2), region = 84 }

// kernel: initial_tier_forward.12
= control target key start
LH: loop header
LB: loop body
LE: loop exit
PB: predicated region body
PF: predicated region fallthrough
CT: control target
= control target key end

     0   :  { %s4303_s29 = smov 0   ;;  %s4305_s30 = smov 0   ;;  %s4945_s0 = inlined_call_operand.vmem [shape: f32[2,8,8,32], index: 0, kind: input, shape index: {}]   ;;  %s4946_s1 = inlined_call_operand.vmem [shape: f32[2,8,8,32], index: 1, kind: input, shape index: {}]   ;;  %s4947_s2 = inlined_call_operand.vmem [shape: f32[32,96], index: 2, kind: input, shape index: {}]   ;;  %s4948_s3 = inlined_call_operand.vmem [shape: f32[32,96], index: 3, kind: input, shape index: {}]   ;;  %s4949_s4 = inlined_call_operand.vmem [shape: f32[1,96], index: 4, kind: input, shape index: {}]   ;;  %s4950_s5 = inlined_call_operand.vmem [shape: f32[1,96], index: 5, kind: input, shape index: {}]   ;;  %s4951_s6 = inlined_call_operand.vmem [shape: f32[32,96], index: 6, kind: input, shape index: {}]   ;;  %s4952_s7 = inlined_call_operand.vmem [shape: f32[32,96], index: 7, kind: input, shape index: {}]   ;;  %s4953_s8 = inlined_call_operand.vmem [shape: f32[1,96], index: 8, kind: input, shape index: {}]   ;;  %s4954_s9 = inlined_call_operand.vmem [shape: f32[1,96], index: 9, kind: input, shape index: {}]   ;;  %s4955_s10 = inlined_call_operand.vmem [shape: f32[32,32], index: 10, kind: input, shape index: {}]   ;;  %s4956_s11 = inlined_call_operand.vmem [shape: f32[32,32], index: 11, kind: input, shape index: {}]   ;;  %s4957_s12 = inlined_call_operand.vmem [shape: f32[32,32], index: 12, kind: input, shape index: {}]   ;;  %s4958_s13 = inlined_call_operand.vmem [shape: f32[1,32], index: 13, kind: input, shape index: {}]   ;;  %s4959_s14 = inlined_call_operand.vmem [shape: f32[2,8,8,32], index: 14, kind: output, shape index: {}]  }
   0x1   :  { %s4307_s15 = smov 0  }
   0x2 LB: > { %s36_s16 = sadd.s32 1, %s4216_s30  ;;  %p3535_p0 = scmp.ge.s32.totalorder %s4220_s15, 1  ;;  %s4220_s15 = sphi %s4307_s15, %s24_s15   ;;  %s4216_s30 = sphi %s4305_s30, %s4961_s30   ;;  %s4212_s29 = sphi %s4303_s29, %s4960_s29  }
   0x3   : > { %p38_p1 = scmp.ge.s32.totalorder %s36_s16, 2  ;;  %p450_p2 = scmp.lt.s32.totalorder %s4220_s15, 3 }
   0x5   : > { %s4963_s16 = smov (%p38_p1, %s36_s16), 0  ;;  %p451_p3 = pnand %p3535_p0, %p450_p2 }
   0x6   : > { %p514_p4 = scmp.lt.s32.totalorder (!%p451_p3), %s4212_s29, 1  ;;  %s4226_s27 = smov (!%p451_p3), 64  }
   0x7   : > { %454 = sbr.rel (%p451_p3) target bundleno = 5710 (0x164e), region = 76  ;;  %s4227_s17 = smov (!%p451_p3), 96  }
   0xc   : > { %v690_v0 = vld [vmem:[%s4947_s2 + $0x18] sm:$0xff]  ;;  %v689_v1 = vld [vmem:[%s4947_s2 + $0x10] sm:$0xff]  ;;  %v556_v2 = vlaneseq  ;;  %v4222_v3 = vmov 1983009808   ;;  %v688_v5 = vld [vmem:[%s4947_s2 + $0x8] sm:$0xff]  ;;  %s4965_s29 = smov (!%p514_p4, %s4212_s29), 1 }
   0xd   : > { %4052 = vmatprep.subr.mxu1 %v690_v0  ;;  %v554_v4 = vunpack.c.l.s4 %v4222_v3  ;;  %3776 = vmatprep.subr.mxu0 %v690_v0  ;;  %v4223_v8 = vmov 1934713408   ;;  %v687_v10 = vld [vmem:[%s4947_s2] sm:$0xff]  ;;  %s4333_s25 = sshll.u32 %s4965_s29, 6  ;;  %v840_v11 = vld [vmem:[%s4951_s6 + $0x18] sm:$0xff]  ;;  %v4224_v18 = vmov 0.0  }
   0xe   : > { %4056 = vmatpush3.msra.mxu1 %v690_v0  ;;  %3777 = vmatpush3.msra.mxu0 %v690_v0  ;;  %v557_v7 = vshrl.u32 %v556_v2, 7  ;;  %v618_v9 = vunpack.c.l.s4 %v4223_v8  ;;  %s4339_s28 = scalar_lea.vmem %s4945_s0, %s4333_s25  ;;  %vm698_vm0 = vcmask 261120   ;;  %v4376_v53 = vld [vmem:[%s4948_s3 + $0x18] sm:$0xff]  ;;  %v839_v54 = vld [vmem:[%s4951_s6 + $0x10] sm:$0xff]  ;;  %v838_v56 = vld [vmem:[%s4951_s6 + $0x8] sm:$0xff]  ;;  %vm4225_vm1 = vmmov 0   ;;  %s531_s24 = scalar_lea.vmem %s4946_s1, %s4333_s25 }
   0xf   : > { %4053 = vmatprep.subr.mxu1 %v689_v1  ;;  %v555_v6 = vunpack.c.0.s8 %v554_v4  ;;  %3778 = vmatprep.subr.mxu0 %v689_v1  ;;  %v4090_v14 = vld [vmem:[%s4339_s28] ss:$16 sps:$4 sm:$0xff]   ;;  %v4092_v15 = vld [vmem:[%s4339_s28 + $0x4] ss:$16 sps:$4 sm:$0xff]   ;;  %v4093_v16 = vld [vmem:[%s4339_s28 + $0x8] ss:$16 sps:$4 sm:$0xff]  }
  0x10   : > { %4057 = vmatpush3.msra.mxu1 %v689_v1  ;;  %3779 = vmatpush3.msra.mxu0 %v689_v1  ;;  %v619_v13 = vunpack.c.0.s8 %v618_v9  ;;  %v4095_v17 = vld [vmem:[%s4339_s28 + $0xc] ss:$16 sps:$4 sm:$0xff]   ;;  %v4096_v19 = vld [vmem:[%s4339_s28 + $0x20] ss:$16 sps:$4 sm:$0xff]   ;;  %v4098_v20 = vld [vmem:[%s4339_s28 + $0x24] ss:$16 sps:$4 sm:$0xff]  }
  0x11   : > { %4054 = vmatprep.subr.mxu1 %v688_v5  ;;  %3780 = vmatprep.subr.mxu0 %v688_v5  ;;  %v4344_v12 = vsub.s32 %v555_v6, %v557_v7  ;;  %v4099_v21 = vld [vmem:[%s4339_s28 + $0x28] ss:$16 sps:$4 sm:$0xff]   ;;  %v4101_v25 = vld [vmem:[%s4339_s28 + $0x2c] ss:$16 sps:$4 sm:$0xff]   ;;  %v837_v58 = vld [vmem:[%s4951_s6] sm:$0xff]  ;;  %vm828_vm2 = vcmask 785408  }
  0x12   : > { %4058 = vmatpush3.msra.mxu1 %v688_v5  ;;  %3781 = vmatpush3.msra.mxu0 %v688_v5  ;;  %v4358_v26 = vsub.s32 %v619_v13, %v557_v7  ;;  %v4398_v59 = vld [vmem:[%s4948_s3 + $0x10] sm:$0xff]  ;;  %v4405_v61 = vld [vmem:[%s4952_s7 + $0x18] sm:$0xff]  ;;  %v4419_v63 = vld [vmem:[%s4948_s3 + $0x8] sm:$0xff] }
  0x13   : > { %4055 = vmatprep.subr.mxu1 %v687_v10  ;;  %3782 = vmatprep.subr.mxu0 %v687_v10  ;;  %v559_v22 = vrot.slane %v4090_v14, %v4344_v12  ;;  %v566_v23 = vrot.slane %v4092_v15, %v4344_v12  ;;  %v582_v24 = vrot.slane %v4095_v17, %v4344_v12  ;;  %v4414_v62 = vld [vmem:[%s4952_s7 + $0x10] sm:$0xff]  ;;  %v4427_v0 = vld [vmem:[%s4952_s7 + $0x8] sm:$0xff]  ;;  %v4437_v1 = vld [vmem:[%s4952_s7] sm:$0xff] }
  0x14   : > { %4059 = vmatpush3.msra.mxu1 %v687_v10  ;;  %3783 = vmatpush3.msra.mxu0 %v687_v10  ;;  %v575_v27 = vrot.slane %v4093_v16, %v4344_v12  ;;  %v598_v28 = vrot.slane %v4098_v20, %v4344_v12  ;;  %v591_v29 = vrot.slane %v4096_v19, %v4344_v12  ;;  %v4442_v2 = vld [vmem:[%s4948_s3] sm:$0xff] }
  0x15   : > { %3796 = vmatprep.subr.mxu1 %v840_v11  ;;  %3816 = vmatprep.subr.mxu0 %v4224_v18  ;;  %v607_v30 = vrot.slane %v4099_v21, %v4344_v12  ;;  %v614_v31 = vrot.slane %v4101_v25, %v4344_v12  ;;  %v631_v32 = vcombine.low %v566_v23, %v582_v24  ;;  %v3542_v3 = vld [vmem:[%s4949_s4] ss:$0 sm:$0xff] }
  0x16   : > { %v632_v33 = vcombine.high %v566_v23, %v582_v24  ;;  %v615_v34 = vcombine.low %v559_v22, %v575_v27  ;;  %v616_v36 = vcombine.high %v559_v22, %v575_v27  ;;  %v3551_v16 = vld [vmem:[%s4953_s8] ss:$0 sm:$0xff] }
  0x17   : > { %v647_v35 = vcombine.low %v591_v29, %v607_v30  ;;  %v648_v37 = vcombine.high %v591_v29, %v607_v30  ;;  %v639_v38 = vrot.slane %v631_v32, %v4358_v26  ;;  %v663_v39 = vcombine.low %v598_v28, %v614_v31 }
  0x18   : > { %v664_v40 = vcombine.high %v598_v28, %v614_v31  ;;  %v646_v41 = vrot.slane %v632_v33, %v4358_v26  ;;  %v623_v42 = vrot.slane %v615_v34, %v4358_v26  ;;  %v630_v47 = vrot.slane %v616_v36, %v4358_v26 }
  0x19   : > { %v655_v43 = vrot.slane %v647_v35, %v4358_v26  ;;  %v671_v44 = vrot.slane %v663_v39, %v4358_v26  ;;  %v662_v48 = vrot.slane %v648_v37, %v4358_v26 }
  0x1a   : > { %v678_v45 = vrot.slane %v664_v40, %v4358_v26 }
  0x1b   : > { %v679_v46 = vcombine.low %v623_v42, %v655_v43  ;;  %v683_v49 = vcombine.low %v639_v38, %v671_v44  ;;  %v684_v50 = vcombine.high %v639_v38, %v671_v44  ;;  %v680_v52 = vcombine.high %v623_v42, %v655_v43  ;;  %v4510_v44 = vld [vmem:[%s4950_s5] ss:$0 sm:$0xff] }
  0x1c   : > { %v685_v51 = vcombine.low %v646_v41, %v678_v45  ;;  %v686_v55 = vcombine.high %v646_v41, %v678_v45  ;;  %v681_v57 = vcombine.low %v630_v47, %v662_v48  ;;  %v682_v60 = vcombine.high %v630_v47, %v662_v48  ;;  %v4504_v41 = vld [vmem:[%s4954_s9] ss:$0 sm:$0xff] }
  0x1d   : > { %3784 = vmatprep.mubr.msk.f32.mxu0 %vm698_vm0, %v679_v46  ;;  %3790 = vmatprep.mubr.msk.f32.mxu1 %vm698_vm0, %v683_v49 }
  0x1e   : > { %3785 = vmatmul.mubr.msk.f32.vlgmr.msra.gmra.mxu0 %vm698_vm0, %v680_v52  ;;  %3791 = vmatmul.mubr.msk.f32.vlgmr.msra.gmra.mxu1 %vm698_vm0, %v684_v50 }
  0x1f   : > { %3817 = vmatpush3.msra.mxu0 %v4376_v53  ;;  %3797 = vmatpush3.msra.mxu1 %v840_v11 }
  0x20   : > { %3793 = vmatprep.mubr.msk.f32.mxu1 %vm698_vm0, %v685_v51  ;;  %3798 = vmatprep.subr.mxu1 %v839_v54 }
  0x21   : > { %3818 = vmatprep.subr.mxu0 %v4224_v18  ;;  %3799 = vmatpush3.msra.mxu1 %v839_v54 }
  0x22   : > { %3787 = vmatprep.mubr.msk.f32.mxu0 %vm698_vm0, %v681_v57  ;;  %3800 = vmatprep.subr.mxu1 %v838_v56 }
  0x23   : > { %3794 = vmatmul.mubr.msk.f32.gmra.mxu1 %vm698_vm0, %v686_v55  ;;  %3819 = vmatpush3.msra.mxu0 %v4398_v59 }
  0x24   : > { %3801 = vmatpush3.msra.mxu1 %v838_v56  ;;  %3804 = vmatprep.mubr.msk.f32.mxu1 %vm698_vm0, %v679_v46 }
  0x25   : > { %3802 = vmatprep.subr.mxu1 %v837_v58  ;;  %3788 = vmatmul.mubr.msk.f32.gmra.mxu0 %vm698_vm0, %v682_v60 }
  0x26   : > { %3803 = vmatpush3.msra.mxu1 %v837_v58  ;;  %3820 = vmatprep.subr.mxu0 %v4224_v18 }
  0x27   : > { %3827 = vmatprep.subr.mxu1 %v4224_v18  ;;  %3805 = vmatmul.mubr.msk.f32.vlgmr.msra.gmra.mxu1 %vm698_vm0, %v680_v52 }
  0x28   : > { %3828 = vmatpush3.msra.mxu1 %v4405_v61  ;;  %3807 = vmatprep.mubr.msk.f32.mxu1 %vm698_vm0, %v681_v57 }
  0x29   : > { %3829 = vmatprep.subr.mxu1 %v4224_v18  ;;  %3821 = vmatpush3.msra.mxu0 %v4419_v63 }
  0x2a   : > { %3830 = vmatpush3.msra.mxu1 %v4414_v62  ;;  %3822 = vmatprep.subr.mxu0 %v4224_v18 }
  0x2b   : > { %3808 = vmatmul.mubr.msk.f32.gmra.mxu1 %vm698_vm0, %v682_v60  ;;  %3831 = vmatprep.subr.mxu1 %v4224_v18 }
  0x2c   : > { %3810 = vmatprep.mubr.msk.f32.mxu1 %vm698_vm0, %v683_v49  ;;  %3832 = vmatpush3.msra.mxu1 %v4427_v0 }
  0x2d   : > { %3833 = vmatprep.subr.mxu1 %v4224_v18  ;;  %3823 = vmatpush3.msra.mxu0 %v4442_v2 }
  0x2e   : > { %3834 = vmatpush3.msra.mxu1 %v4437_v1  ;;  %3824 = vmatprep.mubr.msk.f32.mxu0 %vm4225_vm1, %v4224_v18 }
  0x2f   : > { %3811 = vmatmul.mubr.msk.f32.gmra.mxu1 %vm698_vm0, %v684_v50  ;;  %3825 = vmatmul.mubr.f32.vlgmr.msra.gmra.mxu0 %v4224_v18 }
  0x30   : > { %3813 = vmatprep.mubr.msk.f32.mxu1 %vm698_vm0, %v685_v51  ;;  %3849 = vmatprep.subr.mxu1 %v4224_v18 }
  0x31   : > { %3838 = vmatprep.subr.mxu0 %v4224_v18  ;;  %3846 = vmatprep.mubr.msk.f32.mxu0 %vm4225_vm1, %v4224_v18 }
  0x32   : > { %3839 = vmatpush3.msra.mxu0 %v4376_v53 }
  0x33   : > { %3814 = vmatmul.mubr.msk.f32.gmra.mxu1 %vm698_vm0, %v686_v55  ;;  %3840 = vmatprep.subr.mxu0 %v4224_v18 }
  0x34   : > { %3835 = vmatprep.mubr.msk.f32.mxu1 %vm4225_vm1, %v4224_v18  ;;  %3841 = vmatpush3.msra.mxu0 %v4398_v59 }
  0x35   : > { %3842 = vmatprep.subr.mxu0 %v4224_v18 }
  0x36   : > { %3843 = vmatpush3.msra.mxu0 %v4419_v63 }
  0x37   : > { %3836 = vmatmul.mubr.f32.vlgmr.msra.gmra.mxu1 %v4224_v18  ;;  %3844 = vmatprep.subr.mxu0 %v4224_v18 }
  0x38   : > { %3850 = vmatpush3.msra.mxu1 %v4405_v61  ;;  %3857 = vmatprep.mubr.msk.f32.mxu1 %vm4225_vm1, %v4224_v18 }
  0x39   : > { %3851 = vmatprep.subr.mxu1 %v4224_v18  ;;  %3845 = vmatpush3.msra.mxu0 %v4442_v2 }
  0x3a   : > { %3852 = vmatpush3.msra.mxu1 %v4414_v62  ;;  %3860 = vmatprep.subr.mxu0 %v4224_v18 }
  0x3b   : > { %3853 = vmatprep.subr.mxu1 %v4224_v18 }
  0x3c   : > { %3854 = vmatpush3.msra.mxu1 %v4427_v0 }
  0x3d   : > { %3855 = vmatprep.subr.mxu1 %v4224_v18 }
  0x3e   : > { %3856 = vmatpush3.msra.mxu1 %v4437_v1 }
  0x3f   : > { %3871 = vmatprep.subr.mxu1 %v4224_v18 }
  0xde   : > { %v3786_v4 = vpop.f32.mrf.mxu0  ;;  %v3792_v5 = vpop.f32.mrf.mxu1 }
  0xdf   : > { %v795_v6 = vadd.f32 %v3786_v4, %v3542_v3  ;;  %v815_v7 = vadd.f32 %v3792_v5, %v3542_v3 }
  0xe0   : > { %v789_v8 = vpop.f32.mrf.mxu0  ;;  %v809_v9 = vpop.f32.mrf.mxu1 }
  0xe1   : > { %830 = vst.msk [vmem:[#allocation2 + $0x8] sm:$0xff] %vm828_vm2, %v795_v6  ;;  %v790_v10 = vadd.f32 %v3542_v3, %v789_v8  ;;  %834 = vst.msk [vmem:[#allocation2 + $0x28] sm:$0xff] %vm828_vm2, %v815_v7  ;;  %v810_v11 = vadd.f32 %v3542_v3, %v809_v9 }
  0xe3   : > { %v3795_v13 = vpop.f32.mrf.mxu1  ;;  %829 = vst.msk [vmem:[#allocation2] sm:$0xff] %vm828_vm2, %v790_v10  ;;  %833 = vst.msk [vmem:[#allocation2 + $0x20] sm:$0xff] %vm828_vm2, %v810_v11 }
  0xe4   : > { %v825_v14 = vadd.f32 %v3795_v13, %v3542_v3 }
  0xe5   : > { %v819_v15 = vpop.f32.mrf.mxu1  ;;  %v3789_v19 = vpop.f32.mrf.mxu0 }
  0xe6   : > { %836 = vst.msk [vmem:[#allocation2 + $0x38] sm:$0xff] %vm828_vm2, %v825_v14  ;;  %v820_v17 = vadd.f32 %v3542_v3, %v819_v15  ;;  %v805_v21 = vadd.f32 %v3789_v19, %v3542_v3 }
  0xe7   : > { %v3806_v20 = vpop.f32.mrf.mxu1  ;;  %v799_v23 = vpop.f32.mrf.mxu0 }
  0xe8   : > { %835 = vst.msk [vmem:[#allocation2 + $0x30] sm:$0xff] %vm828_vm2, %v820_v17  ;;  %v920_v22 = vadd.f32 %v3806_v20, %v3551_v16  ;;  %832 = vst.msk [vmem:[#allocation2 + $0x18] sm:$0xff] %vm828_vm2, %v805_v21  ;;  %v800_v25 = vadd.f32 %v3542_v3, %v799_v23 }
  0xe9   : > { %v914_v24 = vpop.f32.mrf.mxu1 }
  0xea   : > { %954 = vst.msk [vmem:[#allocation3 + $0x8] sm:$0xff] %vm828_vm2, %v920_v22  ;;  %v915_v27 = vadd.f32 %v3551_v16, %v914_v24  ;;  %831 = vst.msk [vmem:[#allocation2 + $0x10] sm:$0xff] %vm828_vm2, %v800_v25  ;;  %v1045_v50 = vld [vmem:[#allocation2] sm:$0xff] }
  0xeb   : > { %v3809_v28 = vpop.f32.mrf.mxu1 }
  0xec   : > { %953 = vst.msk [vmem:[#allocation3] sm:$0xff] %vm828_vm2, %v915_v27  ;;  %v930_v29 = vadd.f32 %v3809_v28, %v3551_v16 }
  0xed   : > { %v924_v30 = vpop.f32.mrf.mxu1 }
  0xee   : > { %956 = vst.msk [vmem:[#allocation3 + $0x18] sm:$0xff] %vm828_vm2, %v930_v29  ;;  %v925_v31 = vadd.f32 %v3551_v16, %v924_v30 }
  0xef   : > { %v3812_v32 = vpop.f32.mrf.mxu1  ;;  %v1041_v34 = vpop.f32.mrf.mxu0 }
  0xf0   : > { %955 = vst.msk [vmem:[#allocation3 + $0x10] sm:$0xff] %vm828_vm2, %v925_v31  ;;  %v940_v33 = vadd.f32 %v3812_v32, %v3551_v16  ;;  %v1042_v47 = vadd.f32 %v4510_v44, %v1041_v34 }
  0xf1   : > { %v934_v35 = vpop.f32.mrf.mxu1  ;;  %v3826_v37 = vpop.f32.mrf.mxu0 }
  0xf2   : > { %958 = vst.msk [vmem:[#allocation3 + $0x28] sm:$0xff] %vm828_vm2, %v940_v33  ;;  %v935_v36 = vadd.f32 %v3551_v16, %v934_v35  ;;  %v1046_v52 = vadd.f32 %v1045_v50, %v1042_v47  ;;  %v1276_v37 = vld [vmem:[#allocation2 + $0x8] sm:$0xff] }
  0xf3   : > { %v3815_v38 = vpop.f32.mrf.mxu1 }
  0xf4   : > { %957 = vst.msk [vmem:[#allocation3 + $0x20] sm:$0xff] %vm828_vm2, %v935_v36  ;;  %v950_v39 = vadd.f32 %v3815_v38, %v3551_v16  ;;  %v3561_v54 = vmul.f32 -1.442695, %v1046_v52 }
  0xf5   : > { %v944_v40 = vpop.f32.mrf.mxu1 }
  0xf6   : > { %960 = vst.msk [vmem:[#allocation3 + $0x38] sm:$0xff] %vm828_vm2, %v950_v39  ;;  %v945_v42 = vadd.f32 %v3551_v16, %v944_v40 }
  0xf7   : > { %v1154_v43 = vpop.f32.mrf.mxu1 }
  0xf8   : > { %959 = vst.msk [vmem:[#allocation3 + $0x30] sm:$0xff] %vm828_vm2, %v945_v42  ;;  %v1155_v45 = vadd.f32 %v4504_v41, %v1154_v43 }
  0xf9   : > { %v3837_v46 = vpop.f32.mrf.mxu1 }
  0xfa   : > { %1168 = vrot.lane.b32.xlu0 %v1155_v45, %s4226_s27 }
  0xfd   : > { %v1159_v48 = vld [vmem:[#allocation3 + $0x38] sm:$0xff] }
  0xfe   : > { %1054 = vrot.lane.b32.xlu0 %v1042_v47, %s4226_s27  ;;  %v1160_v49 = vadd.f32 %v1159_v48, %v1155_v45 }
  0xff   : > { %v1393_v35 = vld [vmem:[#allocation3 + $0x30] sm:$0xff] }
 0x100   : > { %v3563_v51 = vmul.f32 -1.442695, %v1160_v49 }
 0x102   : > { %4102 = vpow2.f32 %v3563_v51 }
 0x103   : > { %4104 = vpow2.f32 %v3561_v54 }
 0x10f   : > { %v4103_v55 = vpop.eup %4102 }
 0x110   : > { %v1164_v56 = vadd.f32 1.0, %v4103_v55  ;;  %v4105_v57 = vpop.eup %4104 }
 0x111   : > { %v1050_v58 = vadd.f32 1.0, %v4105_v57 }
 0x112   : > { %4106 = vrcp.f32 %v1164_v56 }
 0x113   : > { %4108 = vrcp.f32 %v1050_v58 }
 0x11f   : > { %v4107_v60 = vpop.eup %4106 }
 0x120   : > { %v4109_v5 = vpop.eup %4108  ;;  %v1178_v15 = vsub.f32 1.0, %v4107_v60  ;;  %v1184_v17 = vmul.f32 0.0, %v4107_v60 }
 0x121   : > { %v1064_v21 = vsub.f32 1.0, %v4109_v5  ;;  %v1070_v23 = vmul.f32 0.0, %v4109_v5 }
 0x16c   : > { %v1169_v3 = vpop.permute.xlu0 %1168 }
 0x16d   : > { %v1171_v4 = vmul.f32 %v4107_v60, %v1169_v3 }
 0x16f   : > { %1173 = vrot.lane.b32.xlu1 %v1171_v4, %s4226_s27 }
 0x170   : > { %v1055_v6 = vpop.permute.xlu0 %1054 }
 0x171   : > { %v1057_v7 = vmul.f32 %v4109_v5, %v1055_v6 }
 0x173   : > { %1059 = vrot.lane.b32.xlu1 %v1057_v7, %s4226_s27 }
 0x1e1   : > { %v1174_v8 = vpop.permute.xlu1 %1173 }
 0x1e2   : > { %v1176_v9 = vadd.f32 %v1174_v8, %v1159_v48 }
 0x1e4   : > { %4110 = vtanh.f32 %v1176_v9 }
 0x1e5   : > { %v1060_v10 = vpop.permute.xlu1 %1059 }
 0x1e6   : > { %v1062_v11 = vadd.f32 %v1060_v10, %v1045_v50 }
 0x1e8   : > { %4112 = vtanh.f32 %v1062_v11 }
 0x1f1   : > { %v4111_v13 = vpop.eup %4110 }
 0x1f2   : > { %1180 = vrot.lane.b32.xlu0 %v4111_v13, %s4227_s17 }
 0x1f5   : > { %v4113_v14 = vpop.eup %4112 }
 0x1f6   : > { %1066 = vrot.lane.b32.xlu1 %v4113_v14, %s4227_s17 }
 0x264   : > { %v1181_v16 = vpop.permute.xlu0 %1180 }
 0x265   : > { %v1183_v19 = vmul.f32 %v1181_v16, %v1178_v15 }
 0x267   : > { %v4521_v20 = vadd.f32 %v1184_v17, %v1183_v19 }
 0x268   : > { %v1067_v22 = vpop.permute.xlu1 %1066 }
 0x269   : > { %v1069_v24 = vmul.f32 %v1067_v22, %v1064_v21  ;;  %1187 = vrot.lane.b32.xlu0 %v4521_v20, %s4227_s17 }
 0x26b   : > { %v4525_v25 = vadd.f32 %v1070_v23, %v1069_v24  ;;  %v1627_v23 = vld [vmem:[#allocation3 + $0x28] sm:$0xff] }
 0x26d   : > { %1073 = vrot.lane.b32.xlu1 %v4525_v25, %s4227_s17 }
 0x2db   : > { %v1188_v27 = vpop.permute.xlu0 %1187 }
 0x2dc   : > { %1191 = vst.msk [vmem:[#allocation5 + $0x38] sm:$0xff] %vm698_vm0, %v1188_v27  ;;  %3858 = vmatmul.mubr.msk.f32.vlgmr.msra.gmra.mxu1 %vm698_vm0, %v1188_v27 }
 0x2dd   : > { %3872 = vmatpush3.msra.mxu1 %v4405_v61  ;;  %3879 = vmatprep.mubr.msk.f32.mxu1 %vm4225_vm1, %v4224_v18 }
 0x2de   : > { %3873 = vmatprep.subr.mxu1 %v4224_v18 }
 0x2df   : > { %v1074_v28 = vpop.permute.xlu1 %1073  ;;  %3874 = vmatpush3.msra.mxu1 %v4414_v62 }
 0x2e0   : > { %1076 = vst.msk [vmem:[#allocation4] sm:$0xff] %vm698_vm0, %v1074_v28  ;;  %3847 = vmatmul.mubr.msk.f32.vlgmr.msra.gmra.mxu0 %vm698_vm0, %v1074_v28  ;;  %3875 = vmatprep.subr.mxu1 %v4224_v18 }
 0x2e1   : > { %3861 = vmatpush3.msra.mxu0 %v4376_v53  ;;  %3876 = vmatpush3.msra.mxu1 %v4427_v0 }
 0x2e2   : > { %3862 = vmatprep.subr.mxu0 %v4224_v18  ;;  %3877 = vmatprep.subr.mxu1 %v4224_v18 }
 0x2e3   : > { %3878 = vmatpush3.msra.mxu1 %v4437_v1  ;;  %3863 = vmatpush3.msra.mxu0 %v4398_v59 }
 0x2e4   : > { %3864 = vmatprep.subr.mxu0 %v4224_v18  ;;  %3868 = vmatprep.mubr.msk.f32.mxu0 %vm4225_vm1, %v4224_v18 }
 0x2e5   : > { %3865 = vmatpush3.msra.mxu0 %v4419_v63  ;;  %3893 = vmatprep.subr.mxu1 %v4224_v18 }
 0x2e6   : > { %3866 = vmatprep.subr.mxu0 %v4224_v18 }
 0x2e7   : > { %3867 = vmatpush3.msra.mxu0 %v4442_v2 }
 0x2e8   : > { %3882 = vmatprep.subr.mxu0 %v4224_v18 }
 0x39c   : > { %v1388_v29 = vpop.f32.mrf.mxu1 }
 0x39d   : > { %v1389_v30 = vadd.f32 %v4504_v41, %v1388_v29 }
 0x39e   : > { %v3859_v31 = vpop.f32.mrf.mxu1 }
 0x39f   : > { %1402 = vrot.lane.b32.xlu0 %v1389_v30, %s4226_s27  ;;  %v1394_v36 = vadd.f32 %v1393_v35, %v1389_v30 }
 0x3a0   : > { %v1271_v32 = vpop.f32.mrf.mxu0 }
 0x3a1   : > { %v1272_v33 = vadd.f32 %v4510_v44, %v1271_v32  ;;  %v3569_v38 = vmul.f32 -1.442695, %v1394_v36 }
 0x3a2   : > { %v3848_v34 = vpop.f32.mrf.mxu0 }
 0x3a3   : > { %1285 = vrot.lane.b32.xlu1 %v1272_v33, %s4226_s27  ;;  %v1277_v39 = vadd.f32 %v1276_v37, %v1272_v33  ;;  %4114 = vpow2.f32 %v3569_v38 }
 0x3a5   : > { %v3566_v40 = vmul.f32 -1.442695, %v1277_v39 }
 0x3a7   : > { %4116 = vpow2.f32 %v3566_v40 }
 0x3b0   : > { %v4115_v42 = vpop.eup %4114 }
 0x3b1   : > { %v1398_v43 = vadd.f32 1.0, %v4115_v42 }
 0x3b3   : > { %4118 = vrcp.f32 %v1398_v43 }
 0x3b4   : > { %v4117_v45 = vpop.eup %4116 }
 0x3b5   : > { %v1281_v46 = vadd.f32 1.0, %v4117_v45 }
 0x3b7   : > { %4120 = vrcp.f32 %v1281_v46 }
 0x3c0   : > { %v4119_v47 = vpop.eup %4118 }
 0x3c1   : > { %v1412_v3 = vsub.f32 1.0, %v4119_v47  ;;  %v1418_v5 = vmul.f32 %v4119_v47, %v4521_v20 }
 0x3c4   : > { %v4121_v50 = vpop.eup %4120 }
 0x3c5   : > { %v1295_v8 = vsub.f32 1.0, %v4121_v50  ;;  %v1301_v10 = vmul.f32 %v4121_v50, %v4525_v25  ;;  %v1510_v25 = vld [vmem:[#allocation2 + $0x10] sm:$0xff] }
 0x411   : > { %v1403_v48 = vpop.permute.xlu0 %1402 }
 0x412   : > { %v1405_v49 = vmul.f32 %v4119_v47, %v1403_v48 }
 0x414   : > { %1407 = vrot.lane.b32.xlu0 %v1405_v49, %s4226_s27 }
 0x415   : > { %v1286_v51 = vpop.permute.xlu1 %1285 }
 0x416   : > { %v1288_v52 = vmul.f32 %v4121_v50, %v1286_v51 }
 0x418   : > { %1290 = vrot.lane.b32.xlu1 %v1288_v52, %s4226_s27 }
 0x486   : > { %v1408_v54 = vpop.permute.xlu0 %1407 }
 0x487   : > { %v1410_v55 = vadd.f32 %v1408_v54, %v1393_v35 }
 0x489   : > { %4122 = vtanh.f32 %v1410_v55 }
 0x48a   : > { %v1291_v56 = vpop.permute.xlu1 %1290 }
 0x48b   : > { %v1293_v57 = vadd.f32 %v1291_v56, %v1276_v37 }
 0x48d   : > { %4124 = vtanh.f32 %v1293_v57 }
 0x496   : > { %v4123_v58 = vpop.eup %4122 }
 0x497   : > { %1414 = vrot.lane.b32.xlu0 %v4123_v58, %s4227_s17 }
 0x49a   : > { %v4125_v60 = vpop.eup %4124 }
 0x49b   : > { %1297 = vrot.lane.b32.xlu1 %v4125_v60, %s4227_s17 }
 0x509   : > { %v1415_v4 = vpop.permute.xlu0 %1414 }
 0x50a   : > { %v1417_v6 = vmul.f32 %v1415_v4, %v1412_v3 }
 0x50c   : > { %v4562_v7 = vadd.f32 %v1418_v5, %v1417_v6 }
 0x50d   : > { %v1298_v9 = vpop.permute.xlu1 %1297 }
 0x50e   : > { %v1300_v11 = vmul.f32 %v1298_v9, %v1295_v8  ;;  %1421 = vrot.lane.b32.xlu0 %v4562_v7, %s4227_s17 }
 0x510   : > { %v4567_v13 = vadd.f32 %v1301_v10, %v1300_v11  ;;  %v1861_v10 = vld [vmem:[#allocation3 + $0x20] sm:$0xff] }
 0x512   : > { %1304 = vrot.lane.b32.xlu1 %v4567_v13, %s4227_s17 }
 0x580   : > { %v1422_v14 = vpop.permute.xlu0 %1421 }
 0x581   : > { %1425 = vst.msk [vmem:[#allocation5 + $0x30] sm:$0xff] %vm698_vm0, %v1422_v14  ;;  %3880 = vmatmul.mubr.msk.f32.vlgmr.msra.gmra.mxu1 %vm698_vm0, %v1422_v14 }
 0x582   : > { %3894 = vmatpush3.msra.mxu1 %v4405_v61  ;;  %3901 = vmatprep.mubr.msk.f32.mxu1 %vm4225_vm1, %v4224_v18 }
 0x583   : > { %3895 = vmatprep.subr.mxu1 %v4224_v18 }
 0x584   : > { %v1305_v15 = vpop.permute.xlu1 %1304  ;;  %3896 = vmatpush3.msra.mxu1 %v4414_v62 }
 0x585   : > { %1308 = vst.msk [vmem:[#allocation4 + $0x8] sm:$0xff] %vm698_vm0, %v1305_v15  ;;  %3869 = vmatmul.mubr.msk.f32.vlgmr.msra.gmra.mxu0 %vm698_vm0, %v1305_v15  ;;  %3897 = vmatprep.subr.mxu1 %v4224_v18 }
 0x586   : > { %3883 = vmatpush3.msra.mxu0 %v4376_v53  ;;  %3898 = vmatpush3.msra.mxu1 %v4427_v0 }
 0x587   : > { %3884 = vmatprep.subr.mxu0 %v4224_v18  ;;  %3899 = vmatprep.subr.mxu1 %v4224_v18 }
 0x588   : > { %3900 = vmatpush3.msra.mxu1 %v4437_v1  ;;  %3885 = vmatpush3.msra.mxu0 %v4398_v59 }
 0x589   : > { %3886 = vmatprep.subr.mxu0 %v4224_v18  ;;  %3890 = vmatprep.mubr.msk.f32.mxu0 %vm4225_vm1, %v4224_v18 }
 0x58a   : > { %3887 = vmatpush3.msra.mxu0 %v4419_v63  ;;  %3915 = vmatprep.subr.mxu1 %v4224_v18 }
 0x58b   : > { %3888 = vmatprep.subr.mxu0 %v4224_v18 }
 0x58c   : > { %3889 = vmatpush3.msra.mxu0 %v4442_v2 }
 0x58d   : > { %3904 = vmatprep.subr.mxu0 %v4224_v18 }
 0x641   : > { %v1622_v16 = vpop.f32.mrf.mxu1 }
 0x642   : > { %v1623_v17 = vadd.f32 %v4504_v41, %v1622_v16 }
 0x643   : > { %v3881_v19 = vpop.f32.mrf.mxu1 }
 0x644   : > { %1636 = vrot.lane.b32.xlu0 %v1623_v17, %s4226_s27  ;;  %v1628_v24 = vadd.f32 %v1627_v23, %v1623_v17 }
 0x645   : > { %v1505_v20 = vpop.f32.mrf.mxu0 }
 0x646   : > { %v1506_v21 = vadd.f32 %v4510_v44, %v1505_v20  ;;  %v3575_v27 = vmul.f32 -1.442695, %v1628_v24 }
 0x647   : > { %v3870_v22 = vpop.f32.mrf.mxu0 }
 0x648   : > { %1519 = vrot.lane.b32.xlu1 %v1506_v21, %s4226_s27  ;;  %v1511_v28 = vadd.f32 %v1510_v25, %v1506_v21  ;;  %4126 = vpow2.f32 %v3575_v27 }
 0x64a   : > { %v3572_v29 = vmul.f32 -1.442695, %v1511_v28 }
 0x64c   : > { %4128 = vpow2.f32 %v3572_v29 }
 0x655   : > { %v4127_v30 = vpop.eup %4126 }
 0x656   : > { %v1632_v31 = vadd.f32 1.0, %v4127_v30 }
 0x658   : > { %4130 = vrcp.f32 %v1632_v31 }
 0x659   : > { %v4129_v32 = vpop.eup %4128 }
 0x65a   : > { %v1515_v33 = vadd.f32 1.0, %v4129_v32 }
 0x65c   : > { %4132 = vrcp.f32 %v1515_v33 }
 0x665   : > { %v4131_v34 = vpop.eup %4130 }
 0x666   : > { %v1646_v48 = vsub.f32 1.0, %v4131_v34  ;;  %v1652_v50 = vmul.f32 %v4131_v34, %v4562_v7 }
 0x669   : > { %v4133_v37 = vpop.eup %4132 }
 0x66a   : > { %v1529_v54 = vsub.f32 1.0, %v4133_v37  ;;  %v1535_v56 = vmul.f32 %v4133_v37, %v4567_v13  ;;  %v1744_v13 = vld [vmem:[#allocation2 + $0x18] sm:$0xff] }
 0x6b6   : > { %v1637_v35 = vpop.permute.xlu0 %1636 }
 0x6b7   : > { %v1639_v36 = vmul.f32 %v4131_v34, %v1637_v35 }
 0x6b9   : > { %1641 = vrot.lane.b32.xlu0 %v1639_v36, %s4226_s27 }
 0x6ba   : > { %v1520_v38 = vpop.permute.xlu1 %1519 }
 0x6bb   : > { %v1522_v39 = vmul.f32 %v4133_v37, %v1520_v38 }
 0x6bd   : > { %1524 = vrot.lane.b32.xlu1 %v1522_v39, %s4226_s27 }
 0x72b   : > { %v1642_v40 = vpop.permute.xlu0 %1641 }
 0x72c   : > { %v1644_v42 = vadd.f32 %v1642_v40, %v1627_v23 }
 0x72e   : > { %4134 = vtanh.f32 %v1644_v42 }
 0x72f   : > { %v1525_v43 = vpop.permute.xlu1 %1524 }
 0x730   : > { %v1527_v45 = vadd.f32 %v1525_v43, %v1510_v25 }
 0x732   : > { %4136 = vtanh.f32 %v1527_v45 }
 0x73b   : > { %v4135_v46 = vpop.eup %4134 }
 0x73c   : > { %1648 = vrot.lane.b32.xlu0 %v4135_v46, %s4227_s17 }
 0x73f   : > { %v4137_v47 = vpop.eup %4136 }
 0x740   : > { %1531 = vrot.lane.b32.xlu1 %v4137_v47, %s4227_s17 }
 0x7ae   : > { %v1649_v49 = vpop.permute.xlu0 %1648 }
 0x7af   : > { %v1651_v51 = vmul.f32 %v1649_v49, %v1646_v48 }
 0x7b1   : > { %v4604_v52 = vadd.f32 %v1652_v50, %v1651_v51  ;;  %v1978_v50 = vld [vmem:[#allocation2 + $0x20] sm:$0xff] }
 0x7b2   : > { %v1532_v55 = vpop.permute.xlu1 %1531 }
 0x7b3   : > { %v1534_v57 = vmul.f32 %v1532_v55, %v1529_v54  ;;  %1655 = vrot.lane.b32.xlu0 %v4604_v52, %s4227_s17 }
 0x7b5   : > { %v4609_v58 = vadd.f32 %v1535_v56, %v1534_v57 }
 0x7b7   : > { %1538 = vrot.lane.b32.xlu1 %v4609_v58, %s4227_s17 }
 0x825   : > { %v1656_v60 = vpop.permute.xlu0 %1655 }
 0x826   : > { %1659 = vst.msk [vmem:[#allocation5 + $0x28] sm:$0xff] %vm698_vm0, %v1656_v60  ;;  %3902 = vmatmul.mubr.msk.f32.vlgmr.msra.gmra.mxu1 %vm698_vm0, %v1656_v60 }
 0x827   : > { %3916 = vmatpush3.msra.mxu1 %v4405_v61  ;;  %3923 = vmatprep.mubr.msk.f32.mxu1 %vm4225_vm1, %v4224_v18 }
 0x828   : > { %3917 = vmatprep.subr.mxu1 %v4224_v18 }
 0x829   : > { %v1539_v3 = vpop.permute.xlu1 %1538  ;;  %3918 = vmatpush3.msra.mxu1 %v4414_v62 }
 0x82a   : > { %1542 = vst.msk [vmem:[#allocation4 + $0x10] sm:$0xff] %vm698_vm0, %v1539_v3  ;;  %3891 = vmatmul.mubr.msk.f32.vlgmr.msra.gmra.mxu0 %vm698_vm0, %v1539_v3  ;;  %3919 = vmatprep.subr.mxu1 %v4224_v18 }
 0x82b   : > { %3905 = vmatpush3.msra.mxu0 %v4376_v53  ;;  %3920 = vmatpush3.msra.mxu1 %v4427_v0 }
 0x82c   : > { %3906 = vmatprep.subr.mxu0 %v4224_v18  ;;  %3921 = vmatprep.subr.mxu1 %v4224_v18 }
 0x82d   : > { %3922 = vmatpush3.msra.mxu1 %v4437_v1  ;;  %3907 = vmatpush3.msra.mxu0 %v4398_v59 }
 0x82e   : > { %3908 = vmatprep.subr.mxu0 %v4224_v18  ;;  %3912 = vmatprep.mubr.msk.f32.mxu0 %vm4225_vm1, %v4224_v18 }
 0x82f   : > { %3909 = vmatpush3.msra.mxu0 %v4419_v63  ;;  %3937 = vmatprep.subr.mxu1 %v4224_v18 }
 0x830   : > { %3910 = vmatprep.subr.mxu0 %v4224_v18 }
 0x831   : > { %3911 = vmatpush3.msra.mxu0 %v4442_v2 }
 0x832   : > { %3926 = vmatprep.subr.mxu0 %v4224_v18 }
 0x8e6   : > { %v1856_v4 = vpop.f32.mrf.mxu1 }
 0x8e7   : > { %v1857_v5 = vadd.f32 %v4504_v41, %v1856_v4 }
 0x8e8   : > { %v3903_v6 = vpop.f32.mrf.mxu1 }
 0x8e9   : > { %1870 = vrot.lane.b32.xlu0 %v1857_v5, %s4226_s27  ;;  %v1862_v11 = vadd.f32 %v1861_v10, %v1857_v5 }
 0x8ea   : > { %v1739_v7 = vpop.f32.mrf.mxu0 }
 0x8eb   : > { %v1740_v8 = vadd.f32 %v4510_v44, %v1739_v7  ;;  %v3581_v14 = vmul.f32 -1.442695, %v1862_v11 }
 0x8ec   : > { %v3892_v9 = vpop.f32.mrf.mxu0 }
 0x8ed   : > { %1753 = vrot.lane.b32.xlu1 %v1740_v8, %s4226_s27  ;;  %v1745_v15 = vadd.f32 %v1744_v13, %v1740_v8  ;;  %4138 = vpow2.f32 %v3581_v14 }
 0x8ef   : > { %v3578_v16 = vmul.f32 -1.442695, %v1745_v15 }
 0x8f1   : > { %4140 = vpow2.f32 %v3578_v16 }
 0x8fa   : > { %v4139_v17 = vpop.eup %4138 }
 0x8fb   : > { %v1866_v19 = vadd.f32 1.0, %v4139_v17 }
 0x8fd   : > { %4142 = vrcp.f32 %v1866_v19 }
 0x8fe   : > { %v4141_v20 = vpop.eup %4140 }
 0x8ff   : > { %v1749_v21 = vadd.f32 1.0, %v4141_v20 }
 0x901   : > { %4144 = vrcp.f32 %v1749_v21 }
 0x90a   : > { %v4143_v22 = vpop.eup %4142 }
 0x90b   : > { %v1880_v35 = vsub.f32 1.0, %v4143_v22  ;;  %v1886_v37 = vmul.f32 %v4143_v22, %v4604_v52 }
 0x90e   : > { %v4145_v25 = vpop.eup %4144 }
 0x90f   : > { %v1763_v40 = vsub.f32 1.0, %v4145_v25  ;;  %v1769_v43 = vmul.f32 %v4145_v25, %v4609_v58 }
 0x95b   : > { %v1871_v23 = vpop.permute.xlu0 %1870 }
 0x95c   : > { %v1873_v24 = vmul.f32 %v4143_v22, %v1871_v23 }
 0x95e   : > { %1875 = vrot.lane.b32.xlu0 %v1873_v24, %s4226_s27 }
 0x95f   : > { %v1754_v27 = vpop.permute.xlu1 %1753 }
 0x960   : > { %v1756_v28 = vmul.f32 %v4145_v25, %v1754_v27 }
 0x962   : > { %1758 = vrot.lane.b32.xlu1 %v1756_v28, %s4226_s27 }
 0x9d0   : > { %v1876_v29 = vpop.permute.xlu0 %1875 }
 0x9d1   : > { %v1878_v30 = vadd.f32 %v1876_v29, %v1861_v10 }
 0x9d3   : > { %4146 = vtanh.f32 %v1878_v30 }
 0x9d4   : > { %v1759_v31 = vpop.permute.xlu1 %1758 }
 0x9d5   : > { %v1761_v32 = vadd.f32 %v1759_v31, %v1744_v13 }
 0x9d7   : > { %4148 = vtanh.f32 %v1761_v32 }
 0x9e0   : > { %v4147_v33 = vpop.eup %4146 }
 0x9e1   : > { %1882 = vrot.lane.b32.xlu0 %v4147_v33, %s4227_s17 }
 0x9e4   : > { %v4149_v34 = vpop.eup %4148 }
 0x9e5   : > { %1765 = vrot.lane.b32.xlu1 %v4149_v34, %s4227_s17  ;;  %v2329_v34 = vld [vmem:[#allocation3 + $0x10] sm:$0xff] }
 0xa53   : > { %v1883_v36 = vpop.permute.xlu0 %1882 }
 0xa54   : > { %v1885_v38 = vmul.f32 %v1883_v36, %v1880_v35  ;;  %v2212_v36 = vld [vmem:[#allocation2 + $0x28] sm:$0xff] }
 0xa56   : > { %v4646_v39 = vadd.f32 %v1886_v37, %v1885_v38 }
 0xa57   : > { %v1766_v42 = vpop.permute.xlu1 %1765 }
 0xa58   : > { %v1768_v45 = vmul.f32 %v1766_v42, %v1763_v40  ;;  %1889 = vrot.lane.b32.xlu0 %v4646_v39, %s4227_s17 }
 0xa5a   : > { %v4651_v46 = vadd.f32 %v1769_v43, %v1768_v45 }
 0xa5c   : > { %1772 = vrot.lane.b32.xlu1 %v4651_v46, %s4227_s17 }
 0xaca   : > { %v1890_v47 = vpop.permute.xlu0 %1889 }
 0xacb   : > { %1893 = vst.msk [vmem:[#allocation5 + $0x20] sm:$0xff] %vm698_vm0, %v1890_v47  ;;  %3924 = vmatmul.mubr.msk.f32.vlgmr.msra.gmra.mxu1 %vm698_vm0, %v1890_v47 }
 0xacc   : > { %3938 = vmatpush3.msra.mxu1 %v4405_v61  ;;  %3945 = vmatprep.mubr.msk.f32.mxu1 %vm4225_vm1, %v4224_v18 }
 0xacd   : > { %3939 = vmatprep.subr.mxu1 %v4224_v18 }
 0xace   : > { %v1773_v48 = vpop.permute.xlu1 %1772  ;;  %3940 = vmatpush3.msra.mxu1 %v4414_v62 }
 0xacf   : > { %1776 = vst.msk [vmem:[#allocation4 + $0x18] sm:$0xff] %vm698_vm0, %v1773_v48  ;;  %3913 = vmatmul.mubr.msk.f32.vlgmr.msra.gmra.mxu0 %vm698_vm0, %v1773_v48  ;;  %3941 = vmatprep.subr.mxu1 %v4224_v18 }
 0xad0   : > { %3927 = vmatpush3.msra.mxu0 %v4376_v53  ;;  %3942 = vmatpush3.msra.mxu1 %v4427_v0 }
 0xad1   : > { %3928 = vmatprep.subr.mxu0 %v4224_v18  ;;  %3943 = vmatprep.subr.mxu1 %v4224_v18 }
 0xad2   : > { %3944 = vmatpush3.msra.mxu1 %v4437_v1  ;;  %3929 = vmatpush3.msra.mxu0 %v4398_v59 }
 0xad3   : > { %3930 = vmatprep.subr.mxu0 %v4224_v18  ;;  %3934 = vmatprep.mubr.msk.f32.mxu0 %vm4225_vm1, %v4224_v18 }
 0xad4   : > { %3931 = vmatpush3.msra.mxu0 %v4419_v63  ;;  %3959 = vmatprep.subr.mxu1 %v4224_v18  ;;  %v2095_v63 = vld [vmem:[#allocation3 + $0x18] sm:$0xff] }
 0xad5   : > { %3932 = vmatprep.subr.mxu0 %v4224_v18 }
 0xad6   : > { %3933 = vmatpush3.msra.mxu0 %v4442_v2 }
 0xad7   : > { %3948 = vmatprep.subr.mxu0 %v4224_v18 }
 0xb8b   : > { %v2090_v53 = vpop.f32.mrf.mxu1 }
 0xb8c   : > { %v2091_v61 = vadd.f32 %v4504_v41, %v2090_v53 }
 0xb8d   : > { %v3925_v62 = vpop.f32.mrf.mxu1 }
 0xb8e   : > { %2104 = vrot.lane.b32.xlu0 %v2091_v61, %s4226_s27  ;;  %v2096_v49 = vadd.f32 %v2095_v63, %v2091_v61 }
 0xb8f   : > { %v1973_v59 = vpop.f32.mrf.mxu0 }
 0xb90   : > { %v1974_v0 = vadd.f32 %v4510_v44, %v1973_v59  ;;  %v3587_v51 = vmul.f32 -1.442695, %v2096_v49  ;;  %v2482_v49 = vld [vmem:[%s4952_s7 + $0x18] sm:$0xff] }
 0xb91   : > { %v3914_v1 = vpop.f32.mrf.mxu0 }
 0xb92   : > { %1987 = vrot.lane.b32.xlu1 %v1974_v0, %s4226_s27  ;;  %v1979_v52 = vadd.f32 %v1978_v50, %v1974_v0  ;;  %4150 = vpow2.f32 %v3587_v51  ;;  %v2365_v51 = vld [vmem:[%s4948_s3 + $0x18] sm:$0xff] }
 0xb94   : > { %v3584_v2 = vmul.f32 -1.442695, %v1979_v52  ;;  %v2480_v52 = vld [vmem:[%s4952_s7 + $0x8] sm:$0xff] }
 0xb96   : > { %4152 = vpow2.f32 %v3584_v2 }
 0xb9f   : > { %v4151_v54 = vpop.eup %4150 }
 0xba0   : > { %v2100_v55 = vadd.f32 1.0, %v4151_v54  ;;  %v2479_v54 = vld [vmem:[%s4952_s7] sm:$0xff] }
 0xba2   : > { %4154 = vrcp.f32 %v2100_v55 }
 0xba3   : > { %v4153_v56 = vpop.eup %4152 }
 0xba4   : > { %v1983_v57 = vadd.f32 1.0, %v4153_v56  ;;  %v2364_v56 = vld [vmem:[%s4948_s3 + $0x10] sm:$0xff] }
 0xba6   : > { %4156 = vrcp.f32 %v1983_v57  ;;  %v2363_v57 = vld [vmem:[%s4948_s3 + $0x8] sm:$0xff] }
 0xbaf   : > { %v4155_v58 = vpop.eup %4154 }
 0xbb0   : > { %v2114_v14 = vsub.f32 1.0, %v4155_v58  ;;  %v2120_v16 = vmul.f32 %v4155_v58, %v4646_v39 }
 0xbb3   : > { %v4157_v4 = vpop.eup %4156 }
 0xbb4   : > { %v1997_v20 = vsub.f32 1.0, %v4157_v4  ;;  %v2003_v22 = vmul.f32 %v4157_v4, %v4651_v46 }
 0xc00   : > { %v2105_v60 = vpop.permute.xlu0 %2104 }
 0xc01   : > { %v2107_v3 = vmul.f32 %v4155_v58, %v2105_v60  ;;  %v2362_v58 = vld [vmem:[%s4948_s3] sm:$0xff] }
 0xc03   : > { %2109 = vrot.lane.b32.xlu0 %v2107_v3, %s4226_s27 }
 0xc04   : > { %v1988_v5 = vpop.permute.xlu1 %1987 }
 0xc05   : > { %v1990_v6 = vmul.f32 %v4157_v4, %v1988_v5 }
 0xc07   : > { %1992 = vrot.lane.b32.xlu1 %v1990_v6, %s4226_s27 }
 0xc75   : > { %v2110_v7 = vpop.permute.xlu0 %2109 }
 0xc76   : > { %v2112_v8 = vadd.f32 %v2110_v7, %v2095_v63 }
 0xc78   : > { %4158 = vtanh.f32 %v2112_v8 }
 0xc79   : > { %v1993_v9 = vpop.permute.xlu1 %1992 }
 0xc7a   : > { %v1995_v10 = vadd.f32 %v1993_v9, %v1978_v50  ;;  %v2481_v50 = vld [vmem:[%s4952_s7 + $0x10] sm:$0xff] }
 0xc7c   : > { %4160 = vtanh.f32 %v1995_v10 }
 0xc85   : > { %v4159_v11 = vpop.eup %4158 }
 0xc86   : > { %2116 = vrot.lane.b32.xlu0 %v4159_v11, %s4227_s17 }
 0xc89   : > { %v4161_v13 = vpop.eup %4160 }
 0xc8a   : > { %1999 = vrot.lane.b32.xlu1 %v4161_v13, %s4227_s17 }
 0xcf8   : > { %v2117_v15 = vpop.permute.xlu0 %2116 }
 0xcf9   : > { %v2119_v17 = vmul.f32 %v2117_v15, %v2114_v14 }
 0xcfb   : > { %v4688_v19 = vadd.f32 %v2120_v16, %v2119_v17 }
 0xcfc   : > { %v2000_v21 = vpop.permute.xlu1 %1999 }
 0xcfd   : > { %v2002_v23 = vmul.f32 %v2000_v21, %v1997_v20  ;;  %2123 = vrot.lane.b32.xlu0 %v4688_v19, %s4227_s17 }
 0xcff   : > { %v4693_v24 = vadd.f32 %v2003_v22, %v2002_v23  ;;  %v2563_v22 = vld [vmem:[#allocation3 + $0x8] sm:$0xff] }
 0xd01   : > { %2006 = vrot.lane.b32.xlu1 %v4693_v24, %s4227_s17 }
 0xd6f   : > { %v2124_v25 = vpop.permute.xlu0 %2123 }
 0xd70   : > { %2127 = vst.msk [vmem:[#allocation5 + $0x18] sm:$0xff] %vm698_vm0, %v2124_v25  ;;  %3946 = vmatmul.mubr.msk.f32.vlgmr.msra.gmra.mxu1 %vm698_vm0, %v2124_v25 }
 0xd71   : > { %3967 = vmatprep.mubr.msk.f32.mxu1 %vm4225_vm1, %v4224_v18  ;;  %3960 = vmatpush3.msra.mxu1 %v2482_v49 }
 0xd72   : > { %3961 = vmatprep.subr.mxu1 %v4224_v18 }
 0xd73   : > { %v2007_v27 = vpop.permute.xlu1 %2006  ;;  %3962 = vmatpush3.msra.mxu1 %v2481_v50 }
 0xd74   : > { %2010 = vst.msk [vmem:[#allocation4 + $0x20] sm:$0xff] %vm698_vm0, %v2007_v27  ;;  %3935 = vmatmul.mubr.msk.f32.vlgmr.msra.gmra.mxu0 %vm698_vm0, %v2007_v27  ;;  %3963 = vmatprep.subr.mxu1 %v4224_v18 }
 0xd75   : > { %3956 = vmatprep.mubr.msk.f32.mxu0 %vm4225_vm1, %v4224_v18  ;;  %3949 = vmatpush3.msra.mxu0 %v2365_v51 }
 0xd76   : > { %3950 = vmatprep.subr.mxu0 %v4224_v18  ;;  %3964 = vmatpush3.msra.mxu1 %v2480_v52 }
 0xd77   : > { %3965 = vmatprep.subr.mxu1 %v4224_v18  ;;  %3951 = vmatpush3.msra.mxu0 %v2364_v56 }
 0xd78   : > { %3966 = vmatpush3.msra.mxu1 %v2479_v54  ;;  %3952 = vmatprep.subr.mxu0 %v4224_v18 }
 0xd79   : > { %3981 = vmatprep.subr.mxu1 %v4224_v18  ;;  %3953 = vmatpush3.msra.mxu0 %v2363_v57 }
 0xd7a   : > { %3954 = vmatprep.subr.mxu0 %v4224_v18 }
 0xd7b   : > { %3955 = vmatpush3.msra.mxu0 %v2362_v58 }
 0xd7c   : > { %3970 = vmatprep.subr.mxu0 %v4224_v18 }
 0xe30   : > { %v2324_v28 = vpop.f32.mrf.mxu1 }
 0xe31   : > { %v2325_v29 = vadd.f32 %v4504_v41, %v2324_v28 }
 0xe32   : > { %v3947_v30 = vpop.f32.mrf.mxu1 }
 0xe33   : > { %2338 = vrot.lane.b32.xlu0 %v2325_v29, %s4226_s27  ;;  %v2330_v35 = vadd.f32 %v2329_v34, %v2325_v29 }
 0xe34   : > { %v2207_v31 = vpop.f32.mrf.mxu0 }
 0xe35   : > { %v2208_v32 = vadd.f32 %v4510_v44, %v2207_v31  ;;  %v3593_v37 = vmul.f32 -1.442695, %v2330_v35 }
 0xe36   : > { %v3936_v33 = vpop.f32.mrf.mxu0 }
 0xe37   : > { %2221 = vrot.lane.b32.xlu1 %v2208_v32, %s4226_s27  ;;  %v2213_v38 = vadd.f32 %v2212_v36, %v2208_v32  ;;  %4162 = vpow2.f32 %v3593_v37 }
 0xe39   : > { %v3590_v39 = vmul.f32 -1.442695, %v2213_v38 }
 0xe3b   : > { %4164 = vpow2.f32 %v3590_v39 }
 0xe44   : > { %v4163_v40 = vpop.eup %4162 }
 0xe45   : > { %v2334_v42 = vadd.f32 1.0, %v4163_v40  ;;  %v2839_v40 = vld [vmem:[%s4956_s11 + $0x18] sm:$0xff] }
 0xe47   : > { %4166 = vrcp.f32 %v2334_v42 }
 0xe48   : > { %v4165_v43 = vpop.eup %4164 }
 0xe49   : > { %v2217_v45 = vadd.f32 1.0, %v4165_v43 }
 0xe4b   : > { %4168 = vrcp.f32 %v2217_v45 }
 0xe54   : > { %v4167_v46 = vpop.eup %4166 }
 0xe55   : > { %v2348_v60 = vsub.f32 1.0, %v4167_v46  ;;  %v2354_v4 = vmul.f32 %v4167_v46, %v4688_v19 }
 0xe58   : > { %v4169_v53 = vpop.eup %4168 }
 0xe59   : > { %v2231_v7 = vsub.f32 1.0, %v4169_v53  ;;  %v2237_v9 = vmul.f32 %v4169_v53, %v4693_v24  ;;  %v2446_v24 = vld [vmem:[#allocation2 + $0x30] sm:$0xff] }
 0xea5   : > { %v2339_v47 = vpop.permute.xlu0 %2338 }
 0xea6   : > { %v2341_v48 = vmul.f32 %v4167_v46, %v2339_v47 }
 0xea8   : > { %2343 = vrot.lane.b32.xlu0 %v2341_v48, %s4226_s27 }
 0xea9   : > { %v2222_v61 = vpop.permute.xlu1 %2221 }
 0xeaa   : > { %v2224_v62 = vmul.f32 %v4169_v53, %v2222_v61 }
 0xeac   : > { %2226 = vrot.lane.b32.xlu1 %v2224_v62, %s4226_s27 }
 0xf1a   : > { %v2344_v59 = vpop.permute.xlu0 %2343 }
 0xf1b   : > { %v2346_v0 = vadd.f32 %v2344_v59, %v2329_v34 }
 0xf1d   : > { %4170 = vtanh.f32 %v2346_v0 }
 0xf1e   : > { %v2227_v1 = vpop.permute.xlu1 %2226 }
 0xf1f   : > { %v2229_v63 = vadd.f32 %v2227_v1, %v2212_v36 }
 0xf21   : > { %4172 = vtanh.f32 %v2229_v63 }
 0xf2a   : > { %v4171_v2 = vpop.eup %4170 }
 0xf2b   : > { %2350 = vrot.lane.b32.xlu0 %v4171_v2, %s4227_s17  ;;  %v2836_v2 = vld [vmem:[%s4956_s11] sm:$0xff] }
 0xf2e   : > { %v4173_v55 = vpop.eup %4172 }
 0xf2f   : > { %2233 = vrot.lane.b32.xlu1 %v4173_v55, %s4227_s17  ;;  %v2830_v55 = vld [vmem:[#allocation4 + $0x10] sm:$0xff] }
 0xf9d   : > { %v2351_v3 = vpop.permute.xlu0 %2350 }
 0xf9e   : > { %v2353_v5 = vmul.f32 %v2351_v3, %v2348_v60  ;;  %v3603_v3 = vld [vmem:[%s4954_s9] ss:$0 sm:$0xff] }
 0xfa0   : > { %v4746_v6 = vadd.f32 %v2354_v4, %v2353_v5 }
 0xfa1   : > { %v2234_v8 = vpop.permute.xlu1 %2233 }
 0xfa2   : > { %v2236_v10 = vmul.f32 %v2234_v8, %v2231_v7  ;;  %2357 = vrot.lane.b32.xlu0 %v4746_v6, %s4227_s17  ;;  %v3600_v7 = vld [vmem:[%s4950_s5] ss:$0 sm:$0xff] }
 0xfa4   : > { %v4751_v11 = vadd.f32 %v2237_v9, %v2236_v10 }
 0xfa6   : > { %2240 = vrot.lane.b32.xlu1 %v4751_v11, %s4227_s17 }
0x1014   : > { %v2358_v13 = vpop.permute.xlu0 %2357 }
0x1015   : > { %2361 = vst.msk [vmem:[#allocation5 + $0x10] sm:$0xff] %vm698_vm0, %v2358_v13  ;;  %3968 = vmatmul.mubr.msk.f32.vlgmr.msra.gmra.mxu1 %vm698_vm0, %v2358_v13 }
0x1016   : > { %3982 = vmatpush3.msra.mxu1 %v2482_v49  ;;  %3989 = vmatprep.mubr.msk.f32.mxu1 %vm4225_vm1, %v4224_v18  ;;  %v2838_v49 = vld [vmem:[%s4956_s11 + $0x10] sm:$0xff] }
0x1017   : > { %3983 = vmatprep.subr.mxu1 %v4224_v18 }
0x1018   : > { %v2241_v14 = vpop.permute.xlu1 %2240  ;;  %3984 = vmatpush3.msra.mxu1 %v2481_v50  ;;  %v2828_v50 = vld [vmem:[#allocation4] sm:$0xff] }
0x1019   : > { %2244 = vst.msk [vmem:[#allocation4 + $0x28] sm:$0xff] %vm698_vm0, %v2241_v14  ;;  %3957 = vmatmul.mubr.msk.f32.vlgmr.msra.gmra.mxu0 %vm698_vm0, %v2241_v14  ;;  %3985 = vmatprep.subr.mxu1 %v4224_v18  ;;  %v2680_v14 = vld [vmem:[#allocation2 + $0x38] sm:$0xff] }
0x101a   : > { %3986 = vmatpush3.msra.mxu1 %v2480_v52  ;;  %3971 = vmatpush3.msra.mxu0 %v2365_v51  ;;  %v2837_v51 = vld [vmem:[%s4956_s11 + $0x8] sm:$0xff] }
0x101b   : > { %3987 = vmatprep.subr.mxu1 %v4224_v18  ;;  %3972 = vmatprep.subr.mxu0 %v4224_v18 }
0x101c   : > { %3988 = vmatpush3.msra.mxu1 %v2479_v54  ;;  %3973 = vmatpush3.msra.mxu0 %v2364_v56  ;;  %v2829_v54 = vld [vmem:[#allocation4 + $0x8] sm:$0xff]  ;;  %v2831_v56 = vld [vmem:[#allocation4 + $0x18] sm:$0xff] }
0x101d   : > { %3974 = vmatprep.subr.mxu0 %v4224_v18  ;;  %3978 = vmatprep.mubr.msk.f32.mxu0 %vm4225_vm1, %v4224_v18 }
0x101e   : > { %3975 = vmatpush3.msra.mxu0 %v2363_v57  ;;  %4012 = vmatprep.subr.mxu1 %v2839_v40  ;;  %v2832_v57 = vld [vmem:[#allocation4 + $0x20] sm:$0xff] }
0x101f   : > { %3976 = vmatprep.subr.mxu0 %v4224_v18 }
0x1020   : > { %3977 = vmatpush3.msra.mxu0 %v2362_v58  ;;  %v2833_v58 = vld [vmem:[#allocation4 + $0x28] sm:$0xff] }
0x10d5   : > { %v2558_v15 = vpop.f32.mrf.mxu1 }
0x10d6   : > { %v2559_v16 = vadd.f32 %v4504_v41, %v2558_v15 }
0x10d7   : > { %v3969_v17 = vpop.f32.mrf.mxu1 }
0x10d8   : > { %2572 = vrot.lane.b32.xlu0 %v2559_v16, %s4226_s27  ;;  %v2564_v23 = vadd.f32 %v2563_v22, %v2559_v16 }
0x10d9   : > { %v2441_v19 = vpop.f32.mrf.mxu0 }
0x10da   : > { %v2442_v20 = vadd.f32 %v4510_v44, %v2441_v19  ;;  %v3599_v25 = vmul.f32 -1.442695, %v2564_v23 }
0x10db   : > { %v3958_v21 = vpop.f32.mrf.mxu0 }
0x10dc   : > { %2455 = vrot.lane.b32.xlu1 %v2442_v20, %s4226_s27  ;;  %v2447_v27 = vadd.f32 %v2446_v24, %v2442_v20  ;;  %4174 = vpow2.f32 %v3599_v25 }
0x10de   : > { %v3596_v18 = vmul.f32 -1.442695, %v2447_v27 }
0x10e0   : > { %4176 = vpow2.f32 %v3596_v18 }
0x10e9   : > { %v4175_v28 = vpop.eup %4174 }
0x10ea   : > { %v2568_v29 = vadd.f32 1.0, %v4175_v28 }
0x10ec   : > { %4178 = vrcp.f32 %v2568_v29 }
0x10ed   : > { %v4177_v41 = vpop.eup %4176 }
0x10ee   : > { %v2451_v30 = vadd.f32 1.0, %v4177_v41 }
0x10f0   : > { %4180 = vrcp.f32 %v2451_v30 }
0x10f9   : > { %v4179_v31 = vpop.eup %4178 }
0x10fa   : > { %v2582_v45 = vsub.f32 1.0, %v4179_v31  ;;  %v2588_v47 = vmul.f32 %v4179_v31, %v4746_v6 }
0x10fd   : > { %v4181_v33 = vpop.eup %4180 }
0x10fe   : > { %v2465_v61 = vsub.f32 1.0, %v4181_v33  ;;  %v2471_v59 = vmul.f32 %v4181_v33, %v4751_v11  ;;  %v2796_v11 = vld [vmem:[#allocation3] sm:$0xff] }
0x114a   : > { %v2573_v32 = vpop.permute.xlu0 %2572 }
0x114b   : > { %v2575_v44 = vmul.f32 %v4179_v31, %v2573_v32 }
0x114d   : > { %2577 = vrot.lane.b32.xlu0 %v2575_v44, %s4226_s27 }
0x114e   : > { %v2456_v34 = vpop.permute.xlu1 %2455 }
0x114f   : > { %v2458_v35 = vmul.f32 %v4181_v33, %v2456_v34  ;;  %v2851_v33 = vld [vmem:[%s4957_s12 + $0x18] sm:$0xff]  ;;  %v2850_v34 = vld [vmem:[%s4957_s12 + $0x10] sm:$0xff] }
0x1150   : > { %3992 = vmatprep.subr.mxu0 %v2851_v33 }
0x1151   : > { %2460 = vrot.lane.b32.xlu1 %v2458_v35, %s4226_s27  ;;  %v2849_v35 = vld [vmem:[%s4957_s12 + $0x8] sm:$0xff] }
0x11bf   : > { %v2578_v36 = vpop.permute.xlu0 %2577 }
0x11c0   : > { %v2580_v37 = vadd.f32 %v2578_v36, %v2563_v22  ;;  %v2848_v36 = vld [vmem:[%s4957_s12] sm:$0xff] }
0x11c2   : > { %4182 = vtanh.f32 %v2580_v37 }
0x11c3   : > { %v2461_v38 = vpop.permute.xlu1 %2460 }
0x11c4   : > { %v2463_v39 = vadd.f32 %v2461_v38, %v2446_v24 }
0x11c6   : > { %4184 = vtanh.f32 %v2463_v39  ;;  %v3121_v39 = vld [vmem:[%s4955_s10 + $0x18] sm:$0xff] }
0x11cf   : > { %v4183_v42 = vpop.eup %4182 }
0x11d0   : > { %2584 = vrot.lane.b32.xlu0 %v4183_v42, %s4227_s17 }
0x11d3   : > { %v4185_v43 = vpop.eup %4184 }
0x11d4   : > { %2467 = vrot.lane.b32.xlu1 %v4185_v43, %s4227_s17 }
0x1242   : > { %v2585_v46 = vpop.permute.xlu0 %2584 }
0x1243   : > { %v2587_v48 = vmul.f32 %v2585_v46, %v2582_v45 }
0x1245   : > { %v4781_v53 = vadd.f32 %v2588_v47, %v2587_v48 }
0x1246   : > { %v2468_v62 = vpop.permute.xlu1 %2467 }
0x1247   : > { %v2470_v0 = vmul.f32 %v2468_v62, %v2465_v61  ;;  %2591 = vrot.lane.b32.xlu0 %v4781_v53, %s4227_s17 }
0x1249   : > { %v4786_v1 = vadd.f32 %v2471_v59, %v2470_v0 }
0x124b   : > { %2474 = vrot.lane.b32.xlu1 %v4786_v1, %s4227_s17 }
0x12b9   : > { %v2592_v63 = vpop.permute.xlu0 %2591 }
0x12ba   : > { %2595 = vst.msk [vmem:[#allocation5 + $0x8] sm:$0xff] %vm698_vm0, %v2592_v63  ;;  %3990 = vmatmul.mubr.msk.f32.vlgmr.msra.gmra.mxu1 %vm698_vm0, %v2592_v63  ;;  %v2842_v63 = vld [vmem:[#allocation5 + $0x10] sm:$0xff] }
0x12bb   : > { %4013 = vmatpush3.msra.mxu1 %v2839_v40  ;;  %4020 = vmatprep.mubr.msk.f32.mxu1 %vm698_vm0, %v2828_v50 }
0x12bc   : > { %4014 = vmatprep.subr.mxu1 %v2838_v49 }
0x12bd   : > { %4015 = vmatpush3.msra.mxu1 %v2838_v49  ;;  %v2475_v52 = vpop.permute.xlu1 %2474  ;;  %v3119_v49 = vld [vmem:[%s4955_s10 + $0x8] sm:$0xff] }
0x12be   : > { %4016 = vmatprep.subr.mxu1 %v2837_v51  ;;  %2478 = vst.msk [vmem:[#allocation4 + $0x30] sm:$0xff] %vm698_vm0, %v2475_v52  ;;  %3979 = vmatmul.mubr.msk.f32.vlgmr.msra.gmra.mxu0 %vm698_vm0, %v2475_v52  ;;  %v3118_v52 = vld [vmem:[%s4955_s10] sm:$0xff] }
0x12bf   : > { %4017 = vmatpush3.msra.mxu1 %v2837_v51  ;;  %3993 = vmatpush3.msra.mxu0 %v2851_v33  ;;  %v2843_v51 = vld [vmem:[#allocation5 + $0x18] sm:$0xff] }
0x12c0   : > { %4018 = vmatprep.subr.mxu1 %v2836_v2  ;;  %3994 = vmatprep.subr.mxu0 %v2850_v34 }
0x12c1   : > { %4019 = vmatpush3.msra.mxu1 %v2836_v2  ;;  %3995 = vmatpush3.msra.mxu0 %v2850_v34  ;;  %v2841_v0 = vld [vmem:[#allocation5 + $0x8] sm:$0xff]  ;;  %v2844_v2 = vld [vmem:[#allocation5 + $0x20] sm:$0xff] }
0x12c2   : > { %4021 = vmatmul.mubr.msk.f32.vlgmr.msra.gmra.mxu1 %vm698_vm0, %v2829_v54  ;;  %3996 = vmatprep.subr.mxu0 %v2849_v35  ;;  %v2845_v54 = vld [vmem:[#allocation5 + $0x28] sm:$0xff] }
0x12c3   : > { %4023 = vmatprep.mubr.msk.f32.mxu1 %vm698_vm0, %v2830_v55  ;;  %3997 = vmatpush3.msra.mxu0 %v2849_v35  ;;  %v2846_v55 = vld [vmem:[#allocation5 + $0x30] sm:$0xff] }
0x12c4   : > { %3998 = vmatprep.subr.mxu0 %v2848_v36 }
0x12c5   : > { %v2834_v60 = vld [vmem:[#allocation4 + $0x30] sm:$0xff]  ;;  %3999 = vmatpush3.msra.mxu0 %v2848_v36 }
0x12c6   : > { %4024 = vmatmul.mubr.msk.f32.gmra.mxu1 %vm698_vm0, %v2831_v56  ;;  %4032 = vmatprep.subr.mxu0 %v3121_v39  ;;  %v3110_v56 = vld [vmem:[%s531_s24] sm:$0xff] }
0x12c7   : > { %4026 = vmatprep.mubr.msk.f32.mxu1 %vm698_vm0, %v2832_v57  ;;  %v2847_v57 = vld [vmem:[#allocation5 + $0x38] sm:$0xff] }
0x12ca   : > { %4027 = vmatmul.mubr.msk.f32.gmra.mxu1 %vm698_vm0, %v2833_v58  ;;  %v3111_v58 = vld [vmem:[%s531_s24 + $0x8] sm:$0xff] }
0x12cb   : > { %4029 = vmatprep.mubr.msk.f32.mxu1 %vm698_vm0, %v2834_v60  ;;  %v3112_v60 = vld [vmem:[%s531_s24 + $0x10] sm:$0xff] }
0x137a   : > { %v2792_v4 = vpop.f32.mrf.mxu1 }
0x137b   : > { %v2793_v5 = vadd.f32 %v3603_v3, %v2792_v4  ;;  %v3113_v3 = vld [vmem:[%s531_s24 + $0x18] sm:$0xff]  ;;  %v3114_v4 = vld [vmem:[%s531_s24 + $0x20] sm:$0xff] }
0x137c   : > { %v3991_v6 = vpop.f32.mrf.mxu1 }
0x137d   : > { %2805 = vrot.lane.b32.xlu0 %v2793_v5, %s4226_s27  ;;  %v2797_v13 = vadd.f32 %v2796_v11, %v2793_v5  ;;  %v3115_v5 = vld [vmem:[%s531_s24 + $0x28] sm:$0xff]  ;;  %v3116_v6 = vld [vmem:[%s531_s24 + $0x30] sm:$0xff] }
0x137e   : > { %v2675_v8 = vpop.f32.mrf.mxu0 }
0x137f   : > { %v2676_v9 = vadd.f32 %v3600_v7, %v2675_v8  ;;  %v3605_v15 = vmul.f32 -1.442695, %v2797_v13  ;;  %v3117_v7 = vld [vmem:[%s531_s24 + $0x38] sm:$0xff] }
0x1380   : > { %v3980_v10 = vpop.f32.mrf.mxu0 }
0x1381   : > { %2689 = vrot.lane.b32.xlu1 %v2676_v9, %s4226_s27  ;;  %v2681_v16 = vadd.f32 %v2680_v14, %v2676_v9  ;;  %4186 = vpow2.f32 %v3605_v15 }
0x1382   : > { %v4022_v8 = vpop.f32.mrf.mxu1 }
0x1383   : > { %v3602_v17 = vmul.f32 -1.442695, %v2681_v16 }
0x1384   : > { %v3071_v9 = vpop.f32.mrf.mxu1 }
0x1385   : > { %4188 = vpow2.f32 %v3602_v17 }
0x1386   : > { %v4025_v10 = vpop.f32.mrf.mxu1 }
0x138e   : > { %v4187_v19 = vpop.eup %4186 }
0x138f   : > { %v2801_v20 = vadd.f32 1.0, %v4187_v19 }
0x1391   : > { %4190 = vrcp.f32 %v2801_v20 }
0x1392   : > { %v4189_v21 = vpop.eup %4188 }
0x1393   : > { %v2685_v22 = vadd.f32 1.0, %v4189_v21 }
0x1395   : > { %4192 = vrcp.f32 %v2685_v22 }
0x139e   : > { %v4191_v23 = vpop.eup %4190 }
0x139f   : > { %v2815_v37 = vsub.f32 1.0, %v4191_v23  ;;  %v2821_v40 = vmul.f32 %v4191_v23, %v4781_v53 }
0x13a2   : > { %v4193_v27 = vpop.eup %4192 }
0x13a3   : > { %v2699_v45 = vsub.f32 1.0, %v4193_v27  ;;  %v2705_v47 = vmul.f32 %v4193_v27, %v4786_v1  ;;  %v3120_v1 = vld [vmem:[%s4955_s10 + $0x10] sm:$0xff] }
0x13ef   : > { %v2806_v24 = vpop.permute.xlu0 %2805 }
0x13f0   : > { %v2808_v25 = vmul.f32 %v4191_v23, %v2806_v24 }
0x13f2   : > { %2810 = vrot.lane.b32.xlu0 %v2808_v25, %s4226_s27 }
0x13f3   : > { %v2690_v18 = vpop.permute.xlu1 %2689 }
0x13f4   : > { %v2692_v28 = vmul.f32 %v4193_v27, %v2690_v18 }
0x13f6   : > { %2694 = vrot.lane.b32.xlu1 %v2692_v28, %s4226_s27 }
0x1464   : > { %v2811_v29 = vpop.permute.xlu0 %2810 }
0x1465   : > { %v2813_v41 = vadd.f32 %v2811_v29, %v2796_v11  ;;  %v3081_v11 = vpop.f32.mrf.mxu1 }
0x1467   : > { %4194 = vtanh.f32 %v2813_v41  ;;  %v4028_v15 = vpop.f32.mrf.mxu1 }
0x1468   : > { %v2695_v30 = vpop.permute.xlu1 %2694 }
0x1469   : > { %v2697_v31 = vadd.f32 %v2695_v30, %v2680_v14  ;;  %v3091_v20 = vpop.f32.mrf.mxu1 }
0x146b   : > { %4196 = vtanh.f32 %v2697_v31 }
0x1474   : > { %v4195_v32 = vpop.eup %4194 }
0x1475   : > { %2817 = vrot.lane.b32.xlu0 %v4195_v32, %s4227_s17 }
0x1478   : > { %v4197_v44 = vpop.eup %4196 }
0x1479   : > { %2701 = vrot.lane.b32.xlu1 %v4197_v44, %s4227_s17 }
0x14e7   : > { %v2818_v38 = vpop.permute.xlu0 %2817 }
0x14e8   : > { %v2820_v42 = vmul.f32 %v2818_v38, %v2815_v37 }
0x14ea   : > { %v2822_v43 = vadd.f32 %v2821_v40, %v2820_v42 }
0x14eb   : > { %v2702_v46 = vpop.permute.xlu1 %2701 }
0x14ec   : > { %v2704_v48 = vmul.f32 %v2702_v46, %v2699_v45  ;;  %2824 = vrot.lane.b32.xlu0 %v2822_v43, %s4227_s17  ;;  %v4881_v46 = vld [vmem:[%s4958_s13] ss:$0 sm:$0xff] }
0x14ee   : > { %v2706_v61 = vadd.f32 %v2705_v47, %v2704_v48 }
0x14f0   : > { %2708 = vrot.lane.b32.xlu1 %v2706_v61, %s4227_s17  ;;  %s4908_s17 = scalar_lea.vmem %s4959_s14, %s4333_s25 }
0x155e   : > { %v2825_v62 = vpop.permute.xlu0 %2824 }
0x155f   : > { %2827 = vst.msk [vmem:[#allocation5] sm:$0xff] %vm698_vm0, %v2825_v62 }
0x1562   : > { %v2709_v59 = vpop.permute.xlu1 %2708 }
0x1563   : > { %2712 = vst.msk [vmem:[#allocation4 + $0x38] sm:$0xff] %vm698_vm0, %v2709_v59 }
0x1566   : > { %v2840_v53 = vld [vmem:[#allocation5] sm:$0xff] }
0x1567   : > { %4000 = vmatprep.mubr.msk.f32.mxu0 %vm698_vm0, %v2840_v53 }
0x1568   : > { %4001 = vmatmul.mubr.msk.f32.vlgmr.msra.gmra.mxu0 %vm698_vm0, %v2841_v0 }
0x1569   : > { %4033 = vmatpush3.msra.mxu0 %v3121_v39  ;;  %4003 = vmatprep.mubr.msk.f32.mxu0 %vm698_vm0, %v2842_v63 }
0x156a   : > { %v2835_v50 = vld [vmem:[#allocation4 + $0x38] sm:$0xff]  ;;  %4034 = vmatprep.subr.mxu0 %v3120_v1 }
0x156b   : > { %4030 = vmatmul.mubr.msk.f32.gmra.mxu1 %vm698_vm0, %v2835_v50  ;;  %4035 = vmatpush3.msra.mxu0 %v3120_v1 }
0x156c   : > { %4004 = vmatmul.mubr.msk.f32.gmra.mxu0 %vm698_vm0, %v2843_v51  ;;  %4036 = vmatprep.subr.mxu0 %v3119_v49 }
0x156d   : > { %4006 = vmatprep.mubr.msk.f32.mxu0 %vm698_vm0, %v2844_v2  ;;  %4037 = vmatpush3.msra.mxu0 %v3119_v49 }
0x156e   : > { %4038 = vmatprep.subr.mxu0 %v3118_v52 }
0x156f   : > { %4039 = vmatpush3.msra.mxu0 %v3118_v52 }
0x1570   : > { %4007 = vmatmul.mubr.msk.f32.gmra.mxu0 %vm698_vm0, %v2845_v54 }
0x1571   : > { %4009 = vmatprep.mubr.msk.f32.mxu0 %vm698_vm0, %v2846_v55  ;;  %v3259_v55 = vld [vmem:[%s4339_s28 + $0x8] sm:$0xff] }
0x1574   : > { %4010 = vmatmul.mubr.msk.f32.gmra.mxu0 %vm698_vm0, %v2847_v57  ;;  %v3261_v57 = vld [vmem:[%s4339_s28 + $0x18] sm:$0xff] }
0x1575   : > { %4040 = vmatprep.mubr.msk.f32.mxu0 %vm698_vm0, %v3110_v56  ;;  %v3258_v56 = vld [vmem:[%s4339_s28] sm:$0xff] }
0x1578   : > { %4041 = vmatmul.mubr.msk.f32.vlgmr.msra.gmra.mxu0 %vm698_vm0, %v3111_v58 }
0x1579   : > { %4043 = vmatprep.mubr.msk.f32.mxu0 %vm698_vm0, %v3112_v60 }
0x157c   : > { %4044 = vmatmul.mubr.msk.f32.gmra.mxu0 %vm698_vm0, %v3113_v3 }
0x157d   : > { %4046 = vmatprep.mubr.msk.f32.mxu0 %vm698_vm0, %v3114_v4 }
0x1580   : > { %4047 = vmatmul.mubr.msk.f32.gmra.mxu0 %vm698_vm0, %v3115_v5  ;;  %v3260_v5 = vld [vmem:[%s4339_s28 + $0x10] sm:$0xff] }
0x1581   : > { %4049 = vmatprep.mubr.msk.f32.mxu0 %vm698_vm0, %v3116_v6 }
0x1584   : > { %4050 = vmatmul.mubr.msk.f32.gmra.mxu0 %vm698_vm0, %v3117_v7 }
0x1628   : > { %v4002_v13 = vpop.f32.mrf.mxu0 }
0x1629   : > { %v3077_v24 = vadd.f32 %v4022_v8, %v4002_v13 }
0x162a   : > { %v2942_v14 = vpop.f32.mrf.mxu0 }
0x162b   : > { %v3072_v21 = vadd.f32 %v3071_v9, %v2942_v14  ;;  %v4031_v25 = vpop.f32.mrf.mxu1 }
0x162c   : > { %v4005_v16 = vpop.f32.mrf.mxu0 }
0x162d   : > { %v3087_v22 = vadd.f32 %v4025_v10, %v4005_v16  ;;  %v3101_v31 = vpop.f32.mrf.mxu1 }
0x162e   : > { %v2952_v17 = vpop.f32.mrf.mxu0 }
0x162f   : > { %v3082_v19 = vadd.f32 %v3081_v11, %v2952_v17  ;;  %v3290_v28 = vcombine.low %v3077_v24, %v3087_v22  ;;  %v3291_v30 = vcombine.high %v3077_v24, %v3087_v22 }
0x1630   : > { %v4008_v23 = vpop.f32.mrf.mxu0 }
0x1631   : > { %v3274_v27 = vcombine.low %v3072_v21, %v3082_v19  ;;  %v3275_v41 = vcombine.high %v3072_v21, %v3082_v19  ;;  %v3097_v44 = vadd.f32 %v4028_v15, %v4008_v23  ;;  %v3298_v37 = vrot.slane %v3290_v28, %v4344_v12  ;;  %v3263_v21 = vld [vmem:[%s4339_s28 + $0x28] sm:$0xff] }
0x1632   : > { %v2962_v18 = vpop.f32.mrf.mxu0  ;;  %v3305_v47 = vrot.slane %v3291_v30, %v4344_v12 }
0x1633   : > { %v3282_v32 = vrot.slane %v3274_v27, %v4344_v12  ;;  %v3092_v35 = vadd.f32 %v3091_v20, %v2962_v18  ;;  %v4876_v42 = vrot.slane %v3275_v41, %v4344_v12  ;;  %v3262_v27 = vld [vmem:[%s4339_s28 + $0x20] sm:$0xff] }
0x1634   : > { %v4011_v29 = vpop.f32.mrf.mxu0 }
0x1635   : > { %v3107_v33 = vadd.f32 %v4031_v25, %v4011_v29  ;;  %v3338_v48 = vcombine.low %v3282_v32, %v3298_v37  ;;  %v3339_v61 = vcombine.high %v3282_v32, %v3298_v37  ;;  %v3354_v51 = vcombine.low %v4876_v42, %v3305_v47 }
0x1636   : > { %v2972_v34 = vpop.f32.mrf.mxu0  ;;  %v3355_v58 = vcombine.high %v4876_v42, %v3305_v47  ;;  %v3264_v42 = vld [vmem:[%s4339_s28 + $0x30] sm:$0xff] }
0x1637   : > { %v3102_v36 = vadd.f32 %v3101_v31, %v2972_v34  ;;  %v3322_v38 = vcombine.low %v3097_v44, %v3107_v33  ;;  %v3323_v39 = vcombine.high %v3097_v44, %v3107_v33  ;;  %v3346_v3 = vrot.slane %v3338_v48, %v4358_v26  ;;  %v3265_v34 = vld [vmem:[%s4339_s28 + $0x38] sm:$0xff] }
0x1638   : > { %v4042_v40 = vpop.f32.mrf.mxu0  ;;  %v3353_v7 = vrot.slane %v3339_v61, %v4358_v26  ;;  %v3362_v24 = vrot.slane %v3354_v51, %v4358_v26 }
0x1639   : > { %v3306_v43 = vcombine.low %v3092_v35, %v3102_v36  ;;  %v3307_v45 = vcombine.high %v3092_v35, %v3102_v36  ;;  %v3330_v59 = vrot.slane %v3322_v38, %v4344_v12  ;;  %v3337_v53 = vrot.slane %v3323_v39, %v4344_v12 }
0x163a   : > { %v3219_v62 = vpop.f32.mrf.mxu0  ;;  %v3225_v63 = vadd.f32 %v4042_v40, %v4881_v46  ;;  %v3369_v38 = vrot.slane %v3355_v58, %v4358_v26 }
0x163b   : > { %v3314_v0 = vrot.slane %v3306_v43, %v4344_v12  ;;  %v3321_v1 = vrot.slane %v3307_v45, %v4344_v12  ;;  %v3220_v49 = vadd.f32 %v4881_v46, %v3219_v62 }
0x163c   : > { %v4045_v50 = vpop.f32.mrf.mxu0  ;;  %v3267_v10 = vadd.f32 %v3259_v55, %v3225_v63 }
0x163d   : > { %v3370_v52 = vcombine.low %v3314_v0, %v3330_v59  ;;  %v3371_v2 = vcombine.high %v3314_v0, %v3330_v59  ;;  %v3386_v54 = vcombine.low %v3321_v1, %v3337_v53  ;;  %v3387_v60 = vcombine.high %v3321_v1, %v3337_v53 }
0x163e   : > { %v3235_v12 = vadd.f32 %v4045_v50, %v4881_v46  ;;  %v3229_v4 = vpop.f32.mrf.mxu0  ;;  %v3266_v11 = vadd.f32 %v3258_v56, %v3220_v49 }
0x163f   : > { %v3378_v6 = vrot.slane %v3370_v52, %v4358_v26  ;;  %v3385_v8 = vrot.slane %v3371_v2, %v4358_v26  ;;  %v3230_v9 = vadd.f32 %v4881_v46, %v3229_v4  ;;  %v3394_v15 = vrot.slane %v3386_v54, %v4358_v26 }
0x1640   : > { %v3269_v13 = vadd.f32 %v3261_v57, %v3235_v12  ;;  %v4048_v14 = vpop.f32.mrf.mxu0  ;;  %v3401_v18 = vrot.slane %v3387_v60, %v4358_v26 }
0x1641   : > { %v3403_v16 = vcombine.high %v3346_v3, %v3378_v6  ;;  %v3402_v17 = vcombine.low %v3346_v3, %v3378_v6  ;;  %v3405_v19 = vcombine.high %v3353_v7, %v3385_v8  ;;  %v3268_v20 = vadd.f32 %v3260_v5, %v3230_v9 }
0x1642   : > { %v3404_v22 = vcombine.low %v3353_v7, %v3385_v8  ;;  %v3245_v23 = vadd.f32 %v4048_v14, %v4881_v46  ;;  %v3239_v25 = vpop.f32.mrf.mxu0  ;;  %v3407_v44 = vcombine.high %v3362_v24, %v3394_v15  ;;  %v3406_v36 = vcombine.low %v3362_v24, %v3394_v15 }
0x1643   : > { %v3411_v28 = vadd.f32 %v3403_v16, %v3267_v10  ;;  %v3410_v29 = vadd.f32 %v3402_v17, %v3266_v11  ;;  %v3413_v41 = vadd.f32 %v3405_v19, %v3269_v13  ;;  %v3240_v30 = vadd.f32 %v4881_v46, %v3239_v25 }
0x1644   : > { %v3412_v31 = vadd.f32 %v3404_v22, %v3268_v20  ;;  %v3271_v32 = vadd.f32 %v3263_v21, %v3245_v23  ;;  %v4051_v33 = vpop.f32.mrf.mxu0  ;;  %v3409_v47 = vcombine.high %v3369_v38, %v3401_v18  ;;  %v3408_v59 = vcombine.low %v3369_v38, %v3401_v18 }
0x1645   : > { %3419 = vst.msk [vmem:[%s4908_s17 + $0x8] sm:$0xff] %vm698_vm0, %v3411_v28  ;;  %3418 = vst.msk [vmem:[%s4908_s17] sm:$0xff] %vm698_vm0, %v3410_v29  ;;  %v3270_v35 = vadd.f32 %v3262_v27, %v3240_v30  ;;  %v3255_v37 = vadd.f32 %v4051_v33, %v4881_v46 }
0x1646   : > { %3421 = vst.msk [vmem:[%s4908_s17 + $0x18] sm:$0xff] %vm698_vm0, %v3413_v41  ;;  %3420 = vst.msk [vmem:[%s4908_s17 + $0x10] sm:$0xff] %vm698_vm0, %v3412_v31  ;;  %v3415_v39 = vadd.f32 %v3407_v44, %v3271_v32  ;;  %v3249_v40 = vpop.f32.mrf.mxu0 }
0x1647   : > { %v3414_v43 = vadd.f32 %v3406_v36, %v3270_v35  ;;  %v3273_v45 = vadd.f32 %v3265_v34, %v3255_v37  ;;  %v3250_v48 = vadd.f32 %v4881_v46, %v3249_v40 }
0x1648   : > { %3423 = vst.msk [vmem:[%s4908_s17 + $0x28] sm:$0xff] %vm698_vm0, %v3415_v39 }
0x1649   : > { %3422 = vst.msk [vmem:[%s4908_s17 + $0x20] sm:$0xff] %vm698_vm0, %v3414_v43  ;;  %v3417_v61 = vadd.f32 %v3409_v47, %v3273_v45  ;;  %v3272_v62 = vadd.f32 %v3264_v42, %v3250_v48 }
0x164b   : > { %3425 = vst.msk [vmem:[%s4908_s17 + $0x38] sm:$0xff] %vm698_vm0, %v3417_v61  ;;  %v3416_v26 = vadd.f32 %v3408_v59, %v3272_v62 }
0x164d   : > { %3424 = vst.msk [vmem:[%s4908_s17 + $0x30] sm:$0xff] %vm698_vm0, %v3416_v26 }
0x164e PF: > { %s24_s15 = sadd.s32 1, %s4220_s15   ;;  %s4960_s29 = smov %s4216_s30 }
0x164f   : > { %p21_p5 = scmp.ge.s32.totalorder %s24_s15, 4   ;;  %s4961_s30 = smov %s4963_s16 }
0x1651   :  { %23 = sbr.rel (!%p21_p5) target bundleno = 2 (0x2), region = 137 }

// kernel: initial_tier_forward.19
= control target key start
LH: loop header
LB: loop body
LE: loop exit
PB: predicated region body
PF: predicated region fallthrough
CT: control target
= control target key end

     0   :  { %s854_s12 = smov 0   ;;  %s856_s13 = smov 0   ;;  %s1071_s0 = inlined_call_operand.vmem [shape: f32[2,8,8,32], index: 0, kind: input, shape index: {}]   ;;  %s1072_s1 = inlined_call_operand.vmem [shape: f32[32,12], index: 1, kind: input, shape index: {}]   ;;  %s1073_s2 = inlined_call_operand.vmem [shape: f32[1,12], index: 2, kind: input, shape index: {}]   ;;  %s1074_s3 = inlined_call_operand.vmem [shape: f32[2,8,8,12], index: 3, kind: output, shape index: {}]  }
   0x1   :  { %s858_s14 = smov 0  }
   0x2 LB: > { %s25_s15 = sadd.s32 1, %s827_s13  ;;  %p670_p0 = scmp.ge.s32.totalorder %s831_s14, 1  ;;  %s831_s14 = sphi %s858_s14, %s13_s14   ;;  %s827_s13 = sphi %s856_s13, %s1076_s13   ;;  %s823_s12 = sphi %s854_s12, %s1075_s12  }
   0x3   : > { %p27_p1 = scmp.ge.s32.totalorder %s25_s15, 2  ;;  %p158_p2 = scmp.lt.s32.totalorder %s831_s14, 3 }
   0x5   : > { %s1078_s15 = smov (%p27_p1, %s25_s15), 0  ;;  %p159_p3 = pnand %p670_p0, %p158_p2 }
   0x6   : > { %p191_p4 = scmp.lt.s32.totalorder (!%p159_p3), %s823_s12, 1  ;;  %s833_s30 = smov (!%p159_p3), 120  }
   0x7   : > { %162 = sbr.rel (%p159_p3) target bundleno = 670 (0x29e), region = 32 }
   0xc   : > { %v221_v0 = vld [vmem:[%s1072_s1 + $0x18] sm:$0xff]  ;;  %v220_v1 = vld [vmem:[%s1072_s1 + $0x10] sm:$0xff]  ;;  %v219_v2 = vld [vmem:[%s1072_s1 + $0x8] sm:$0xff]  ;;  %s1080_s12 = smov (!%p191_p4, %s823_s12), 1  ;;  %vm229_vm0 = vcmask 261120   ;;  %vm415_vm1 = vcmask 97344  }
   0xd   : > { %708 = vmatprep.subr.mxu0 %v221_v0  ;;  %728 = vmatprep.subr.mxu1 %v221_v0  ;;  %v218_v3 = vld [vmem:[%s1072_s1] sm:$0xff]  ;;  %s694_s24 = sshll.u32 %s1080_s12, 6  ;;  %vm496_vm2 = vcmask 31744   ;;  %vm561_vm7 = vcmask 64512   ;;  %vm570_vm8 = vcmask 97280  }
   0xe   : > { %709 = vmatpush3.msra.mxu0 %v221_v0  ;;  %732 = vmatpush3.msra.mxu1 %v221_v0  ;;  %s198_s27 = scalar_lea.vmem %s1071_s0, %s694_s24  ;;  %v675_v12 = vld [vmem:[%s1073_s2] ss:$0 sm:$0xff]  ;;  %s998_s6 = scalar_lea.vmem %s1074_s3, %s694_s24 }
   0xf   : > { %710 = vmatprep.subr.mxu0 %v220_v1  ;;  %729 = vmatprep.subr.mxu1 %v220_v1  ;;  %v210_v4 = vld [vmem:[%s198_s27] sm:$0xff]  ;;  %v211_v6 = vld [vmem:[%s198_s27 + $0x8] sm:$0xff]  ;;  %v212_v8 = vld [vmem:[%s198_s27 + $0x10] sm:$0xff] }
  0x10   : > { %711 = vmatpush3.msra.mxu0 %v220_v1  ;;  %733 = vmatpush3.msra.mxu1 %v220_v1  ;;  %v214_v5 = vld [vmem:[%s198_s27 + $0x20] sm:$0xff]  ;;  %v215_v7 = vld [vmem:[%s198_s27 + $0x28] sm:$0xff]  ;;  %v216_v9 = vld [vmem:[%s198_s27 + $0x30] sm:$0xff] }
  0x11   : > { %712 = vmatprep.subr.mxu0 %v219_v2  ;;  %730 = vmatprep.subr.mxu1 %v219_v2  ;;  %v213_v10 = vld [vmem:[%s198_s27 + $0x18] sm:$0xff] }
  0x12   : > { %713 = vmatpush3.msra.mxu0 %v219_v2  ;;  %734 = vmatpush3.msra.mxu1 %v219_v2  ;;  %v217_v11 = vld [vmem:[%s198_s27 + $0x38] sm:$0xff] }
  0x13   : > { %714 = vmatprep.subr.mxu0 %v218_v3  ;;  %731 = vmatprep.subr.mxu1 %v218_v3 }
  0x14   : > { %715 = vmatpush3.msra.mxu0 %v218_v3  ;;  %735 = vmatpush3.msra.mxu1 %v218_v3 }
  0x15   : > { %716 = vmatprep.mubr.msk.f32.mxu0 %vm229_vm0, %v210_v4  ;;  %722 = vmatprep.mubr.msk.f32.mxu1 %vm229_vm0, %v214_v5 }
  0x16   : > { %717 = vmatmul.mubr.msk.f32.vlgmr.msra.gmra.mxu0 %vm229_vm0, %v211_v6  ;;  %723 = vmatmul.mubr.msk.f32.vlgmr.msra.gmra.mxu1 %vm229_vm0, %v215_v7 }
  0x17   : > { %719 = vmatprep.mubr.msk.f32.mxu0 %vm229_vm0, %v212_v8  ;;  %725 = vmatprep.mubr.msk.f32.mxu1 %vm229_vm0, %v216_v9 }
  0x1a   : > { %720 = vmatmul.mubr.msk.f32.gmra.mxu0 %vm229_vm0, %v213_v10  ;;  %726 = vmatmul.mubr.msk.f32.gmra.mxu1 %vm229_vm0, %v217_v11 }
  0xd6   : > { %v718_v13 = vpop.f32.mrf.mxu0  ;;  %v724_v14 = vpop.f32.mrf.mxu1 }
  0xd7   : > { %v903_v15 = vadd.f32 %v718_v13, %v675_v12  ;;  %v905_v16 = vadd.f32 %v724_v14, %v675_v12 }
  0xd8   : > { %v320_v17 = vpop.f32.mrf.mxu0  ;;  %v340_v18 = vpop.f32.mrf.mxu1 }
  0xd9   : > { %v907_v19 = vadd.f32 %v675_v12, %v320_v17  ;;  %v431_v20 = vsel %vm415_vm1, %v905_v16, -inf  ;;  %v419_v21 = vsel %vm415_vm1, %v903_v15, -inf  ;;  %v921_v30 = vadd.f32 %v675_v12, %v340_v18 }
  0xda   : > { %v721_v22 = vpop.f32.mrf.mxu0  ;;  %432 = vmax.xlane.f32.xlu1 %v431_v20  ;;  %v727_v23 = vpop.f32.mrf.mxu1  ;;  %420 = vmax.xlane.f32.xlu0 %v419_v21  ;;  %vm360_vm3 = vcmp.gt.f32.partialorder %v903_v15, 0.0  ;;  %vm364_vm4 = vcmp.gt.f32.partialorder %v905_v16, 0.0 }
  0xdb   : > { %v913_v24 = vadd.f32 %v721_v22, %v675_v12  ;;  %v416_v26 = vsel %vm415_vm1, %v907_v19, -inf  ;;  %v428_v33 = vsel %vm415_vm1, %v921_v30, -inf  ;;  %v929_v34 = vadd.f32 %v727_v23, %v675_v12 }
  0xdc   : > { %v330_v25 = vpop.f32.mrf.mxu0  ;;  %v350_v28 = vpop.f32.mrf.mxu1  ;;  %vm359_vm5 = vcmp.gt.f32.partialorder %v907_v19, 0.0  ;;  %vm363_vm6 = vcmp.gt.f32.partialorder %v921_v30, 0.0 }
  0xdd   : > { %v917_v27 = vadd.f32 %v675_v12, %v330_v25  ;;  %v425_v29 = vsel %vm415_vm1, %v913_v24, -inf  ;;  %v925_v32 = vadd.f32 %v675_v12, %v350_v28  ;;  %v437_v36 = vsel %vm415_vm1, %v929_v34, -inf }
  0xde   : > { %417 = vmax.xlane.f32.xlu0 %v416_v26  ;;  %426 = vmax.xlane.f32.xlu1 %v425_v29  ;;  %v368_v25 = vmin.f32 %v903_v15, 0.0  ;;  %v372_v28 = vmin.f32 %v905_v16, 0.0  ;;  %v367_v29 = vmin.f32 %v907_v19, 0.0  ;;  %vm362_vm9 = vcmp.gt.f32.partialorder %v913_v24, 0.0 }
  0xdf   : > { %v422_v31 = vsel %vm415_vm1, %v917_v27, -inf  ;;  %v434_v35 = vsel %vm415_vm1, %v925_v32, -inf  ;;  %vm366_vm10 = vcmp.gt.f32.partialorder %v929_v34, 0.0  ;;  %vm361_vm11 = vcmp.gt.f32.partialorder %v917_v27, 0.0 }
  0xe0   : > { %v377_v26 = vmul.f32 1.442695, %v368_v25  ;;  %vm365_vm12 = vcmp.gt.f32.partialorder %v925_v32, 0.0 }
  0xe2   : > { %429 = vmax.xlane.f32.xlu0 %v428_v33  ;;  %423 = vmax.xlane.f32.xlu1 %v422_v31  ;;  %v385_v31 = vmul.f32 1.442695, %v372_v28  ;;  %v375_v33 = vmul.f32 1.442695, %v367_v29 }
  0xe6   : > { %435 = vmax.xlane.f32.xlu0 %v434_v35  ;;  %438 = vmax.xlane.f32.xlu1 %v437_v36  ;;  %v371_v35 = vmin.f32 %v921_v30, 0.0  ;;  %v370_v36 = vmin.f32 %v913_v24, 0.0 }
 0x163   : > { %v935_v37 = vpop.xlane.xlu1 %432  ;;  %v937_v38 = vpop.xlane.xlu0 %420 }
 0x164   : > { %v441_v39 = vsub.f32 %v903_v15, %v937_v38  ;;  %v445_v40 = vsub.f32 %v905_v16, %v935_v37 }
 0x166   : > { %v450_v41 = vmul.f32 1.442695, %v441_v39  ;;  %v458_v45 = vmul.f32 1.442695, %v445_v40  ;;  %v383_v39 = vmul.f32 1.442695, %v371_v35 }
 0x167   : > { %v943_v42 = vpop.xlane.xlu0 %417  ;;  %v945_v43 = vpop.xlane.xlu1 %426  ;;  %v381_v40 = vmul.f32 1.442695, %v370_v36 }
 0x168   : > { %v440_v44 = vsub.f32 %v907_v19, %v943_v42  ;;  %761 = vpow2.f32 %v450_v41  ;;  %v443_v46 = vsub.f32 %v913_v24, %v945_v43  ;;  %v369_v41 = vmin.f32 %v917_v27, 0.0 }
 0x16a   : > { %v448_v47 = vmul.f32 1.442695, %v440_v44  ;;  %v454_v51 = vmul.f32 1.442695, %v443_v46  ;;  %v379_v46 = vmul.f32 1.442695, %v369_v41 }
 0x16b   : > { %v951_v48 = vpop.xlane.xlu0 %429  ;;  %v953_v49 = vpop.xlane.xlu1 %423 }
 0x16c   : > { %763 = vpow2.f32 %v448_v47  ;;  %v444_v50 = vsub.f32 %v921_v30, %v951_v48  ;;  %v442_v52 = vsub.f32 %v917_v27, %v953_v49  ;;  %v373_v47 = vmin.f32 %v925_v32, 0.0 }
 0x16d   : > { %765 = vpow2.f32 %v458_v45  ;;  %v374_v45 = vmin.f32 %v929_v34, 0.0 }
 0x16e   : > { %v456_v53 = vmul.f32 1.442695, %v444_v50  ;;  %v452_v57 = vmul.f32 1.442695, %v442_v52 }
 0x16f   : > { %v959_v54 = vpop.xlane.xlu0 %435  ;;  %v961_v55 = vpop.xlane.xlu1 %438 }
 0x170   : > { %767 = vpow2.f32 %v456_v53  ;;  %v446_v56 = vsub.f32 %v925_v32, %v959_v54  ;;  %v447_v58 = vsub.f32 %v929_v34, %v961_v55  ;;  %v389_v53 = vmul.f32 1.442695, %v374_v45 }
 0x171   : > { %769 = vpow2.f32 %v454_v51 }
 0x172   : > { %v460_v59 = vmul.f32 1.442695, %v446_v56  ;;  %v462_v60 = vmul.f32 1.442695, %v447_v58  ;;  %v387_v56 = vmul.f32 1.442695, %v373_v47 }
 0x174   : > { %771 = vpow2.f32 %v460_v59 }
 0x175   : > { %773 = vpow2.f32 %v452_v57  ;;  %v762_v61 = vpop.eup %761 }
 0x176   : > { %474 = vrot.lane.b32.xlu1 %v762_v61, %s833_s30  ;;  %775 = vpow2.f32 %v462_v60 }
 0x177   : > { %777 = vpow2.f32 %v377_v26 }
 0x178   : > { %779 = vpow2.f32 %v385_v31 }
 0x179   : > { %v764_v62 = vpop.eup %763  ;;  %781 = vpow2.f32 %v375_v33 }
 0x17a   : > { %v766_v63 = vpop.eup %765  ;;  %472 = vrot.lane.b32.xlu0 %v764_v62, %s833_s30  ;;  %783 = vpow2.f32 %v383_v39 }
 0x17b   : > { %482 = vrot.lane.b32.xlu1 %v766_v63, %s833_s30 }
 0x17d   : > { %v768_v0 = vpop.eup %767 }
 0x17e   : > { %v770_v1 = vpop.eup %769  ;;  %480 = vrot.lane.b32.xlu0 %v768_v0, %s833_s30 }
 0x17f   : > { %478 = vrot.lane.b32.xlu1 %v770_v1, %s833_s30 }
 0x181   : > { %v772_v2 = vpop.eup %771 }
 0x182   : > { %v774_v3 = vpop.eup %773  ;;  %484 = vrot.lane.b32.xlu0 %v772_v2, %s833_s30 }
 0x183   : > { %476 = vrot.lane.b32.xlu1 %v774_v3, %s833_s30  ;;  %v776_v4 = vpop.eup %775 }
 0x184   : > { %v778_v51 = vpop.eup %777 }
 0x185   : > { %v685_v57 = vadd.f32 -1.0, %v778_v51  ;;  %v780_v59 = vpop.eup %779 }
 0x186   : > { %v782_v60 = vpop.eup %781  ;;  %v689_v62 = vadd.f32 -1.0, %v780_v59 }
 0x187   : > { %486 = vrot.lane.b32.xlu1 %v776_v4, %s833_s30  ;;  %v400_v61 = vsel %vm360_vm3, %v903_v15, %v685_v57  ;;  %v684_v0 = vadd.f32 -1.0, %v782_v60  ;;  %v784_v1 = vpop.eup %783 }
 0x188   : > { %v408_v3 = vadd.f32 1.0, %v400_v61 }
 0x1e8   : > { %v475_v5 = vpop.permute.xlu1 %474 }
 0x1e9   : > { %v500_v6 = vsel %vm496_vm2, %v475_v5, 0.0  ;;  %v404_v5 = vsel %vm364_vm4, %v905_v16, %v689_v62 }
 0x1ea   : > { %501 = vadd.xlane.f32.xlu1 %v500_v6 }
 0x1ec   : > { %v473_v7 = vpop.permute.xlu0 %472 }
 0x1ed   : > { %v483_v8 = vpop.permute.xlu1 %482  ;;  %v497_v9 = vsel %vm496_vm2, %v473_v7, 0.0 }
 0x1ee   : > { %v512_v10 = vsel %vm496_vm2, %v483_v8, 0.0  ;;  %498 = vadd.xlane.f32.xlu0 %v497_v9  ;;  %v399_v8 = vsel %vm359_vm5, %v907_v19, %v684_v0  ;;  %v688_v9 = vadd.f32 -1.0, %v784_v1 }
 0x1ef   : > { %513 = vadd.xlane.f32.xlu1 %v512_v10 }
 0x1f0   : > { %v481_v11 = vpop.permute.xlu0 %480  ;;  %v403_v26 = vsel %vm363_vm6, %v921_v30, %v688_v9 }
 0x1f1   : > { %v479_v12 = vpop.permute.xlu1 %478  ;;  %v509_v13 = vsel %vm496_vm2, %v481_v11, 0.0  ;;  %v411_v41 = vadd.f32 1.0, %v403_v26 }
 0x1f2   : > { %510 = vadd.xlane.f32.xlu0 %v509_v13  ;;  %v506_v17 = vsel %vm496_vm2, %v479_v12, 0.0 }
 0x1f4   : > { %v485_v21 = vpop.permute.xlu0 %484 }
 0x1f5   : > { %v477_v14 = vpop.permute.xlu1 %476  ;;  %v515_v23 = vsel %vm496_vm2, %v485_v21, 0.0  ;;  %v407_v21 = vadd.f32 1.0, %v399_v8 }
 0x1f6   : > { %507 = vadd.xlane.f32.xlu0 %v506_v17  ;;  %v503_v20 = vsel %vm496_vm2, %v477_v14, 0.0  ;;  %v554_v14 = vsel %vm496_vm2, %v903_v15, %v408_v3  ;;  %v412_v17 = vadd.f32 1.0, %v404_v5 }
 0x1f9   : > { %v487_v18 = vpop.permute.xlu1 %486 }
 0x1fa   : > { %v518_v22 = vsel %vm496_vm2, %v487_v18, 0.0  ;;  %504 = vadd.xlane.f32.xlu0 %v503_v20 }
 0x1fb   : > { %519 = vadd.xlane.f32.xlu1 %v518_v22 }
 0x1fe   : > { %516 = vadd.xlane.f32.xlu0 %v515_v23 }
 0x273   : > { %v502_v44 = vpop.xlane.xlu1 %501 }
 0x274   : > { %785 = vlog2.f32 %v502_v44 }
 0x275   : > { %787 = vpow2.f32 %v381_v40  ;;  %v553_v40 = vsel %vm496_vm2, %v907_v19, %v407_v21 }
 0x277   : > { %v499_v50 = vpop.xlane.xlu0 %498 }
 0x278   : > { %v514_v52 = vpop.xlane.xlu1 %513  ;;  %789 = vlog2.f32 %v499_v50 }
 0x279   : > { %791 = vlog2.f32 %v514_v52 }
 0x27a   : > { %793 = vpow2.f32 %v379_v46 }
 0x27b   : > { %v511_v58 = vpop.xlane.xlu0 %510 }
 0x27c   : > { %795 = vlog2.f32 %v511_v58 }
 0x27d   : > { %797 = vpow2.f32 %v389_v53  ;;  %v557_v53 = vsel %vm496_vm2, %v921_v30, %v411_v41 }
 0x27e   : > { %799 = vpow2.f32 %v387_v56 }
 0x27f   : > { %v508_v63 = vpop.xlane.xlu0 %507 }
 0x280   : > { %801 = vlog2.f32 %v508_v63 }
 0x281   : > { %v786_v2 = vpop.eup %785 }
 0x282   : > { %v524_v4 = vmul.f32 0.6931472, %v786_v2  ;;  %v788_v7 = vpop.eup %787 }
 0x283   : > { %v505_v6 = vpop.xlane.xlu0 %504  ;;  %v687_v28 = vadd.f32 -1.0, %v788_v7 }
 0x284   : > { %v520_v10 = vpop.xlane.xlu1 %519  ;;  %803 = vlog2.f32 %v505_v6  ;;  %v538_v12 = vadd.f32 %v524_v4, %v937_v38 }
 0x285   : > { %v790_v11 = vpop.eup %789  ;;  %805 = vlog2.f32 %v520_v10  ;;  %v402_v46 = vsel %vm362_vm9, %v913_v24, %v687_v28 }
 0x286   : > { %v792_v13 = vpop.eup %791  ;;  %v522_v18 = vmul.f32 0.6931472, %v790_v11  ;;  %v546_v38 = vsub.f32 %v903_v15, %v538_v12  ;;  %v410_v56 = vadd.f32 1.0, %v402_v46 }
 0x287   : > { %v532_v20 = vmul.f32 0.6931472, %v792_v13  ;;  %v517_v22 = vpop.xlane.xlu0 %516  ;;  %v794_v23 = vpop.eup %793 }
 0x288   : > { %v537_v25 = vadd.f32 %v522_v18, %v943_v42  ;;  %807 = vlog2.f32 %v517_v22  ;;  %v563_v31 = vsel %vm561_vm7, %v554_v14, %v546_v38  ;;  %v558_v42 = vsel %vm496_vm2, %v905_v16, %v412_v17 }
 0x289   : > { %v796_v29 = vpop.eup %795  ;;  %v542_v33 = vadd.f32 %v532_v20, %v935_v37  ;;  %572 = vst.msk [vmem:[%s998_s6 + $0x8] sm:$0xff] %vm570_vm8, %v563_v31  ;;  %v686_v47 = vadd.f32 -1.0, %v794_v23  ;;  %v556_v0 = vsel %vm496_vm2, %v913_v24, %v410_v56 }
 0x28a   : > { %v798_v35 = vpop.eup %797  ;;  %v545_v15 = vsub.f32 %v907_v19, %v537_v25  ;;  %v530_v36 = vmul.f32 0.6931472, %v796_v29 }
 0x28b   : > { %v550_v39 = vsub.f32 %v905_v16, %v542_v33  ;;  %v800_v37 = vpop.eup %799  ;;  %v691_v52 = vadd.f32 -1.0, %v798_v35  ;;  %v401_v58 = vsel %vm361_vm11, %v917_v27, %v686_v47 }
 0x28c   : > { %v562_v44 = vsel %vm561_vm7, %v553_v40, %v545_v15  ;;  %v541_v45 = vadd.f32 %v530_v36, %v951_v48  ;;  %v690_v59 = vadd.f32 -1.0, %v800_v37  ;;  %v409_v2 = vadd.f32 1.0, %v401_v58 }
 0x28d   : > { %v802_v50 = vpop.eup %801  ;;  %v567_v51 = vsel %vm561_vm7, %v558_v42, %v550_v39  ;;  %571 = vst.msk [vmem:[%s998_s6] sm:$0xff] %vm570_vm8, %v562_v44  ;;  %v406_v61 = vsel %vm366_vm10, %v929_v34, %v691_v52 }
 0x28e   : > { %576 = vst.msk [vmem:[%s998_s6 + $0x28] sm:$0xff] %vm570_vm8, %v567_v51  ;;  %v549_v16 = vsub.f32 %v921_v30, %v541_v45  ;;  %v528_v19 = vmul.f32 0.6931472, %v802_v50  ;;  %v414_v3 = vadd.f32 1.0, %v406_v61  ;;  %v405_v5 = vsel %vm365_vm12, %v925_v32, %v690_v59 }
 0x28f   : > { %v555_v10 = vsel %vm496_vm2, %v917_v27, %v409_v2  ;;  %v413_v11 = vadd.f32 1.0, %v405_v5 }
 0x290   : > { %v566_v48 = vsel %vm561_vm7, %v557_v53, %v549_v16  ;;  %v540_v57 = vadd.f32 %v528_v19, %v945_v43 }
 0x291   : > { %v804_v60 = vpop.eup %803  ;;  %575 = vst.msk [vmem:[%s998_s6 + $0x20] sm:$0xff] %vm570_vm8, %v566_v48  ;;  %v559_v17 = vsel %vm496_vm2, %v925_v32, %v413_v11 }
 0x292   : > { %v806_v62 = vpop.eup %805  ;;  %v548_v30 = vsub.f32 %v913_v24, %v540_v57  ;;  %v526_v63 = vmul.f32 0.6931472, %v804_v60 }
 0x293   : > { %v536_v1 = vmul.f32 0.6931472, %v806_v62 }
 0x294   : > { %v565_v43 = vsel %vm561_vm7, %v556_v0, %v548_v30  ;;  %v539_v4 = vadd.f32 %v526_v63, %v953_v49  ;;  %v560_v49 = vsel %vm496_vm2, %v929_v34, %v414_v3 }
 0x295   : > { %v808_v6 = vpop.eup %807  ;;  %574 = vst.msk [vmem:[%s998_s6 + $0x18] sm:$0xff] %vm570_vm8, %v565_v43  ;;  %v544_v7 = vadd.f32 %v536_v1, %v961_v55 }
 0x296   : > { %v547_v24 = vsub.f32 %v917_v27, %v539_v4  ;;  %v534_v8 = vmul.f32 0.6931472, %v808_v6 }
 0x297   : > { %v552_v9 = vsub.f32 %v929_v34, %v544_v7 }
 0x298   : > { %v564_v12 = vsel %vm561_vm7, %v555_v10, %v547_v24  ;;  %v543_v13 = vadd.f32 %v534_v8, %v959_v54 }
 0x299   : > { %v569_v14 = vsel %vm561_vm7, %v560_v49, %v552_v9  ;;  %573 = vst.msk [vmem:[%s998_s6 + $0x10] sm:$0xff] %vm570_vm8, %v564_v12 }
 0x29a   : > { %578 = vst.msk [vmem:[%s998_s6 + $0x38] sm:$0xff] %vm570_vm8, %v569_v14  ;;  %v551_v55 = vsub.f32 %v925_v32, %v543_v13 }
 0x29c   : > { %v568_v27 = vsel %vm561_vm7, %v559_v17, %v551_v55 }
 0x29d   : > { %577 = vst.msk [vmem:[%s998_s6 + $0x30] sm:$0xff] %vm570_vm8, %v568_v27 }
 0x29e PF: > { %s13_s14 = sadd.s32 1, %s831_s14   ;;  %s1075_s12 = smov %s827_s13 }
 0x29f   : > { %p10_p5 = scmp.ge.s32.totalorder %s13_s14, 4   ;;  %s1076_s13 = smov %s1078_s15 }
 0x2a1   :  { %12 = sbr.rel (!%p10_p5) target bundleno = 2 (0x2), region = 62 }

// kernel: initial_tier_forward.14
= control target key start
LH: loop header
LB: loop body
LE: loop exit
PB: predicated region body
PF: predicated region fallthrough
CT: control target
= control target key end

     0   :  { %s2627_s30 = smov 0   ;;  %s2629_s10 = smov 0   ;;  %s2999_s0 = inlined_call_operand.vmem [shape: f32[2,8,8,32], index: 0, kind: input, shape index: {}]   ;;  %s3000_s1 = inlined_call_operand.vmem [shape: f32[2,8,8,32], index: 1, kind: input, shape index: {}]   ;;  %s3001_s2 = inlined_call_operand.vmem [shape: f32[2,8,32], index: 2, kind: input, shape index: {}]   ;;  %s3002_s3 = inlined_call_operand.vmem [shape: f32[32,96], index: 3, kind: input, shape index: {}]   ;;  %s3003_s4 = inlined_call_operand.vmem [shape: f32[32,96], index: 4, kind: input, shape index: {}]   ;;  %s3004_s5 = inlined_call_operand.vmem [shape: f32[1,96], index: 5, kind: input, shape index: {}]   ;;  %s3005_s6 = inlined_call_operand.vmem [shape: f32[1,96], index: 6, kind: input, shape index: {}]   ;;  %s3006_s7 = inlined_call_operand.vmem [shape: f32[32,32], index: 7, kind: input, shape index: {}]   ;;  %s3007_s8 = inlined_call_operand.vmem [shape: f32[1,32], index: 8, kind: input, shape index: {}]   ;;  %s3008_s9 = inlined_call_operand.vmem [shape: f32[2,8,8,32], index: 9, kind: output, shape index: {}]  }
   0x1   :  { %s2631_s11 = smov 0  }
   0x2 LB: > { %s31_s12 = sadd.s32 1, %s2564_s10  ;;  %p2212_p0 = scmp.ge.s32.totalorder %s2568_s11, 1  ;;  %s2568_s11 = sphi %s2631_s11, %s19_s11   ;;  %s2564_s10 = sphi %s2629_s10, %s3010_s10   ;;  %s2560_s30 = sphi %s2627_s30, %s3009_s30  }
   0x3   : > { %p33_p1 = scmp.ge.s32.totalorder %s31_s12, 2  ;;  %p339_p2 = scmp.lt.s32.totalorder %s2568_s11, 3 }
   0x5   : > { %s3012_s12 = smov (%p33_p1, %s31_s12), 0  ;;  %p340_p3 = pnand %p2212_p0, %p339_p2 }
   0x6   : > { %p400_p4 = scmp.lt.s32.totalorder (!%p340_p3), %s2560_s30, 1  ;;  %s2575_s27 = smov (!%p340_p3), 64  }
   0x7   : > { %343 = sbr.rel (%p340_p3) target bundleno = 5689 (0x1639), region = 56  ;;  %s2576_s29 = smov (!%p340_p3), 96  }
   0xc   : > { %v698_v0 = vld [vmem:[%s3002_s3 + $0x18] sm:$0xff]  ;;  %v697_v1 = vld [vmem:[%s3002_s3 + $0x10] sm:$0xff]  ;;  %v466_v2 = vlaneseq  ;;  %v2570_v3 = vmov 1966171168   ;;  %v696_v5 = vld [vmem:[%s3002_s3 + $0x8] sm:$0xff]  ;;  %s3014_s30 = smov (!%p400_p4, %s2560_s30), 1 }
   0xd   : > { %2458 = vmatprep.subr.mxu1 %v698_v0  ;;  %2330 = vmatprep.subr.mxu0 %v698_v0  ;;  %v464_v4 = vunpack.c.l.s4 %v2570_v3  ;;  %v695_v6 = vld [vmem:[%s3002_s3] sm:$0xff]  ;;  %s2657_s21 = sshll.u32 %s3014_s30, 6  ;;  %s2217_s22 = sshll.u32 %s3014_s30, 3  ;;  %v2571_v10 = vmov 1983009808   ;;  %v2572_v12 = vmov 0.0  }
   0xe   : > { %2462 = vmatpush3.msra.mxu1 %v698_v0  ;;  %2331 = vmatpush3.msra.mxu0 %v698_v0  ;;  %v2659_v8 = vshrl.u32 %v466_v2, 7  ;;  %s2665_s25 = scalar_lea.vmem %s2999_s0, %s2657_s21  ;;  %s2671_s28 = scalar_lea.vmem %s3000_s1, %s2657_s21  ;;  %v562_v11 = vunpack.c.l.s4 %v2571_v10  ;;  %v2573_v16 = vmov 1934713408   ;;  %vm706_vm0 = vcmask 261120  }
   0xf   : > { %2459 = vmatprep.subr.mxu1 %v697_v1  ;;  %2332 = vmatprep.subr.mxu0 %v697_v1  ;;  %v465_v7 = vunpack.c.0.s8 %v464_v4  ;;  %s425_s13 = scalar_lea.vmem %s3001_s2, %s2217_s22  ;;  %v436_v13 = vld [vmem:[%s2665_s25] sm:$0xff]  ;;  %v437_v14 = vld [vmem:[%s2665_s25 + $0x8] sm:$0xff]  ;;  %v438_v15 = vld [vmem:[%s2665_s25 + $0x10] sm:$0xff]  ;;  %v2682_v17 = vunpack.c.l.s4 %v2573_v16  ;;  %vm2574_vm1 = vmmov 0   ;;  %vm836_vm2 = vcmask 785408  }
  0x10   : > { %2463 = vmatpush3.msra.mxu1 %v697_v1  ;;  %2333 = vmatpush3.msra.mxu0 %v697_v1  ;;  %v439_v18 = vld [vmem:[%s2665_s25 + $0x18] sm:$0xff]  ;;  %v444_v19 = vld [vmem:[%s2671_s28] sm:$0xff]  ;;  %v445_v21 = vld [vmem:[%s2671_s28 + $0x8] sm:$0xff]  ;;  %v513_v29 = vsub.s32 0, %v2659_v8  ;;  %v563_v30 = vunpack.c.0.s8 %v562_v11 }
  0x11   : > { %2460 = vmatprep.subr.mxu1 %v696_v5  ;;  %2334 = vmatprep.subr.mxu0 %v696_v5  ;;  %v468_v9 = vsub.s32 %v465_v7, %v2659_v8  ;;  %v460_v20 = vld [vmem:[%s425_s13] sm:$0xff]  ;;  %v446_v22 = vld [vmem:[%s2671_s28 + $0x10] sm:$0xff]  ;;  %v447_v23 = vld [vmem:[%s2671_s28 + $0x18] sm:$0xff]  ;;  %v627_v37 = vunpack.c.0.s8 %v2682_v17  ;;  %v452_v38 = vadd.f32 %v444_v19, %v436_v13  ;;  %v453_v39 = vadd.f32 %v445_v21, %v437_v14 }
  0x12   : > { %2464 = vmatpush3.msra.mxu1 %v696_v5  ;;  %2335 = vmatpush3.msra.mxu0 %v696_v5  ;;  %v462_v24 = vcombine.high %v460_v20, %v460_v20  ;;  %v440_v26 = vld [vmem:[%s2665_s25 + $0x20] sm:$0xff]  ;;  %v441_v27 = vld [vmem:[%s2665_s25 + $0x28] sm:$0xff]  ;;  %v442_v28 = vld [vmem:[%s2665_s25 + $0x30] sm:$0xff]  ;;  %v454_v40 = vadd.f32 %v446_v22, %v438_v15  ;;  %v455_v41 = vadd.f32 %v447_v23, %v439_v18 }
  0x13   : > { %2461 = vmatprep.subr.mxu1 %v695_v6  ;;  %2336 = vmatprep.subr.mxu0 %v695_v6  ;;  %v469_v25 = vrot.slane %v460_v20, %v468_v9  ;;  %v448_v31 = vld [vmem:[%s2671_s28 + $0x20] sm:$0xff]  ;;  %v449_v32 = vld [vmem:[%s2671_s28 + $0x28] sm:$0xff]  ;;  %v450_v33 = vld [vmem:[%s2671_s28 + $0x30] sm:$0xff]  ;;  %v2700_v3 = vsub.s32 %v563_v30, %v2659_v8  ;;  %v2706_v17 = vsub.s32 %v627_v37, %v2659_v8 }
  0x14   : > { %2465 = vmatpush3.msra.mxu1 %v695_v6  ;;  %2337 = vmatpush3.msra.mxu0 %v695_v6  ;;  %v476_v34 = vrot.slane %v462_v24, %v468_v9  ;;  %v443_v42 = vld [vmem:[%s2665_s25 + $0x38] sm:$0xff]  ;;  %v456_v48 = vadd.f32 %v448_v31, %v440_v26  ;;  %v457_v49 = vadd.f32 %v449_v32, %v441_v27  ;;  %s434_s25 = scalar_lea.vmem %s3008_s9, %s2657_s21 }
  0x15   : > { %2350 = vmatprep.subr.mxu1 %v2572_v12  ;;  %2372 = vmatprep.subr.mxu0 %v2572_v12  ;;  %v477_v35 = vcombine.high %v469_v25, %v469_v25  ;;  %v485_v36 = vrot.slane %v469_v25, %v468_v9  ;;  %v451_v43 = vld [vmem:[%s2671_s28 + $0x38] sm:$0xff]  ;;  %v458_v50 = vadd.f32 %v450_v33, %v442_v28 }
  0x16   : > { %v478_v44 = vcombine.high %v476_v34, %v476_v34  ;;  %v492_v45 = vrot.slane %v476_v34, %v468_v9  ;;  %v459_v56 = vadd.f32 %v451_v43, %v443_v42 }
  0x17   : > { %v499_v46 = vrot.slane %v477_v35, %v468_v9  ;;  %v507_v47 = vcombine.high %v485_v36, %v485_v36  ;;  %v514_v51 = vrot.slane %v485_v36, %v513_v29 }
  0x18   : > { %v506_v52 = vrot.slane %v478_v44, %v468_v9  ;;  %v508_v53 = vcombine.high %v492_v45, %v492_v45  ;;  %v530_v58 = vrot.slane %v492_v45, %v513_v29 }
  0x19   : > { %v509_v54 = vcombine.high %v499_v46, %v499_v46  ;;  %v518_v55 = vrot.slane %v499_v46, %v513_v29  ;;  %v522_v57 = vrot.slane %v507_v47, %v513_v29  ;;  %v551_v59 = vadd.f32 %v514_v51, %v452_v38  ;;  %v2739_v46 = vld [vmem:[%s3003_s4 + $0x18] sm:$0xff]  ;;  %v2747_v47 = vld [vmem:[%s3003_s4 + $0x10] sm:$0xff]  ;;  %v2793_v51 = vld [vmem:[%s3004_s5] ss:$0 sm:$0xff] }
  0x1a   : > { %v510_v60 = vcombine.high %v506_v52, %v506_v52  ;;  %v534_v62 = vrot.slane %v506_v52, %v513_v29  ;;  %v538_v63 = vrot.slane %v508_v53, %v513_v29  ;;  %v555_v2 = vadd.f32 %v530_v58, %v456_v48 }
  0x1b   : > { %v526_v61 = vrot.slane %v509_v54, %v513_v29  ;;  %v552_v0 = vadd.f32 %v518_v55, %v453_v39  ;;  %v553_v1 = vadd.f32 %v522_v57, %v454_v40 }
  0x1c   : > { %v542_v4 = vrot.slane %v510_v60, %v513_v29  ;;  %v556_v6 = vadd.f32 %v534_v62, %v457_v49  ;;  %v557_v7 = vadd.f32 %v538_v63, %v458_v50  ;;  %v2756_v49 = vld [vmem:[%s3003_s4 + $0x8] sm:$0xff]  ;;  %v2766_v50 = vld [vmem:[%s3003_s4] sm:$0xff] }
  0x1d   : > { %v554_v5 = vadd.f32 %v526_v61, %v455_v41  ;;  %v559_v9 = vcombine.low %v551_v59, %v553_v1  ;;  %v560_v10 = vcombine.high %v551_v59, %v553_v1  ;;  %v2807_v63 = vld [vmem:[%s3005_s6] ss:$0 sm:$0xff] }
  0x1e   : > { %v558_v11 = vadd.f32 %v542_v4, %v459_v56  ;;  %v591_v14 = vcombine.low %v555_v2, %v557_v7  ;;  %v592_v19 = vcombine.high %v555_v2, %v557_v7 }
  0x1f   : > { %v575_v13 = vcombine.low %v552_v0, %v554_v5  ;;  %v576_v15 = vcombine.high %v552_v0, %v554_v5  ;;  %v2703_v16 = vrot.slane %v559_v9, %v2700_v3  ;;  %v574_v18 = vrot.slane %v560_v10, %v2700_v3 }
  0x20   : > { %v2713_v21 = vrot.slane %v591_v14, %v2700_v3  ;;  %v607_v22 = vcombine.low %v556_v6, %v558_v11  ;;  %v606_v24 = vrot.slane %v592_v19, %v2700_v3  ;;  %v608_v25 = vcombine.high %v556_v6, %v558_v11 }
  0x21   : > { %v2710_v20 = vrot.slane %v575_v13, %v2700_v3  ;;  %v590_v23 = vrot.slane %v576_v15, %v2700_v3 }
  0x22   : > { %v2718_v26 = vrot.slane %v607_v22, %v2700_v3  ;;  %v622_v29 = vrot.slane %v608_v25, %v2700_v3 }
  0x23   : > { %v623_v8 = vcombine.low %v2703_v16, %v2710_v20  ;;  %v624_v27 = vcombine.high %v2703_v16, %v2710_v20  ;;  %v639_v28 = vcombine.low %v574_v18, %v590_v23  ;;  %v640_v30 = vcombine.high %v574_v18, %v590_v23 }
  0x24   : > { %v655_v32 = vcombine.low %v2713_v21, %v2718_v26  ;;  %v656_v33 = vcombine.high %v2713_v21, %v2718_v26  ;;  %v671_v35 = vcombine.low %v606_v24, %v622_v29  ;;  %v672_v36 = vcombine.high %v606_v24, %v622_v29 }
  0x25   : > { %v631_v31 = vrot.slane %v623_v8, %v2706_v17  ;;  %v647_v34 = vrot.slane %v639_v28, %v2706_v17  ;;  %v654_v37 = vrot.slane %v640_v30, %v2706_v17 }
  0x26   : > { %v663_v38 = vrot.slane %v655_v32, %v2706_v17  ;;  %v679_v39 = vrot.slane %v671_v35, %v2706_v17  ;;  %v686_v40 = vrot.slane %v672_v36, %v2706_v17 }
  0x28   : > { %v687_v41 = vcombine.low %v631_v31, %v663_v38  ;;  %v688_v42 = vcombine.high %v631_v31, %v663_v38  ;;  %v691_v43 = vcombine.low %v647_v34, %v679_v39  ;;  %v692_v44 = vcombine.high %v647_v34, %v679_v39 }
  0x29   : > { %v693_v45 = vcombine.low %v654_v37, %v686_v40  ;;  %v694_v48 = vcombine.high %v654_v37, %v686_v40 }
  0x2a   : > { %2338 = vmatprep.mubr.msk.f32.mxu0 %vm706_vm0, %v687_v41  ;;  %2344 = vmatprep.mubr.msk.f32.mxu1 %vm706_vm0, %v691_v43  ;;  %v638_v43 = vrot.slane %v624_v27, %v2706_v17 }
  0x2b   : > { %2339 = vmatmul.mubr.msk.f32.vlgmr.msra.gmra.mxu0 %vm706_vm0, %v688_v42  ;;  %2345 = vmatmul.mubr.msk.f32.vlgmr.msra.gmra.mxu1 %vm706_vm0, %v692_v44  ;;  %v670_v44 = vrot.slane %v656_v33, %v2706_v17 }
  0x2c   : > { %2373 = vmatpush3.msra.mxu0 %v2739_v46  ;;  %2351 = vmatpush3.msra.mxu1 %v2739_v46 }
  0x2d   : > { %2347 = vmatprep.mubr.msk.f32.mxu1 %vm706_vm0, %v693_v45  ;;  %2352 = vmatprep.subr.mxu1 %v2572_v12  ;;  %v689_v45 = vcombine.low %v638_v43, %v670_v44 }
  0x2e   : > { %2374 = vmatprep.subr.mxu0 %v2572_v12  ;;  %2353 = vmatpush3.msra.mxu1 %v2747_v47 }
  0x2f   : > { %2375 = vmatpush3.msra.mxu0 %v2747_v47  ;;  %2354 = vmatprep.subr.mxu1 %v2572_v12 }
  0x30   : > { %2348 = vmatmul.mubr.msk.f32.gmra.mxu1 %vm706_vm0, %v694_v48  ;;  %2376 = vmatprep.subr.mxu0 %v2572_v12  ;;  %v690_v48 = vcombine.high %v638_v43, %v670_v44 }
  0x31   : > { %2355 = vmatpush3.msra.mxu1 %v2756_v49  ;;  %2358 = vmatprep.mubr.msk.f32.mxu1 %vm2574_vm1, %v2572_v12 }
  0x32   : > { %2356 = vmatprep.subr.mxu1 %v2572_v12  ;;  %2377 = vmatpush3.msra.mxu0 %v2756_v49 }
  0x33   : > { %2357 = vmatpush3.msra.mxu1 %v2766_v50  ;;  %2378 = vmatprep.subr.mxu0 %v2572_v12 }
  0x34   : > { %2359 = vmatmul.mubr.f32.vlgmr.msra.gmra.mxu1 %v2572_v12  ;;  %2361 = vmatprep.subr.mxu1 %v2572_v12 }
  0x35   : > { %2362 = vmatpush3.msra.mxu1 %v2739_v46  ;;  %2369 = vmatprep.mubr.msk.f32.mxu1 %vm2574_vm1, %v2572_v12 }
  0x36   : > { %2363 = vmatprep.subr.mxu1 %v2572_v12  ;;  %2379 = vmatpush3.msra.mxu0 %v2766_v50 }
  0x37   : > { %2364 = vmatpush3.msra.mxu1 %v2747_v47  ;;  %2394 = vmatprep.subr.mxu0 %v2572_v12 }
  0x38   : > { %2365 = vmatprep.subr.mxu1 %v2572_v12  ;;  %2341 = vmatprep.mubr.msk.f32.mxu0 %vm706_vm0, %v689_v45 }
  0x39   : > { %2366 = vmatpush3.msra.mxu1 %v2756_v49  ;;  %2342 = vmatmul.mubr.msk.f32.gmra.mxu0 %vm706_vm0, %v690_v48 }
  0x3a   : > { %2367 = vmatprep.subr.mxu1 %v2572_v12  ;;  %2380 = vmatprep.mubr.msk.f32.mxu0 %vm2574_vm1, %v2572_v12 }
  0x3b   : > { %2368 = vmatpush3.msra.mxu1 %v2766_v50 }
  0x3c   : > { %2383 = vmatprep.subr.mxu1 %v2572_v12 }
  0xeb   : > { %v2340_v52 = vpop.f32.mrf.mxu0  ;;  %v2346_v54 = vpop.f32.mrf.mxu1 }
  0xec   : > { %v803_v53 = vadd.f32 %v2340_v52, %v2793_v51  ;;  %v823_v55 = vadd.f32 %v2346_v54, %v2793_v51 }
  0xed   : > { %v797_v56 = vpop.f32.mrf.mxu0  ;;  %v817_v58 = vpop.f32.mrf.mxu1 }
  0xee   : > { %838 = vst.msk [vmem:[#allocation2 + $0x8] sm:$0xff] %vm836_vm2, %v803_v53  ;;  %v798_v57 = vadd.f32 %v2793_v51, %v797_v56  ;;  %842 = vst.msk [vmem:[#allocation2 + $0x28] sm:$0xff] %vm836_vm2, %v823_v55  ;;  %v818_v59 = vadd.f32 %v2793_v51, %v817_v58 }
  0xf0   : > { %837 = vst.msk [vmem:[#allocation2] sm:$0xff] %vm836_vm2, %v798_v57  ;;  %v2349_v60 = vpop.f32.mrf.mxu1  ;;  %841 = vst.msk [vmem:[#allocation2 + $0x20] sm:$0xff] %vm836_vm2, %v818_v59 }
  0xf1   : > { %v833_v61 = vadd.f32 %v2349_v60, %v2793_v51 }
  0xf2   : > { %v827_v62 = vpop.f32.mrf.mxu1 }
  0xf3   : > { %844 = vst.msk [vmem:[#allocation2 + $0x38] sm:$0xff] %vm836_vm2, %v833_v61  ;;  %v828_v0 = vadd.f32 %v2793_v51, %v827_v62 }
  0xf4   : > { %v925_v1 = vpop.f32.mrf.mxu1 }
  0xf5   : > { %843 = vst.msk [vmem:[#allocation2 + $0x30] sm:$0xff] %vm836_vm2, %v828_v0  ;;  %v926_v2 = vadd.f32 %v2807_v63, %v925_v1  ;;  %v1045_v32 = vld [vmem:[#allocation2 + $0x8] sm:$0xff] }
  0xf6   : > { %v2360_v4 = vpop.f32.mrf.mxu1 }
  0xf7   : > { %938 = vrot.lane.b32.xlu0 %v926_v2, %s2575_s27  ;;  %v929_v5 = vld [vmem:[#allocation2] sm:$0xff] }
  0xf8   : > { %v930_v6 = vadd.f32 %v929_v5, %v926_v2  ;;  %v1396_v45 = vld [vmem:[#allocation2 + $0x20] sm:$0xff] }
  0xf9   : > { %v2343_v21 = vpop.f32.mrf.mxu0 }
  0xfa   : > { %v2230_v7 = vmul.f32 -1.442695, %v930_v6  ;;  %v813_v26 = vadd.f32 %v2343_v21, %v2793_v51 }
  0xfb   : > { %v807_v33 = vpop.f32.mrf.mxu0 }
  0xfc   : > { %2498 = vpow2.f32 %v2230_v7  ;;  %840 = vst.msk [vmem:[#allocation2 + $0x18] sm:$0xff] %vm836_vm2, %v813_v26  ;;  %v808_v55 = vadd.f32 %v2793_v51, %v807_v33 }
  0xfe   : > { %839 = vst.msk [vmem:[#allocation2 + $0x10] sm:$0xff] %vm836_vm2, %v808_v55 }
 0x105   : > { %v1162_v59 = vld [vmem:[#allocation2 + $0x10] sm:$0xff] }
 0x109   : > { %v2499_v9 = vpop.eup %2498 }
 0x10a   : > { %v934_v10 = vadd.f32 1.0, %v2499_v9 }
 0x10c   : > { %2500 = vrcp.f32 %v934_v10 }
 0x119   : > { %v2501_v11 = vpop.eup %2500 }
 0x11a   : > { %v948_v22 = vsub.f32 1.0, %v2501_v11  ;;  %v954_v24 = vmul.f32 0.0, %v2501_v11 }
 0x169   : > { %v939_v13 = vpop.permute.xlu0 %938 }
 0x16a   : > { %v941_v14 = vmul.f32 %v2501_v11, %v939_v13 }
 0x16c   : > { %943 = vrot.lane.b32.xlu0 %v941_v14, %s2575_s27 }
 0x1de   : > { %v944_v15 = vpop.permute.xlu0 %943 }
 0x1df   : > { %v946_v18 = vadd.f32 %v944_v15, %v929_v5 }
 0x1e1   : > { %2502 = vtanh.f32 %v946_v18 }
 0x1ee   : > { %v2503_v19 = vpop.eup %2502 }
 0x1ef   : > { %950 = vrot.lane.b32.xlu1 %v2503_v19, %s2576_s29 }
 0x261   : > { %v951_v23 = vpop.permute.xlu1 %950 }
 0x262   : > { %v953_v25 = vmul.f32 %v951_v23, %v948_v22  ;;  %v1279_v23 = vld [vmem:[#allocation2 + $0x18] sm:$0xff] }
 0x264   : > { %v955_v8 = vadd.f32 %v954_v24, %v953_v25 }
 0x266   : > { %957 = vrot.lane.b32.xlu1 %v955_v8, %s2576_s29 }
 0x2d8   : > { %v958_v28 = vpop.permute.xlu1 %957 }
 0x2d9   : > { %960 = vst.msk [vmem:[#allocation3] sm:$0xff] %vm706_vm0, %v958_v28  ;;  %2370 = vmatmul.mubr.msk.f32.vlgmr.msra.gmra.mxu1 %vm706_vm0, %v958_v28 }
 0x2da   : > { %2384 = vmatpush3.msra.mxu1 %v2739_v46  ;;  %2391 = vmatprep.mubr.msk.f32.mxu1 %vm2574_vm1, %v2572_v12 }
 0x2db   : > { %2385 = vmatprep.subr.mxu1 %v2572_v12 }
 0x2dc   : > { %2386 = vmatpush3.msra.mxu1 %v2747_v47 }
 0x2dd   : > { %2387 = vmatprep.subr.mxu1 %v2572_v12 }
 0x2de   : > { %2388 = vmatpush3.msra.mxu1 %v2756_v49 }
 0x2df   : > { %2389 = vmatprep.subr.mxu1 %v2572_v12 }
 0x2e0   : > { %2390 = vmatpush3.msra.mxu1 %v2766_v50 }
 0x2e1   : > { %2405 = vmatprep.subr.mxu1 %v2572_v12 }
 0x399   : > { %v1040_v29 = vpop.f32.mrf.mxu1 }
 0x39a   : > { %v1041_v30 = vadd.f32 %v2807_v63, %v1040_v29 }
 0x39b   : > { %v2371_v31 = vpop.f32.mrf.mxu1 }
 0x39c   : > { %1054 = vrot.lane.b32.xlu0 %v1041_v30, %s2575_s27  ;;  %v1046_v34 = vadd.f32 %v1045_v32, %v1041_v30 }
 0x39e   : > { %v2233_v35 = vmul.f32 -1.442695, %v1046_v34 }
 0x3a0   : > { %2504 = vpow2.f32 %v2233_v35 }
 0x3ad   : > { %v2505_v36 = vpop.eup %2504 }
 0x3ae   : > { %v1050_v37 = vadd.f32 1.0, %v2505_v36 }
 0x3b0   : > { %2506 = vrcp.f32 %v1050_v37 }
 0x3bd   : > { %v2507_v38 = vpop.eup %2506 }
 0x3be   : > { %v1064_v53 = vsub.f32 1.0, %v2507_v38  ;;  %v1070_v20 = vmul.f32 %v2507_v38, %v955_v8 }
 0x40e   : > { %v1055_v39 = vpop.permute.xlu0 %1054 }
 0x40f   : > { %v1057_v40 = vmul.f32 %v2507_v38, %v1055_v39 }
 0x411   : > { %1059 = vrot.lane.b32.xlu1 %v1057_v40, %s2575_s27 }
 0x483   : > { %v1060_v41 = vpop.permute.xlu1 %1059 }
 0x484   : > { %v1062_v42 = vadd.f32 %v1060_v41, %v1045_v32 }
 0x486   : > { %2508 = vtanh.f32 %v1062_v42 }
 0x493   : > { %v2509_v52 = vpop.eup %2508 }
 0x494   : > { %1066 = vrot.lane.b32.xlu0 %v2509_v52, %s2576_s29 }
 0x506   : > { %v1067_v16 = vpop.permute.xlu0 %1066 }
 0x507   : > { %v1069_v27 = vmul.f32 %v1067_v16, %v1064_v53 }
 0x509   : > { %v1071_v54 = vadd.f32 %v1070_v20, %v1069_v27 }
 0x50b   : > { %1073 = vrot.lane.b32.xlu1 %v1071_v54, %s2576_s29 }
 0x57d   : > { %v1074_v56 = vpop.permute.xlu1 %1073 }
 0x57e   : > { %1077 = vst.msk [vmem:[#allocation3 + $0x8] sm:$0xff] %vm706_vm0, %v1074_v56  ;;  %2381 = vmatmul.mubr.msk.f32.vlgmr.msra.gmra.mxu0 %vm706_vm0, %v1074_v56 }
 0x57f   : > { %2395 = vmatpush3.msra.mxu0 %v2739_v46  ;;  %2402 = vmatprep.mubr.msk.f32.mxu0 %vm2574_vm1, %v2572_v12 }
 0x580   : > { %2396 = vmatprep.subr.mxu0 %v2572_v12 }
 0x581   : > { %2397 = vmatpush3.msra.mxu0 %v2747_v47 }
 0x582   : > { %2398 = vmatprep.subr.mxu0 %v2572_v12 }
 0x583   : > { %2399 = vmatpush3.msra.mxu0 %v2756_v49 }
 0x584   : > { %2400 = vmatprep.subr.mxu0 %v2572_v12 }
 0x585   : > { %2401 = vmatpush3.msra.mxu0 %v2766_v50 }
 0x586   : > { %2416 = vmatprep.subr.mxu0 %v2572_v12 }
 0x63e   : > { %v1157_v51 = vpop.f32.mrf.mxu0 }
 0x63f   : > { %v1158_v57 = vadd.f32 %v2807_v63, %v1157_v51 }
 0x640   : > { %v2382_v58 = vpop.f32.mrf.mxu0 }
 0x641   : > { %1171 = vrot.lane.b32.xlu0 %v1158_v57, %s2575_s27  ;;  %v1163_v60 = vadd.f32 %v1162_v59, %v1158_v57 }
 0x643   : > { %v2236_v61 = vmul.f32 -1.442695, %v1163_v60 }
 0x645   : > { %2510 = vpow2.f32 %v2236_v61 }
 0x652   : > { %v2511_v62 = vpop.eup %2510 }
 0x653   : > { %v1167_v0 = vadd.f32 1.0, %v2511_v62 }
 0x655   : > { %2512 = vrcp.f32 %v1167_v0 }
 0x662   : > { %v2513_v1 = vpop.eup %2512 }
 0x663   : > { %v1181_v9 = vsub.f32 1.0, %v2513_v1  ;;  %v1187_v11 = vmul.f32 %v2513_v1, %v1071_v54 }
 0x6b3   : > { %v1172_v2 = vpop.permute.xlu0 %1171 }
 0x6b4   : > { %v1174_v4 = vmul.f32 %v2513_v1, %v1172_v2 }
 0x6b6   : > { %1176 = vrot.lane.b32.xlu1 %v1174_v4, %s2575_s27 }
 0x728   : > { %v1177_v5 = vpop.permute.xlu1 %1176 }
 0x729   : > { %v1179_v6 = vadd.f32 %v1177_v5, %v1162_v59 }
 0x72b   : > { %2514 = vtanh.f32 %v1179_v6  ;;  %v1791_v6 = vld [vmem:[%s3006_s7 + $0x18] sm:$0xff] }
 0x738   : > { %v2515_v7 = vpop.eup %2514 }
 0x739   : > { %1183 = vrot.lane.b32.xlu0 %v2515_v7, %s2576_s29 }
 0x7ab   : > { %v1184_v10 = vpop.permute.xlu0 %1183 }
 0x7ac   : > { %v1186_v13 = vmul.f32 %v1184_v10, %v1181_v9 }
 0x7ae   : > { %v1188_v14 = vadd.f32 %v1187_v11, %v1186_v13 }
 0x7b0   : > { %1190 = vrot.lane.b32.xlu1 %v1188_v14, %s2576_s29 }
 0x822   : > { %v1191_v15 = vpop.permute.xlu1 %1190 }
 0x823   : > { %1194 = vst.msk [vmem:[#allocation3 + $0x10] sm:$0xff] %vm706_vm0, %v1191_v15  ;;  %2392 = vmatmul.mubr.msk.f32.vlgmr.msra.gmra.mxu1 %vm706_vm0, %v1191_v15 }
 0x824   : > { %2406 = vmatpush3.msra.mxu1 %v2739_v46  ;;  %2413 = vmatprep.mubr.msk.f32.mxu1 %vm2574_vm1, %v2572_v12 }
 0x825   : > { %2407 = vmatprep.subr.mxu1 %v2572_v12 }
 0x826   : > { %2408 = vmatpush3.msra.mxu1 %v2747_v47 }
 0x827   : > { %2409 = vmatprep.subr.mxu1 %v2572_v12 }
 0x828   : > { %2410 = vmatpush3.msra.mxu1 %v2756_v49 }
 0x829   : > { %2411 = vmatprep.subr.mxu1 %v2572_v12 }
 0x82a   : > { %2412 = vmatpush3.msra.mxu1 %v2766_v50 }
 0x82b   : > { %2427 = vmatprep.subr.mxu1 %v2572_v12 }
 0x8e3   : > { %v1274_v18 = vpop.f32.mrf.mxu1 }
 0x8e4   : > { %v1275_v19 = vadd.f32 %v2807_v63, %v1274_v18  ;;  %v1790_v18 = vld [vmem:[%s3006_s7 + $0x10] sm:$0xff] }
 0x8e5   : > { %v2393_v22 = vpop.f32.mrf.mxu1 }
 0x8e6   : > { %1288 = vrot.lane.b32.xlu0 %v1275_v19, %s2575_s27  ;;  %v1280_v24 = vadd.f32 %v1279_v23, %v1275_v19  ;;  %v1780_v19 = vld [vmem:[#allocation3] sm:$0xff]  ;;  %v1789_v22 = vld [vmem:[%s3006_s7 + $0x8] sm:$0xff] }
 0x8e8   : > { %v2239_v25 = vmul.f32 -1.442695, %v1280_v24  ;;  %v1781_v24 = vld [vmem:[#allocation3 + $0x8] sm:$0xff] }
 0x8ea   : > { %2516 = vpow2.f32 %v2239_v25  ;;  %v1782_v25 = vld [vmem:[#allocation3 + $0x10] sm:$0xff] }
 0x8f7   : > { %v2517_v8 = vpop.eup %2516 }
 0x8f8   : > { %v1284_v28 = vadd.f32 1.0, %v2517_v8 }
 0x8fa   : > { %2518 = vrcp.f32 %v1284_v28 }
 0x907   : > { %v2519_v29 = vpop.eup %2518 }
 0x908   : > { %v1298_v36 = vsub.f32 1.0, %v2519_v29  ;;  %v1304_v38 = vmul.f32 %v2519_v29, %v1188_v14 }
 0x958   : > { %v1289_v30 = vpop.permute.xlu0 %1288 }
 0x959   : > { %v1291_v31 = vmul.f32 %v2519_v29, %v1289_v30 }
 0x95b   : > { %1293 = vrot.lane.b32.xlu1 %v1291_v31, %s2575_s27 }
 0x9cd   : > { %v1294_v32 = vpop.permute.xlu1 %1293 }
 0x9ce   : > { %v1296_v34 = vadd.f32 %v1294_v32, %v1279_v23  ;;  %v1788_v23 = vld [vmem:[%s3006_s7] sm:$0xff] }
 0x9d0   : > { %2520 = vtanh.f32 %v1296_v34  ;;  %v1630_v34 = vld [vmem:[#allocation2 + $0x30] sm:$0xff] }
 0x9dd   : > { %v2521_v35 = vpop.eup %2520 }
 0x9de   : > { %1300 = vrot.lane.b32.xlu0 %v2521_v35, %s2576_s29 }
 0xa50   : > { %v1301_v37 = vpop.permute.xlu0 %1300 }
 0xa51   : > { %v1303_v39 = vmul.f32 %v1301_v37, %v1298_v36 }
 0xa53   : > { %v1305_v40 = vadd.f32 %v1304_v38, %v1303_v39 }
 0xa55   : > { %1307 = vrot.lane.b32.xlu1 %v1305_v40, %s2576_s29 }
 0xac7   : > { %v1308_v41 = vpop.permute.xlu1 %1307 }
 0xac8   : > { %1311 = vst.msk [vmem:[#allocation3 + $0x18] sm:$0xff] %vm706_vm0, %v1308_v41  ;;  %2403 = vmatmul.mubr.msk.f32.vlgmr.msra.gmra.mxu0 %vm706_vm0, %v1308_v41 }
 0xac9   : > { %2417 = vmatpush3.msra.mxu0 %v2739_v46  ;;  %2424 = vmatprep.mubr.msk.f32.mxu0 %vm2574_vm1, %v2572_v12 }
 0xaca   : > { %2418 = vmatprep.subr.mxu0 %v2572_v12 }
 0xacb   : > { %2419 = vmatpush3.msra.mxu0 %v2747_v47 }
 0xacc   : > { %2420 = vmatprep.subr.mxu0 %v2572_v12 }
 0xacd   : > { %2421 = vmatpush3.msra.mxu0 %v2756_v49 }
 0xace   : > { %2422 = vmatprep.subr.mxu0 %v2572_v12 }
 0xacf   : > { %2423 = vmatpush3.msra.mxu0 %v2766_v50  ;;  %v1783_v8 = vld [vmem:[#allocation3 + $0x18] sm:$0xff] }
 0xad0   : > { %2438 = vmatprep.subr.mxu0 %v1791_v6 }
 0xb88   : > { %v1391_v42 = vpop.f32.mrf.mxu0 }
 0xb89   : > { %v1392_v43 = vadd.f32 %v2807_v63, %v1391_v42 }
 0xb8a   : > { %v2404_v44 = vpop.f32.mrf.mxu0 }
 0xb8b   : > { %1405 = vrot.lane.b32.xlu0 %v1392_v43, %s2575_s27  ;;  %v1397_v48 = vadd.f32 %v1396_v45, %v1392_v43 }
 0xb8d   : > { %v2242_v52 = vmul.f32 -1.442695, %v1397_v48 }
 0xb8f   : > { %2522 = vpow2.f32 %v2242_v52 }
 0xb9c   : > { %v2523_v53 = vpop.eup %2522 }
 0xb9d   : > { %v1401_v16 = vadd.f32 1.0, %v2523_v53 }
 0xb9f   : > { %2524 = vrcp.f32 %v1401_v16 }
 0xbac   : > { %v2525_v20 = vpop.eup %2524 }
 0xbad   : > { %v1415_v55 = vsub.f32 1.0, %v2525_v20  ;;  %v1421_v51 = vmul.f32 %v2525_v20, %v1305_v40 }
 0xbfd   : > { %v1406_v27 = vpop.permute.xlu0 %1405 }
 0xbfe   : > { %v1408_v54 = vmul.f32 %v2525_v20, %v1406_v27 }
 0xc00   : > { %1410 = vrot.lane.b32.xlu1 %v1408_v54, %s2575_s27 }
 0xc72   : > { %v1411_v21 = vpop.permute.xlu1 %1410 }
 0xc73   : > { %v1413_v26 = vadd.f32 %v1411_v21, %v1396_v45 }
 0xc75   : > { %2526 = vtanh.f32 %v1413_v26 }
 0xc82   : > { %v2527_v33 = vpop.eup %2526 }
 0xc83   : > { %1417 = vrot.lane.b32.xlu0 %v2527_v33, %s2576_s29  ;;  %v1747_v33 = vld [vmem:[#allocation2 + $0x38] sm:$0xff] }
 0xcf5   : > { %v1418_v56 = vpop.permute.xlu0 %1417 }
 0xcf6   : > { %v1420_v57 = vmul.f32 %v1418_v56, %v1415_v55 }
 0xcf8   : > { %v1422_v58 = vadd.f32 %v1421_v51, %v1420_v57 }
 0xcfa   : > { %1424 = vrot.lane.b32.xlu1 %v1422_v58, %s2576_s29 }
 0xd6c   : > { %v1425_v59 = vpop.permute.xlu1 %1424 }
 0xd6d   : > { %1428 = vst.msk [vmem:[#allocation3 + $0x20] sm:$0xff] %vm706_vm0, %v1425_v59  ;;  %2414 = vmatmul.mubr.msk.f32.vlgmr.msra.gmra.mxu1 %vm706_vm0, %v1425_v59 }
 0xd6e   : > { %2428 = vmatpush3.msra.mxu1 %v2739_v46  ;;  %2435 = vmatprep.mubr.msk.f32.mxu1 %vm2574_vm1, %v2572_v12  ;;  %v1513_v46 = vld [vmem:[#allocation2 + $0x28] sm:$0xff] }
 0xd6f   : > { %2429 = vmatprep.subr.mxu1 %v2572_v12 }
 0xd70   : > { %2430 = vmatpush3.msra.mxu1 %v2747_v47 }
 0xd71   : > { %2431 = vmatprep.subr.mxu1 %v2572_v12 }
 0xd72   : > { %2432 = vmatpush3.msra.mxu1 %v2756_v49 }
 0xd73   : > { %2433 = vmatprep.subr.mxu1 %v2572_v12 }
 0xd74   : > { %2434 = vmatpush3.msra.mxu1 %v2766_v50  ;;  %v1784_v28 = vld [vmem:[#allocation3 + $0x20] sm:$0xff] }
 0xe2d   : > { %v1508_v60 = vpop.f32.mrf.mxu1 }
 0xe2e   : > { %v1509_v61 = vadd.f32 %v2807_v63, %v1508_v60 }
 0xe2f   : > { %v2415_v62 = vpop.f32.mrf.mxu1 }
 0xe30   : > { %1522 = vrot.lane.b32.xlu0 %v1509_v61, %s2575_s27  ;;  %v1514_v0 = vadd.f32 %v1513_v46, %v1509_v61 }
 0xe32   : > { %v2245_v1 = vmul.f32 -1.442695, %v1514_v0 }
 0xe34   : > { %2528 = vpow2.f32 %v2245_v1 }
 0xe41   : > { %v2529_v2 = vpop.eup %2528 }
 0xe42   : > { %v1518_v47 = vadd.f32 1.0, %v2529_v2 }
 0xe44   : > { %2530 = vrcp.f32 %v1518_v47 }
 0xe51   : > { %v2531_v4 = vpop.eup %2530 }
 0xe52   : > { %v1532_v9 = vsub.f32 1.0, %v2531_v4  ;;  %v1538_v11 = vmul.f32 %v2531_v4, %v1422_v58 }
 0xea2   : > { %v1523_v5 = vpop.permute.xlu0 %1522 }
 0xea3   : > { %v1525_v49 = vmul.f32 %v2531_v4, %v1523_v5 }
 0xea5   : > { %1527 = vrot.lane.b32.xlu1 %v1525_v49, %s2575_s27 }
 0xf17   : > { %v1528_v12 = vpop.permute.xlu1 %1527 }
 0xf18   : > { %v1530_v50 = vadd.f32 %v1528_v12, %v1513_v46 }
 0xf1a   : > { %2532 = vtanh.f32 %v1530_v50 }
 0xf27   : > { %v2533_v7 = vpop.eup %2532 }
 0xf28   : > { %1534 = vrot.lane.b32.xlu0 %v2533_v7, %s2576_s29  ;;  %v2252_v7 = vld [vmem:[%s3007_s8] ss:$0 sm:$0xff] }
 0xf9a   : > { %v1535_v10 = vpop.permute.xlu0 %1534 }
 0xf9b   : > { %v1537_v13 = vmul.f32 %v1535_v10, %v1532_v9 }
 0xf9d   : > { %v1539_v14 = vadd.f32 %v1538_v11, %v1537_v13 }
 0xf9f   : > { %1541 = vrot.lane.b32.xlu1 %v1539_v14, %s2576_s29 }
0x1011   : > { %v1542_v15 = vpop.permute.xlu1 %1541 }
0x1012   : > { %1545 = vst.msk [vmem:[#allocation3 + $0x28] sm:$0xff] %vm706_vm0, %v1542_v15  ;;  %2425 = vmatmul.mubr.msk.f32.vlgmr.msra.gmra.mxu0 %vm706_vm0, %v1542_v15 }
0x1013   : > { %2439 = vmatpush3.msra.mxu0 %v1791_v6  ;;  %2446 = vmatprep.mubr.msk.f32.mxu0 %vm706_vm0, %v1780_v19 }
0x1014   : > { %2440 = vmatprep.subr.mxu0 %v1790_v18 }
0x1015   : > { %2441 = vmatpush3.msra.mxu0 %v1790_v18 }
0x1016   : > { %2442 = vmatprep.subr.mxu0 %v1789_v22 }
0x1017   : > { %2443 = vmatpush3.msra.mxu0 %v1789_v22 }
0x1018   : > { %2444 = vmatprep.subr.mxu0 %v1788_v23 }
0x1019   : > { %2445 = vmatpush3.msra.mxu0 %v1788_v23  ;;  %v1785_v29 = vld [vmem:[#allocation3 + $0x28] sm:$0xff] }
0x101a   : > { %2447 = vmatmul.mubr.msk.f32.vlgmr.msra.gmra.mxu0 %vm706_vm0, %v1781_v24 }
0x101b   : > { %2449 = vmatprep.mubr.msk.f32.mxu0 %vm706_vm0, %v1782_v25 }
0x101e   : > { %2450 = vmatmul.mubr.msk.f32.gmra.mxu0 %vm706_vm0, %v1783_v8 }
0x101f   : > { %2452 = vmatprep.mubr.msk.f32.mxu0 %vm706_vm0, %v1784_v28 }
0x1022   : > { %2453 = vmatmul.mubr.msk.f32.gmra.mxu0 %vm706_vm0, %v1785_v29 }
0x10d2   : > { %v1625_v30 = vpop.f32.mrf.mxu0 }
0x10d3   : > { %v1626_v31 = vadd.f32 %v2807_v63, %v1625_v30 }
0x10d4   : > { %v2426_v32 = vpop.f32.mrf.mxu0 }
0x10d5   : > { %1639 = vrot.lane.b32.xlu0 %v1626_v31, %s2575_s27  ;;  %v1631_v35 = vadd.f32 %v1630_v34, %v1626_v31 }
0x10d7   : > { %v2248_v36 = vmul.f32 -1.442695, %v1631_v35 }
0x10d9   : > { %2534 = vpow2.f32 %v2248_v36 }
0x10da   : > { %v2448_v49 = vpop.f32.mrf.mxu0 }
0x10dc   : > { %v1889_v12 = vpop.f32.mrf.mxu0 }
0x10dd   : > { %v1890_v11 = vadd.f32 %v2252_v7, %v1889_v12 }
0x10de   : > { %v2451_v50 = vpop.f32.mrf.mxu0 }
0x10df   : > { %v1905_v13 = vadd.f32 %v2451_v50, %v2252_v7 }
0x10e0   : > { %v1899_v6 = vpop.f32.mrf.mxu0 }
0x10e1   : > { %v1900_v9 = vadd.f32 %v2252_v7, %v1899_v6 }
0x10e2   : > { %v2454_v10 = vpop.f32.mrf.mxu0 }
0x10e3   : > { %v1936_v15 = vcombine.low %v1890_v11, %v1900_v9  ;;  %v1937_v22 = vcombine.high %v1890_v11, %v1900_v9  ;;  %v1915_v24 = vadd.f32 %v2454_v10, %v2252_v7 }
0x10e4   : > { %v1909_v18 = vpop.f32.mrf.mxu0 }
0x10e5   : > { %v1944_v28 = vrot.slane %v1936_v15, %v2700_v3  ;;  %v1910_v30 = vadd.f32 %v2252_v7, %v1909_v18  ;;  %v1951_v36 = vrot.slane %v1937_v22, %v2700_v3 }
0x10e6   : > { %v2535_v37 = vpop.eup %2534 }
0x10e7   : > { %v1635_v38 = vadd.f32 1.0, %v2535_v37 }
0x10e9   : > { %2536 = vrcp.f32 %v1635_v38 }
0x10f6   : > { %v2537_v39 = vpop.eup %2536 }
0x10f7   : > { %v1649_v45 = vsub.f32 1.0, %v2537_v39  ;;  %v1655_v52 = vmul.f32 %v2537_v39, %v1539_v14  ;;  %v1895_v14 = vadd.f32 %v2448_v49, %v2252_v7 }
0x10f9   : > { %v1952_v19 = vcombine.low %v1895_v14, %v1905_v13  ;;  %v1953_v8 = vcombine.high %v1895_v14, %v1905_v13 }
0x10fb   : > { %v1960_v35 = vrot.slane %v1952_v19, %v2700_v3 }
0x1147   : > { %v1640_v40 = vpop.permute.xlu0 %1639 }
0x1148   : > { %v1642_v41 = vmul.f32 %v2537_v39, %v1640_v40  ;;  %v1967_v39 = vrot.slane %v1953_v8, %v2700_v3  ;;  %v2000_v40 = vcombine.low %v1944_v28, %v1960_v35 }
0x114a   : > { %1644 = vrot.lane.b32.xlu1 %v1642_v41, %s2575_s27  ;;  %v2001_v41 = vcombine.high %v1944_v28, %v1960_v35 }
0x11bc   : > { %v1645_v42 = vpop.permute.xlu1 %1644 }
0x11bd   : > { %v1647_v43 = vadd.f32 %v1645_v42, %v1630_v34 }
0x11bf   : > { %2538 = vtanh.f32 %v1647_v43 }
0x11cc   : > { %v2539_v44 = vpop.eup %2538 }
0x11cd   : > { %1651 = vrot.lane.b32.xlu0 %v2539_v44, %s2576_s29 }
0x123f   : > { %v1652_v48 = vpop.permute.xlu0 %1651 }
0x1240   : > { %v1654_v53 = vmul.f32 %v1652_v48, %v1649_v45  ;;  %v2016_v48 = vcombine.low %v1951_v36, %v1967_v39 }
0x1242   : > { %v1656_v16 = vadd.f32 %v1655_v52, %v1654_v53  ;;  %v2017_v52 = vcombine.high %v1951_v36, %v1967_v39 }
0x1244   : > { %1658 = vrot.lane.b32.xlu1 %v1656_v16, %s2576_s29 }
0x12b6   : > { %v1659_v20 = vpop.permute.xlu1 %1658 }
0x12b7   : > { %1662 = vst.msk [vmem:[#allocation3 + $0x30] sm:$0xff] %vm706_vm0, %v1659_v20  ;;  %2436 = vmatmul.mubr.msk.f32.vlgmr.msra.gmra.mxu1 %vm706_vm0, %v1659_v20 }
0x12be   : > { %v1786_v27 = vld [vmem:[#allocation3 + $0x30] sm:$0xff] }
0x12bf   : > { %2455 = vmatprep.mubr.msk.f32.mxu0 %vm706_vm0, %v1786_v27 }
0x1377   : > { %v1742_v54 = vpop.f32.mrf.mxu1 }
0x1378   : > { %v1743_v21 = vadd.f32 %v2807_v63, %v1742_v54  ;;  %v2008_v54 = vrot.slane %v2000_v40, %v2706_v17 }
0x1379   : > { %v2437_v26 = vpop.f32.mrf.mxu1 }
0x137a   : > { %1756 = vrot.lane.b32.xlu0 %v1743_v21, %s2575_s27  ;;  %v1748_v55 = vadd.f32 %v1747_v33, %v1743_v21  ;;  %v2015_v21 = vrot.slane %v2001_v41, %v2706_v17  ;;  %v1928_v26 = vld [vmem:[%s2671_s28] sm:$0xff] }
0x137c   : > { %v2251_v56 = vmul.f32 -1.442695, %v1748_v55 }
0x137e   : > { %2540 = vpow2.f32 %v2251_v56 }
0x138b   : > { %v2541_v51 = vpop.eup %2540 }
0x138c   : > { %v1752_v57 = vadd.f32 1.0, %v2541_v51 }
0x138e   : > { %2542 = vrcp.f32 %v1752_v57  ;;  %v2024_v57 = vrot.slane %v2016_v48, %v2706_v17 }
0x139b   : > { %v2543_v58 = vpop.eup %2542 }
0x139c   : > { %v1766_v63 = vsub.f32 1.0, %v2543_v58  ;;  %v1772_v1 = vmul.f32 %v2543_v58, %v1656_v16 }
0x13ec   : > { %v1757_v59 = vpop.permute.xlu0 %1756 }
0x13ed   : > { %v1759_v60 = vmul.f32 %v2543_v58, %v1757_v59  ;;  %v2031_v58 = vrot.slane %v2017_v52, %v2706_v17  ;;  %v1930_v59 = vld [vmem:[%s2671_s28 + $0x10] sm:$0xff] }
0x13ef   : > { %1761 = vrot.lane.b32.xlu1 %v1759_v60, %s2575_s27  ;;  %v1931_v60 = vld [vmem:[%s2671_s28 + $0x18] sm:$0xff] }
0x1461   : > { %v1762_v61 = vpop.permute.xlu1 %1761 }
0x1462   : > { %v1764_v62 = vadd.f32 %v1762_v61, %v1747_v33  ;;  %v1929_v33 = vld [vmem:[%s2671_s28 + $0x8] sm:$0xff]  ;;  %v1932_v61 = vld [vmem:[%s2671_s28 + $0x20] sm:$0xff] }
0x1464   : > { %2544 = vtanh.f32 %v1764_v62  ;;  %v1933_v62 = vld [vmem:[%s2671_s28 + $0x28] sm:$0xff] }
0x1471   : > { %v2545_v46 = vpop.eup %2544 }
0x1472   : > { %1768 = vrot.lane.b32.xlu0 %v2545_v46, %s2576_s29  ;;  %v1934_v46 = vld [vmem:[%s2671_s28 + $0x30] sm:$0xff] }
0x14e4   : > { %v1769_v0 = vpop.permute.xlu0 %1768 }
0x14e5   : > { %v1771_v2 = vmul.f32 %v1769_v0, %v1766_v63  ;;  %v1935_v63 = vld [vmem:[%s2671_s28 + $0x38] sm:$0xff] }
0x14e7   : > { %v1773_v47 = vadd.f32 %v1772_v1, %v1771_v2 }
0x14e9   : > { %1775 = vrot.lane.b32.xlu1 %v1773_v47, %s2576_s29 }
0x155b   : > { %v1776_v4 = vpop.permute.xlu1 %1775 }
0x155c   : > { %1779 = vst.msk [vmem:[#allocation3 + $0x38] sm:$0xff] %vm706_vm0, %v1776_v4 }
0x1563   : > { %v1787_v5 = vld [vmem:[#allocation3 + $0x38] sm:$0xff] }
0x1564   : > { %2456 = vmatmul.mubr.msk.f32.gmra.mxu0 %vm706_vm0, %v1787_v5 }
0x1624   : > { %v2457_v23 = vpop.f32.mrf.mxu0 }
0x1625   : > { %v1925_v25 = vadd.f32 %v2457_v23, %v2252_v7 }
0x1626   : > { %v1919_v29 = vpop.f32.mrf.mxu0 }
0x1627   : > { %v1984_v31 = vcombine.low %v1915_v24, %v1925_v25  ;;  %v1985_v32 = vcombine.high %v1915_v24, %v1925_v25  ;;  %v1920_v34 = vadd.f32 %v2252_v7, %v1919_v29 }
0x1629   : > { %v1968_v37 = vcombine.low %v1910_v30, %v1920_v34  ;;  %v1969_v38 = vcombine.high %v1910_v30, %v1920_v34  ;;  %v1992_v42 = vrot.slane %v1984_v31, %v2700_v3  ;;  %v1999_v43 = vrot.slane %v1985_v32, %v2700_v3 }
0x162b   : > { %v1976_v44 = vrot.slane %v1968_v37, %v2700_v3  ;;  %v1983_v45 = vrot.slane %v1969_v38, %v2700_v3 }
0x162d   : > { %v2032_v53 = vcombine.low %v1976_v44, %v1992_v42  ;;  %v2033_v16 = vcombine.high %v1976_v44, %v1992_v42  ;;  %v2048_v20 = vcombine.low %v1983_v45, %v1999_v43  ;;  %v2049_v27 = vcombine.high %v1983_v45, %v1999_v43 }
0x162f   : > { %v2040_v3 = vrot.slane %v2032_v53, %v2706_v17  ;;  %v2047_v55 = vrot.slane %v2033_v16, %v2706_v17  ;;  %v2056_v56 = vrot.slane %v2048_v20, %v2706_v17  ;;  %v2063_v51 = vrot.slane %v2049_v27, %v2706_v17 }
0x1631   : > { %v2064_v0 = vcombine.low %v2008_v54, %v2040_v3  ;;  %v2065_v1 = vcombine.high %v2008_v54, %v2040_v3  ;;  %v2066_v2 = vcombine.low %v2015_v21, %v2047_v55  ;;  %v2067_v47 = vcombine.high %v2015_v21, %v2047_v55 }
0x1632   : > { %v2068_v4 = vcombine.low %v2024_v57, %v2056_v56  ;;  %v2069_v5 = vcombine.high %v2024_v57, %v2056_v56  ;;  %v2070_v49 = vcombine.low %v2031_v58, %v2063_v51  ;;  %v2071_v12 = vcombine.high %v2031_v58, %v2063_v51 }
0x1633   : > { %v2072_v50 = vadd.f32 %v2064_v0, %v1928_v26  ;;  %v2073_v17 = vadd.f32 %v2065_v1, %v1929_v33  ;;  %v2074_v6 = vadd.f32 %v2066_v2, %v1930_v59  ;;  %v2075_v7 = vadd.f32 %v2067_v47, %v1931_v60 }
0x1634   : > { %v2076_v9 = vadd.f32 %v2068_v4, %v1932_v61  ;;  %v2077_v10 = vadd.f32 %v2069_v5, %v1933_v62  ;;  %v2078_v11 = vadd.f32 %v2070_v49, %v1934_v46  ;;  %v2079_v13 = vadd.f32 %v2071_v12, %v1935_v63 }
0x1635   : > { %2080 = vst.msk [vmem:[%s434_s25] sm:$0xff] %vm706_vm0, %v2072_v50  ;;  %2081 = vst.msk [vmem:[%s434_s25 + $0x8] sm:$0xff] %vm706_vm0, %v2073_v17 }
0x1636   : > { %2082 = vst.msk [vmem:[%s434_s25 + $0x10] sm:$0xff] %vm706_vm0, %v2074_v6  ;;  %2083 = vst.msk [vmem:[%s434_s25 + $0x18] sm:$0xff] %vm706_vm0, %v2075_v7 }
0x1637   : > { %2084 = vst.msk [vmem:[%s434_s25 + $0x20] sm:$0xff] %vm706_vm0, %v2076_v9  ;;  %2085 = vst.msk [vmem:[%s434_s25 + $0x28] sm:$0xff] %vm706_vm0, %v2077_v10 }
0x1638   : > { %2086 = vst.msk [vmem:[%s434_s25 + $0x30] sm:$0xff] %vm706_vm0, %v2078_v11  ;;  %2087 = vst.msk [vmem:[%s434_s25 + $0x38] sm:$0xff] %vm706_vm0, %v2079_v13 }
0x1639 PF: > { %s19_s11 = sadd.s32 1, %s2568_s11   ;;  %s3009_s30 = smov %s2564_s10 }
0x163a   : > { %p16_p5 = scmp.ge.s32.totalorder %s19_s11, 4   ;;  %s3010_s10 = smov %s3012_s12 }
0x163c   :  { %18 = sbr.rel (!%p16_p5) target bundleno = 2 (0x2), region = 106 }

</bundles_post_ra>
